<compile_context>
chip_gen: v6e
topology: v6e:2x2x1
jax: 0.10.0
libtpu: 0.0.40
codegen_flags: <defaults>
</compile_context>

<pallas_src>
import math
from functools import partial

import jax
import jax.numpy as jnp
from jax import lax
from jax.experimental import pallas as pl
from jax.experimental.pallas import tpu as pltpu

# ---------------- config (small, consistent with the module) -----------------
CFG = dict(
    task_name="long_term_forecast",
    seq_len=32, pred_len=8,
    enc_in=4,            # n_vars == number of graph nodes
    d_model=32, n_heads=4, d_ff=64,
    e_layers=2,
    cls_len=1,
    knn=2,
    embed_dim=8,
    dropout=0.0,         # eval mode: all Dropout layers are identity
    activation="gelu",
)
PATCH_LEN, STRIDE, PADDING = 16, 8, 8
GC_ALPHA = 1.0
GAT_ALPHA = 0.2
LN_EPS = 1e-5

F32 = jnp.float32


# ============================ the single fused kernel =========================
def _sageformer_kernel(
    x_ref, scale_ref, shift_ref,
    wqkv_ref, bqkv_ref, wo_ref, bo_ref,
    ln1g_ref, ln1b_ref, w1_ref, b1_ref, w2_ref, b2_ref, ln2g_ref, ln2b_ref,
    gatw_ref, gata1_ref, gata2_ref, adj_ref,
    encg_ref, encb_ref, headw_ref, headb_ref,
    out_ref,
    *, n_layers, n_gat, n_heads, n_vars, cls_len, tokens, patch_num,
    batches, eps, gat_alpha):
    """GraphEncoder (attn + FFN + GAT + shared LN) + flatten head + de-norm."""
    x = x_ref[0]                                   # (Rg, D); Rg = sequences * tokens
    Rg, D = x.shape
    H = n_heads
    E = D // H
    L = tokens
    P = patch_num
    n_seq = batches * n_vars
    qk_scale = 1.0 / math.sqrt(E)
    NEG = -1e30                                    # finite mask (no -inf NaN risk)

    # ---- helpers -------------------------------------------------------------
    def layer_norm(v, g, b):
        mu = jnp.mean(v, axis=-1, keepdims=True)
        var = jnp.mean(jnp.square(v - mu), axis=-1, keepdims=True)
        return (v - mu) * lax.rsqrt(var + eps) * g + b

    def gelu_exact(v):
        # GELU(x) = 0.5 x (1 + erf(x/sqrt(2))); erf via A&S 7.1.26, |err| < 1.5e-7.
        z = v * 0.7071067811865476
        az = jnp.abs(z)
        t = 1.0 / (1.0 + 0.3275911 * az)
        poly = ((((1.061405429 * t - 1.453152027) * t + 1.421413741) * t
                 - 0.284496736) * t + 0.254829592) * t
        erf_abs = 1.0 - poly * jnp.exp(-az * az)
        erf_z = jnp.where(z >= 0, erf_abs, -erf_abs)
        return 0.5 * v * (1.0 + erf_z)

    # Block-diagonal attention mask: tokens attend only within their own length-L
    # sequence.  Sequence ids built from summed step functions (no vector int divide).
    r_col = lax.broadcasted_iota(jnp.int32, (Rg, 1), 0)
    r_row = lax.broadcasted_iota(jnp.int32, (1, Rg), 1)
    seq_col = jnp.zeros((Rg, 1), jnp.int32)
    seq_row = jnp.zeros((1, Rg), jnp.int32)
    for si in range(1, n_seq):
        seq_col = seq_col + (r_col >= si * L).astype(jnp.int32)
        seq_row = seq_row + (r_row >= si * L).astype(jnp.int32)
    same_seq = seq_col == seq_row                   # (Rg, Rg)

    # One-hot row-selection iotas (static; consumed by gather/scatter matmuls).
    gat_node = lax.broadcasted_iota(jnp.int32, (n_vars, Rg), 0)
    gat_col = lax.broadcasted_iota(jnp.int32, (n_vars, Rg), 1)
    gat_row = lax.broadcasted_iota(jnp.int32, (Rg, n_vars), 0)
    gat_nodeT = lax.broadcasted_iota(jnp.int32, (Rg, n_vars), 1)
    head_seq = lax.broadcasted_iota(jnp.int32, (n_seq, Rg), 0)
    head_col = lax.broadcasted_iota(jnp.int32, (n_seq, Rg), 1)

    adj = adj_ref[...]                              # (V, V)

    # ---- GraphEncoder --------------------------------------------------------
    for layer in range(n_layers):
        # multi-head self-attention with fused QKV projection
        qkv = jnp.dot(x, wqkv_ref[layer], preferred_element_type=F32) + bqkv_ref[layer]
        head_outs = []
        for h in range(H):
            qh = qkv[:, h * E:(h + 1) * E]
            kh = qkv[:, D + h * E:D + (h + 1) * E]
            vh = qkv[:, 2 * D + h * E:2 * D + (h + 1) * E]
            s = lax.dot_general(qh, kh, (((1,), (1,)), ((), ())),
                                preferred_element_type=F32) * qk_scale
            s = jnp.where(same_seq, s, NEG)
            s = s - jnp.max(s, axis=-1, keepdims=True)
            pr = jnp.exp(s)
            pr = pr / jnp.sum(pr, axis=-1, keepdims=True)      # exact normalization
            head_outs.append(jnp.dot(pr, vh, preferred_element_type=F32))
        attn = jnp.concatenate(head_outs, axis=-1)             # (Rg, D) lane concat
        attn = jnp.dot(attn, wo_ref[layer], preferred_element_type=F32) + bo_ref[layer]
        xn = layer_norm(x + attn, ln1g_ref[layer], ln1b_ref[layer])

        # position-wise FFN (1x1 convs == matmuls), exact GELU, residual, norm2
        y = jnp.dot(xn, w1_ref[layer], preferred_element_type=F32) + b1_ref[layer]
        y = gelu_exact(y)
        y = jnp.dot(y, w2_ref[layer], preferred_element_type=F32) + b2_ref[layer]
        x = layer_norm(xn + y, ln2g_ref[layer], ln2b_ref[layer])

        # GAT over the cls token of every variable (graph node), residual fused
        if layer < n_gat:
            W = gatw_ref[layer]                                # (D, D)
            a1 = gata1_ref[layer]                              # (1, D)
            a2 = gata2_ref[layer]                              # (1, D)
            for b in range(batches):
                for p_ in range(cls_len):
                    # one-hot selection of the cls row of each var (row stride L)
                    sel = (gat_col ==
                           (b * n_vars + gat_node) * L + p_).astype(F32)   # (V, Rg)
                    selT = (gat_row ==
                            (b * n_vars + gat_nodeT) * L + p_).astype(F32)  # (Rg, V)
                    g = jnp.dot(sel, x, preferred_element_type=F32)         # (V, D)
                    hm = jnp.dot(g, W, preferred_element_type=F32)          # (V, D)
                    f1 = lax.dot_general(hm, a1, (((1,), (1,)), ((), ())),
                                         preferred_element_type=F32)        # (V, 1)
                    f2 = lax.dot_general(a2, hm, (((1,), (1,)), ((), ())),
                                         preferred_element_type=F32)        # (1, V)
                    e = f1 + f2
                    e = jnp.where(e > 0, e, gat_alpha * e)                   # LeakyReLU
                    e = jnp.where(adj > 0, e, NEG)
                    e = e - jnp.max(e, axis=-1, keepdims=True)
                    pe = jnp.exp(e)
                    att = pe / jnp.sum(pe, axis=-1, keepdims=True)
                    gout = jnp.dot(att, hm, preferred_element_type=F32) + g  # +residual
                    # scatter the updated cls rows back into the slab (delta update)
                    x = x + jnp.dot(selT, gout - g, preferred_element_type=F32)

        # shared GraphEncoder LayerNorm
        x = layer_norm(x, encg_ref[...], encb_ref[...])

    # ---- flatten head + de-normalization -------------------------------------
    # PyTorch flattens (D, P) -> nf index d*P + p; the head weight was re-laid out to
    # (P, D, pred) outside, so the kernel just accumulates over the patch index p.
    yhat = headb_ref[...]                                       # (1, pred)
    for p_ in range(P):
        sel = (head_col == head_seq * L + cls_len + p_).astype(F32)   # (n_seq, Rg)
        xp = jnp.dot(sel, x, preferred_element_type=F32)               # (n_seq, D)
        yhat = yhat + jnp.dot(xp, headw_ref[p_], preferred_element_type=F32)
    out_ref[0] = yhat * scale_ref[0] + shift_ref[0]


# ============================ generation-aware grid ===========================
def _two_tensorcores():
    """True only on chips with 2 TensorCores (v7x); v5e/v6e have one."""
    try:
        kind = jax.devices()[0].device_kind.lower()
    except Exception:
        return False
    return ("v7" in kind) or ("7x" in kind)


def _encoder_groups(batch):
    return 2 if (_two_tensorcores() and batch % 2 == 0) else 1


# ================================ model glue ==================================
def sinusoidal_pos_emb(max_len, d_model):
    pos = jnp.arange(max_len, dtype=F32)[:, None]
    div = jnp.exp(jnp.arange(0, d_model, 2, dtype=F32) * (-math.log(10000.0) / d_model))
    pe = jnp.zeros((max_len, d_model), F32)
    pe = pe.at[:, 0::2].set(jnp.sin(pos * div))
    pe = pe.at[:, 1::2].set(jnp.cos(pos * div))
    return pe


def patch_embedding(x_bvs, params):
    """x_bvs: (B, n_vars, seq_len) -> ((B*n_vars, num_patches, d_model), n_vars)."""
    B, V, S = x_bvs.shape
    # ReplicationPad1d((0, PADDING))
    xpad = jnp.concatenate(
        [x_bvs, jnp.repeat(x_bvs[..., -1:], PADDING, axis=-1)], axis=-1)
    num_patches = (S + PADDING - PATCH_LEN) // STRIDE + 1
    idx = jnp.arange(num_patches)[:, None] * STRIDE + jnp.arange(PATCH_LEN)[None, :]
    patches = xpad[..., idx]                               # (B, V, P, patch_len)
    emb = jnp.einsum("bvpk,kd->bvpd", patches, params["pe_w"])   # value embedding
    emb = emb.reshape(B * V, num_patches, -1)
    emb = emb + params["pos_emb"][:num_patches][None]            # positional embedding
    return emb, V


def graph_constructor_fn(params, noise_key):
    """adj = relu(v1 v2^T - v2 v1^T), top-k masked.  Tiny -> plain jnp."""
    emb = params["node_embs"]
    nv1 = jax.nn.gelu(GC_ALPHA * (emb @ params["gl_w1"] + params["gl_b1"]),
                      approximate=False)
    nv2 = jax.nn.gelu(GC_ALPHA * (emb @ params["gl_w2"] + params["gl_b2"]),
                      approximate=False)
    adj = jax.nn.relu(nv1 @ nv2.T - nv2 @ nv1.T)
    n = emb.shape[0]
    if CFG["knn"] < n:
        # TODO(synk): tie-break noise uses jax.random instead of the torch RNG stream.
        noise = jax.random.uniform(noise_key, adj.shape, F32) * 0.01
        _, idx = lax.top_k(adj + noise, CFG["knn"])
        mask = jnp.zeros((n, n), F32).at[jnp.arange(n)[:, None], idx].set(1.0)
        adj = adj * mask
    return adj


def _prepare(params, x_enc, gl_key):
    """Instance norm + patching + cls concat + adjacency (all tiny, plain jnp)."""
    B, S, V = x_enc.shape
    D = CFG["d_model"]
    cls_len = CFG["cls_len"]
    means = jnp.mean(x_enc, axis=1, keepdims=True)
    xc = x_enc - means
    stdev = jnp.sqrt(jnp.var(xc, axis=1, keepdims=True) + 1e-5)   # unbiased=False
    xs = xc / stdev
    xbv = jnp.transpose(xs, (0, 2, 1))                            # (B, V, S)
    emb, n_vars = patch_embedding(xbv, params)                    # (B*V, P, D)
    P = emb.shape[1]
    cls = jnp.broadcast_to(params["cls_token"], (emb.shape[0], cls_len, D))
    enc = jnp.concatenate([cls, emb], axis=1)                     # (B*V, cls+P, D)
    adj = graph_constructor_fn(params, gl_key)
    scale = stdev[:, 0, :].reshape(B * n_vars, 1)
    shift = means[:, 0, :].reshape(B * n_vars, 1)
    return enc, adj, scale, shift, n_vars, P


def forecast(params, x_enc, gl_key):
    B = x_enc.shape[0]
    D = CFG["d_model"]
    cls_len = CFG["cls_len"]
    pred = CFG["pred_len"]
    n_layers = CFG["e_layers"]
    n_gat = n_layers - 1

    enc, adj, scale, shift, n_vars, P = _prepare(params, x_enc, gl_key)
    L = cls_len + P

    groups = _encoder_groups(B)            # 2 only on 2-TensorCore chips (v7x)
    bpg = B // groups
    Rg = bpg * n_vars * L
    Sg = bpg * n_vars

    x_g = enc.reshape(groups, Rg, D)
    scale_g = scale.reshape(groups, Sg, 1)
    shift_g = shift.reshape(groups, Sg, 1)

    # head weight: PyTorch nf index d*P + p  ->  (P, D, pred) layout for the kernel
    head_w3 = params["head_w"].reshape(D, P, pred).transpose(1, 0, 2)
    head_b = params["head_b"].reshape(1, pred)

    lw = params["layers"]
    operands = [
        x_g, scale_g, shift_g,
        lw["wqkv"], lw["bqkv"], lw["wo"], lw["bo"],
        lw["ln1_g"], lw["ln1_b"], lw["w1"], lw["b1"], lw["w2"], lw["b2"],
        lw["ln2_g"], lw["ln2_b"],
        params["gat_w"], params["gat_a1"], params["gat_a2"], adj,
        params["enc_norm_g"], params["enc_norm_b"],
        head_w3, head_b,
    ]

    def rep_spec(a):          # weights: full array resident, constant index map
        zeros = (0,) * a.ndim
        return pl.BlockSpec(a.shape, lambda i: zeros)

    def grp_spec(a):          # per-group blocks (activations / scale / shift / out)
        return pl.BlockSpec((1,) + a.shape[1:], lambda i: (i, 0, 0))

    in_specs = [grp_spec(x_g), grp_spec(scale_g), grp_spec(shift_g)]
    in_specs += [rep_spec(a) for a in operands[3:]]

    kernel = partial(
        _sageformer_kernel,
        n_layers=n_layers, n_gat=n_gat, n_heads=CFG["n_heads"],
        n_vars=n_vars, cls_len=cls_len, tokens=L, patch_num=P,
        batches=bpg, eps=LN_EPS, gat_alpha=GAT_ALPHA)

    out = pl.pallas_call(
        kernel,
        grid=(groups,),
        in_specs=in_specs,
        out_specs=pl.BlockSpec((1, Sg, pred), lambda i: (i, 0, 0)),
        out_shape=jax.ShapeDtypeStruct((groups, Sg, pred), F32),
        compiler_params=pltpu.CompilerParams(dimension_semantics=("parallel",)),
    )(*operands)

    dec = out.reshape(B, n_vars, pred).transpose(0, 2, 1)        # (B, pred, V)
    return dec[:, -CFG["pred_len"]:, :]


def forward(params, x_enc, x_mark_enc, x_dec, x_mark_dec, gl_key, mask=None):
    # task_name contains 'forecast' -> forecast path only
    return forecast(params, x_enc, gl_key)


# ---------------------- pure-jnp reference (self-check) -----------------------
def _layer_norm_ref(v, g, b, eps=LN_EPS):
    mu = jnp.mean(v, axis=-1, keepdims=True)
    var = jnp.mean(jnp.square(v - mu), axis=-1, keepdims=True)
    return (v - mu) * lax.rsqrt(var + eps) * g + b


def forecast_reference(params, x_enc, gl_key):
    B = x_enc.shape[0]
    D = CFG["d_model"]
    cls_len = CFG["cls_len"]
    pred = CFG["pred_len"]
    H = CFG["n_heads"]
    E = D // H
    n_layers = CFG["e_layers"]
    n_gat = n_layers - 1

    enc, adj, scale, shift, n_vars, P = _prepare(params, x_enc, gl_key)
    Bx, L, _ = enc.shape
    lw = params["layers"]
    x = enc
    for layer in range(n_layers):
        qkv = jnp.einsum("bld,de->ble", x, lw["wqkv"][layer]) + lw["bqkv"][layer]
        q = qkv[..., :D].reshape(Bx, L, H, E)
        k = qkv[..., D:2 * D].reshape(Bx, L, H, E)
        v = qkv[..., 2 * D:].reshape(Bx, L, H, E)
        s = jnp.einsum("blhe,bmhe->bhlm", q, k) / math.sqrt(E)
        pr = jax.nn.softmax(s, axis=-1)
        o = jnp.einsum("bhlm,bmhe->blhe", pr, v).reshape(Bx, L, D)
        o = jnp.einsum("bld,de->ble", o, lw["wo"][layer]) + lw["bo"][layer]
        x = _layer_norm_ref(x + o, lw["ln1_g"][layer], lw["ln1_b"][layer])
        y = jnp.einsum("bld,df->blf", x, lw["w1"][layer]) + lw["b1"][layer]
        y = jax.nn.gelu(y, approximate=False)
        y = jnp.einsum("blf,fd->bld", y, lw["w2"][layer]) + lw["b2"][layer]
        x = _layer_norm_ref(x + y, lw["ln2_g"][layer], lw["ln2_b"][layer])
        if layer < n_gat:
            g = x[:, :cls_len]
            g = g.reshape(B, n_vars, cls_len, D).transpose(0, 2, 1, 3)
            g = g.reshape(B * cls_len, n_vars, D)
            W = params["gat_w"][layer]
            a1 = params["gat_a1"][layer][0]
            a2 = params["gat_a2"][layer][0]
            h = jnp.einsum("bnd,de->bne", g, W)
            e = (jnp.einsum("bnd,d->bn", h, a1)[:, :, None]
                 + jnp.einsum("bnd,d->bn", h, a2)[:, None, :])
            e = jnp.where(e > 0, e, GAT_ALPHA * e)
            e = jnp.where(adj[None] > 0, e, -1e30)
            att = jax.nn.softmax(e, axis=-1)
            gout = jnp.einsum("bnm,bmd->bnd", att, h) + g
            gout = gout.reshape(B, cls_len, n_vars, D).transpose(0, 2, 1, 3)
            gout = gout.reshape(Bx, cls_len, D)
            x = jnp.concatenate([gout, x[:, cls_len:]], axis=1)
        x = _layer_norm_ref(x, params["enc_norm_g"], params["enc_norm_b"])
    lastP = x[:, -P:, :]
    flat = lastP.transpose(0, 2, 1).reshape(Bx, D * P)
    y = flat @ params["head_w"] + params["head_b"]
    y = y * scale + shift
    dec = y.reshape(B, n_vars, pred).transpose(0, 2, 1)
    return dec[:, -CFG["pred_len"]:, :]


# ============================== parameter init ================================
def init_params(key):
    d, dff = CFG["d_model"], CFG["d_ff"]
    V, ed = CFG["enc_in"], CFG["embed_dim"]
    pred = CFG["pred_len"]
    n_layers = CFG["e_layers"]
    n_gat = max(n_layers - 1, 1)
    patch_num = int((CFG["seq_len"] - PATCH_LEN) / STRIDE + 2)
    ks = iter(jax.random.split(key, 64))

    def nrm(shape, scl=0.05):
        return (scl * jax.random.normal(next(ks), shape)).astype(F32)

    p = {}
    p["pe_w"] = nrm((PATCH_LEN, d))                       # value embedding (no bias)
    p["pos_emb"] = sinusoidal_pos_emb(64, d)
    p["cls_token"] = nrm((1, CFG["cls_len"], d), 1.0)

    # encoder layers stacked along a leading layer axis (VMEM resident in-kernel)
    p["layers"] = dict(
        wqkv=nrm((n_layers, d, 3 * d)), bqkv=jnp.zeros((n_layers, 1, 3 * d), F32),
        wo=nrm((n_layers, d, d)), bo=jnp.zeros((n_layers, 1, d), F32),
        ln1_g=jnp.ones((n_layers, 1, d), F32), ln1_b=jnp.zeros((n_layers, 1, d), F32),
        w1=nrm((n_layers, d, dff)), b1=jnp.zeros((n_layers, 1, dff), F32),
        w2=nrm((n_layers, dff, d)), b2=jnp.zeros((n_layers, 1, d), F32),
        ln2_g=jnp.ones((n_layers, 1, d), F32), ln2_b=jnp.zeros((n_layers, 1, d), F32),
    )

    # GAT layers (e_layers-1 of them); attention vector 'a' split into row halves
    gat_a = nrm((n_gat, 2 * d, 1), 0.5)
    p["gat_w"] = nrm((n_gat, d, d))
    p["gat_a1"] = jnp.transpose(gat_a[:, :d, :], (0, 2, 1))       # (n_gat, 1, d)
    p["gat_a2"] = jnp.transpose(gat_a[:, d:, :], (0, 2, 1))       # (n_gat, 1, d)

    p["enc_norm_g"] = jnp.ones((1, d), F32)
    p["enc_norm_b"] = jnp.zeros((1, d), F32)

    # graph-learning params: deterministic init giving a cyclic adjacency so every GAT
    # softmax row has at least one unmasked (adj > 0) entry.
    p["node_embs"] = jnp.eye(V, ed, dtype=F32)
    p["gl_w1"] = jnp.eye(ed, dtype=F32)
    p["gl_b1"] = jnp.zeros((ed,), F32)
    w2 = jnp.zeros((ed, ed), F32)
    for i in range(V):
        w2 = w2.at[i, (i + 1) % V].set(1.0)
    p["gl_w2"] = w2
    p["gl_b2"] = jnp.zeros((ed,), F32)

    p["head_w"] = nrm((d * patch_num, pred))
    p["head_b"] = jnp.zeros((pred,), F32)
    return p


# ==================================== main ====================================
if __name__ == "__main__":
    key = jax.random.PRNGKey(0)
    pkey, xkey, gkey = jax.random.split(key, 3)
    params = init_params(pkey)

    B = 2
    x_enc = jax.random.normal(xkey, (B, CFG["seq_len"], CFG["enc_in"]), F32)
    x_mark_enc = jnp.zeros((B, CFG["seq_len"], 4), F32)   # unused on forecast path
    x_dec = jnp.zeros((B, CFG["pred_len"], CFG["enc_in"]), F32)
    x_mark_dec = jnp.zeros((B, CFG["pred_len"], 4), F32)

    # TODO(synk): Dropout layers are identity here (eval mode / rate 0).
    out = jax.jit(forward)(params, x_enc, x_mark_enc, x_dec, x_mark_dec, gkey)
    out = jax.block_until_ready(out)

    assert out.shape == (B, CFG["pred_len"], CFG["enc_in"]), out.shape
    assert bool(jnp.all(jnp.isfinite(out)))

    # structural self-check of the fused kernel against a pure-jnp reference
    ref = jax.block_until_ready(jax.jit(forecast_reference)(params, x_enc, gkey))
    max_err = float(jnp.max(jnp.abs(out - ref)))
    assert max_err < 0.1, f"kernel/reference mismatch: max abs err = {max_err}"

    print("KERNEL_OK")
</pallas_src>

<mosaic_0001>
module attributes {stable_mosaic.version = 11 : i64} {
  func.func @_sageformer_kernel(%arg0: i32, %arg1: memref<1x40x32xf32, #tpu.memory_space<vmem>>, %arg2: memref<1x8x1xf32, #tpu.memory_space<vmem>>, %arg3: memref<1x8x1xf32, #tpu.memory_space<vmem>>, %arg4: memref<2x32x96xf32, #tpu.memory_space<vmem>>, %arg5: memref<2x1x96xf32, #tpu.memory_space<vmem>>, %arg6: memref<2x32x32xf32, #tpu.memory_space<vmem>>, %arg7: memref<2x1x32xf32, #tpu.memory_space<vmem>>, %arg8: memref<2x1x32xf32, #tpu.memory_space<vmem>>, %arg9: memref<2x1x32xf32, #tpu.memory_space<vmem>>, %arg10: memref<2x32x64xf32, #tpu.memory_space<vmem>>, %arg11: memref<2x1x64xf32, #tpu.memory_space<vmem>>, %arg12: memref<2x64x32xf32, #tpu.memory_space<vmem>>, %arg13: memref<2x1x32xf32, #tpu.memory_space<vmem>>, %arg14: memref<2x1x32xf32, #tpu.memory_space<vmem>>, %arg15: memref<2x1x32xf32, #tpu.memory_space<vmem>>, %arg16: memref<1x32x32xf32, #tpu.memory_space<vmem>>, %arg17: memref<1x1x32xf32, #tpu.memory_space<vmem>>, %arg18: memref<1x1x32xf32, #tpu.memory_space<vmem>>, %arg19: memref<4x4xf32, #tpu.memory_space<vmem>>, %arg20: memref<1x32xf32, #tpu.memory_space<vmem>>, %arg21: memref<1x32xf32, #tpu.memory_space<vmem>>, %arg22: memref<4x32x8xf32, #tpu.memory_space<vmem>>, %arg23: memref<1x8xf32, #tpu.memory_space<vmem>>, %arg24: memref<1x8x8xf32, #tpu.memory_space<vmem>>) attributes {dimension_semantics = [#tpu.dimension_semantics<parallel>], iteration_bounds = array<i64: 1>, scalar_prefetch = 0 : i64, scratch_operands = 0 : i64, tpu.core_type = #tpu.core_type<tc>, window_params = [{transform_indices = @transform_0, window_bounds = array<i64: 1, 40, 32>}, {transform_indices = @transform_1, window_bounds = array<i64: 1, 8, 1>}, {transform_indices = @transform_2, window_bounds = array<i64: 1, 8, 1>}, {pipeline_mode = #tpu.pipeline_mode<synchronous>, transform_indices = @transform_3, window_bounds = array<i64: 2, 32, 96>}, {pipeline_mode = #tpu.pipeline_mode<synchronous>, transform_indices = @transform_4, window_bounds = array<i64: 2, 1, 96>}, {pipeline_mode = #tpu.pipeline_mode<synchronous>, transform_indices = @transform_5, window_bounds = array<i64: 2, 32, 32>}, {pipeline_mode = #tpu.pipeline_mode<synchronous>, transform_indices = @transform_6, window_bounds = array<i64: 2, 1, 32>}, {pipeline_mode = #tpu.pipeline_mode<synchronous>, transform_indices = @transform_7, window_bounds = array<i64: 2, 1, 32>}, {pipeline_mode = #tpu.pipeline_mode<synchronous>, transform_indices = @transform_8, window_bounds = array<i64: 2, 1, 32>}, {pipeline_mode = #tpu.pipeline_mode<synchronous>, transform_indices = @transform_9, window_bounds = array<i64: 2, 32, 64>}, {pipeline_mode = #tpu.pipeline_mode<synchronous>, transform_indices = @transform_10, window_bounds = array<i64: 2, 1, 64>}, {pipeline_mode = #tpu.pipeline_mode<synchronous>, transform_indices = @transform_11, window_bounds = array<i64: 2, 64, 32>}, {pipeline_mode = #tpu.pipeline_mode<synchronous>, transform_indices = @transform_12, window_bounds = array<i64: 2, 1, 32>}, {pipeline_mode = #tpu.pipeline_mode<synchronous>, transform_indices = @transform_13, window_bounds = array<i64: 2, 1, 32>}, {pipeline_mode = #tpu.pipeline_mode<synchronous>, transform_indices = @transform_14, window_bounds = array<i64: 2, 1, 32>}, {pipeline_mode = #tpu.pipeline_mode<synchronous>, transform_indices = @transform_15, window_bounds = array<i64: 1, 32, 32>}, {pipeline_mode = #tpu.pipeline_mode<synchronous>, transform_indices = @transform_16, window_bounds = array<i64: 1, 1, 32>}, {pipeline_mode = #tpu.pipeline_mode<synchronous>, transform_indices = @transform_17, window_bounds = array<i64: 1, 1, 32>}, {pipeline_mode = #tpu.pipeline_mode<synchronous>, transform_indices = @transform_18, window_bounds = array<i64: 4, 4>}, {pipeline_mode = #tpu.pipeline_mode<synchronous>, transform_indices = @transform_19, window_bounds = array<i64: 1, 32>}, {pipeline_mode = #tpu.pipeline_mode<synchronous>, transform_indices = @transform_20, window_bounds = array<i64: 1, 32>}, {pipeline_mode = #tpu.pipeline_mode<synchronous>, transform_indices = @transform_21, window_bounds = array<i64: 4, 32, 8>}, {pipeline_mode = #tpu.pipeline_mode<synchronous>, transform_indices = @transform_22, window_bounds = array<i64: 1, 8>}, {transform_indices = @transform_23, window_bounds = array<i64: 1, 8, 8>}]} {
    %c0 = arith.constant 0 : index
    %c0_0 = arith.constant 0 : index
    %c0_1 = arith.constant 0 : index
    %0 = vector.load %arg1[%c0, %c0_0, %c0_1] : memref<1x40x32xf32, #tpu.memory_space<vmem>>, vector<1x40x32xf32>
    %1 = vector.shape_cast %0 : vector<1x40x32xf32> to vector<40x32xf32>
    %2 = tpu.iota {dimensions = array<i32: 0>} : vector<40x1xi32>
    %3 = tpu.iota {dimensions = array<i32: 1>} : vector<1x40xi32>
    %c0_i32 = arith.constant 0 : i32
    %4 = vector.broadcast %c0_i32 : i32 to vector<40x1xi32>
    %c0_i32_2 = arith.constant 0 : i32
    %5 = vector.broadcast %c0_i32_2 : i32 to vector<1x40xi32>
    %c5_i32 = arith.constant 5 : i32
    %6 = vector.broadcast %c5_i32 : i32 to vector<40x1xi32>
    %7 = arith.cmpi sge, %2, %6 : vector<40x1xi32>
    %8 = arith.extui %7 : vector<40x1xi1> to vector<40x1xi32>
    %9 = arith.addi %4, %8 : vector<40x1xi32>
    %c5_i32_3 = arith.constant 5 : i32
    %10 = vector.broadcast %c5_i32_3 : i32 to vector<1x40xi32>
    %11 = arith.cmpi sge, %3, %10 : vector<1x40xi32>
    %12 = arith.extui %11 : vector<1x40xi1> to vector<1x40xi32>
    %13 = arith.addi %5, %12 : vector<1x40xi32>
    %c10_i32 = arith.constant 10 : i32
    %14 = vector.broadcast %c10_i32 : i32 to vector<40x1xi32>
    %15 = arith.cmpi sge, %2, %14 : vector<40x1xi32>
    %16 = arith.extui %15 : vector<40x1xi1> to vector<40x1xi32>
    %17 = arith.addi %9, %16 : vector<40x1xi32>
    %c10_i32_4 = arith.constant 10 : i32
    %18 = vector.broadcast %c10_i32_4 : i32 to vector<1x40xi32>
    %19 = arith.cmpi sge, %3, %18 : vector<1x40xi32>
    %20 = arith.extui %19 : vector<1x40xi1> to vector<1x40xi32>
    %21 = arith.addi %13, %20 : vector<1x40xi32>
    %c15_i32 = arith.constant 15 : i32
    %22 = vector.broadcast %c15_i32 : i32 to vector<40x1xi32>
    %23 = arith.cmpi sge, %2, %22 : vector<40x1xi32>
    %24 = arith.extui %23 : vector<40x1xi1> to vector<40x1xi32>
    %25 = arith.addi %17, %24 : vector<40x1xi32>
    %c15_i32_5 = arith.constant 15 : i32
    %26 = vector.broadcast %c15_i32_5 : i32 to vector<1x40xi32>
    %27 = arith.cmpi sge, %3, %26 : vector<1x40xi32>
    %28 = arith.extui %27 : vector<1x40xi1> to vector<1x40xi32>
    %29 = arith.addi %21, %28 : vector<1x40xi32>
    %c20_i32 = arith.constant 20 : i32
    %30 = vector.broadcast %c20_i32 : i32 to vector<40x1xi32>
    %31 = arith.cmpi sge, %2, %30 : vector<40x1xi32>
    %32 = arith.extui %31 : vector<40x1xi1> to vector<40x1xi32>
    %33 = arith.addi %25, %32 : vector<40x1xi32>
    %c20_i32_6 = arith.constant 20 : i32
    %34 = vector.broadcast %c20_i32_6 : i32 to vector<1x40xi32>
    %35 = arith.cmpi sge, %3, %34 : vector<1x40xi32>
    %36 = arith.extui %35 : vector<1x40xi1> to vector<1x40xi32>
    %37 = arith.addi %29, %36 : vector<1x40xi32>
    %c25_i32 = arith.constant 25 : i32
    %38 = vector.broadcast %c25_i32 : i32 to vector<40x1xi32>
    %39 = arith.cmpi sge, %2, %38 : vector<40x1xi32>
    %40 = arith.extui %39 : vector<40x1xi1> to vector<40x1xi32>
    %41 = arith.addi %33, %40 : vector<40x1xi32>
    %c25_i32_7 = arith.constant 25 : i32
    %42 = vector.broadcast %c25_i32_7 : i32 to vector<1x40xi32>
    %43 = arith.cmpi sge, %3, %42 : vector<1x40xi32>
    %44 = arith.extui %43 : vector<1x40xi1> to vector<1x40xi32>
    %45 = arith.addi %37, %44 : vector<1x40xi32>
    %c30_i32 = arith.constant 30 : i32
    %46 = vector.broadcast %c30_i32 : i32 to vector<40x1xi32>
    %47 = arith.cmpi sge, %2, %46 : vector<40x1xi32>
    %48 = arith.extui %47 : vector<40x1xi1> to vector<40x1xi32>
    %49 = arith.addi %41, %48 : vector<40x1xi32>
    %c30_i32_8 = arith.constant 30 : i32
    %50 = vector.broadcast %c30_i32_8 : i32 to vector<1x40xi32>
    %51 = arith.cmpi sge, %3, %50 : vector<1x40xi32>
    %52 = arith.extui %51 : vector<1x40xi1> to vector<1x40xi32>
    %53 = arith.addi %45, %52 : vector<1x40xi32>
    %c35_i32 = arith.constant 35 : i32
    %54 = vector.broadcast %c35_i32 : i32 to vector<40x1xi32>
    %55 = arith.cmpi sge, %2, %54 : vector<40x1xi32>
    %56 = arith.extui %55 : vector<40x1xi1> to vector<40x1xi32>
    %57 = arith.addi %49, %56 : vector<40x1xi32>
    %c35_i32_9 = arith.constant 35 : i32
    %58 = vector.broadcast %c35_i32_9 : i32 to vector<1x40xi32>
    %59 = arith.cmpi sge, %3, %58 : vector<1x40xi32>
    %60 = arith.extui %59 : vector<1x40xi1> to vector<1x40xi32>
    %61 = arith.addi %53, %60 : vector<1x40xi32>
    %62 = vector.broadcast %57 : vector<40x1xi32> to vector<40x40xi32>
    %63 = vector.broadcast %61 : vector<1x40xi32> to vector<40x40xi32>
    %64 = arith.cmpi eq, %62, %63 : vector<40x40xi32>
    %65 = tpu.iota {dimensions = array<i32: 0>} : vector<4x40xi32>
    %66 = tpu.iota {dimensions = array<i32: 1>} : vector<4x40xi32>
    %67 = tpu.iota {dimensions = array<i32: 0>} : vector<40x4xi32>
    %68 = tpu.iota {dimensions = array<i32: 1>} : vector<40x4xi32>
    %69 = tpu.iota {dimensions = array<i32: 0>} : vector<8x40xi32>
    %70 = tpu.iota {dimensions = array<i32: 1>} : vector<8x40xi32>
    %c0_10 = arith.constant 0 : index
    %c0_11 = arith.constant 0 : index
    %71 = vector.load %arg19[%c0_10, %c0_11] : memref<4x4xf32, #tpu.memory_space<vmem>>, vector<4x4xf32>
    %c0_12 = arith.constant 0 : index
    %c0_13 = arith.constant 0 : index
    %c0_14 = arith.constant 0 : index
    %72 = vector.load %arg4[%c0_12, %c0_13, %c0_14] : memref<2x32x96xf32, #tpu.memory_space<vmem>>, vector<1x32x96xf32>
    %73 = vector.shape_cast %72 : vector<1x32x96xf32> to vector<32x96xf32>
    %cst = arith.constant dense<0.000000e+00> : vector<40x96xf32>
    %74 = tpu.matmul %1, %73, %cst {dimension_numbers = #tpu.dot_dimension_numbers<[1], [0], [0], [1], [0, 0, 1, 1], [], []>} : vector<40x32xf32>, vector<32x96xf32>, vector<40x96xf32> -> vector<40x96xf32>
    %c0_15 = arith.constant 0 : index
    %c0_16 = arith.constant 0 : index
    %c0_17 = arith.constant 0 : index
    %75 = vector.load %arg5[%c0_15, %c0_16, %c0_17] : memref<2x1x96xf32, #tpu.memory_space<vmem>>, vector<1x1x96xf32>
    %76 = vector.shape_cast %75 : vector<1x1x96xf32> to vector<1x96xf32>
    %77 = vector.broadcast %76 : vector<1x96xf32> to vector<40x96xf32>
    %78 = arith.addf %74, %77 : vector<40x96xf32>
    %79 = vector.extract_strided_slice %78 {offsets = [0, 0], sizes = [40, 8], strides = [1, 1]} : vector<40x96xf32> to vector<40x8xf32>
    %80 = vector.extract_strided_slice %78 {offsets = [0, 32], sizes = [40, 8], strides = [1, 1]} : vector<40x96xf32> to vector<40x8xf32>
    %81 = vector.extract_strided_slice %78 {offsets = [0, 64], sizes = [40, 8], strides = [1, 1]} : vector<40x96xf32> to vector<40x8xf32>
    %cst_18 = arith.constant dense<0.000000e+00> : vector<40x40xf32>
    %82 = tpu.matmul %79, %80, %cst_18 {dimension_numbers = #tpu.dot_dimension_numbers<[1], [1], [0], [0], [0, 0, 1, 0], [], []>} : vector<40x8xf32>, vector<40x8xf32>, vector<40x40xf32> -> vector<40x40xf32>
    %cst_19 = arith.constant 0.353553385 : f32
    %83 = vector.broadcast %cst_19 : f32 to vector<40x40xf32>
    %84 = arith.mulf %82, %83 : vector<40x40xf32>
    %cst_20 = arith.constant -1.000000e+30 : f32
    %85 = vector.broadcast %cst_20 : f32 to vector<40x40xf32>
    %86 = arith.select %64, %84, %85 : vector<40x40xi1>, vector<40x40xf32>
    %cst_21 = arith.constant dense<0xFF800000> : vector<40xf32>
    %87 = vector.multi_reduction <maximumf>, %86, %cst_21 [1] : vector<40x40xf32> to vector<40xf32>
    %88 = vector.shape_cast %87 : vector<40xf32> to vector<40x1xf32>
    %89 = vector.broadcast %88 : vector<40x1xf32> to vector<40x40xf32>
    %90 = arith.subf %86, %89 : vector<40x40xf32>
    %91 = math.exp %90 : vector<40x40xf32>
    %cst_22 = arith.constant dense<0.000000e+00> : vector<40xf32>
    %92 = vector.multi_reduction <add>, %91, %cst_22 [1] : vector<40x40xf32> to vector<40xf32>
    %93 = vector.shape_cast %92 : vector<40xf32> to vector<40x1xf32>
    %94 = vector.broadcast %93 : vector<40x1xf32> to vector<40x40xf32>
    %95 = arith.divf %91, %94 : vector<40x40xf32>
    %cst_23 = arith.constant dense<0.000000e+00> : vector<40x8xf32>
    %96 = tpu.matmul %95, %81, %cst_23 {dimension_numbers = #tpu.dot_dimension_numbers<[1], [0], [0], [1], [0, 0, 1, 1], [], []>} : vector<40x40xf32>, vector<40x8xf32>, vector<40x8xf32> -> vector<40x8xf32>
    %97 = vector.extract_strided_slice %78 {offsets = [0, 8], sizes = [40, 8], strides = [1, 1]} : vector<40x96xf32> to vector<40x8xf32>
    %98 = vector.extract_strided_slice %78 {offsets = [0, 40], sizes = [40, 8], strides = [1, 1]} : vector<40x96xf32> to vector<40x8xf32>
    %99 = vector.extract_strided_slice %78 {offsets = [0, 72], sizes = [40, 8], strides = [1, 1]} : vector<40x96xf32> to vector<40x8xf32>
    %cst_24 = arith.constant dense<0.000000e+00> : vector<40x40xf32>
    %100 = tpu.matmul %97, %98, %cst_24 {dimension_numbers = #tpu.dot_dimension_numbers<[1], [1], [0], [0], [0, 0, 1, 0], [], []>} : vector<40x8xf32>, vector<40x8xf32>, vector<40x40xf32> -> vector<40x40xf32>
    %cst_25 = arith.constant 0.353553385 : f32
    %101 = vector.broadcast %cst_25 : f32 to vector<40x40xf32>
    %102 = arith.mulf %100, %101 : vector<40x40xf32>
    %cst_26 = arith.constant -1.000000e+30 : f32
    %103 = vector.broadcast %cst_26 : f32 to vector<40x40xf32>
    %104 = arith.select %64, %102, %103 : vector<40x40xi1>, vector<40x40xf32>
    %cst_27 = arith.constant dense<0xFF800000> : vector<40xf32>
    %105 = vector.multi_reduction <maximumf>, %104, %cst_27 [1] : vector<40x40xf32> to vector<40xf32>
    %106 = vector.shape_cast %105 : vector<40xf32> to vector<40x1xf32>
    %107 = vector.broadcast %106 : vector<40x1xf32> to vector<40x40xf32>
    %108 = arith.subf %104, %107 : vector<40x40xf32>
    %109 = math.exp %108 : vector<40x40xf32>
    %cst_28 = arith.constant dense<0.000000e+00> : vector<40xf32>
    %110 = vector.multi_reduction <add>, %109, %cst_28 [1] : vector<40x40xf32> to vector<40xf32>
    %111 = vector.shape_cast %110 : vector<40xf32> to vector<40x1xf32>
    %112 = vector.broadcast %111 : vector<40x1xf32> to vector<40x40xf32>
    %113 = arith.divf %109, %112 : vector<40x40xf32>
    %cst_29 = arith.constant dense<0.000000e+00> : vector<40x8xf32>
    %114 = tpu.matmul %113, %99, %cst_29 {dimension_numbers = #tpu.dot_dimension_numbers<[1], [0], [0], [1], [0, 0, 1, 1], [], []>} : vector<40x40xf32>, vector<40x8xf32>, vector<40x8xf32> -> vector<40x8xf32>
    %115 = vector.extract_strided_slice %78 {offsets = [0, 16], sizes = [40, 8], strides = [1, 1]} : vector<40x96xf32> to vector<40x8xf32>
    %116 = vector.extract_strided_slice %78 {offsets = [0, 48], sizes = [40, 8], strides = [1, 1]} : vector<40x96xf32> to vector<40x8xf32>
    %117 = vector.extract_strided_slice %78 {offsets = [0, 80], sizes = [40, 8], strides = [1, 1]} : vector<40x96xf32> to vector<40x8xf32>
    %cst_30 = arith.constant dense<0.000000e+00> : vector<40x40xf32>
    %118 = tpu.matmul %115, %116, %cst_30 {dimension_numbers = #tpu.dot_dimension_numbers<[1], [1], [0], [0], [0, 0, 1, 0], [], []>} : vector<40x8xf32>, vector<40x8xf32>, vector<40x40xf32> -> vector<40x40xf32>
    %cst_31 = arith.constant 0.353553385 : f32
    %119 = vector.broadcast %cst_31 : f32 to vector<40x40xf32>
    %120 = arith.mulf %118, %119 : vector<40x40xf32>
    %cst_32 = arith.constant -1.000000e+30 : f32
    %121 = vector.broadcast %cst_32 : f32 to vector<40x40xf32>
    %122 = arith.select %64, %120, %121 : vector<40x40xi1>, vector<40x40xf32>
    %cst_33 = arith.constant dense<0xFF800000> : vector<40xf32>
    %123 = vector.multi_reduction <maximumf>, %122, %cst_33 [1] : vector<40x40xf32> to vector<40xf32>
    %124 = vector.shape_cast %123 : vector<40xf32> to vector<40x1xf32>
    %125 = vector.broadcast %124 : vector<40x1xf32> to vector<40x40xf32>
    %126 = arith.subf %122, %125 : vector<40x40xf32>
    %127 = math.exp %126 : vector<40x40xf32>
    %cst_34 = arith.constant dense<0.000000e+00> : vector<40xf32>
    %128 = vector.multi_reduction <add>, %127, %cst_34 [1] : vector<40x40xf32> to vector<40xf32>
    %129 = vector.shape_cast %128 : vector<40xf32> to vector<40x1xf32>
    %130 = vector.broadcast %129 : vector<40x1xf32> to vector<40x40xf32>
    %131 = arith.divf %127, %130 : vector<40x40xf32>
    %cst_35 = arith.constant dense<0.000000e+00> : vector<40x8xf32>
    %132 = tpu.matmul %131, %117, %cst_35 {dimension_numbers = #tpu.dot_dimension_numbers<[1], [0], [0], [1], [0, 0, 1, 1], [], []>} : vector<40x40xf32>, vector<40x8xf32>, vector<40x8xf32> -> vector<40x8xf32>
    %133 = vector.extract_strided_slice %78 {offsets = [0, 24], sizes = [40, 8], strides = [1, 1]} : vector<40x96xf32> to vector<40x8xf32>
    %134 = vector.extract_strided_slice %78 {offsets = [0, 56], sizes = [40, 8], strides = [1, 1]} : vector<40x96xf32> to vector<40x8xf32>
    %135 = vector.extract_strided_slice %78 {offsets = [0, 88], sizes = [40, 8], strides = [1, 1]} : vector<40x96xf32> to vector<40x8xf32>
    %cst_36 = arith.constant dense<0.000000e+00> : vector<40x40xf32>
    %136 = tpu.matmul %133, %134, %cst_36 {dimension_numbers = #tpu.dot_dimension_numbers<[1], [1], [0], [0], [0, 0, 1, 0], [], []>} : vector<40x8xf32>, vector<40x8xf32>, vector<40x40xf32> -> vector<40x40xf32>
    %cst_37 = arith.constant 0.353553385 : f32
    %137 = vector.broadcast %cst_37 : f32 to vector<40x40xf32>
    %138 = arith.mulf %136, %137 : vector<40x40xf32>
    %cst_38 = arith.constant -1.000000e+30 : f32
    %139 = vector.broadcast %cst_38 : f32 to vector<40x40xf32>
    %140 = arith.select %64, %138, %139 : vector<40x40xi1>, vector<40x40xf32>
    %cst_39 = arith.constant dense<0xFF800000> : vector<40xf32>
    %141 = vector.multi_reduction <maximumf>, %140, %cst_39 [1] : vector<40x40xf32> to vector<40xf32>
    %142 = vector.shape_cast %141 : vector<40xf32> to vector<40x1xf32>
    %143 = vector.broadcast %142 : vector<40x1xf32> to vector<40x40xf32>
    %144 = arith.subf %140, %143 : vector<40x40xf32>
    %145 = math.exp %144 : vector<40x40xf32>
    %cst_40 = arith.constant dense<0.000000e+00> : vector<40xf32>
    %146 = vector.multi_reduction <add>, %145, %cst_40 [1] : vector<40x40xf32> to vector<40xf32>
    %147 = vector.shape_cast %146 : vector<40xf32> to vector<40x1xf32>
    %148 = vector.broadcast %147 : vector<40x1xf32> to vector<40x40xf32>
    %149 = arith.divf %145, %148 : vector<40x40xf32>
    %cst_41 = arith.constant dense<0.000000e+00> : vector<40x8xf32>
    %150 = tpu.matmul %149, %135, %cst_41 {dimension_numbers = #tpu.dot_dimension_numbers<[1], [0], [0], [1], [0, 0, 1, 1], [], []>} : vector<40x40xf32>, vector<40x8xf32>, vector<40x8xf32> -> vector<40x8xf32>
    %151 = tpu.concatenate %96, %114, %132, %150 in 1 : vector<40x8xf32>, vector<40x8xf32>, vector<40x8xf32>, vector<40x8xf32> -> vector<40x32xf32>
    %c0_42 = arith.constant 0 : index
    %c0_43 = arith.constant 0 : index
    %c0_44 = arith.constant 0 : index
    %152 = vector.load %arg6[%c0_42, %c0_43, %c0_44] : memref<2x32x32xf32, #tpu.memory_space<vmem>>, vector<1x32x32xf32>
    %153 = vector.shape_cast %152 : vector<1x32x32xf32> to vector<32x32xf32>
    %cst_45 = arith.constant dense<0.000000e+00> : vector<40x32xf32>
    %154 = tpu.matmul %151, %153, %cst_45 {dimension_numbers = #tpu.dot_dimension_numbers<[1], [0], [0], [1], [0, 0, 1, 1], [], []>} : vector<40x32xf32>, vector<32x32xf32>, vector<40x32xf32> -> vector<40x32xf32>
    %c0_46 = arith.constant 0 : index
    %c0_47 = arith.constant 0 : index
    %c0_48 = arith.constant 0 : index
    %155 = vector.load %arg7[%c0_46, %c0_47, %c0_48] : memref<2x1x32xf32, #tpu.memory_space<vmem>>, vector<1x1x32xf32>
    %156 = vector.shape_cast %155 : vector<1x1x32xf32> to vector<1x32xf32>
    %157 = vector.broadcast %156 : vector<1x32xf32> to vector<40x32xf32>
    %158 = arith.addf %154, %157 : vector<40x32xf32>
    %159 = arith.addf %1, %158 : vector<40x32xf32>
    %c0_49 = arith.constant 0 : index
    %c0_50 = arith.constant 0 : index
    %c0_51 = arith.constant 0 : index
    %160 = vector.load %arg8[%c0_49, %c0_50, %c0_51] : memref<2x1x32xf32, #tpu.memory_space<vmem>>, vector<1x1x32xf32>
    %161 = vector.shape_cast %160 : vector<1x1x32xf32> to vector<1x32xf32>
    %c0_52 = arith.constant 0 : index
    %c0_53 = arith.constant 0 : index
    %c0_54 = arith.constant 0 : index
    %162 = vector.load %arg9[%c0_52, %c0_53, %c0_54] : memref<2x1x32xf32, #tpu.memory_space<vmem>>, vector<1x1x32xf32>
    %163 = vector.shape_cast %162 : vector<1x1x32xf32> to vector<1x32xf32>
    %cst_55 = arith.constant dense<0.000000e+00> : vector<40xf32>
    %164 = vector.multi_reduction <add>, %159, %cst_55 [1] : vector<40x32xf32> to vector<40xf32>
    %165 = vector.shape_cast %164 : vector<40xf32> to vector<40x1xf32>
    %cst_56 = arith.constant 3.200000e+01 : f32
    %166 = vector.broadcast %cst_56 : f32 to vector<40x1xf32>
    %167 = arith.divf %165, %166 : vector<40x1xf32>
    %168 = vector.broadcast %167 : vector<40x1xf32> to vector<40x32xf32>
    %169 = arith.subf %159, %168 : vector<40x32xf32>
    %170 = arith.mulf %169, %169 : vector<40x32xf32>
    %cst_57 = arith.constant dense<0.000000e+00> : vector<40xf32>
    %171 = vector.multi_reduction <add>, %170, %cst_57 [1] : vector<40x32xf32> to vector<40xf32>
    %172 = vector.shape_cast %171 : vector<40xf32> to vector<40x1xf32>
    %cst_58 = arith.constant 3.200000e+01 : f32
    %173 = vector.broadcast %cst_58 : f32 to vector<40x1xf32>
    %174 = arith.divf %172, %173 : vector<40x1xf32>
    %175 = vector.broadcast %167 : vector<40x1xf32> to vector<40x32xf32>
    %176 = arith.subf %159, %175 : vector<40x32xf32>
    %cst_59 = arith.constant 9.99999974E-6 : f32
    %177 = vector.broadcast %cst_59 : f32 to vector<40x1xf32>
    %178 = arith.addf %174, %177 : vector<40x1xf32>
    %179 = math.rsqrt %178 : vector<40x1xf32>
    %180 = vector.broadcast %179 : vector<40x1xf32> to vector<40x32xf32>
    %181 = arith.mulf %176, %180 : vector<40x32xf32>
    %182 = vector.broadcast %161 : vector<1x32xf32> to vector<40x32xf32>
    %183 = arith.mulf %181, %182 : vector<40x32xf32>
    %184 = vector.broadcast %163 : vector<1x32xf32> to vector<40x32xf32>
    %185 = arith.addf %183, %184 : vector<40x32xf32>
    %c0_60 = arith.constant 0 : index
    %c0_61 = arith.constant 0 : index
    %c0_62 = arith.constant 0 : index
    %186 = vector.load %arg10[%c0_60, %c0_61, %c0_62] : memref<2x32x64xf32, #tpu.memory_space<vmem>>, vector<1x32x64xf32>
    %187 = vector.shape_cast %186 : vector<1x32x64xf32> to vector<32x64xf32>
    %cst_63 = arith.constant dense<0.000000e+00> : vector<40x64xf32>
    %188 = tpu.matmul %185, %187, %cst_63 {dimension_numbers = #tpu.dot_dimension_numbers<[1], [0], [0], [1], [0, 0, 1, 1], [], []>} : vector<40x32xf32>, vector<32x64xf32>, vector<40x64xf32> -> vector<40x64xf32>
    %c0_64 = arith.constant 0 : index
    %c0_65 = arith.constant 0 : index
    %c0_66 = arith.constant 0 : index
    %189 = vector.load %arg11[%c0_64, %c0_65, %c0_66] : memref<2x1x64xf32, #tpu.memory_space<vmem>>, vector<1x1x64xf32>
    %190 = vector.shape_cast %189 : vector<1x1x64xf32> to vector<1x64xf32>
    %191 = vector.broadcast %190 : vector<1x64xf32> to vector<40x64xf32>
    %192 = arith.addf %188, %191 : vector<40x64xf32>
    %cst_67 = arith.constant 0.707106769 : f32
    %193 = vector.broadcast %cst_67 : f32 to vector<40x64xf32>
    %194 = arith.mulf %192, %193 : vector<40x64xf32>
    %195 = math.absf %194 : vector<40x64xf32>
    %cst_68 = arith.constant 0.327591091 : f32
    %196 = vector.broadcast %cst_68 : f32 to vector<40x64xf32>
    %197 = arith.mulf %196, %195 : vector<40x64xf32>
    %cst_69 = arith.constant 1.000000e+00 : f32
    %198 = vector.broadcast %cst_69 : f32 to vector<40x64xf32>
    %199 = arith.addf %198, %197 : vector<40x64xf32>
    %cst_70 = arith.constant 1.000000e+00 : f32
    %200 = vector.broadcast %cst_70 : f32 to vector<40x64xf32>
    %201 = arith.divf %200, %199 : vector<40x64xf32>
    %cst_71 = arith.constant 1.06140542 : f32
    %202 = vector.broadcast %cst_71 : f32 to vector<40x64xf32>
    %203 = arith.mulf %202, %201 : vector<40x64xf32>
    %cst_72 = arith.constant 1.45315206 : f32
    %204 = vector.broadcast %cst_72 : f32 to vector<40x64xf32>
    %205 = arith.subf %203, %204 : vector<40x64xf32>
    %206 = arith.mulf %205, %201 : vector<40x64xf32>
    %cst_73 = arith.constant 1.42141378 : f32
    %207 = vector.broadcast %cst_73 : f32 to vector<40x64xf32>
    %208 = arith.addf %206, %207 : vector<40x64xf32>
    %209 = arith.mulf %208, %201 : vector<40x64xf32>
    %cst_74 = arith.constant 0.284496725 : f32
    %210 = vector.broadcast %cst_74 : f32 to vector<40x64xf32>
    %211 = arith.subf %209, %210 : vector<40x64xf32>
    %212 = arith.mulf %211, %201 : vector<40x64xf32>
    %cst_75 = arith.constant 0.254829586 : f32
    %213 = vector.broadcast %cst_75 : f32 to vector<40x64xf32>
    %214 = arith.addf %212, %213 : vector<40x64xf32>
    %215 = arith.mulf %214, %201 : vector<40x64xf32>
    %cst_76 = arith.constant 0.000000e+00 : f32
    %216 = vector.broadcast %cst_76 : f32 to vector<40x64xf32>
    %217 = arith.subf %216, %195 : vector<40x64xf32>
    %218 = arith.mulf %217, %195 : vector<40x64xf32>
    %219 = math.exp %218 : vector<40x64xf32>
    %220 = arith.mulf %215, %219 : vector<40x64xf32>
    %cst_77 = arith.constant 1.000000e+00 : f32
    %221 = vector.broadcast %cst_77 : f32 to vector<40x64xf32>
    %222 = arith.subf %221, %220 : vector<40x64xf32>
    %cst_78 = arith.constant 0.000000e+00 : f32
    %223 = vector.broadcast %cst_78 : f32 to vector<40x64xf32>
    %224 = arith.cmpf oge, %194, %223 : vector<40x64xf32>
    %cst_79 = arith.constant 0.000000e+00 : f32
    %225 = vector.broadcast %cst_79 : f32 to vector<40x64xf32>
    %226 = arith.subf %225, %222 : vector<40x64xf32>
    %227 = arith.select %224, %222, %226 : vector<40x64xi1>, vector<40x64xf32>
    %cst_80 = arith.constant 5.000000e-01 : f32
    %228 = vector.broadcast %cst_80 : f32 to vector<40x64xf32>
    %229 = arith.mulf %228, %192 : vector<40x64xf32>
    %cst_81 = arith.constant 1.000000e+00 : f32
    %230 = vector.broadcast %cst_81 : f32 to vector<40x64xf32>
    %231 = arith.addf %230, %227 : vector<40x64xf32>
    %232 = arith.mulf %229, %231 : vector<40x64xf32>
    %c0_82 = arith.constant 0 : index
    %c0_83 = arith.constant 0 : index
    %c0_84 = arith.constant 0 : index
    %233 = vector.load %arg12[%c0_82, %c0_83, %c0_84] : memref<2x64x32xf32, #tpu.memory_space<vmem>>, vector<1x64x32xf32>
    %234 = vector.shape_cast %233 : vector<1x64x32xf32> to vector<64x32xf32>
    %cst_85 = arith.constant dense<0.000000e+00> : vector<40x32xf32>
    %235 = tpu.matmul %232, %234, %cst_85 {dimension_numbers = #tpu.dot_dimension_numbers<[1], [0], [0], [1], [0, 0, 1, 1], [], []>} : vector<40x64xf32>, vector<64x32xf32>, vector<40x32xf32> -> vector<40x32xf32>
    %c0_86 = arith.constant 0 : index
    %c0_87 = arith.constant 0 : index
    %c0_88 = arith.constant 0 : index
    %236 = vector.load %arg13[%c0_86, %c0_87, %c0_88] : memref<2x1x32xf32, #tpu.memory_space<vmem>>, vector<1x1x32xf32>
    %237 = vector.shape_cast %236 : vector<1x1x32xf32> to vector<1x32xf32>
    %238 = vector.broadcast %237 : vector<1x32xf32> to vector<40x32xf32>
    %239 = arith.addf %235, %238 : vector<40x32xf32>
    %240 = arith.addf %185, %239 : vector<40x32xf32>
    %c0_89 = arith.constant 0 : index
    %c0_90 = arith.constant 0 : index
    %c0_91 = arith.constant 0 : index
    %241 = vector.load %arg14[%c0_89, %c0_90, %c0_91] : memref<2x1x32xf32, #tpu.memory_space<vmem>>, vector<1x1x32xf32>
    %242 = vector.shape_cast %241 : vector<1x1x32xf32> to vector<1x32xf32>
    %c0_92 = arith.constant 0 : index
    %c0_93 = arith.constant 0 : index
    %c0_94 = arith.constant 0 : index
    %243 = vector.load %arg15[%c0_92, %c0_93, %c0_94] : memref<2x1x32xf32, #tpu.memory_space<vmem>>, vector<1x1x32xf32>
    %244 = vector.shape_cast %243 : vector<1x1x32xf32> to vector<1x32xf32>
    %cst_95 = arith.constant dense<0.000000e+00> : vector<40xf32>
    %245 = vector.multi_reduction <add>, %240, %cst_95 [1] : vector<40x32xf32> to vector<40xf32>
    %246 = vector.shape_cast %245 : vector<40xf32> to vector<40x1xf32>
    %cst_96 = arith.constant 3.200000e+01 : f32
    %247 = vector.broadcast %cst_96 : f32 to vector<40x1xf32>
    %248 = arith.divf %246, %247 : vector<40x1xf32>
    %249 = vector.broadcast %248 : vector<40x1xf32> to vector<40x32xf32>
    %250 = arith.subf %240, %249 : vector<40x32xf32>
    %251 = arith.mulf %250, %250 : vector<40x32xf32>
    %cst_97 = arith.constant dense<0.000000e+00> : vector<40xf32>
    %252 = vector.multi_reduction <add>, %251, %cst_97 [1] : vector<40x32xf32> to vector<40xf32>
    %253 = vector.shape_cast %252 : vector<40xf32> to vector<40x1xf32>
    %cst_98 = arith.constant 3.200000e+01 : f32
    %254 = vector.broadcast %cst_98 : f32 to vector<40x1xf32>
    %255 = arith.divf %253, %254 : vector<40x1xf32>
    %256 = vector.broadcast %248 : vector<40x1xf32> to vector<40x32xf32>
    %257 = arith.subf %240, %256 : vector<40x32xf32>
    %cst_99 = arith.constant 9.99999974E-6 : f32
    %258 = vector.broadcast %cst_99 : f32 to vector<40x1xf32>
    %259 = arith.addf %255, %258 : vector<40x1xf32>
    %260 = math.rsqrt %259 : vector<40x1xf32>
    %261 = vector.broadcast %260 : vector<40x1xf32> to vector<40x32xf32>
    %262 = arith.mulf %257, %261 : vector<40x32xf32>
    %263 = vector.broadcast %242 : vector<1x32xf32> to vector<40x32xf32>
    %264 = arith.mulf %262, %263 : vector<40x32xf32>
    %265 = vector.broadcast %244 : vector<1x32xf32> to vector<40x32xf32>
    %266 = arith.addf %264, %265 : vector<40x32xf32>
    %c0_100 = arith.constant 0 : index
    %c0_101 = arith.constant 0 : index
    %c0_102 = arith.constant 0 : index
    %267 = vector.load %arg16[%c0_100, %c0_101, %c0_102] : memref<1x32x32xf32, #tpu.memory_space<vmem>>, vector<1x32x32xf32>
    %268 = vector.shape_cast %267 : vector<1x32x32xf32> to vector<32x32xf32>
    %c0_103 = arith.constant 0 : index
    %c0_104 = arith.constant 0 : index
    %c0_105 = arith.constant 0 : index
    %269 = vector.load %arg17[%c0_103, %c0_104, %c0_105] : memref<1x1x32xf32, #tpu.memory_space<vmem>>, vector<1x1x32xf32>
    %270 = vector.shape_cast %269 : vector<1x1x32xf32> to vector<1x32xf32>
    %c0_106 = arith.constant 0 : index
    %c0_107 = arith.constant 0 : index
    %c0_108 = arith.constant 0 : index
    %271 = vector.load %arg18[%c0_106, %c0_107, %c0_108] : memref<1x1x32xf32, #tpu.memory_space<vmem>>, vector<1x1x32xf32>
    %272 = vector.shape_cast %271 : vector<1x1x32xf32> to vector<1x32xf32>
    %c0_i32_109 = arith.constant 0 : i32
    %273 = vector.broadcast %c0_i32_109 : i32 to vector<4x40xi32>
    %274 = arith.addi %273, %65 : vector<4x40xi32>
    %c5_i32_110 = arith.constant 5 : i32
    %275 = vector.broadcast %c5_i32_110 : i32 to vector<4x40xi32>
    %276 = arith.muli %274, %275 : vector<4x40xi32>
    %c0_i32_111 = arith.constant 0 : i32
    %277 = vector.broadcast %c0_i32_111 : i32 to vector<4x40xi32>
    %278 = arith.addi %276, %277 : vector<4x40xi32>
    %279 = arith.cmpi eq, %66, %278 : vector<4x40xi32>
    %280 = arith.extui %279 : vector<4x40xi1> to vector<4x40xi32>
    %281 = arith.sitofp %280 : vector<4x40xi32> to vector<4x40xf32>
    %c0_i32_112 = arith.constant 0 : i32
    %282 = vector.broadcast %c0_i32_112 : i32 to vector<40x4xi32>
    %283 = arith.addi %282, %68 : vector<40x4xi32>
    %c5_i32_113 = arith.constant 5 : i32
    %284 = vector.broadcast %c5_i32_113 : i32 to vector<40x4xi32>
    %285 = arith.muli %283, %284 : vector<40x4xi32>
    %c0_i32_114 = arith.constant 0 : i32
    %286 = vector.broadcast %c0_i32_114 : i32 to vector<40x4xi32>
    %287 = arith.addi %285, %286 : vector<40x4xi32>
    %288 = arith.cmpi eq, %67, %287 : vector<40x4xi32>
    %289 = arith.extui %288 : vector<40x4xi1> to vector<40x4xi32>
    %290 = arith.sitofp %289 : vector<40x4xi32> to vector<40x4xf32>
    %cst_115 = arith.constant dense<0.000000e+00> : vector<4x32xf32>
    %291 = tpu.matmul %281, %266, %cst_115 {dimension_numbers = #tpu.dot_dimension_numbers<[1], [0], [0], [1], [0, 0, 1, 1], [], []>} : vector<4x40xf32>, vector<40x32xf32>, vector<4x32xf32> -> vector<4x32xf32>
    %cst_116 = arith.constant dense<0.000000e+00> : vector<4x32xf32>
    %292 = tpu.matmul %291, %268, %cst_116 {dimension_numbers = #tpu.dot_dimension_numbers<[1], [0], [0], [1], [0, 0, 1, 1], [], []>} : vector<4x32xf32>, vector<32x32xf32>, vector<4x32xf32> -> vector<4x32xf32>
    %cst_117 = arith.constant dense<0.000000e+00> : vector<4x1xf32>
    %293 = tpu.matmul %292, %270, %cst_117 {dimension_numbers = #tpu.dot_dimension_numbers<[1], [1], [0], [0], [0, 0, 1, 0], [], []>} : vector<4x32xf32>, vector<1x32xf32>, vector<4x1xf32> -> vector<4x1xf32>
    %cst_118 = arith.constant dense<0.000000e+00> : vector<1x4xf32>
    %294 = tpu.matmul %272, %292, %cst_118 {dimension_numbers = #tpu.dot_dimension_numbers<[1], [1], [0], [0], [0, 0, 1, 0], [], []>} : vector<1x32xf32>, vector<4x32xf32>, vector<1x4xf32> -> vector<1x4xf32>
    %295 = vector.broadcast %293 : vector<4x1xf32> to vector<4x4xf32>
    %296 = vector.broadcast %294 : vector<1x4xf32> to vector<4x4xf32>
    %297 = arith.addf %295, %296 : vector<4x4xf32>
    %cst_119 = arith.constant 0.000000e+00 : f32
    %298 = vector.broadcast %cst_119 : f32 to vector<4x4xf32>
    %299 = arith.cmpf ogt, %297, %298 : vector<4x4xf32>
    %cst_120 = arith.constant 2.000000e-01 : f32
    %300 = vector.broadcast %cst_120 : f32 to vector<4x4xf32>
    %301 = arith.mulf %300, %297 : vector<4x4xf32>
    %302 = arith.select %299, %297, %301 : vector<4x4xi1>, vector<4x4xf32>
    %cst_121 = arith.constant 0.000000e+00 : f32
    %303 = vector.broadcast %cst_121 : f32 to vector<4x4xf32>
    %304 = arith.cmpf ogt, %71, %303 : vector<4x4xf32>
    %cst_122 = arith.constant -1.000000e+30 : f32
    %305 = vector.broadcast %cst_122 : f32 to vector<4x4xf32>
    %306 = arith.select %304, %302, %305 : vector<4x4xi1>, vector<4x4xf32>
    %cst_123 = arith.constant dense<0xFF800000> : vector<4xf32>
    %307 = vector.multi_reduction <maximumf>, %306, %cst_123 [1] : vector<4x4xf32> to vector<4xf32>
    %308 = vector.shape_cast %307 : vector<4xf32> to vector<4x1xf32>
    %309 = vector.broadcast %308 : vector<4x1xf32> to vector<4x4xf32>
    %310 = arith.subf %306, %309 : vector<4x4xf32>
    %311 = math.exp %310 : vector<4x4xf32>
    %cst_124 = arith.constant dense<0.000000e+00> : vector<4xf32>
    %312 = vector.multi_reduction <add>, %311, %cst_124 [1] : vector<4x4xf32> to vector<4xf32>
    %313 = vector.shape_cast %312 : vector<4xf32> to vector<4x1xf32>
    %314 = vector.broadcast %313 : vector<4x1xf32> to vector<4x4xf32>
    %315 = arith.divf %311, %314 : vector<4x4xf32>
    %cst_125 = arith.constant dense<0.000000e+00> : vector<4x32xf32>
    %316 = tpu.matmul %315, %292, %cst_125 {dimension_numbers = #tpu.dot_dimension_numbers<[1], [0], [0], [1], [0, 0, 1, 1], [], []>} : vector<4x4xf32>, vector<4x32xf32>, vector<4x32xf32> -> vector<4x32xf32>
    %317 = arith.addf %316, %291 : vector<4x32xf32>
    %318 = arith.subf %317, %291 : vector<4x32xf32>
    %cst_126 = arith.constant dense<0.000000e+00> : vector<40x32xf32>
    %319 = tpu.matmul %290, %318, %cst_126 {dimension_numbers = #tpu.dot_dimension_numbers<[1], [0], [0], [1], [0, 0, 1, 1], [], []>} : vector<40x4xf32>, vector<4x32xf32>, vector<40x32xf32> -> vector<40x32xf32>
    %320 = arith.addf %266, %319 : vector<40x32xf32>
    %c4_i32 = arith.constant 4 : i32
    %321 = vector.broadcast %c4_i32 : i32 to vector<4x40xi32>
    %322 = arith.addi %321, %65 : vector<4x40xi32>
    %c5_i32_127 = arith.constant 5 : i32
    %323 = vector.broadcast %c5_i32_127 : i32 to vector<4x40xi32>
    %324 = arith.muli %322, %323 : vector<4x40xi32>
    %c0_i32_128 = arith.constant 0 : i32
    %325 = vector.broadcast %c0_i32_128 : i32 to vector<4x40xi32>
    %326 = arith.addi %324, %325 : vector<4x40xi32>
    %327 = arith.cmpi eq, %66, %326 : vector<4x40xi32>
    %328 = arith.extui %327 : vector<4x40xi1> to vector<4x40xi32>
    %329 = arith.sitofp %328 : vector<4x40xi32> to vector<4x40xf32>
    %c4_i32_129 = arith.constant 4 : i32
    %330 = vector.broadcast %c4_i32_129 : i32 to vector<40x4xi32>
    %331 = arith.addi %330, %68 : vector<40x4xi32>
    %c5_i32_130 = arith.constant 5 : i32
    %332 = vector.broadcast %c5_i32_130 : i32 to vector<40x4xi32>
    %333 = arith.muli %331, %332 : vector<40x4xi32>
    %c0_i32_131 = arith.constant 0 : i32
    %334 = vector.broadcast %c0_i32_131 : i32 to vector<40x4xi32>
    %335 = arith.addi %333, %334 : vector<40x4xi32>
    %336 = arith.cmpi eq, %67, %335 : vector<40x4xi32>
    %337 = arith.extui %336 : vector<40x4xi1> to vector<40x4xi32>
    %338 = arith.sitofp %337 : vector<40x4xi32> to vector<40x4xf32>
    %cst_132 = arith.constant dense<0.000000e+00> : vector<4x32xf32>
    %339 = tpu.matmul %329, %320, %cst_132 {dimension_numbers = #tpu.dot_dimension_numbers<[1], [0], [0], [1], [0, 0, 1, 1], [], []>} : vector<4x40xf32>, vector<40x32xf32>, vector<4x32xf32> -> vector<4x32xf32>
    %cst_133 = arith.constant dense<0.000000e+00> : vector<4x32xf32>
    %340 = tpu.matmul %339, %268, %cst_133 {dimension_numbers = #tpu.dot_dimension_numbers<[1], [0], [0], [1], [0, 0, 1, 1], [], []>} : vector<4x32xf32>, vector<32x32xf32>, vector<4x32xf32> -> vector<4x32xf32>
    %cst_134 = arith.constant dense<0.000000e+00> : vector<4x1xf32>
    %341 = tpu.matmul %340, %270, %cst_134 {dimension_numbers = #tpu.dot_dimension_numbers<[1], [1], [0], [0], [0, 0, 1, 0], [], []>} : vector<4x32xf32>, vector<1x32xf32>, vector<4x1xf32> -> vector<4x1xf32>
    %cst_135 = arith.constant dense<0.000000e+00> : vector<1x4xf32>
    %342 = tpu.matmul %272, %340, %cst_135 {dimension_numbers = #tpu.dot_dimension_numbers<[1], [1], [0], [0], [0, 0, 1, 0], [], []>} : vector<1x32xf32>, vector<4x32xf32>, vector<1x4xf32> -> vector<1x4xf32>
    %343 = vector.broadcast %341 : vector<4x1xf32> to vector<4x4xf32>
    %344 = vector.broadcast %342 : vector<1x4xf32> to vector<4x4xf32>
    %345 = arith.addf %343, %344 : vector<4x4xf32>
    %cst_136 = arith.constant 0.000000e+00 : f32
    %346 = vector.broadcast %cst_136 : f32 to vector<4x4xf32>
    %347 = arith.cmpf ogt, %345, %346 : vector<4x4xf32>
    %cst_137 = arith.constant 2.000000e-01 : f32
    %348 = vector.broadcast %cst_137 : f32 to vector<4x4xf32>
    %349 = arith.mulf %348, %345 : vector<4x4xf32>
    %350 = arith.select %347, %345, %349 : vector<4x4xi1>, vector<4x4xf32>
    %cst_138 = arith.constant 0.000000e+00 : f32
    %351 = vector.broadcast %cst_138 : f32 to vector<4x4xf32>
    %352 = arith.cmpf ogt, %71, %351 : vector<4x4xf32>
    %cst_139 = arith.constant -1.000000e+30 : f32
    %353 = vector.broadcast %cst_139 : f32 to vector<4x4xf32>
    %354 = arith.select %352, %350, %353 : vector<4x4xi1>, vector<4x4xf32>
    %cst_140 = arith.constant dense<0xFF800000> : vector<4xf32>
    %355 = vector.multi_reduction <maximumf>, %354, %cst_140 [1] : vector<4x4xf32> to vector<4xf32>
    %356 = vector.shape_cast %355 : vector<4xf32> to vector<4x1xf32>
    %357 = vector.broadcast %356 : vector<4x1xf32> to vector<4x4xf32>
    %358 = arith.subf %354, %357 : vector<4x4xf32>
    %359 = math.exp %358 : vector<4x4xf32>
    %cst_141 = arith.constant dense<0.000000e+00> : vector<4xf32>
    %360 = vector.multi_reduction <add>, %359, %cst_141 [1] : vector<4x4xf32> to vector<4xf32>
    %361 = vector.shape_cast %360 : vector<4xf32> to vector<4x1xf32>
    %362 = vector.broadcast %361 : vector<4x1xf32> to vector<4x4xf32>
    %363 = arith.divf %359, %362 : vector<4x4xf32>
    %cst_142 = arith.constant dense<0.000000e+00> : vector<4x32xf32>
    %364 = tpu.matmul %363, %340, %cst_142 {dimension_numbers = #tpu.dot_dimension_numbers<[1], [0], [0], [1], [0, 0, 1, 1], [], []>} : vector<4x4xf32>, vector<4x32xf32>, vector<4x32xf32> -> vector<4x32xf32>
    %365 = arith.addf %364, %339 : vector<4x32xf32>
    %366 = arith.subf %365, %339 : vector<4x32xf32>
    %cst_143 = arith.constant dense<0.000000e+00> : vector<40x32xf32>
    %367 = tpu.matmul %338, %366, %cst_143 {dimension_numbers = #tpu.dot_dimension_numbers<[1], [0], [0], [1], [0, 0, 1, 1], [], []>} : vector<40x4xf32>, vector<4x32xf32>, vector<40x32xf32> -> vector<40x32xf32>
    %368 = arith.addf %320, %367 : vector<40x32xf32>
    %c0_144 = arith.constant 0 : index
    %c0_145 = arith.constant 0 : index
    %369 = vector.load %arg20[%c0_144, %c0_145] : memref<1x32xf32, #tpu.memory_space<vmem>>, vector<1x32xf32>
    %c0_146 = arith.constant 0 : index
    %c0_147 = arith.constant 0 : index
    %370 = vector.load %arg21[%c0_146, %c0_147] : memref<1x32xf32, #tpu.memory_space<vmem>>, vector<1x32xf32>
    %cst_148 = arith.constant dense<0.000000e+00> : vector<40xf32>
    %371 = vector.multi_reduction <add>, %368, %cst_148 [1] : vector<40x32xf32> to vector<40xf32>
    %372 = vector.shape_cast %371 : vector<40xf32> to vector<40x1xf32>
    %cst_149 = arith.constant 3.200000e+01 : f32
    %373 = vector.broadcast %cst_149 : f32 to vector<40x1xf32>
    %374 = arith.divf %372, %373 : vector<40x1xf32>
    %375 = vector.broadcast %374 : vector<40x1xf32> to vector<40x32xf32>
    %376 = arith.subf %368, %375 : vector<40x32xf32>
    %377 = arith.mulf %376, %376 : vector<40x32xf32>
    %cst_150 = arith.constant dense<0.000000e+00> : vector<40xf32>
    %378 = vector.multi_reduction <add>, %377, %cst_150 [1] : vector<40x32xf32> to vector<40xf32>
    %379 = vector.shape_cast %378 : vector<40xf32> to vector<40x1xf32>
    %cst_151 = arith.constant 3.200000e+01 : f32
    %380 = vector.broadcast %cst_151 : f32 to vector<40x1xf32>
    %381 = arith.divf %379, %380 : vector<40x1xf32>
    %382 = vector.broadcast %374 : vector<40x1xf32> to vector<40x32xf32>
    %383 = arith.subf %368, %382 : vector<40x32xf32>
    %cst_152 = arith.constant 9.99999974E-6 : f32
    %384 = vector.broadcast %cst_152 : f32 to vector<40x1xf32>
    %385 = arith.addf %381, %384 : vector<40x1xf32>
    %386 = math.rsqrt %385 : vector<40x1xf32>
    %387 = vector.broadcast %386 : vector<40x1xf32> to vector<40x32xf32>
    %388 = arith.mulf %383, %387 : vector<40x32xf32>
    %389 = vector.broadcast %369 : vector<1x32xf32> to vector<40x32xf32>
    %390 = arith.mulf %388, %389 : vector<40x32xf32>
    %391 = vector.broadcast %370 : vector<1x32xf32> to vector<40x32xf32>
    %392 = arith.addf %390, %391 : vector<40x32xf32>
    %c1 = arith.constant 1 : index
    %c0_153 = arith.constant 0 : index
    %c0_154 = arith.constant 0 : index
    %393 = vector.load %arg4[%c1, %c0_153, %c0_154] : memref<2x32x96xf32, #tpu.memory_space<vmem>>, vector<1x32x96xf32>
    %394 = vector.shape_cast %393 : vector<1x32x96xf32> to vector<32x96xf32>
    %cst_155 = arith.constant dense<0.000000e+00> : vector<40x96xf32>
    %395 = tpu.matmul %392, %394, %cst_155 {dimension_numbers = #tpu.dot_dimension_numbers<[1], [0], [0], [1], [0, 0, 1, 1], [], []>} : vector<40x32xf32>, vector<32x96xf32>, vector<40x96xf32> -> vector<40x96xf32>
    %c1_156 = arith.constant 1 : index
    %c0_157 = arith.constant 0 : index
    %c0_158 = arith.constant 0 : index
    %396 = vector.load %arg5[%c1_156, %c0_157, %c0_158] : memref<2x1x96xf32, #tpu.memory_space<vmem>>, vector<1x1x96xf32>
    %397 = vector.shape_cast %396 : vector<1x1x96xf32> to vector<1x96xf32>
    %398 = vector.broadcast %397 : vector<1x96xf32> to vector<40x96xf32>
    %399 = arith.addf %395, %398 : vector<40x96xf32>
    %400 = vector.extract_strided_slice %399 {offsets = [0, 0], sizes = [40, 8], strides = [1, 1]} : vector<40x96xf32> to vector<40x8xf32>
    %401 = vector.extract_strided_slice %399 {offsets = [0, 32], sizes = [40, 8], strides = [1, 1]} : vector<40x96xf32> to vector<40x8xf32>
    %402 = vector.extract_strided_slice %399 {offsets = [0, 64], sizes = [40, 8], strides = [1, 1]} : vector<40x96xf32> to vector<40x8xf32>
    %cst_159 = arith.constant dense<0.000000e+00> : vector<40x40xf32>
    %403 = tpu.matmul %400, %401, %cst_159 {dimension_numbers = #tpu.dot_dimension_numbers<[1], [1], [0], [0], [0, 0, 1, 0], [], []>} : vector<40x8xf32>, vector<40x8xf32>, vector<40x40xf32> -> vector<40x40xf32>
    %cst_160 = arith.constant 0.353553385 : f32
    %404 = vector.broadcast %cst_160 : f32 to vector<40x40xf32>
    %405 = arith.mulf %403, %404 : vector<40x40xf32>
    %cst_161 = arith.constant -1.000000e+30 : f32
    %406 = vector.broadcast %cst_161 : f32 to vector<40x40xf32>
    %407 = arith.select %64, %405, %406 : vector<40x40xi1>, vector<40x40xf32>
    %cst_162 = arith.constant dense<0xFF800000> : vector<40xf32>
    %408 = vector.multi_reduction <maximumf>, %407, %cst_162 [1] : vector<40x40xf32> to vector<40xf32>
    %409 = vector.shape_cast %408 : vector<40xf32> to vector<40x1xf32>
    %410 = vector.broadcast %409 : vector<40x1xf32> to vector<40x40xf32>
    %411 = arith.subf %407, %410 : vector<40x40xf32>
    %412 = math.exp %411 : vector<40x40xf32>
    %cst_163 = arith.constant dense<0.000000e+00> : vector<40xf32>
    %413 = vector.multi_reduction <add>, %412, %cst_163 [1] : vector<40x40xf32> to vector<40xf32>
    %414 = vector.shape_cast %413 : vector<40xf32> to vector<40x1xf32>
    %415 = vector.broadcast %414 : vector<40x1xf32> to vector<40x40xf32>
    %416 = arith.divf %412, %415 : vector<40x40xf32>
    %cst_164 = arith.constant dense<0.000000e+00> : vector<40x8xf32>
    %417 = tpu.matmul %416, %402, %cst_164 {dimension_numbers = #tpu.dot_dimension_numbers<[1], [0], [0], [1], [0, 0, 1, 1], [], []>} : vector<40x40xf32>, vector<40x8xf32>, vector<40x8xf32> -> vector<40x8xf32>
    %418 = vector.extract_strided_slice %399 {offsets = [0, 8], sizes = [40, 8], strides = [1, 1]} : vector<40x96xf32> to vector<40x8xf32>
    %419 = vector.extract_strided_slice %399 {offsets = [0, 40], sizes = [40, 8], strides = [1, 1]} : vector<40x96xf32> to vector<40x8xf32>
    %420 = vector.extract_strided_slice %399 {offsets = [0, 72], sizes = [40, 8], strides = [1, 1]} : vector<40x96xf32> to vector<40x8xf32>
    %cst_165 = arith.constant dense<0.000000e+00> : vector<40x40xf32>
    %421 = tpu.matmul %418, %419, %cst_165 {dimension_numbers = #tpu.dot_dimension_numbers<[1], [1], [0], [0], [0, 0, 1, 0], [], []>} : vector<40x8xf32>, vector<40x8xf32>, vector<40x40xf32> -> vector<40x40xf32>
    %cst_166 = arith.constant 0.353553385 : f32
    %422 = vector.broadcast %cst_166 : f32 to vector<40x40xf32>
    %423 = arith.mulf %421, %422 : vector<40x40xf32>
    %cst_167 = arith.constant -1.000000e+30 : f32
    %424 = vector.broadcast %cst_167 : f32 to vector<40x40xf32>
    %425 = arith.select %64, %423, %424 : vector<40x40xi1>, vector<40x40xf32>
    %cst_168 = arith.constant dense<0xFF800000> : vector<40xf32>
    %426 = vector.multi_reduction <maximumf>, %425, %cst_168 [1] : vector<40x40xf32> to vector<40xf32>
    %427 = vector.shape_cast %426 : vector<40xf32> to vector<40x1xf32>
    %428 = vector.broadcast %427 : vector<40x1xf32> to vector<40x40xf32>
    %429 = arith.subf %425, %428 : vector<40x40xf32>
    %430 = math.exp %429 : vector<40x40xf32>
    %cst_169 = arith.constant dense<0.000000e+00> : vector<40xf32>
    %431 = vector.multi_reduction <add>, %430, %cst_169 [1] : vector<40x40xf32> to vector<40xf32>
    %432 = vector.shape_cast %431 : vector<40xf32> to vector<40x1xf32>
    %433 = vector.broadcast %432 : vector<40x1xf32> to vector<40x40xf32>
    %434 = arith.divf %430, %433 : vector<40x40xf32>
    %cst_170 = arith.constant dense<0.000000e+00> : vector<40x8xf32>
    %435 = tpu.matmul %434, %420, %cst_170 {dimension_numbers = #tpu.dot_dimension_numbers<[1], [0], [0], [1], [0, 0, 1, 1], [], []>} : vector<40x40xf32>, vector<40x8xf32>, vector<40x8xf32> -> vector<40x8xf32>
    %436 = vector.extract_strided_slice %399 {offsets = [0, 16], sizes = [40, 8], strides = [1, 1]} : vector<40x96xf32> to vector<40x8xf32>
    %437 = vector.extract_strided_slice %399 {offsets = [0, 48], sizes = [40, 8], strides = [1, 1]} : vector<40x96xf32> to vector<40x8xf32>
    %438 = vector.extract_strided_slice %399 {offsets = [0, 80], sizes = [40, 8], strides = [1, 1]} : vector<40x96xf32> to vector<40x8xf32>
    %cst_171 = arith.constant dense<0.000000e+00> : vector<40x40xf32>
    %439 = tpu.matmul %436, %437, %cst_171 {dimension_numbers = #tpu.dot_dimension_numbers<[1], [1], [0], [0], [0, 0, 1, 0], [], []>} : vector<40x8xf32>, vector<40x8xf32>, vector<40x40xf32> -> vector<40x40xf32>
    %cst_172 = arith.constant 0.353553385 : f32
    %440 = vector.broadcast %cst_172 : f32 to vector<40x40xf32>
    %441 = arith.mulf %439, %440 : vector<40x40xf32>
    %cst_173 = arith.constant -1.000000e+30 : f32
    %442 = vector.broadcast %cst_173 : f32 to vector<40x40xf32>
    %443 = arith.select %64, %441, %442 : vector<40x40xi1>, vector<40x40xf32>
    %cst_174 = arith.constant dense<0xFF800000> : vector<40xf32>
    %444 = vector.multi_reduction <maximumf>, %443, %cst_174 [1] : vector<40x40xf32> to vector<40xf32>
    %445 = vector.shape_cast %444 : vector<40xf32> to vector<40x1xf32>
    %446 = vector.broadcast %445 : vector<40x1xf32> to vector<40x40xf32>
    %447 = arith.subf %443, %446 : vector<40x40xf32>
    %448 = math.exp %447 : vector<40x40xf32>
    %cst_175 = arith.constant dense<0.000000e+00> : vector<40xf32>
    %449 = vector.multi_reduction <add>, %448, %cst_175 [1] : vector<40x40xf32> to vector<40xf32>
    %450 = vector.shape_cast %449 : vector<40xf32> to vector<40x1xf32>
    %451 = vector.broadcast %450 : vector<40x1xf32> to vector<40x40xf32>
    %452 = arith.divf %448, %451 : vector<40x40xf32>
    %cst_176 = arith.constant dense<0.000000e+00> : vector<40x8xf32>
    %453 = tpu.matmul %452, %438, %cst_176 {dimension_numbers = #tpu.dot_dimension_numbers<[1], [0], [0], [1], [0, 0, 1, 1], [], []>} : vector<40x40xf32>, vector<40x8xf32>, vector<40x8xf32> -> vector<40x8xf32>
    %454 = vector.extract_strided_slice %399 {offsets = [0, 24], sizes = [40, 8], strides = [1, 1]} : vector<40x96xf32> to vector<40x8xf32>
    %455 = vector.extract_strided_slice %399 {offsets = [0, 56], sizes = [40, 8], strides = [1, 1]} : vector<40x96xf32> to vector<40x8xf32>
    %456 = vector.extract_strided_slice %399 {offsets = [0, 88], sizes = [40, 8], strides = [1, 1]} : vector<40x96xf32> to vector<40x8xf32>
    %cst_177 = arith.constant dense<0.000000e+00> : vector<40x40xf32>
    %457 = tpu.matmul %454, %455, %cst_177 {dimension_numbers = #tpu.dot_dimension_numbers<[1], [1], [0], [0], [0, 0, 1, 0], [], []>} : vector<40x8xf32>, vector<40x8xf32>, vector<40x40xf32> -> vector<40x40xf32>
    %cst_178 = arith.constant 0.353553385 : f32
    %458 = vector.broadcast %cst_178 : f32 to vector<40x40xf32>
    %459 = arith.mulf %457, %458 : vector<40x40xf32>
    %cst_179 = arith.constant -1.000000e+30 : f32
    %460 = vector.broadcast %cst_179 : f32 to vector<40x40xf32>
    %461 = arith.select %64, %459, %460 : vector<40x40xi1>, vector<40x40xf32>
    %cst_180 = arith.constant dense<0xFF800000> : vector<40xf32>
    %462 = vector.multi_reduction <maximumf>, %461, %cst_180 [1] : vector<40x40xf32> to vector<40xf32>
    %463 = vector.shape_cast %462 : vector<40xf32> to vector<40x1xf32>
    %464 = vector.broadcast %463 : vector<40x1xf32> to vector<40x40xf32>
    %465 = arith.subf %461, %464 : vector<40x40xf32>
    %466 = math.exp %465 : vector<40x40xf32>
    %cst_181 = arith.constant dense<0.000000e+00> : vector<40xf32>
    %467 = vector.multi_reduction <add>, %466, %cst_181 [1] : vector<40x40xf32> to vector<40xf32>
    %468 = vector.shape_cast %467 : vector<40xf32> to vector<40x1xf32>
    %469 = vector.broadcast %468 : vector<40x1xf32> to vector<40x40xf32>
    %470 = arith.divf %466, %469 : vector<40x40xf32>
    %cst_182 = arith.constant dense<0.000000e+00> : vector<40x8xf32>
    %471 = tpu.matmul %470, %456, %cst_182 {dimension_numbers = #tpu.dot_dimension_numbers<[1], [0], [0], [1], [0, 0, 1, 1], [], []>} : vector<40x40xf32>, vector<40x8xf32>, vector<40x8xf32> -> vector<40x8xf32>
    %472 = tpu.concatenate %417, %435, %453, %471 in 1 : vector<40x8xf32>, vector<40x8xf32>, vector<40x8xf32>, vector<40x8xf32> -> vector<40x32xf32>
    %c1_183 = arith.constant 1 : index
    %c0_184 = arith.constant 0 : index
    %c0_185 = arith.constant 0 : index
    %473 = vector.load %arg6[%c1_183, %c0_184, %c0_185] : memref<2x32x32xf32, #tpu.memory_space<vmem>>, vector<1x32x32xf32>
    %474 = vector.shape_cast %473 : vector<1x32x32xf32> to vector<32x32xf32>
    %cst_186 = arith.constant dense<0.000000e+00> : vector<40x32xf32>
    %475 = tpu.matmul %472, %474, %cst_186 {dimension_numbers = #tpu.dot_dimension_numbers<[1], [0], [0], [1], [0, 0, 1, 1], [], []>} : vector<40x32xf32>, vector<32x32xf32>, vector<40x32xf32> -> vector<40x32xf32>
    %c1_187 = arith.constant 1 : index
    %c0_188 = arith.constant 0 : index
    %c0_189 = arith.constant 0 : index
    %476 = vector.load %arg7[%c1_187, %c0_188, %c0_189] : memref<2x1x32xf32, #tpu.memory_space<vmem>>, vector<1x1x32xf32>
    %477 = vector.shape_cast %476 : vector<1x1x32xf32> to vector<1x32xf32>
    %478 = vector.broadcast %477 : vector<1x32xf32> to vector<40x32xf32>
    %479 = arith.addf %475, %478 : vector<40x32xf32>
    %480 = arith.addf %392, %479 : vector<40x32xf32>
    %c1_190 = arith.constant 1 : index
    %c0_191 = arith.constant 0 : index
    %c0_192 = arith.constant 0 : index
    %481 = vector.load %arg8[%c1_190, %c0_191, %c0_192] : memref<2x1x32xf32, #tpu.memory_space<vmem>>, vector<1x1x32xf32>
    %482 = vector.shape_cast %481 : vector<1x1x32xf32> to vector<1x32xf32>
    %c1_193 = arith.constant 1 : index
    %c0_194 = arith.constant 0 : index
    %c0_195 = arith.constant 0 : index
    %483 = vector.load %arg9[%c1_193, %c0_194, %c0_195] : memref<2x1x32xf32, #tpu.memory_space<vmem>>, vector<1x1x32xf32>
    %484 = vector.shape_cast %483 : vector<1x1x32xf32> to vector<1x32xf32>
    %cst_196 = arith.constant dense<0.000000e+00> : vector<40xf32>
    %485 = vector.multi_reduction <add>, %480, %cst_196 [1] : vector<40x32xf32> to vector<40xf32>
    %486 = vector.shape_cast %485 : vector<40xf32> to vector<40x1xf32>
    %cst_197 = arith.constant 3.200000e+01 : f32
    %487 = vector.broadcast %cst_197 : f32 to vector<40x1xf32>
    %488 = arith.divf %486, %487 : vector<40x1xf32>
    %489 = vector.broadcast %488 : vector<40x1xf32> to vector<40x32xf32>
    %490 = arith.subf %480, %489 : vector<40x32xf32>
    %491 = arith.mulf %490, %490 : vector<40x32xf32>
    %cst_198 = arith.constant dense<0.000000e+00> : vector<40xf32>
    %492 = vector.multi_reduction <add>, %491, %cst_198 [1] : vector<40x32xf32> to vector<40xf32>
    %493 = vector.shape_cast %492 : vector<40xf32> to vector<40x1xf32>
    %cst_199 = arith.constant 3.200000e+01 : f32
    %494 = vector.broadcast %cst_199 : f32 to vector<40x1xf32>
    %495 = arith.divf %493, %494 : vector<40x1xf32>
    %496 = vector.broadcast %488 : vector<40x1xf32> to vector<40x32xf32>
    %497 = arith.subf %480, %496 : vector<40x32xf32>
    %cst_200 = arith.constant 9.99999974E-6 : f32
    %498 = vector.broadcast %cst_200 : f32 to vector<40x1xf32>
    %499 = arith.addf %495, %498 : vector<40x1xf32>
    %500 = math.rsqrt %499 : vector<40x1xf32>
    %501 = vector.broadcast %500 : vector<40x1xf32> to vector<40x32xf32>
    %502 = arith.mulf %497, %501 : vector<40x32xf32>
    %503 = vector.broadcast %482 : vector<1x32xf32> to vector<40x32xf32>
    %504 = arith.mulf %502, %503 : vector<40x32xf32>
    %505 = vector.broadcast %484 : vector<1x32xf32> to vector<40x32xf32>
    %506 = arith.addf %504, %505 : vector<40x32xf32>
    %c1_201 = arith.constant 1 : index
    %c0_202 = arith.constant 0 : index
    %c0_203 = arith.constant 0 : index
    %507 = vector.load %arg10[%c1_201, %c0_202, %c0_203] : memref<2x32x64xf32, #tpu.memory_space<vmem>>, vector<1x32x64xf32>
    %508 = vector.shape_cast %507 : vector<1x32x64xf32> to vector<32x64xf32>
    %cst_204 = arith.constant dense<0.000000e+00> : vector<40x64xf32>
    %509 = tpu.matmul %506, %508, %cst_204 {dimension_numbers = #tpu.dot_dimension_numbers<[1], [0], [0], [1], [0, 0, 1, 1], [], []>} : vector<40x32xf32>, vector<32x64xf32>, vector<40x64xf32> -> vector<40x64xf32>
    %c1_205 = arith.constant 1 : index
    %c0_206 = arith.constant 0 : index
    %c0_207 = arith.constant 0 : index
    %510 = vector.load %arg11[%c1_205, %c0_206, %c0_207] : memref<2x1x64xf32, #tpu.memory_space<vmem>>, vector<1x1x64xf32>
    %511 = vector.shape_cast %510 : vector<1x1x64xf32> to vector<1x64xf32>
    %512 = vector.broadcast %511 : vector<1x64xf32> to vector<40x64xf32>
    %513 = arith.addf %509, %512 : vector<40x64xf32>
    %cst_208 = arith.constant 0.707106769 : f32
    %514 = vector.broadcast %cst_208 : f32 to vector<40x64xf32>
    %515 = arith.mulf %513, %514 : vector<40x64xf32>
    %516 = math.absf %515 : vector<40x64xf32>
    %cst_209 = arith.constant 0.327591091 : f32
    %517 = vector.broadcast %cst_209 : f32 to vector<40x64xf32>
    %518 = arith.mulf %517, %516 : vector<40x64xf32>
    %cst_210 = arith.constant 1.000000e+00 : f32
    %519 = vector.broadcast %cst_210 : f32 to vector<40x64xf32>
    %520 = arith.addf %519, %518 : vector<40x64xf32>
    %cst_211 = arith.constant 1.000000e+00 : f32
    %521 = vector.broadcast %cst_211 : f32 to vector<40x64xf32>
    %522 = arith.divf %521, %520 : vector<40x64xf32>
    %cst_212 = arith.constant 1.06140542 : f32
    %523 = vector.broadcast %cst_212 : f32 to vector<40x64xf32>
    %524 = arith.mulf %523, %522 : vector<40x64xf32>
    %cst_213 = arith.constant 1.45315206 : f32
    %525 = vector.broadcast %cst_213 : f32 to vector<40x64xf32>
    %526 = arith.subf %524, %525 : vector<40x64xf32>
    %527 = arith.mulf %526, %522 : vector<40x64xf32>
    %cst_214 = arith.constant 1.42141378 : f32
    %528 = vector.broadcast %cst_214 : f32 to vector<40x64xf32>
    %529 = arith.addf %527, %528 : vector<40x64xf32>
    %530 = arith.mulf %529, %522 : vector<40x64xf32>
    %cst_215 = arith.constant 0.284496725 : f32
    %531 = vector.broadcast %cst_215 : f32 to vector<40x64xf32>
    %532 = arith.subf %530, %531 : vector<40x64xf32>
    %533 = arith.mulf %532, %522 : vector<40x64xf32>
    %cst_216 = arith.constant 0.254829586 : f32
    %534 = vector.broadcast %cst_216 : f32 to vector<40x64xf32>
    %535 = arith.addf %533, %534 : vector<40x64xf32>
    %536 = arith.mulf %535, %522 : vector<40x64xf32>
    %cst_217 = arith.constant 0.000000e+00 : f32
    %537 = vector.broadcast %cst_217 : f32 to vector<40x64xf32>
    %538 = arith.subf %537, %516 : vector<40x64xf32>
    %539 = arith.mulf %538, %516 : vector<40x64xf32>
    %540 = math.exp %539 : vector<40x64xf32>
    %541 = arith.mulf %536, %540 : vector<40x64xf32>
    %cst_218 = arith.constant 1.000000e+00 : f32
    %542 = vector.broadcast %cst_218 : f32 to vector<40x64xf32>
    %543 = arith.subf %542, %541 : vector<40x64xf32>
    %cst_219 = arith.constant 0.000000e+00 : f32
    %544 = vector.broadcast %cst_219 : f32 to vector<40x64xf32>
    %545 = arith.cmpf oge, %515, %544 : vector<40x64xf32>
    %cst_220 = arith.constant 0.000000e+00 : f32
    %546 = vector.broadcast %cst_220 : f32 to vector<40x64xf32>
    %547 = arith.subf %546, %543 : vector<40x64xf32>
    %548 = arith.select %545, %543, %547 : vector<40x64xi1>, vector<40x64xf32>
    %cst_221 = arith.constant 5.000000e-01 : f32
    %549 = vector.broadcast %cst_221 : f32 to vector<40x64xf32>
    %550 = arith.mulf %549, %513 : vector<40x64xf32>
    %cst_222 = arith.constant 1.000000e+00 : f32
    %551 = vector.broadcast %cst_222 : f32 to vector<40x64xf32>
    %552 = arith.addf %551, %548 : vector<40x64xf32>
    %553 = arith.mulf %550, %552 : vector<40x64xf32>
    %c1_223 = arith.constant 1 : index
    %c0_224 = arith.constant 0 : index
    %c0_225 = arith.constant 0 : index
    %554 = vector.load %arg12[%c1_223, %c0_224, %c0_225] : memref<2x64x32xf32, #tpu.memory_space<vmem>>, vector<1x64x32xf32>
    %555 = vector.shape_cast %554 : vector<1x64x32xf32> to vector<64x32xf32>
    %cst_226 = arith.constant dense<0.000000e+00> : vector<40x32xf32>
    %556 = tpu.matmul %553, %555, %cst_226 {dimension_numbers = #tpu.dot_dimension_numbers<[1], [0], [0], [1], [0, 0, 1, 1], [], []>} : vector<40x64xf32>, vector<64x32xf32>, vector<40x32xf32> -> vector<40x32xf32>
    %c1_227 = arith.constant 1 : index
    %c0_228 = arith.constant 0 : index
    %c0_229 = arith.constant 0 : index
    %557 = vector.load %arg13[%c1_227, %c0_228, %c0_229] : memref<2x1x32xf32, #tpu.memory_space<vmem>>, vector<1x1x32xf32>
    %558 = vector.shape_cast %557 : vector<1x1x32xf32> to vector<1x32xf32>
    %559 = vector.broadcast %558 : vector<1x32xf32> to vector<40x32xf32>
    %560 = arith.addf %556, %559 : vector<40x32xf32>
    %561 = arith.addf %506, %560 : vector<40x32xf32>
    %c1_230 = arith.constant 1 : index
    %c0_231 = arith.constant 0 : index
    %c0_232 = arith.constant 0 : index
    %562 = vector.load %arg14[%c1_230, %c0_231, %c0_232] : memref<2x1x32xf32, #tpu.memory_space<vmem>>, vector<1x1x32xf32>
    %563 = vector.shape_cast %562 : vector<1x1x32xf32> to vector<1x32xf32>
    %c1_233 = arith.constant 1 : index
    %c0_234 = arith.constant 0 : index
    %c0_235 = arith.constant 0 : index
    %564 = vector.load %arg15[%c1_233, %c0_234, %c0_235] : memref<2x1x32xf32, #tpu.memory_space<vmem>>, vector<1x1x32xf32>
    %565 = vector.shape_cast %564 : vector<1x1x32xf32> to vector<1x32xf32>
    %cst_236 = arith.constant dense<0.000000e+00> : vector<40xf32>
    %566 = vector.multi_reduction <add>, %561, %cst_236 [1] : vector<40x32xf32> to vector<40xf32>
    %567 = vector.shape_cast %566 : vector<40xf32> to vector<40x1xf32>
    %cst_237 = arith.constant 3.200000e+01 : f32
    %568 = vector.broadcast %cst_237 : f32 to vector<40x1xf32>
    %569 = arith.divf %567, %568 : vector<40x1xf32>
    %570 = vector.broadcast %569 : vector<40x1xf32> to vector<40x32xf32>
    %571 = arith.subf %561, %570 : vector<40x32xf32>
    %572 = arith.mulf %571, %571 : vector<40x32xf32>
    %cst_238 = arith.constant dense<0.000000e+00> : vector<40xf32>
    %573 = vector.multi_reduction <add>, %572, %cst_238 [1] : vector<40x32xf32> to vector<40xf32>
    %574 = vector.shape_cast %573 : vector<40xf32> to vector<40x1xf32>
    %cst_239 = arith.constant 3.200000e+01 : f32
    %575 = vector.broadcast %cst_239 : f32 to vector<40x1xf32>
    %576 = arith.divf %574, %575 : vector<40x1xf32>
    %577 = vector.broadcast %569 : vector<40x1xf32> to vector<40x32xf32>
    %578 = arith.subf %561, %577 : vector<40x32xf32>
    %cst_240 = arith.constant 9.99999974E-6 : f32
    %579 = vector.broadcast %cst_240 : f32 to vector<40x1xf32>
    %580 = arith.addf %576, %579 : vector<40x1xf32>
    %581 = math.rsqrt %580 : vector<40x1xf32>
    %582 = vector.broadcast %581 : vector<40x1xf32> to vector<40x32xf32>
    %583 = arith.mulf %578, %582 : vector<40x32xf32>
    %584 = vector.broadcast %563 : vector<1x32xf32> to vector<40x32xf32>
    %585 = arith.mulf %583, %584 : vector<40x32xf32>
    %586 = vector.broadcast %565 : vector<1x32xf32> to vector<40x32xf32>
    %587 = arith.addf %585, %586 : vector<40x32xf32>
    %c0_241 = arith.constant 0 : index
    %c0_242 = arith.constant 0 : index
    %588 = vector.load %arg20[%c0_241, %c0_242] : memref<1x32xf32, #tpu.memory_space<vmem>>, vector<1x32xf32>
    %c0_243 = arith.constant 0 : index
    %c0_244 = arith.constant 0 : index
    %589 = vector.load %arg21[%c0_243, %c0_244] : memref<1x32xf32, #tpu.memory_space<vmem>>, vector<1x32xf32>
    %cst_245 = arith.constant dense<0.000000e+00> : vector<40xf32>
    %590 = vector.multi_reduction <add>, %587, %cst_245 [1] : vector<40x32xf32> to vector<40xf32>
    %591 = vector.shape_cast %590 : vector<40xf32> to vector<40x1xf32>
    %cst_246 = arith.constant 3.200000e+01 : f32
    %592 = vector.broadcast %cst_246 : f32 to vector<40x1xf32>
    %593 = arith.divf %591, %592 : vector<40x1xf32>
    %594 = vector.broadcast %593 : vector<40x1xf32> to vector<40x32xf32>
    %595 = arith.subf %587, %594 : vector<40x32xf32>
    %596 = arith.mulf %595, %595 : vector<40x32xf32>
    %cst_247 = arith.constant dense<0.000000e+00> : vector<40xf32>
    %597 = vector.multi_reduction <add>, %596, %cst_247 [1] : vector<40x32xf32> to vector<40xf32>
    %598 = vector.shape_cast %597 : vector<40xf32> to vector<40x1xf32>
    %cst_248 = arith.constant 3.200000e+01 : f32
    %599 = vector.broadcast %cst_248 : f32 to vector<40x1xf32>
    %600 = arith.divf %598, %599 : vector<40x1xf32>
    %601 = vector.broadcast %593 : vector<40x1xf32> to vector<40x32xf32>
    %602 = arith.subf %587, %601 : vector<40x32xf32>
    %cst_249 = arith.constant 9.99999974E-6 : f32
    %603 = vector.broadcast %cst_249 : f32 to vector<40x1xf32>
    %604 = arith.addf %600, %603 : vector<40x1xf32>
    %605 = math.rsqrt %604 : vector<40x1xf32>
    %606 = vector.broadcast %605 : vector<40x1xf32> to vector<40x32xf32>
    %607 = arith.mulf %602, %606 : vector<40x32xf32>
    %608 = vector.broadcast %588 : vector<1x32xf32> to vector<40x32xf32>
    %609 = arith.mulf %607, %608 : vector<40x32xf32>
    %610 = vector.broadcast %589 : vector<1x32xf32> to vector<40x32xf32>
    %611 = arith.addf %609, %610 : vector<40x32xf32>
    %c0_250 = arith.constant 0 : index
    %c0_251 = arith.constant 0 : index
    %612 = vector.load %arg23[%c0_250, %c0_251] : memref<1x8xf32, #tpu.memory_space<vmem>>, vector<1x8xf32>
    %c5_i32_252 = arith.constant 5 : i32
    %613 = vector.broadcast %c5_i32_252 : i32 to vector<8x40xi32>
    %614 = arith.muli %69, %613 : vector<8x40xi32>
    %c1_i32 = arith.constant 1 : i32
    %615 = vector.broadcast %c1_i32 : i32 to vector<8x40xi32>
    %616 = arith.addi %614, %615 : vector<8x40xi32>
    %c0_i32_253 = arith.constant 0 : i32
    %617 = vector.broadcast %c0_i32_253 : i32 to vector<8x40xi32>
    %618 = arith.addi %616, %617 : vector<8x40xi32>
    %619 = arith.cmpi eq, %70, %618 : vector<8x40xi32>
    %620 = arith.extui %619 : vector<8x40xi1> to vector<8x40xi32>
    %621 = arith.sitofp %620 : vector<8x40xi32> to vector<8x40xf32>
    %cst_254 = arith.constant dense<0.000000e+00> : vector<8x32xf32>
    %622 = tpu.matmul %621, %611, %cst_254 {dimension_numbers = #tpu.dot_dimension_numbers<[1], [0], [0], [1], [0, 0, 1, 1], [], []>} : vector<8x40xf32>, vector<40x32xf32>, vector<8x32xf32> -> vector<8x32xf32>
    %c0_255 = arith.constant 0 : index
    %c0_256 = arith.constant 0 : index
    %c0_257 = arith.constant 0 : index
    %623 = vector.load %arg22[%c0_255, %c0_256, %c0_257] : memref<4x32x8xf32, #tpu.memory_space<vmem>>, vector<1x32x8xf32>
    %624 = vector.shape_cast %623 : vector<1x32x8xf32> to vector<32x8xf32>
    %cst_258 = arith.constant dense<0.000000e+00> : vector<8x8xf32>
    %625 = tpu.matmul %622, %624, %cst_258 {dimension_numbers = #tpu.dot_dimension_numbers<[1], [0], [0], [1], [0, 0, 1, 1], [], []>} : vector<8x32xf32>, vector<32x8xf32>, vector<8x8xf32> -> vector<8x8xf32>
    %626 = vector.broadcast %612 : vector<1x8xf32> to vector<8x8xf32>
    %627 = arith.addf %626, %625 : vector<8x8xf32>
    %c5_i32_259 = arith.constant 5 : i32
    %628 = vector.broadcast %c5_i32_259 : i32 to vector<8x40xi32>
    %629 = arith.muli %69, %628 : vector<8x40xi32>
    %c1_i32_260 = arith.constant 1 : i32
    %630 = vector.broadcast %c1_i32_260 : i32 to vector<8x40xi32>
    %631 = arith.addi %629, %630 : vector<8x40xi32>
    %c1_i32_261 = arith.constant 1 : i32
    %632 = vector.broadcast %c1_i32_261 : i32 to vector<8x40xi32>
    %633 = arith.addi %631, %632 : vector<8x40xi32>
    %634 = arith.cmpi eq, %70, %633 : vector<8x40xi32>
    %635 = arith.extui %634 : vector<8x40xi1> to vector<8x40xi32>
    %636 = arith.sitofp %635 : vector<8x40xi32> to vector<8x40xf32>
    %cst_262 = arith.constant dense<0.000000e+00> : vector<8x32xf32>
    %637 = tpu.matmul %636, %611, %cst_262 {dimension_numbers = #tpu.dot_dimension_numbers<[1], [0], [0], [1], [0, 0, 1, 1], [], []>} : vector<8x40xf32>, vector<40x32xf32>, vector<8x32xf32> -> vector<8x32xf32>
    %c1_263 = arith.constant 1 : index
    %c0_264 = arith.constant 0 : index
    %c0_265 = arith.constant 0 : index
    %638 = vector.load %arg22[%c1_263, %c0_264, %c0_265] : memref<4x32x8xf32, #tpu.memory_space<vmem>>, vector<1x32x8xf32>
    %639 = vector.shape_cast %638 : vector<1x32x8xf32> to vector<32x8xf32>
    %cst_266 = arith.constant dense<0.000000e+00> : vector<8x8xf32>
    %640 = tpu.matmul %637, %639, %cst_266 {dimension_numbers = #tpu.dot_dimension_numbers<[1], [0], [0], [1], [0, 0, 1, 1], [], []>} : vector<8x32xf32>, vector<32x8xf32>, vector<8x8xf32> -> vector<8x8xf32>
    %641 = arith.addf %627, %640 : vector<8x8xf32>
    %c5_i32_267 = arith.constant 5 : i32
    %642 = vector.broadcast %c5_i32_267 : i32 to vector<8x40xi32>
    %643 = arith.muli %69, %642 : vector<8x40xi32>
    %c1_i32_268 = arith.constant 1 : i32
    %644 = vector.broadcast %c1_i32_268 : i32 to vector<8x40xi32>
    %645 = arith.addi %643, %644 : vector<8x40xi32>
    %c2_i32 = arith.constant 2 : i32
    %646 = vector.broadcast %c2_i32 : i32 to vector<8x40xi32>
    %647 = arith.addi %645, %646 : vector<8x40xi32>
    %648 = arith.cmpi eq, %70, %647 : vector<8x40xi32>
    %649 = arith.extui %648 : vector<8x40xi1> to vector<8x40xi32>
    %650 = arith.sitofp %649 : vector<8x40xi32> to vector<8x40xf32>
    %cst_269 = arith.constant dense<0.000000e+00> : vector<8x32xf32>
    %651 = tpu.matmul %650, %611, %cst_269 {dimension_numbers = #tpu.dot_dimension_numbers<[1], [0], [0], [1], [0, 0, 1, 1], [], []>} : vector<8x40xf32>, vector<40x32xf32>, vector<8x32xf32> -> vector<8x32xf32>
    %c2 = arith.constant 2 : index
    %c0_270 = arith.constant 0 : index
    %c0_271 = arith.constant 0 : index
    %652 = vector.load %arg22[%c2, %c0_270, %c0_271] : memref<4x32x8xf32, #tpu.memory_space<vmem>>, vector<1x32x8xf32>
    %653 = vector.shape_cast %652 : vector<1x32x8xf32> to vector<32x8xf32>
    %cst_272 = arith.constant dense<0.000000e+00> : vector<8x8xf32>
    %654 = tpu.matmul %651, %653, %cst_272 {dimension_numbers = #tpu.dot_dimension_numbers<[1], [0], [0], [1], [0, 0, 1, 1], [], []>} : vector<8x32xf32>, vector<32x8xf32>, vector<8x8xf32> -> vector<8x8xf32>
    %655 = arith.addf %641, %654 : vector<8x8xf32>
    %c5_i32_273 = arith.constant 5 : i32
    %656 = vector.broadcast %c5_i32_273 : i32 to vector<8x40xi32>
    %657 = arith.muli %69, %656 : vector<8x40xi32>
    %c1_i32_274 = arith.constant 1 : i32
    %658 = vector.broadcast %c1_i32_274 : i32 to vector<8x40xi32>
    %659 = arith.addi %657, %658 : vector<8x40xi32>
    %c3_i32 = arith.constant 3 : i32
    %660 = vector.broadcast %c3_i32 : i32 to vector<8x40xi32>
    %661 = arith.addi %659, %660 : vector<8x40xi32>
    %662 = arith.cmpi eq, %70, %661 : vector<8x40xi32>
    %663 = arith.extui %662 : vector<8x40xi1> to vector<8x40xi32>
    %664 = arith.sitofp %663 : vector<8x40xi32> to vector<8x40xf32>
    %cst_275 = arith.constant dense<0.000000e+00> : vector<8x32xf32>
    %665 = tpu.matmul %664, %611, %cst_275 {dimension_numbers = #tpu.dot_dimension_numbers<[1], [0], [0], [1], [0, 0, 1, 1], [], []>} : vector<8x40xf32>, vector<40x32xf32>, vector<8x32xf32> -> vector<8x32xf32>
    %c3 = arith.constant 3 : index
    %c0_276 = arith.constant 0 : index
    %c0_277 = arith.constant 0 : index
    %666 = vector.load %arg22[%c3, %c0_276, %c0_277] : memref<4x32x8xf32, #tpu.memory_space<vmem>>, vector<1x32x8xf32>
    %667 = vector.shape_cast %666 : vector<1x32x8xf32> to vector<32x8xf32>
    %cst_278 = arith.constant dense<0.000000e+00> : vector<8x8xf32>
    %668 = tpu.matmul %665, %667, %cst_278 {dimension_numbers = #tpu.dot_dimension_numbers<[1], [0], [0], [1], [0, 0, 1, 1], [], []>} : vector<8x32xf32>, vector<32x8xf32>, vector<8x8xf32> -> vector<8x8xf32>
    %669 = arith.addf %655, %668 : vector<8x8xf32>
    %c0_279 = arith.constant 0 : index
    %c0_280 = arith.constant 0 : index
    %c0_281 = arith.constant 0 : index
    %670 = vector.load %arg2[%c0_279, %c0_280, %c0_281] : memref<1x8x1xf32, #tpu.memory_space<vmem>>, vector<1x8x1xf32>
    %671 = vector.shape_cast %670 : vector<1x8x1xf32> to vector<8x1xf32>
    %672 = vector.broadcast %671 : vector<8x1xf32> to vector<8x8xf32>
    %673 = arith.mulf %669, %672 : vector<8x8xf32>
    %c0_282 = arith.constant 0 : index
    %c0_283 = arith.constant 0 : index
    %c0_284 = arith.constant 0 : index
    %674 = vector.load %arg3[%c0_282, %c0_283, %c0_284] : memref<1x8x1xf32, #tpu.memory_space<vmem>>, vector<1x8x1xf32>
    %675 = vector.shape_cast %674 : vector<1x8x1xf32> to vector<8x1xf32>
    %676 = vector.broadcast %675 : vector<8x1xf32> to vector<8x8xf32>
    %677 = arith.addf %673, %676 : vector<8x8xf32>
    %c0_285 = arith.constant 0 : index
    %c0_286 = arith.constant 0 : index
    %c0_287 = arith.constant 0 : index
    %678 = vector.load %arg24[%c0_285, %c0_286, %c0_287] : memref<1x8x8xf32, #tpu.memory_space<vmem>>, vector<1x8x8xf32>
    %679 = vector.shape_cast %678 : vector<1x8x8xf32> to vector<8x8xf32>
    %680 = vector.shape_cast %677 : vector<8x8xf32> to vector<1x8x8xf32>
    tpu.vector_store %arg24[%c0_285, %c0_286, %c0_287], %680 {strides = array<i32>} : memref<1x8x8xf32, #tpu.memory_space<vmem>>, vector<1x8x8xf32>,
    return
  }
  func.func @transform_0(%arg0: i32) -> (i32, i32, i32) {
    %c0_i32 = arith.constant 0 : i32
    %c0_i32_0 = arith.constant 0 : i32
    %c0_i32_1 = arith.constant 0 : i32
    return %arg0, %c0_i32, %c0_i32_0 : i32, i32, i32
  }
  func.func @transform_1(%arg0: i32) -> (i32, i32, i32) {
    %c0_i32 = arith.constant 0 : i32
    %c0_i32_0 = arith.constant 0 : i32
    %c0_i32_1 = arith.constant 0 : i32
    return %arg0, %c0_i32, %c0_i32_0 : i32, i32, i32
  }
  func.func @transform_2(%arg0: i32) -> (i32, i32, i32) {
    %c0_i32 = arith.constant 0 : i32
    %c0_i32_0 = arith.constant 0 : i32
    %c0_i32_1 = arith.constant 0 : i32
    return %arg0, %c0_i32, %c0_i32_0 : i32, i32, i32
  }
  func.func @transform_3(%arg0: i32) -> (i32, i32, i32) {
    %c0_i32 = arith.constant 0 : i32
    %c0_i32_0 = arith.constant 0 : i32
    %c0_i32_1 = arith.constant 0 : i32
    %c0_i32_2 = arith.constant 0 : i32
    return %c0_i32, %c0_i32_0, %c0_i32_1 : i32, i32, i32
  }
  func.func @transform_4(%arg0: i32) -> (i32, i32, i32) {
    %c0_i32 = arith.constant 0 : i32
    %c0_i32_0 = arith.constant 0 : i32
    %c0_i32_1 = arith.constant 0 : i32
    %c0_i32_2 = arith.constant 0 : i32
    return %c0_i32, %c0_i32_0, %c0_i32_1 : i32, i32, i32
  }
  func.func @transform_5(%arg0: i32) -> (i32, i32, i32) {
    %c0_i32 = arith.constant 0 : i32
    %c0_i32_0 = arith.constant 0 : i32
    %c0_i32_1 = arith.constant 0 : i32
    %c0_i32_2 = arith.constant 0 : i32
    return %c0_i32, %c0_i32_0, %c0_i32_1 : i32, i32, i32
  }
  func.func @transform_6(%arg0: i32) -> (i32, i32, i32) {
    %c0_i32 = arith.constant 0 : i32
    %c0_i32_0 = arith.constant 0 : i32
    %c0_i32_1 = arith.constant 0 : i32
    %c0_i32_2 = arith.constant 0 : i32
    return %c0_i32, %c0_i32_0, %c0_i32_1 : i32, i32, i32
  }
  func.func @transform_7(%arg0: i32) -> (i32, i32, i32) {
    %c0_i32 = arith.constant 0 : i32
    %c0_i32_0 = arith.constant 0 : i32
    %c0_i32_1 = arith.constant 0 : i32
    %c0_i32_2 = arith.constant 0 : i32
    return %c0_i32, %c0_i32_0, %c0_i32_1 : i32, i32, i32
  }
  func.func @transform_8(%arg0: i32) -> (i32, i32, i32) {
    %c0_i32 = arith.constant 0 : i32
    %c0_i32_0 = arith.constant 0 : i32
    %c0_i32_1 = arith.constant 0 : i32
    %c0_i32_2 = arith.constant 0 : i32
    return %c0_i32, %c0_i32_0, %c0_i32_1 : i32, i32, i32
  }
  func.func @transform_9(%arg0: i32) -> (i32, i32, i32) {
    %c0_i32 = arith.constant 0 : i32
    %c0_i32_0 = arith.constant 0 : i32
    %c0_i32_1 = arith.constant 0 : i32
    %c0_i32_2 = arith.constant 0 : i32
    return %c0_i32, %c0_i32_0, %c0_i32_1 : i32, i32, i32
  }
  func.func @transform_10(%arg0: i32) -> (i32, i32, i32) {
    %c0_i32 = arith.constant 0 : i32
    %c0_i32_0 = arith.constant 0 : i32
    %c0_i32_1 = arith.constant 0 : i32
    %c0_i32_2 = arith.constant 0 : i32
    return %c0_i32, %c0_i32_0, %c0_i32_1 : i32, i32, i32
  }
  func.func @transform_11(%arg0: i32) -> (i32, i32, i32) {
    %c0_i32 = arith.constant 0 : i32
    %c0_i32_0 = arith.constant 0 : i32
    %c0_i32_1 = arith.constant 0 : i32
    %c0_i32_2 = arith.constant 0 : i32
    return %c0_i32, %c0_i32_0, %c0_i32_1 : i32, i32, i32
  }
  func.func @transform_12(%arg0: i32) -> (i32, i32, i32) {
    %c0_i32 = arith.constant 0 : i32
    %c0_i32_0 = arith.constant 0 : i32
    %c0_i32_1 = arith.constant 0 : i32
    %c0_i32_2 = arith.constant 0 : i32
    return %c0_i32, %c0_i32_0, %c0_i32_1 : i32, i32, i32
  }
  func.func @transform_13(%arg0: i32) -> (i32, i32, i32) {
    %c0_i32 = arith.constant 0 : i32
    %c0_i32_0 = arith.constant 0 : i32
    %c0_i32_1 = arith.constant 0 : i32
    %c0_i32_2 = arith.constant 0 : i32
    return %c0_i32, %c0_i32_0, %c0_i32_1 : i32, i32, i32
  }
  func.func @transform_14(%arg0: i32) -> (i32, i32, i32) {
    %c0_i32 = arith.constant 0 : i32
    %c0_i32_0 = arith.constant 0 : i32
    %c0_i32_1 = arith.constant 0 : i32
    %c0_i32_2 = arith.constant 0 : i32
    return %c0_i32, %c0_i32_0, %c0_i32_1 : i32, i32, i32
  }
  func.func @transform_15(%arg0: i32) -> (i32, i32, i32) {
    %c0_i32 = arith.constant 0 : i32
    %c0_i32_0 = arith.constant 0 : i32
    %c0_i32_1 = arith.constant 0 : i32
    %c0_i32_2 = arith.constant 0 : i32
    return %c0_i32, %c0_i32_0, %c0_i32_1 : i32, i32, i32
  }
  func.func @transform_16(%arg0: i32) -> (i32, i32, i32) {
    %c0_i32 = arith.constant 0 : i32
    %c0_i32_0 = arith.constant 0 : i32
    %c0_i32_1 = arith.constant 0 : i32
    %c0_i32_2 = arith.constant 0 : i32
    return %c0_i32, %c0_i32_0, %c0_i32_1 : i32, i32, i32
  }
  func.func @transform_17(%arg0: i32) -> (i32, i32, i32) {
    %c0_i32 = arith.constant 0 : i32
    %c0_i32_0 = arith.constant 0 : i32
    %c0_i32_1 = arith.constant 0 : i32
    %c0_i32_2 = arith.constant 0 : i32
    return %c0_i32, %c0_i32_0, %c0_i32_1 : i32, i32, i32
  }
  func.func @transform_18(%arg0: i32) -> (i32, i32) {
    %c0_i32 = arith.constant 0 : i32
    %c0_i32_0 = arith.constant 0 : i32
    %c0_i32_1 = arith.constant 0 : i32
    return %c0_i32, %c0_i32_0 : i32, i32
  }
  func.func @transform_19(%arg0: i32) -> (i32, i32) {
    %c0_i32 = arith.constant 0 : i32
    %c0_i32_0 = arith.constant 0 : i32
    %c0_i32_1 = arith.constant 0 : i32
    return %c0_i32, %c0_i32_0 : i32, i32
  }
  func.func @transform_20(%arg0: i32) -> (i32, i32) {
    %c0_i32 = arith.constant 0 : i32
    %c0_i32_0 = arith.constant 0 : i32
    %c0_i32_1 = arith.constant 0 : i32
    return %c0_i32, %c0_i32_0 : i32, i32
  }
  func.func @transform_21(%arg0: i32) -> (i32, i32, i32) {
    %c0_i32 = arith.constant 0 : i32
    %c0_i32_0 = arith.constant 0 : i32
    %c0_i32_1 = arith.constant 0 : i32
    %c0_i32_2 = arith.constant 0 : i32
    return %c0_i32, %c0_i32_0, %c0_i32_1 : i32, i32, i32
  }
  func.func @transform_22(%arg0: i32) -> (i32, i32) {
    %c0_i32 = arith.constant 0 : i32
    %c0_i32_0 = arith.constant 0 : i32
    %c0_i32_1 = arith.constant 0 : i32
    return %c0_i32, %c0_i32_0 : i32, i32
  }
  func.func @transform_23(%arg0: i32) -> (i32, i32, i32) {
    %c0_i32 = arith.constant 0 : i32
    %c0_i32_0 = arith.constant 0 : i32
    %c0_i32_1 = arith.constant 0 : i32
    return %arg0, %c0_i32, %c0_i32_0 : i32, i32, i32
  }
}

</mosaic_0001>

<bundles_post_ra>
// kernel: mul.25
= control target key start
LH: loop header
LB: loop body
LE: loop exit
PB: predicated region body
PF: predicated region fallthrough
CT: control target
= control target key end

     0   :  { %s34_s0 = inlined_call_operand.vmem [shape: f32[4,4], index: 0, kind: input, shape index: {}]   ;;  %s35_s1 = inlined_call_operand.vmem [shape: f32[4,4], index: 1, kind: input, shape index: {}]   ;;  %s36_s2 = inlined_call_operand.vmem [shape: f32[4,4], index: 2, kind: output, shape index: {}]  }
   0x1   :  { %v3_v0 = vld [vmem:[%s34_s0] sm:$0xf] }
   0x2   :  { %v4_v1 = vld [vmem:[%s35_s1] sm:$0xf] }
   0x3   :  { %v7_v2 = vmul.f32 %v4_v1, %v3_v0 }
   0x5   :  { %9 = vst [vmem:[%s36_s2] sm:$0xf] %v7_v2 }

// kernel: forward.1
= control target key start
LH: loop header
LB: loop body
LE: loop exit
PB: predicated region body
PF: predicated region fallthrough
CT: control target
= control target key end

     0   :  { %s10397_s0 = inlined_call_operand.vmem [shape: f32[1,40,32], index: 0, kind: input, shape index: {}]   ;;  %s10398_s1 = inlined_call_operand.vmem [shape: f32[1,8,1], index: 1, kind: input, shape index: {}]   ;;  %s10399_s2 = inlined_call_operand.vmem [shape: f32[1,8,1], index: 2, kind: input, shape index: {}]   ;;  %s10400_s3 = inlined_call_operand.vmem [shape: f32[2,32,96], index: 3, kind: input, shape index: {}]   ;;  %s10401_s4 = inlined_call_operand.vmem [shape: f32[2,1,96], index: 4, kind: input, shape index: {}]   ;;  %s10402_s5 = inlined_call_operand.vmem [shape: f32[2,32,32], index: 5, kind: input, shape index: {}]   ;;  %s10403_s6 = inlined_call_operand.vmem [shape: f32[2,1,32], index: 6, kind: input, shape index: {}]   ;;  %s10404_s7 = inlined_call_operand.vmem [shape: f32[2,1,32], index: 7, kind: input, shape index: {}]   ;;  %s10405_s8 = inlined_call_operand.vmem [shape: f32[2,1,32], index: 8, kind: input, shape index: {}]   ;;  %s10406_s9 = inlined_call_operand.vmem [shape: f32[2,32,64], index: 9, kind: input, shape index: {}]   ;;  %s10407_s10 = inlined_call_operand.vmem [shape: f32[2,1,64], index: 10, kind: input, shape index: {}]   ;;  %s10408_s11 = inlined_call_operand.vmem [shape: f32[2,64,32], index: 11, kind: input, shape index: {}]   ;;  %s10409_s12 = inlined_call_operand.vmem [shape: f32[2,1,32], index: 12, kind: input, shape index: {}]   ;;  %s10410_s13 = inlined_call_operand.vmem [shape: f32[2,1,32], index: 13, kind: input, shape index: {}]   ;;  %s10411_s14 = inlined_call_operand.vmem [shape: f32[2,1,32], index: 14, kind: input, shape index: {}]   ;;  %s10412_s15 = inlined_call_operand.vmem [shape: f32[1,32,32], index: 15, kind: input, shape index: {}]   ;;  %s10413_s16 = inlined_call_operand.vmem [shape: f32[1,1,32], index: 16, kind: input, shape index: {}]   ;;  %s10414_s17 = inlined_call_operand.vmem [shape: f32[1,1,32], index: 17, kind: input, shape index: {}]   ;;  %s10415_s18 = inlined_call_operand.vmem [shape: f32[4,4], index: 18, kind: input, shape index: {}]   ;;  %s10416_s19 = inlined_call_operand.vmem [shape: f32[1,32], index: 19, kind: input, shape index: {}]   ;;  %s10417_s20 = inlined_call_operand.vmem [shape: f32[1,32], index: 20, kind: input, shape index: {}]   ;;  %s10418_s21 = inlined_call_operand.vmem [shape: f32[4,32,8], index: 21, kind: input, shape index: {}]   ;;  %s10419_s22 = inlined_call_operand.vmem [shape: f32[1,8], index: 22, kind: input, shape index: {}]   ;;  %s10420_s23 = inlined_call_operand.hbm [shape: f32[1,8,8], index: 23, kind: output, shape index: {}]  }
   0x1   :  { %10453 = sst [smem:[#allocation5_spill]] %s10397_s0 }
   0x2   :  { %10454 = sst [smem:[#allocation6_spill]] %s10398_s1 }
   0x3   :  { %10455 = sst [smem:[#allocation7_spill]] %s10399_s2 }
   0x4   :  { %10456 = sst [smem:[#allocation8_spill]] %s10400_s3 }
   0x5   :  { %10457 = sst [smem:[#allocation9_spill]] %s10401_s4 }
   0x6   :  { %10458 = sst [smem:[#allocation10_spill]] %s10402_s5 }
   0x7   :  { %10459 = sst [smem:[#allocation11_spill]] %s10403_s6 }
   0x8   :  { %10460 = sst [smem:[#allocation12_spill]] %s10404_s7 }
   0x9   :  { %s10461_s24 = sld [smem:[#allocation8_spill]]  ;;  %v7953_v1 = vmov 0.0   ;;  %vm7954_vm0 = vmmov 0  }
   0xa   :  { %6838 = vmatprep.subr.mxu0 %v7953_v1  ;;  %6846 = vmatprep.mubr.msk.f32.mxu0 %vm7954_vm0, %v7953_v1 }
   0xb   :  { %6861 = vmatprep.subr.mxu1 %v7953_v1  ;;  %6871 = vmatprep.mubr.msk.f32.mxu1 %vm7954_vm0, %v7953_v1 }
   0xf   :  { %v217_v0 = vld [vmem:[%s10461_s24 + $0x18] sm:$0xff]  ;;  %v216_v2 = vld [vmem:[%s10461_s24 + $0x10] sm:$0xff]  ;;  %v215_v3 = vld [vmem:[%s10461_s24 + $0x8] sm:$0xff] }
  0x10   :  { %6839 = vmatpush3.msra.mxu0 %v217_v0 }
  0x11   :  { %6840 = vmatprep.subr.mxu0 %v7953_v1 }
  0x12   :  { %28 = vsyncpa [#allocation3], 0  ;;  %6841 = vmatpush3.msra.mxu0 %v216_v2  ;;  %v214_v4 = vld [vmem:[%s10461_s24] sm:$0xff]  ;;  %s10462_s28 = sld [smem:[#allocation5_spill]]  ;;  %vm225_vm1 = vcmask 261120   ;;  %s7955_s27 = smov 96  }
  0x13   :  { %6842 = vmatprep.subr.mxu0 %v7953_v1  ;;  %s10463_s6 = sld [smem:[#allocation9_spill]]  ;;  %s7956_s7 = smov 88   ;;  %vm10452_vm2 = vcmask 64512  }
  0x14   :  { %6843 = vmatpush3.msra.mxu0 %v215_v3  ;;  %s10441_s29 = smov 80   ;;  %s7958_s3 = smov 120  }
  0x15   :  { %6844 = vmatprep.subr.mxu0 %v7953_v1  ;;  %s10437_s0 = smov 72   ;;  %s10439_s4 = smov 112  }
  0x16   :  { %6845 = vmatpush3.msra.mxu0 %v214_v4  ;;  %s10435_s30 = smov 104   ;;  %s10433_s25 = smov 64  }
  0x17   :  { %6886 = vmatprep.subr.mxu0 %v7953_v1  ;;  %s10431_s5 = smov 56   ;;  %s10429_s1 = smov 48  }
  0x18   :  { %v75_v5 = vld [vmem:[%s10462_s28] sm:$0xff]  ;;  %v76_v6 = vld [vmem:[%s10462_s28 + $0x8] sm:$0xff]  ;;  %v77_v7 = vld [vmem:[%s10462_s28 + $0x10] sm:$0xff]  ;;  %s10427_s26 = smov 40   ;;  %s10447_s2 = smov 8  }
  0x19   :  { %6847 = vmatmul.mubr.msk.f32.vlgmr.msra.gmra.mxu0 %vm225_vm1, %v75_v5  ;;  %v78_v8 = vld [vmem:[%s10462_s28 + $0x18] sm:$0xff]  ;;  %v79_v9 = vld [vmem:[%s10462_s28 + $0x20] sm:$0xff]  ;;  %v7965_v5 = vmov 0  }
  0x1a   :  { %6849 = vmatprep.mubr.msk.f32.mxu0 %vm7954_vm0, %v7953_v1  ;;  %v6224_v14 = vld [vmem:[%s10463_s6] ss:$0 sm:$0xff]  ;;  %7654 = vset.pattern.permute.xlu1 %v7965_v5 }
  0x1b   :  { %7655 = vset.pattern.permute.xlu0 %v7965_v5 }
  0x1d   :  { %6850 = vmatmul.mubr.msk.f32.gmra.mxu0 %vm225_vm1, %v76_v6  ;;  %v80_v6 = vlaneseq }
  0x1e   :  { %6852 = vmatprep.mubr.msk.f32.mxu0 %vm7954_vm0, %v7953_v1 }
  0x21   :  { %6853 = vmatmul.mubr.msk.f32.gmra.mxu0 %vm225_vm1, %v77_v7  ;;  %v8370_v7 = vand.u32 127, %v80_v6 }
  0x22   :  { %6855 = vmatprep.mubr.msk.f32.mxu0 %vm7954_vm0, %v7953_v1 }
  0x23   :  { %vm98_vm3 = vcmp.ge.s32.totalorder %v8370_v7, 5  ;;  %vm115_vm4 = vcmp.ge.s32.totalorder %v8370_v7, 10  ;;  %vm133_vm5 = vcmp.ge.s32.totalorder %v8370_v7, 15  ;;  %vm151_vm6 = vcmp.ge.s32.totalorder %v8370_v7, 20 }
  0x24   :  { %vm169_vm7 = vcmp.ge.s32.totalorder %v8370_v7, 25  ;;  %vm187_vm8 = vcmp.ge.s32.totalorder %v8370_v7, 30  ;;  %vm205_vm9 = vcmp.ge.s32.totalorder %v8370_v7, 35 }
  0x25   :  { %6856 = vmatmul.mubr.msk.f32.gmra.mxu0 %vm225_vm1, %v78_v8  ;;  %v99_v8 = vsel %vm98_vm3, 1, %v7965_v5  ;;  %vm467_vm3 = vcmask 326656  }
  0x26   :  { %6858 = vmatprep.mubr.msk.f32.mxu0 %vm7954_vm0, %v7953_v1 }
  0x29   :  { %6859 = vmatmul.mubr.msk.f32.gmra.mxu0 %vm225_vm1, %v79_v9  ;;  %v116_v9 = vsel %vm115_vm4, 1, %v7965_v5 }
  0x2a   :  { %6896 = vmatprep.mubr.msk.f32.mxu0 %vm7954_vm0, %v7953_v1 }
  0xd9   :  { %v307_v10 = vpop.f32.mrf.mxu0 }
  0xda   :  { %v8166_v25 = vadd.f32 %v6224_v14, %v307_v10  ;;  %v117_v10 = vadd.s32 %v116_v9, %v99_v8 }
  0xdb   :  { %v6848_v11 = vpop.f32.mrf.mxu0 }
  0xdc   :  { %v134_v11 = vsel %vm133_vm5, 1, %v7965_v5 }
  0xdd   :  { %v312_v12 = vpop.f32.mrf.mxu0 }
  0xde   :  { %v8150_v19 = vadd.f32 %v6224_v14, %v312_v12  ;;  %v135_v12 = vadd.s32 %v134_v11, %v117_v10 }
  0xdf   :  { %v6851_v13 = vpop.f32.mrf.mxu0 }
  0xe0   :  { %v152_v13 = vsel %vm151_vm6, 1, %v7965_v5 }
  0xe1   :  { %v317_v15 = vpop.f32.mrf.mxu0 }
  0xe2   :  { %v8146_v16 = vadd.f32 %v6224_v14, %v317_v15  ;;  %v153_v15 = vadd.s32 %v152_v13, %v135_v12 }
  0xe3   :  { %v6854_v17 = vpop.f32.mrf.mxu0 }
  0xe4   :  { %340 = vrot.lane.b32.xlu1 %v8146_v16, %s7955_s27  ;;  %v170_v17 = vsel %vm169_vm7, 1, %v7965_v5 }
  0xe5   :  { %v322_v18 = vpop.f32.mrf.mxu0 }
  0xe6   :  { %v8160_v24 = vadd.f32 %v6224_v14, %v322_v18 }
  0xe7   :  { %v6857_v20 = vpop.f32.mrf.mxu0 }
  0xe8   :  { %338 = vrot.lane.b32.xlu1 %v8150_v19, %s7955_s27  ;;  %v171_v20 = vadd.s32 %v170_v17, %v153_v15 }
  0xe9   :  { %v327_v21 = vpop.f32.mrf.mxu0 }
  0xea   :  { %v8154_v22 = vadd.f32 %v6224_v14, %v327_v21  ;;  %v8380_v14 = vshrl.u32 %v80_v6, 7  ;;  %v188_v21 = vsel %vm187_vm8, 1, %v7965_v5 }
  0xeb   :  { %v6860_v23 = vpop.f32.mrf.mxu0 }
  0xec   :  { %661 = vrot.lane.b32.xlu1 %v8154_v22, %s7956_s7  ;;  %344 = vrot.lane.b32.xlu0 %v8154_v22, %s7955_s27  ;;  %v8386_v18 = vadd.s32 8, %v8380_v14  ;;  %v189_v23 = vadd.s32 %v188_v21, %v171_v20  ;;  %vm88_vm11 = vcmp.ge.s32.totalorder %v8380_v14, 5 }
  0xee   :  { %vm101_vm10 = vcmp.ge.s32.totalorder %v8386_v18, 10  ;;  %vm119_vm12 = vcmp.ge.s32.totalorder %v8386_v18, 15 }
  0xf0   :  { %657 = vrot.lane.b32.xlu1 %v8146_v16, %s7956_s7  ;;  %342 = vrot.lane.b32.xlu0 %v8160_v24, %s7955_s27 }
  0xf4   :  { %653 = vrot.lane.b32.xlu1 %v8166_v25, %s7956_s7  ;;  %336 = vrot.lane.b32.xlu0 %v8166_v25, %s7955_s27 }
  0xf8   :  { %976 = vrot.lane.b32.xlu1 %v8154_v22, %s10441_s29  ;;  %659 = vrot.lane.b32.xlu0 %v8160_v24, %s7956_s7 }
  0xfc   :  { %974 = vrot.lane.b32.xlu1 %v8160_v24, %s10441_s29  ;;  %655 = vrot.lane.b32.xlu0 %v8150_v19, %s7956_s7 }
 0x100   :  { %972 = vrot.lane.b32.xlu1 %v8146_v16, %s10441_s29  ;;  %643 = vrot.lane.b32.xlu0 %v8166_v25, %s7958_s3 }
 0x104   :  { %970 = vrot.lane.b32.xlu1 %v8150_v19, %s10441_s29  ;;  %645 = vrot.lane.b32.xlu0 %v8150_v19, %s7958_s3 }
 0x108   :  { %968 = vrot.lane.b32.xlu1 %v8166_v25, %s10441_s29  ;;  %647 = vrot.lane.b32.xlu0 %v8146_v16, %s7958_s3  ;;  %s10443_s29 = smov 24  }
 0x10c   :  { %1291 = vrot.lane.b32.xlu1 %v8154_v22, %s10437_s0  ;;  %649 = vrot.lane.b32.xlu0 %v8160_v24, %s7958_s3 }
 0x110   :  { %1289 = vrot.lane.b32.xlu1 %v8160_v24, %s10437_s0  ;;  %651 = vrot.lane.b32.xlu0 %v8154_v22, %s7958_s3 }
 0x114   :  { %1287 = vrot.lane.b32.xlu1 %v8146_v16, %s10437_s0  ;;  %958 = vrot.lane.b32.xlu0 %v8166_v25, %s10439_s4 }
 0x118   :  { %1285 = vrot.lane.b32.xlu1 %v8150_v19, %s10437_s0  ;;  %960 = vrot.lane.b32.xlu0 %v8150_v19, %s10439_s4 }
 0x11c   :  { %1283 = vrot.lane.b32.xlu1 %v8166_v25, %s10437_s0  ;;  %962 = vrot.lane.b32.xlu0 %v8146_v16, %s10439_s4  ;;  %s10481_s0 = smov 64  }
 0x120   :  { %1275 = vrot.lane.b32.xlu1 %v8150_v19, %s10435_s30  ;;  %964 = vrot.lane.b32.xlu0 %v8160_v24, %s10439_s4 }
 0x124   :  { %1279 = vrot.lane.b32.xlu1 %v8160_v24, %s10435_s30  ;;  %966 = vrot.lane.b32.xlu0 %v8154_v22, %s10439_s4  ;;  %s10476_s4 = sld [smem:[#allocation12_spill]] }
 0x128   :  { %527 = vrot.lane.b32.xlu1 %v8146_v16, %s10433_s25  ;;  %1273 = vrot.lane.b32.xlu0 %v8166_v25, %s10435_s30 }
 0x12c   :  { %842 = vrot.lane.b32.xlu1 %v8146_v16, %s10431_s5  ;;  %1277 = vrot.lane.b32.xlu0 %v8146_v16, %s10435_s30 }
 0x130   :  { %1157 = vrot.lane.b32.xlu1 %v8146_v16, %s10429_s1  ;;  %1281 = vrot.lane.b32.xlu0 %v8154_v22, %s10435_s30  ;;  %s10482_s30 = smov 56  }
 0x134   :  { %531 = vrot.lane.b32.xlu1 %v8154_v22, %s10433_s25  ;;  %529 = vrot.lane.b32.xlu0 %v8160_v24, %s10433_s25 }
 0x138   :  { %846 = vrot.lane.b32.xlu1 %v8154_v22, %s10431_s5  ;;  %525 = vrot.lane.b32.xlu0 %v8150_v19, %s10433_s25 }
 0x13c   :  { %1161 = vrot.lane.b32.xlu1 %v8154_v22, %s10429_s1  ;;  %523 = vrot.lane.b32.xlu0 %v8166_v25, %s10433_s25  ;;  %s10474_s25 = sld [smem:[#allocation10_spill]] }
 0x140   :  { %844 = vrot.lane.b32.xlu0 %v8160_v24, %s10431_s5 }
 0x144   :  { %840 = vrot.lane.b32.xlu0 %v8150_v19, %s10431_s5 }
 0x148   :  { %838 = vrot.lane.b32.xlu0 %v8166_v25, %s10431_s5  ;;  %s10521_s5 = smov 8  }
 0x14c   :  { %1159 = vrot.lane.b32.xlu0 %v8160_v24, %s10429_s1 }
 0x150   :  { %1155 = vrot.lane.b32.xlu0 %v8150_v19, %s10429_s1 }
 0x156   :  { %v341_v26 = vpop.permute.xlu1 %340 }
 0x15a   :  { %v339_v27 = vpop.permute.xlu1 %338 }
 0x15e   :  { %v662_v28 = vpop.permute.xlu1 %661  ;;  %v345_v29 = vpop.permute.xlu0 %344 }
 0x15f   :  { %6862 = vmatpush3.xpose.msk.msra.mxu1 %vm10452_vm2, %v345_v29  ;;  %v8399_v29 = vadd.s32 24, %v8380_v14 }
 0x160   :  { %6863 = vmatprep.subr.mxu1 %v7953_v1 }
 0x161   :  { %vm157_vm14 = vcmp.ge.s32.totalorder %v8399_v29, 25  ;;  %vm175_vm4 = vcmp.ge.s32.totalorder %v8399_v29, 30 }
 0x162   :  { %v658_v30 = vpop.permute.xlu1 %657  ;;  %v343_v31 = vpop.permute.xlu0 %342 }
 0x163   :  { %6864 = vmatpush3.xpose.msk.msra.mxu1 %vm10452_vm2, %v343_v31 }
 0x164   :  { %6865 = vmatprep.subr.mxu1 %v7953_v1 }
 0x166   :  { %v654_v32 = vpop.permute.xlu1 %653  ;;  %v337_v33 = vpop.permute.xlu0 %336 }
 0x167   :  { %6866 = vmatpush3.xpose.msk.msra.mxu1 %vm10452_vm2, %v341_v26  ;;  %v206_v26 = vsel %vm205_vm9, 1, %v7965_v5 }
 0x168   :  { %6867 = vmatprep.subr.mxu1 %v7953_v1 }
 0x16a   :  { %v977_v34 = vpop.permute.xlu1 %976  ;;  %v660_v35 = vpop.permute.xlu0 %659 }
 0x16b   :  { %6868 = vmatpush3.xpose.msk.msra.mxu1 %vm10452_vm2, %v339_v27  ;;  %v106_v27 = vsel %vm101_vm10, 1, %v7965_v5  ;;  %vm10451_vm10 = vcmask 130048  }
 0x16c   :  { %6869 = vmatprep.subr.mxu1 %v7953_v1  ;;  %v111_v31 = vadd.s32 1, %v106_v27 }
 0x16e   :  { %v975_v36 = vpop.permute.xlu1 %974  ;;  %v656_v37 = vpop.permute.xlu0 %655 }
 0x16f   :  { %6870 = vmatpush3.xpose.msk.msra.mxu1 %vm10452_vm2, %v337_v33  ;;  %v124_v33 = vsel %vm119_vm12, 1, %v7965_v5 }
 0x170   :  { %6911 = vmatprep.subr.mxu1 %v7953_v1 }
 0x172   :  { %v973_v38 = vpop.permute.xlu1 %972  ;;  %6872 = vmatmul.mubr.msk.f32.vlgmr.msra.gmra.mxu1 %vm10452_vm2, %v8166_v25  ;;  %v644_v39 = vpop.permute.xlu0 %643 }
 0x173   :  { %6912 = vmatpush3.xpose.msk.msra.mxu1 %vm10452_vm2, %v662_v28  ;;  %6874 = vmatprep.mubr.msk.f32.mxu1 %vm7954_vm0, %v7953_v1  ;;  %v8396_v28 = vadd.s32 16, %v8380_v14 }
 0x174   :  { %6913 = vmatprep.subr.mxu1 %v7953_v1 }
 0x175   :  { %vm138_vm13 = vcmp.ge.s32.totalorder %v8396_v28, 20 }
 0x176   :  { %v971_v40 = vpop.permute.xlu1 %970  ;;  %6875 = vmatmul.mubr.msk.f32.gmra.mxu1 %vm10452_vm2, %v8150_v19  ;;  %v646_v41 = vpop.permute.xlu0 %645 }
 0x177   :  { %6914 = vmatpush3.xpose.msk.msra.mxu1 %vm10452_vm2, %v660_v35  ;;  %6877 = vmatprep.mubr.msk.f32.mxu1 %vm7954_vm0, %v7953_v1 }
 0x178   :  { %6915 = vmatprep.subr.mxu1 %v7953_v1 }
 0x17a   :  { %v969_v42 = vpop.permute.xlu1 %968  ;;  %6878 = vmatmul.mubr.msk.f32.gmra.mxu1 %vm10452_vm2, %v8146_v16  ;;  %v648_v43 = vpop.permute.xlu0 %647 }
 0x17b   :  { %6916 = vmatpush3.xpose.msk.msra.mxu1 %vm10452_vm2, %v658_v30  ;;  %6880 = vmatprep.mubr.msk.f32.mxu1 %vm7954_vm0, %v7953_v1  ;;  %v207_v30 = vadd.s32 %v206_v26, %v189_v23 }
 0x17c   :  { %6917 = vmatprep.subr.mxu1 %v7953_v1 }
 0x17e   :  { %v1292_v44 = vpop.permute.xlu1 %1291  ;;  %6881 = vmatmul.mubr.msk.f32.gmra.mxu1 %vm10452_vm2, %v8160_v24  ;;  %v650_v45 = vpop.permute.xlu0 %649 }
 0x17f   :  { %6918 = vmatpush3.xpose.msk.msra.mxu1 %vm10452_vm2, %v656_v37  ;;  %6883 = vmatprep.mubr.msk.f32.mxu1 %vm7954_vm0, %v7953_v1 }
 0x180   :  { %6919 = vmatprep.subr.mxu1 %v7953_v1 }
 0x182   :  { %v1290_v46 = vpop.permute.xlu1 %1289  ;;  %6884 = vmatmul.mubr.msk.f32.gmra.mxu1 %vm10452_vm2, %v8154_v22  ;;  %v652_v47 = vpop.permute.xlu0 %651 }
 0x183   :  { %6920 = vmatpush3.xpose.msk.msra.mxu1 %vm10452_vm2, %v654_v32  ;;  %6921 = vmatprep.mubr.msk.f32.mxu1 %vm7954_vm0, %v7953_v1  ;;  %v93_v32 = vsel %vm88_vm11, 1, %v7965_v5  ;;  %vm10450_vm11 = vcmask 195584  }
 0x184   :  { %6961 = vmatprep.subr.mxu1 %v7953_v1  ;;  %vm8405_vm15 = vcmp.eq.s32.totalorder %v93_v32, %v207_v30 }
 0x186   :  { %v1288_v48 = vpop.permute.xlu1 %1287  ;;  %6922 = vmatmul.mubr.msk.f32.vlgmr.msra.gmra.mxu1 %vm10452_vm2, %v644_v39  ;;  %v959_v49 = vpop.permute.xlu0 %958  ;;  %v162_v39 = vsel %vm157_vm14, 1, %v7965_v5 }
 0x187   :  { %6962 = vmatpush3.xpose.msk.msra.mxu1 %vm10452_vm2, %v977_v34  ;;  %6924 = vmatprep.mubr.msk.f32.mxu1 %vm7954_vm0, %v7953_v1 }
 0x188   :  { %6963 = vmatprep.subr.mxu1 %v7953_v1 }
 0x18a   :  { %v1286_v50 = vpop.permute.xlu1 %1285  ;;  %6925 = vmatmul.mubr.msk.f32.gmra.mxu1 %vm10452_vm2, %v646_v41  ;;  %v961_v51 = vpop.permute.xlu0 %960  ;;  %v8413_v41 = vadd.s32 32, %v8380_v14 }
 0x18b   :  { %6964 = vmatpush3.xpose.msk.msra.mxu1 %vm10452_vm2, %v975_v36  ;;  %6927 = vmatprep.mubr.msk.f32.mxu1 %vm7954_vm0, %v7953_v1  ;;  %v129_v36 = vadd.s32 %v124_v33, %v111_v31 }
 0x18c   :  { %6965 = vmatprep.subr.mxu1 %v7953_v1  ;;  %vm194_vm6 = vcmp.ge.s32.totalorder %v8413_v41, 35 }
 0x18d   :  { %vm8421_vm5 = vcmp.eq.s32.totalorder %v129_v36, %v207_v30 }
 0x18e   :  { %v1284_v52 = vpop.permute.xlu1 %1283  ;;  %6928 = vmatmul.mubr.msk.f32.gmra.mxu1 %vm10452_vm2, %v648_v43  ;;  %v963_v53 = vpop.permute.xlu0 %962 }
 0x18f   :  { %6966 = vmatpush3.xpose.msk.msra.mxu1 %vm10452_vm2, %v973_v38  ;;  %6930 = vmatprep.mubr.msk.f32.mxu1 %vm7954_vm0, %v7953_v1  ;;  %v143_v38 = vsel %vm138_vm13, 1, %v7965_v5  ;;  %vm10449_vm13 = vcmask 523264  }
 0x190   :  { %6967 = vmatprep.subr.mxu1 %v7953_v1 }
 0x192   :  { %v1276_v54 = vpop.permute.xlu1 %1275  ;;  %6931 = vmatmul.mubr.msk.f32.gmra.mxu1 %vm10452_vm2, %v650_v45  ;;  %v965_v55 = vpop.permute.xlu0 %964 }
 0x193   :  { %6968 = vmatpush3.xpose.msk.msra.mxu1 %vm10452_vm2, %v971_v40  ;;  %6933 = vmatprep.mubr.msk.f32.mxu1 %vm7954_vm0, %v7953_v1 }
 0x194   :  { %6969 = vmatprep.subr.mxu1 %v7953_v1 }
 0x196   :  { %v1280_v56 = vpop.permute.xlu1 %1279  ;;  %6934 = vmatmul.mubr.msk.f32.gmra.mxu1 %vm10452_vm2, %v652_v47  ;;  %v967_v57 = vpop.permute.xlu0 %966  ;;  %v167_v47 = vadd.s32 4, %v162_v39 }
 0x197   :  { %6970 = vmatpush3.xpose.msk.msra.mxu1 %vm10452_vm2, %v969_v42  ;;  %6971 = vmatprep.mubr.msk.f32.mxu1 %vm7954_vm0, %v7953_v1 }
 0x198   :  { %7011 = vmatprep.subr.mxu1 %v7953_v1 }
 0x19a   :  { %v528_v58 = vpop.permute.xlu1 %527  ;;  %6972 = vmatmul.mubr.msk.f32.vlgmr.msra.gmra.mxu1 %vm10452_vm2, %v959_v49  ;;  %v1274_v59 = vpop.permute.xlu0 %1273  ;;  %v180_v49 = vsel %vm175_vm4, 1, %v7965_v5 }
 0x19b   :  { %7012 = vmatpush3.xpose.msk.msra.mxu1 %vm10452_vm2, %v1292_v44  ;;  %6974 = vmatprep.mubr.msk.f32.mxu1 %vm7954_vm0, %v7953_v1 }
 0x19c   :  { %7013 = vmatprep.subr.mxu1 %v7953_v1 }
 0x19e   :  { %v8324_v60 = vpop.permute.xlu1 %842  ;;  %6975 = vmatmul.mubr.msk.f32.gmra.mxu1 %vm10452_vm2, %v961_v51  ;;  %v1278_v61 = vpop.permute.xlu0 %1277 }
 0x19f   :  { %7014 = vmatpush3.xpose.msk.msra.mxu1 %vm10452_vm2, %v1290_v46  ;;  %6977 = vmatprep.mubr.msk.f32.mxu1 %vm7954_vm0, %v7953_v1  ;;  %v148_v46 = vadd.s32 3, %v143_v38 }
 0x1a0   :  { %7015 = vmatprep.subr.mxu1 %v7953_v1 }
 0x1a1   :  { %vm8433_vm7 = vcmp.eq.s32.totalorder %v148_v46, %v207_v30 }
 0x1a2   :  { %v8331_v62 = vpop.permute.xlu1 %1157  ;;  %6978 = vmatmul.mubr.msk.f32.gmra.mxu1 %vm10452_vm2, %v963_v53  ;;  %v1282_v63 = vpop.permute.xlu0 %1281 }
 0x1a3   :  { %7016 = vmatpush3.xpose.msk.msra.mxu1 %vm10452_vm2, %v1288_v48  ;;  %6980 = vmatprep.mubr.msk.f32.mxu1 %vm7954_vm0, %v7953_v1 }
 0x1a4   :  { %7017 = vmatprep.subr.mxu1 %v7953_v1 }
 0x1a6   :  { %v532_v0 = vpop.permute.xlu1 %531  ;;  %6981 = vmatmul.mubr.msk.f32.gmra.mxu1 %vm10452_vm2, %v965_v55  ;;  %v530_v2 = vpop.permute.xlu0 %529  ;;  %v185_v55 = vadd.s32 %v180_v49, %v167_v47 }
 0x1a7   :  { %6887 = vmatpush3.msra.mxu0 %v532_v0  ;;  %7018 = vmatpush3.xpose.msk.msra.mxu1 %vm10452_vm2, %v1286_v50 }
 0x1a8   :  { %6888 = vmatprep.subr.mxu0 %v7953_v1  ;;  %6983 = vmatprep.mubr.msk.f32.mxu1 %vm7954_vm0, %v7953_v1  ;;  %vm8444_vm8 = vcmp.eq.s32.totalorder %v185_v55, %v207_v30 }
 0x1a9   :  { %6889 = vmatpush3.msra.mxu0 %v530_v2  ;;  %7019 = vmatprep.subr.mxu1 %v7953_v1 }
 0x1aa   :  { %6890 = vmatprep.subr.mxu0 %v7953_v1  ;;  %6984 = vmatmul.mubr.msk.f32.gmra.mxu1 %vm10452_vm2, %v967_v57  ;;  %v526_v3 = vpop.permute.xlu0 %525  ;;  %v199_v57 = vsel %vm194_vm6, 1, %v7965_v5 }
 0x1ab   :  { %6891 = vmatpush3.msra.mxu0 %v528_v58  ;;  %7020 = vmatpush3.xpose.msk.msra.mxu1 %vm10452_vm2, %v1284_v52  ;;  %v204_v2 = vadd.s32 6, %v199_v57 }
 0x1ac   :  { %6892 = vmatprep.subr.mxu0 %v7953_v1  ;;  %7021 = vmatprep.mubr.msk.f32.mxu1 %vm7954_vm0, %v7953_v1 }
 0x1ad   :  { %6893 = vmatpush3.msra.mxu0 %v526_v3  ;;  %7061 = vmatprep.subr.mxu1 %v7953_v1  ;;  %vm8454_vm9 = vcmp.eq.s32.totalorder %v204_v2, %v207_v30 }
 0x1ae   :  { %6894 = vmatprep.subr.mxu0 %v7953_v1  ;;  %7022 = vmatmul.mubr.msk.f32.vlgmr.msra.gmra.mxu1 %vm10452_vm2, %v1274_v59  ;;  %v524_v4 = vpop.permute.xlu0 %523 }
 0x1af   :  { %6895 = vmatpush3.msra.mxu0 %v524_v4  ;;  %7024 = vmatprep.mubr.msk.f32.mxu1 %vm7954_vm0, %v7953_v1 }
 0x1b0   :  { %6936 = vmatprep.subr.mxu0 %v7953_v1 }
 0x1b2   :  { %7025 = vmatmul.mubr.msk.f32.gmra.mxu1 %vm10452_vm2, %v1276_v54 }
 0x1b3   :  { %7027 = vmatprep.mubr.msk.f32.mxu1 %vm7954_vm0, %v7953_v1 }
 0x1b6   :  { %7028 = vmatmul.mubr.msk.f32.gmra.mxu1 %vm10452_vm2, %v1278_v61 }
 0x1b7   :  { %7030 = vmatprep.mubr.msk.f32.mxu1 %vm7954_vm0, %v7953_v1 }
 0x1ba   :  { %7031 = vmatmul.mubr.msk.f32.gmra.mxu1 %vm10452_vm2, %v1280_v56 }
 0x1bb   :  { %7033 = vmatprep.mubr.msk.f32.mxu1 %vm7954_vm0, %v7953_v1 }
 0x1be   :  { %7034 = vmatmul.mubr.msk.f32.gmra.mxu1 %vm10452_vm2, %v1282_v63 }
 0x1bf   :  { %7069 = vmatprep.mubr.msk.f32.mxu1 %vm7954_vm0, %v7953_v1 }
 0x232   :  { %v433_v34 = vpop.f32.mrf.mxu1 }
 0x233   :  { %v457_v37 = vmul.f32 0.35355338, %v433_v34 }
 0x234   :  { %v6873_v40 = vpop.f32.mrf.mxu1 }
 0x235   :  { %v8417_v42 = vsel %vm8405_vm15, %v457_v37, -1e+30 }
 0x236   :  { %v438_v43 = vpop.f32.mrf.mxu1  ;;  %v468_v44 = vsel %vm467_vm3, %v8417_v42, -inf }
 0x237   :  { %v458_v48 = vmul.f32 0.35355338, %v438_v43  ;;  %469 = vmax.xlane.f32.xlu1 %v468_v44 }
 0x238   :  { %v6876_v50 = vpop.f32.mrf.mxu1 }
 0x239   :  { %v8429_v51 = vsel %vm8421_vm5, %v458_v48, -1e+30 }
 0x23a   :  { %v443_v52 = vpop.f32.mrf.mxu1  ;;  %v471_v53 = vsel %vm467_vm3, %v8429_v51, -inf }
 0x23b   :  { %v459_v56 = vmul.f32 0.35355338, %v443_v52  ;;  %472 = vmax.xlane.f32.xlu0 %v471_v53 }
 0x23c   :  { %v6879_v58 = vpop.f32.mrf.mxu1 }
 0x23d   :  { %v8440_v59 = vsel %vm8433_vm7, %v459_v56, -1e+30 }
 0x23e   :  { %v448_v61 = vpop.f32.mrf.mxu1  ;;  %v474_v63 = vsel %vm467_vm3, %v8440_v59, -inf }
 0x23f   :  { %v460_v3 = vmul.f32 0.35355338, %v448_v61  ;;  %475 = vmax.xlane.f32.xlu0 %v474_v63 }
 0x240   :  { %v6882_v4 = vpop.f32.mrf.mxu1 }
 0x241   :  { %v8450_v5 = vsel %vm8444_vm8, %v460_v3, -1e+30 }
 0x242   :  { %v453_v6 = vpop.f32.mrf.mxu1  ;;  %v477_v8 = vsel %vm467_vm3, %v8450_v5, -inf }
 0x243   :  { %v461_v10 = vmul.f32 0.35355338, %v453_v6  ;;  %478 = vmax.xlane.f32.xlu1 %v477_v8 }
 0x244   :  { %v6885_v11 = vpop.f32.mrf.mxu1 }
 0x245   :  { %v8460_v12 = vsel %vm8454_vm9, %v461_v10, -1e+30 }
 0x246   :  { %v749_v13 = vpop.f32.mrf.mxu1  ;;  %v480_v15 = vsel %vm467_vm3, %v8460_v12, -inf }
 0x247   :  { %v773_v17 = vmul.f32 0.35355338, %v749_v13  ;;  %481 = vmax.xlane.f32.xlu0 %v480_v15 }
 0x248   :  { %v6923_v20 = vpop.f32.mrf.mxu1 }
 0x249   :  { %v8466_v21 = vsel %vm8405_vm15, %v773_v17, -1e+30 }
 0x24a   :  { %v754_v23 = vpop.f32.mrf.mxu1  ;;  %v783_v26 = vsel %vm467_vm3, %v8466_v21, -inf }
 0x24b   :  { %v774_v27 = vmul.f32 0.35355338, %v754_v23  ;;  %784 = vmax.xlane.f32.xlu1 %v783_v26 }
 0x24c   :  { %v6926_v30 = vpop.f32.mrf.mxu1 }
 0x24d   :  { %v8472_v31 = vsel %vm8421_vm5, %v774_v27, -1e+30 }
 0x24e   :  { %v759_v32 = vpop.f32.mrf.mxu1  ;;  %v786_v33 = vsel %vm467_vm3, %v8472_v31, -inf }
 0x24f   :  { %v775_v34 = vmul.f32 0.35355338, %v759_v32  ;;  %787 = vmax.xlane.f32.xlu0 %v786_v33 }
 0x250   :  { %v6929_v36 = vpop.f32.mrf.mxu1 }
 0x251   :  { %v8478_v37 = vsel %vm8433_vm7, %v775_v34, -1e+30 }
 0x252   :  { %v764_v38 = vpop.f32.mrf.mxu1  ;;  %v789_v39 = vsel %vm467_vm3, %v8478_v37, -inf }
 0x253   :  { %v776_v40 = vmul.f32 0.35355338, %v764_v38  ;;  %790 = vmax.xlane.f32.xlu1 %v789_v39 }
 0x254   :  { %v6932_v43 = vpop.f32.mrf.mxu1 }
 0x255   :  { %v8484_v44 = vsel %vm8444_vm8, %v776_v40, -1e+30 }
 0x256   :  { %v769_v46 = vpop.f32.mrf.mxu1  ;;  %v792_v47 = vsel %vm467_vm3, %v8484_v44, -inf }
 0x257   :  { %v777_v48 = vmul.f32 0.35355338, %v769_v46  ;;  %793 = vmax.xlane.f32.xlu0 %v792_v47 }
 0x258   :  { %v6935_v49 = vpop.f32.mrf.mxu1 }
 0x259   :  { %v8490_v50 = vsel %vm8454_vm9, %v777_v48, -1e+30 }
 0x25a   :  { %v1064_v52 = vpop.f32.mrf.mxu1  ;;  %v795_v53 = vsel %vm467_vm3, %v8490_v50, -inf }
 0x25b   :  { %v1088_v55 = vmul.f32 0.35355338, %v1064_v52  ;;  %796 = vmax.xlane.f32.xlu1 %v795_v53 }
 0x25c   :  { %v6973_v56 = vpop.f32.mrf.mxu1 }
 0x25d   :  { %v8496_v57 = vsel %vm8405_vm15, %v1088_v55, -1e+30 }
 0x25e   :  { %v1069_v58 = vpop.f32.mrf.mxu1  ;;  %v1098_v61 = vsel %vm467_vm3, %v8496_v57, -inf }
 0x25f   :  { %1099 = vmax.xlane.f32.xlu0 %v1098_v61  ;;  %v1089_v33 = vmul.f32 0.35355338, %v1069_v58 }
 0x260   :  { %v6976_v63 = vpop.f32.mrf.mxu1 }
 0x262   :  { %v1074_v2 = vpop.f32.mrf.mxu1 }
 0x263   :  { %v1090_v34 = vmul.f32 0.35355338, %v1074_v2 }
 0x264   :  { %v6979_v3 = vpop.f32.mrf.mxu1 }
 0x265   :  { %v8512_v39 = vsel %vm8433_vm7, %v1090_v34, -1e+30 }
 0x266   :  { %v1079_v4 = vpop.f32.mrf.mxu1  ;;  %v1104_v48 = vsel %vm467_vm3, %v8512_v39, -inf }
 0x267   :  { %v1091_v36 = vmul.f32 0.35355338, %v1079_v4 }
 0x268   :  { %v6982_v6 = vpop.f32.mrf.mxu1 }
 0x269   :  { %v8516_v46 = vsel %vm8444_vm8, %v1091_v36, -1e+30 }
 0x26a   :  { %v1084_v8 = vpop.f32.mrf.mxu1  ;;  %v1107_v49 = vsel %vm467_vm3, %v8516_v46, -inf }
 0x26b   :  { %v1092_v40 = vmul.f32 0.35355338, %v1084_v8 }
 0x26c   :  { %1476 = vrot.lane.b32.xlu1 %v8154_v22, %s10427_s26  ;;  %v6985_v10 = vpop.f32.mrf.mxu1  ;;  %v8506_v22 = vsel %vm8421_vm5, %v1089_v33, -1e+30 }
 0x26d   :  { %v1101_v38 = vsel %vm467_vm3, %v8506_v22, -inf  ;;  %v8524_v53 = vsel %vm8454_vm9, %v1092_v40, -1e+30 }
 0x26e   :  { %v1379_v11 = vpop.f32.mrf.mxu1  ;;  %v1110_v56 = vsel %vm467_vm3, %v8524_v53, -inf }
 0x26f   :  { %v1403_v43 = vmul.f32 0.35355338, %v1379_v11 }
 0x270   :  { %v7023_v13 = vpop.f32.mrf.mxu1 }
 0x271   :  { %v8528_v55 = vsel %vm8405_vm15, %v1403_v43, -1e+30 }
 0x272   :  { %v1384_v15 = vpop.f32.mrf.mxu1  ;;  %v1413_v58 = vsel %vm467_vm3, %v8528_v55, -inf }
 0x273   :  { %v1404_v47 = vmul.f32 0.35355338, %v1384_v15  ;;  %v8558_v15 = vpop.permute.xlu0 %844 }
 0x274   :  { %v7026_v17 = vpop.f32.mrf.mxu1 }
 0x275   :  { %1153 = vrot.lane.b32.xlu0 %v8166_v25, %s10429_s1  ;;  %v8536_v61 = vsel %vm8421_vm5, %v1404_v47, -1e+30  ;;  %s10475_s1 = sld [smem:[#allocation11_spill]] }
 0x276   :  { %v1389_v20 = vpop.f32.mrf.mxu1  ;;  %v1416_v4 = vsel %vm467_vm3, %v8536_v61, -inf }
 0x277   :  { %v1405_v52 = vmul.f32 0.35355338, %v1389_v20  ;;  %v8560_v17 = vpop.permute.xlu0 %840 }
 0x278   :  { %v7029_v23 = vpop.f32.mrf.mxu1 }
 0x279   :  { %v8540_v3 = vsel %vm8433_vm7, %v1405_v52, -1e+30  ;;  %v8564_v23 = vpop.permute.xlu1 %846 }
 0x27a   :  { %v1394_v26 = vpop.f32.mrf.mxu1  ;;  %v1419_v6 = vsel %vm467_vm3, %v8540_v3, -inf }
 0x27b   :  { %v1406_v63 = vmul.f32 0.35355338, %v1394_v26  ;;  %v8562_v20 = vpop.permute.xlu0 %838 }
 0x27c   :  { %v7032_v27 = vpop.f32.mrf.mxu1 }
 0x27d   :  { %v8548_v8 = vsel %vm8444_vm8, %v1406_v63, -1e+30  ;;  %v8568_v27 = vpop.permute.xlu1 %1161 }
 0x27e   :  { %v1399_v30 = vpop.f32.mrf.mxu1  ;;  %v1422_v11 = vsel %vm467_vm3, %v8548_v8, -inf }
 0x27f   :  { %v1407_v2 = vmul.f32 0.35355338, %v1399_v30  ;;  %v8566_v26 = vpop.permute.xlu0 %1159 }
 0x280   :  { %v7035_v32 = vpop.f32.mrf.mxu1 }
 0x281   :  { %v8552_v10 = vsel %vm8454_vm9, %v1407_v2, -1e+30 }
 0x282   :  { %v1425_v13 = vsel %vm467_vm3, %v8552_v10, -inf }
 0x283   :  { %v8570_v30 = vpop.permute.xlu0 %1155 }
 0x290   :  { %1102 = vmax.xlane.f32.xlu1 %v1101_v38 }
 0x294   :  { %1105 = vmax.xlane.f32.xlu0 %v1104_v48  ;;  %1108 = vmax.xlane.f32.xlu1 %v1107_v49 }
 0x298   :  { %1111 = vmax.xlane.f32.xlu0 %v1110_v56  ;;  %1414 = vmax.xlane.f32.xlu1 %v1413_v58 }
 0x29c   :  { %1417 = vmax.xlane.f32.xlu0 %v1416_v4  ;;  %1420 = vmax.xlane.f32.xlu1 %v1419_v6 }
 0x2a0   :  { %1423 = vmax.xlane.f32.xlu0 %v1422_v11  ;;  %1426 = vmax.xlane.f32.xlu1 %v1425_v13 }
 0x2c0   :  { %v470_v32 = vpop.xlane.xlu1 %469 }
 0x2c1   :  { %v483_v33 = vsub.f32 %v8417_v42, %v470_v32 }
 0x2c3   :  { %v488_v34 = vmul.f32 1.442695, %v483_v33 }
 0x2c4   :  { %v473_v36 = vpop.xlane.xlu0 %472 }
 0x2c5   :  { %7656 = vpow2.f32 %v488_v34  ;;  %v484_v38 = vsub.f32 %v8429_v51, %v473_v36 }
 0x2c7   :  { %v490_v40 = vmul.f32 1.442695, %v484_v38 }
 0x2c8   :  { %v476_v43 = vpop.xlane.xlu0 %475 }
 0x2c9   :  { %7658 = vpow2.f32 %v490_v40  ;;  %v485_v47 = vsub.f32 %v8440_v59, %v476_v43 }
 0x2cb   :  { %v492_v48 = vmul.f32 1.442695, %v485_v47 }
 0x2cc   :  { %v479_v49 = vpop.xlane.xlu1 %478 }
 0x2cd   :  { %7660 = vpow2.f32 %v492_v48  ;;  %v486_v52 = vsub.f32 %v8450_v5, %v479_v49 }
 0x2cf   :  { %v494_v56 = vmul.f32 1.442695, %v486_v52 }
 0x2d0   :  { %v482_v58 = vpop.xlane.xlu0 %481 }
 0x2d1   :  { %7662 = vpow2.f32 %v494_v56  ;;  %v487_v42 = vsub.f32 %v8460_v12, %v482_v58 }
 0x2d2   :  { %v8577_v63 = vpop.eup %7656 }
 0x2d3   :  { %v496_v2 = vmul.f32 1.442695, %v487_v42  ;;  %v498_v51 = vsel %vm467_vm3, %v8577_v63, 0.0 }
 0x2d4   :  { %v785_v4 = vpop.xlane.xlu1 %784  ;;  %499 = vadd.xlane.f32.xlu0 %v498_v51 }
 0x2d5   :  { %7664 = vpow2.f32 %v496_v2  ;;  %v798_v59 = vsub.f32 %v8466_v21, %v785_v4 }
 0x2d6   :  { %v8582_v6 = vpop.eup %7658 }
 0x2d7   :  { %v803_v11 = vmul.f32 1.442695, %v798_v59  ;;  %v501_v5 = vsel %vm467_vm3, %v8582_v6, 0.0 }
 0x2d8   :  { %502 = vadd.xlane.f32.xlu1 %v501_v5  ;;  %v788_v13 = vpop.xlane.xlu0 %787 }
 0x2d9   :  { %7666 = vpow2.f32 %v803_v11  ;;  %v799_v12 = vsub.f32 %v8472_v31, %v788_v13 }
 0x2da   :  { %v8587_v32 = vpop.eup %7660 }
 0x2db   :  { %v805_v33 = vmul.f32 1.442695, %v799_v12  ;;  %v504_v34 = vsel %vm467_vm3, %v8587_v32, 0.0 }
 0x2dc   :  { %v791_v36 = vpop.xlane.xlu1 %790  ;;  %505 = vadd.xlane.f32.xlu0 %v504_v34 }
 0x2dd   :  { %7668 = vpow2.f32 %v805_v33  ;;  %v800_v21 = vsub.f32 %v8478_v37, %v791_v36 }
 0x2de   :  { %v8592_v38 = vpop.eup %7662 }
 0x2df   :  { %v807_v40 = vmul.f32 1.442695, %v800_v21  ;;  %v507_v43 = vsel %vm467_vm3, %v8592_v38, 0.0 }
 0x2e0   :  { %508 = vadd.xlane.f32.xlu1 %v507_v43  ;;  %v794_v47 = vpop.xlane.xlu0 %793 }
 0x2e1   :  { %7670 = vpow2.f32 %v807_v40  ;;  %v801_v31 = vsub.f32 %v8484_v44, %v794_v47 }
 0x2e2   :  { %v8597_v48 = vpop.eup %7664 }
 0x2e3   :  { %v809_v49 = vmul.f32 1.442695, %v801_v31  ;;  %v510_v52 = vsel %vm467_vm3, %v8597_v48, 0.0 }
 0x2e4   :  { %v797_v56 = vpop.xlane.xlu1 %796  ;;  %511 = vadd.xlane.f32.xlu0 %v510_v52 }
 0x2e5   :  { %7672 = vpow2.f32 %v809_v49  ;;  %v802_v37 = vsub.f32 %v8490_v50, %v797_v56 }
 0x2e6   :  { %v8602_v58 = vpop.eup %7666 }
 0x2e7   :  { %v811_v42 = vmul.f32 1.442695, %v802_v37  ;;  %v813_v2 = vsel %vm467_vm3, %v8602_v58, 0.0 }
 0x2e8   :  { %814 = vadd.xlane.f32.xlu0 %v813_v2  ;;  %v1100_v51 = vpop.xlane.xlu0 %1099  ;;  %v8631_v21 = vpop.permute.xlu1 %1476 }
 0x2e9   :  { %7674 = vpow2.f32 %v811_v42  ;;  %v1113_v44 = vsub.f32 %v8496_v57, %v1100_v51 }
 0x2ea   :  { %v8607_v4 = vpop.eup %7668 }
 0x2eb   :  { %v1118_v59 = vmul.f32 1.442695, %v1113_v44  ;;  %v816_v11 = vsel %vm467_vm3, %v8607_v4, 0.0 }
 0x2ec   :  { %817 = vadd.xlane.f32.xlu1 %v816_v11  ;;  %v8633_v40 = vpop.permute.xlu0 %1153 }
 0x2ed   :  { %7676 = vpow2.f32 %v1118_v59 }
 0x2ee   :  { %v8611_v50 = vpop.eup %7670 }
 0x2ef   :  { %v819_v5 = vsel %vm467_vm3, %v8611_v50, 0.0 }
 0x2f0   :  { %820 = vadd.xlane.f32.xlu0 %v819_v5 }
 0x2f2   :  { %v8615_v13 = vpop.eup %7672 }
 0x2f3   :  { %v822_v12 = vsel %vm467_vm3, %v8615_v13, 0.0 }
 0x2f4   :  { %823 = vadd.xlane.f32.xlu1 %v822_v12 }
 0x2f6   :  { %v8619_v57 = vpop.eup %7674 }
 0x2f7   :  { %v825_v33 = vsel %vm467_vm3, %v8619_v57, 0.0 }
 0x2f8   :  { %826 = vadd.xlane.f32.xlu1 %v825_v33 }
 0x2fa   :  { %v8623_v34 = vpop.eup %7676 }
 0x2fb   :  { %v1128_v36 = vsel %vm467_vm3, %v8623_v34, 0.0 }
 0x2fc   :  { %1129 = vadd.xlane.f32.xlu0 %v1128_v36 }
 0x309   :  { %1472 = vrot.lane.b32.xlu1 %v8146_v16, %s10427_s26 }
 0x312   :  { %1474 = vrot.lane.b32.xlu0 %v8160_v24, %s10427_s26 }
 0x319   :  { %v1103_v43 = vpop.xlane.xlu1 %1102 }
 0x31a   :  { %v1114_v47 = vsub.f32 %v8506_v22, %v1103_v43 }
 0x31c   :  { %v1120_v31 = vmul.f32 1.442695, %v1114_v47 }
 0x31d   :  { %v1109_v49 = vpop.xlane.xlu1 %1108  ;;  %v1106_v52 = vpop.xlane.xlu0 %1105 }
 0x31e   :  { %7678 = vpow2.f32 %v1120_v31  ;;  %v1116_v56 = vsub.f32 %v8516_v46, %v1109_v49  ;;  %v1115_v37 = vsub.f32 %v8512_v39, %v1106_v52 }
 0x320   :  { %v1124_v42 = vmul.f32 1.442695, %v1116_v56  ;;  %v1122_v16 = vmul.f32 1.442695, %v1115_v37 }
 0x321   :  { %v1415_v2 = vpop.xlane.xlu1 %1414  ;;  %v1112_v51 = vpop.xlane.xlu0 %1111 }
 0x322   :  { %7680 = vpow2.f32 %v1124_v42  ;;  %v1428_v24 = vsub.f32 %v8528_v55, %v1415_v2  ;;  %v1117_v44 = vsub.f32 %v8524_v53, %v1112_v51 }
 0x323   :  { %7682 = vpow2.f32 %v1122_v16 }
 0x324   :  { %v1433_v59 = vmul.f32 1.442695, %v1428_v24  ;;  %v1126_v22 = vmul.f32 1.442695, %v1117_v44 }
 0x325   :  { %v1421_v11 = vpop.xlane.xlu1 %1420  ;;  %v1418_v5 = vpop.xlane.xlu0 %1417 }
 0x326   :  { %7684 = vpow2.f32 %v1433_v59  ;;  %v1430_v12 = vsub.f32 %v8540_v3, %v1421_v11  ;;  %v1429_v46 = vsub.f32 %v8536_v61, %v1418_v5 }
 0x327   :  { %7686 = vpow2.f32 %v1126_v22 }
 0x328   :  { %v1437_v39 = vmul.f32 1.442695, %v1430_v12  ;;  %v1435_v33 = vmul.f32 1.442695, %v1429_v46 }
 0x329   :  { %v1427_v36 = vpop.xlane.xlu1 %1426  ;;  %v1424_v43 = vpop.xlane.xlu0 %1423 }
 0x32a   :  { %7688 = vpow2.f32 %v1437_v39  ;;  %v1432_v55 = vsub.f32 %v8552_v10, %v1427_v36  ;;  %v1431_v53 = vsub.f32 %v8548_v8, %v1424_v43 }
 0x32b   :  { %v8644_v47 = vpop.eup %7678  ;;  %7690 = vpow2.f32 %v1435_v33 }
 0x32c   :  { %v1439_v31 = vmul.f32 1.442695, %v1431_v53  ;;  %v1131_v49 = vsel %vm467_vm3, %v8644_v47, 0.0  ;;  %v1441_v3 = vmul.f32 1.442695, %v1432_v55 }
 0x32d   :  { %1132 = vadd.xlane.f32.xlu1 %v1131_v49 }
 0x32e   :  { %7692 = vpow2.f32 %v1439_v31 }
 0x32f   :  { %v8648_v61 = vpop.eup %7680  ;;  %7694 = vpow2.f32 %v1441_v3 }
 0x330   :  { %v8650_v52 = vpop.eup %7682  ;;  %v1137_v56 = vsel %vm467_vm3, %v8648_v61, 0.0 }
 0x331   :  { %1138 = vadd.xlane.f32.xlu1 %v1137_v56  ;;  %v1134_v8 = vsel %vm467_vm3, %v8650_v52, 0.0 }
 0x332   :  { %1135 = vadd.xlane.f32.xlu0 %v1134_v8 }
 0x333   :  { %v8656_v10 = vpop.eup %7684 }
 0x334   :  { %v8658_v37 = vpop.eup %7686  ;;  %v1443_v42 = vsel %vm467_vm3, %v8656_v10, 0.0 }
 0x335   :  { %v1140_v16 = vsel %vm467_vm3, %v8658_v37, 0.0 }
 0x336   :  { %1444 = vadd.xlane.f32.xlu0 %v1443_v42  ;;  %1141 = vadd.xlane.f32.xlu1 %v1140_v16 }
 0x337   :  { %v8664_v2 = vpop.eup %7688 }
 0x338   :  { %v8666_v51 = vpop.eup %7690  ;;  %v1449_v24 = vsel %vm467_vm3, %v8664_v2, 0.0 }
 0x339   :  { %v1446_v44 = vsel %vm467_vm3, %v8666_v51, 0.0 }
 0x33a   :  { %1450 = vadd.xlane.f32.xlu0 %v1449_v24  ;;  %1447 = vadd.xlane.f32.xlu1 %v1446_v44 }
 0x33b   :  { %v8672_v59 = vpop.eup %7692 }
 0x33c   :  { %v1452_v22 = vsel %vm467_vm3, %v8672_v59, 0.0  ;;  %v8676_v11 = vpop.eup %7694 }
 0x33d   :  { %v1455_v5 = vsel %vm467_vm3, %v8676_v11, 0.0 }
 0x33e   :  { %1453 = vadd.xlane.f32.xlu1 %v1452_v22 }
 0x342   :  { %1456 = vadd.xlane.f32.xlu1 %v1455_v5 }
 0x350   :  { %1468 = vrot.lane.b32.xlu0 %v8166_v25, %s10427_s26 }
 0x353   :  { %1470 = vrot.lane.b32.xlu1 %v8150_v19, %s10427_s26  ;;  %s10445_s26 = smov 16  }
 0x35d   :  { %v500_v12 = vpop.xlane.xlu0 %499 }
 0x35e   :  { %7696 = vrcp.f32 %v500_v12 }
 0x361   :  { %v503_v46 = vpop.xlane.xlu1 %502 }
 0x362   :  { %7698 = vrcp.f32 %v503_v46 }
 0x365   :  { %v506_v39 = vpop.xlane.xlu0 %505 }
 0x366   :  { %7700 = vrcp.f32 %v506_v39 }
 0x369   :  { %v509_v33 = vpop.xlane.xlu1 %508 }
 0x36a   :  { %7702 = vrcp.f32 %v509_v33 }
 0x36b   :  { %v7697_v36 = vpop.eup %7696 }
 0x36c   :  { %v514_v43 = vmul.f32 %v7697_v36, %v8577_v63 }
 0x36d   :  { %v512_v55 = vpop.xlane.xlu0 %511 }
 0x36e   :  { %7704 = vrcp.f32 %v512_v55  ;;  %6897 = vmatmul.mubr.msk.f32.vlgmr.msra.gmra.mxu0 %vm467_vm3, %v514_v43 }
 0x36f   :  { %v7699_v53 = vpop.eup %7698  ;;  %6937 = vmatpush3.msra.mxu0 %v8564_v23  ;;  %6899 = vmatprep.mubr.msk.f32.mxu0 %vm7954_vm0, %v7953_v1 }
 0x370   :  { %6938 = vmatprep.subr.mxu0 %v7953_v1  ;;  %v516_v19 = vmul.f32 %v7699_v53, %v8582_v6 }
 0x371   :  { %6939 = vmatpush3.msra.mxu0 %v8558_v15  ;;  %v815_v25 = vpop.xlane.xlu0 %814 }
 0x372   :  { %6940 = vmatprep.subr.mxu0 %v7953_v1  ;;  %7706 = vrcp.f32 %v815_v25  ;;  %6900 = vmatmul.mubr.msk.f32.gmra.mxu0 %vm467_vm3, %v516_v19 }
 0x373   :  { %v7701_v63 = vpop.eup %7700  ;;  %6941 = vmatpush3.msra.mxu0 %v8324_v60  ;;  %6902 = vmatprep.mubr.msk.f32.mxu0 %vm7954_vm0, %v7953_v1 }
 0x374   :  { %6942 = vmatprep.subr.mxu0 %v7953_v1  ;;  %v518_v23 = vmul.f32 %v7701_v63, %v8587_v32 }
 0x375   :  { %6943 = vmatpush3.msra.mxu0 %v8560_v17  ;;  %v818_v6 = vpop.xlane.xlu1 %817 }
 0x376   :  { %7708 = vrcp.f32 %v818_v6  ;;  %6944 = vmatprep.subr.mxu0 %v7953_v1  ;;  %6903 = vmatmul.mubr.msk.f32.gmra.mxu0 %vm467_vm3, %v518_v23 }
 0x377   :  { %v7703_v15 = vpop.eup %7702  ;;  %6945 = vmatpush3.msra.mxu0 %v8562_v20  ;;  %6905 = vmatprep.mubr.msk.f32.mxu0 %vm7954_vm0, %v7953_v1 }
 0x378   :  { %v520_v60 = vmul.f32 %v7703_v15, %v8592_v38  ;;  %6986 = vmatprep.subr.mxu0 %v7953_v1 }
 0x379   :  { %v821_v31 = vpop.xlane.xlu0 %820 }
 0x37a   :  { %7710 = vrcp.f32 %v821_v31  ;;  %6906 = vmatmul.mubr.msk.f32.gmra.mxu0 %vm467_vm3, %v520_v60 }
 0x37b   :  { %v7705_v17 = vpop.eup %7704  ;;  %6908 = vmatprep.mubr.msk.f32.mxu0 %vm7954_vm0, %v7953_v1 }
 0x37c   :  { %v522_v32 = vmul.f32 %v7705_v17, %v8597_v48 }
 0x37d   :  { %v824_v49 = vpop.xlane.xlu1 %823 }
 0x37e   :  { %7712 = vrcp.f32 %v824_v49  ;;  %6909 = vmatmul.mubr.msk.f32.gmra.mxu0 %vm467_vm3, %v522_v32 }
 0x37f   :  { %v7707_v20 = vpop.eup %7706  ;;  %6946 = vmatprep.mubr.msk.f32.mxu0 %vm7954_vm0, %v7953_v1 }
 0x380   :  { %v829_v38 = vmul.f32 %v7707_v20, %v8602_v58 }
 0x381   :  { %v827_v3 = vpop.xlane.xlu1 %826 }
 0x382   :  { %7714 = vrcp.f32 %v827_v3  ;;  %6947 = vmatmul.mubr.msk.f32.vlgmr.msra.gmra.mxu0 %vm467_vm3, %v829_v38 }
 0x383   :  { %v7709_v56 = vpop.eup %7708  ;;  %6987 = vmatpush3.msra.mxu0 %v8568_v27  ;;  %6949 = vmatprep.mubr.msk.f32.mxu0 %vm7954_vm0, %v7953_v1 }
 0x384   :  { %6988 = vmatprep.subr.mxu0 %v7953_v1  ;;  %v831_v48 = vmul.f32 %v7709_v56, %v8607_v4 }
 0x385   :  { %6989 = vmatpush3.msra.mxu0 %v8566_v26  ;;  %v1130_v8 = vpop.xlane.xlu0 %1129 }
 0x386   :  { %6990 = vmatprep.subr.mxu0 %v7953_v1  ;;  %7716 = vrcp.f32 %v1130_v8  ;;  %6950 = vmatmul.mubr.msk.f32.gmra.mxu0 %vm467_vm3, %v831_v48 }
 0x387   :  { %v7711_v58 = vpop.eup %7710  ;;  %6991 = vmatpush3.msra.mxu0 %v8331_v62  ;;  %6952 = vmatprep.mubr.msk.f32.mxu0 %vm7954_vm0, %v7953_v1 }
 0x388   :  { %6992 = vmatprep.subr.mxu0 %v7953_v1  ;;  %v833_v27 = vmul.f32 %v7711_v58, %v8611_v50 }
 0x389   :  { %6993 = vmatpush3.msra.mxu0 %v8570_v30 }
 0x38a   :  { %6994 = vmatprep.subr.mxu0 %v7953_v1  ;;  %6953 = vmatmul.mubr.msk.f32.gmra.mxu0 %vm467_vm3, %v833_v27 }
 0x38b   :  { %v7713_v26 = vpop.eup %7712  ;;  %6995 = vmatpush3.msra.mxu0 %v8633_v40  ;;  %6955 = vmatprep.mubr.msk.f32.mxu0 %vm7954_vm0, %v7953_v1 }
 0x38c   :  { %v835_v62 = vmul.f32 %v7713_v26, %v8615_v13  ;;  %7036 = vmatprep.subr.mxu0 %v7953_v1  ;;  %v1475_v13 = vpop.permute.xlu0 %1474 }
 0x38e   :  { %6956 = vmatmul.mubr.msk.f32.gmra.mxu0 %vm467_vm3, %v835_v62 }
 0x38f   :  { %v7715_v4 = vpop.eup %7714  ;;  %6958 = vmatprep.mubr.msk.f32.mxu0 %vm7954_vm0, %v7953_v1 }
 0x390   :  { %v837_v30 = vmul.f32 %v7715_v4, %v8619_v57  ;;  %v1473_v57 = vpop.permute.xlu1 %1472 }
 0x392   :  { %6959 = vmatmul.mubr.msk.f32.gmra.mxu0 %vm467_vm3, %v837_v30 }
 0x393   :  { %v7717_v50 = vpop.eup %7716  ;;  %6996 = vmatprep.mubr.msk.f32.mxu0 %vm7954_vm0, %v7953_v1 }
 0x394   :  { %v1144_v40 = vmul.f32 %v7717_v50, %v8623_v34 }
 0x396   :  { %6997 = vmatmul.mubr.msk.f32.vlgmr.msra.gmra.mxu0 %vm467_vm3, %v1144_v40 }
 0x397   :  { %7037 = vmatpush3.msra.mxu0 %v8631_v21  ;;  %6999 = vmatprep.mubr.msk.f32.mxu0 %vm7954_vm0, %v7953_v1 }
 0x398   :  { %7038 = vmatprep.subr.mxu0 %v7953_v1 }
 0x399   :  { %7039 = vmatpush3.msra.mxu0 %v1475_v13 }
 0x39a   :  { %7040 = vmatprep.subr.mxu0 %v7953_v1 }
 0x39b   :  { %7041 = vmatpush3.msra.mxu0 %v1473_v57  ;;  %v1668_v57 = vld [vmem:[%s10474_s25 + $0x18] sm:$0xff] }
 0x39c   :  { %7042 = vmatprep.subr.mxu0 %v7953_v1  ;;  %7062 = vmatpush3.msra.mxu1 %v1668_v57 }
 0x39d   :  { %7063 = vmatprep.subr.mxu1 %v7953_v1 }
 0x3b6   :  { %v1133_v42 = vpop.xlane.xlu1 %1132 }
 0x3b7   :  { %7718 = vrcp.f32 %v1133_v42  ;;  %v1667_v42 = vld [vmem:[%s10474_s25 + $0x10] sm:$0xff] }
 0x3b8   :  { %7064 = vmatpush3.msra.mxu1 %v1667_v42  ;;  %v6290_v42 = vld [vmem:[%s10475_s1] ss:$0 sm:$0xff] }
 0x3b9   :  { %7065 = vmatprep.subr.mxu1 %v7953_v1 }
 0x3ba   :  { %v1139_v34 = vpop.xlane.xlu1 %1138 }
 0x3bb   :  { %v1136_v16 = vpop.xlane.xlu0 %1135 }
 0x3bc   :  { %7720 = vrcp.f32 %v1136_v16 }
 0x3bd   :  { %7722 = vrcp.f32 %v1139_v34  ;;  %v1666_v34 = vld [vmem:[%s10474_s25 + $0x8] sm:$0xff] }
 0x3be   :  { %7066 = vmatpush3.msra.mxu1 %v1666_v34 }
 0x3bf   :  { %v1142_v21 = vpop.xlane.xlu1 %1141  ;;  %v1445_v24 = vpop.xlane.xlu0 %1444  ;;  %7067 = vmatprep.subr.mxu1 %v7953_v1 }
 0x3c0   :  { %7724 = vrcp.f32 %v1142_v21 }
 0x3c1   :  { %7726 = vrcp.f32 %v1445_v24 }
 0x3c3   :  { %v1448_v44 = vpop.xlane.xlu1 %1447  ;;  %v1451_v36 = vpop.xlane.xlu0 %1450 }
 0x3c4   :  { %v7719_v22 = vpop.eup %7718  ;;  %7728 = vrcp.f32 %v1448_v44  ;;  %v1665_v44 = vld [vmem:[%s10474_s25] sm:$0xff] }
 0x3c5   :  { %v1146_v5 = vmul.f32 %v7719_v22, %v8644_v47  ;;  %7730 = vrcp.f32 %v1451_v36  ;;  %7068 = vmatpush3.msra.mxu1 %v1665_v44 }
 0x3c6   :  { %7107 = vmatprep.subr.mxu1 %v7953_v1 }
 0x3c7   :  { %v1454_v12 = vpop.xlane.xlu1 %1453  ;;  %7000 = vmatmul.mubr.msk.f32.gmra.mxu0 %vm467_vm3, %v1146_v5 }
 0x3c8   :  { %7002 = vmatprep.mubr.msk.f32.mxu0 %vm7954_vm0, %v7953_v1  ;;  %7732 = vrcp.f32 %v1454_v12 }
 0x3c9   :  { %v7721_v46 = vpop.eup %7720 }
 0x3ca   :  { %v1148_v39 = vmul.f32 %v7721_v46, %v8650_v52  ;;  %v7723_v33 = vpop.eup %7722  ;;  %v1469_v52 = vpop.permute.xlu0 %1468 }
 0x3cb   :  { %v1457_v43 = vpop.xlane.xlu1 %1456  ;;  %v1150_v47 = vmul.f32 %v7723_v33, %v8648_v61 }
 0x3cc   :  { %7003 = vmatmul.mubr.msk.f32.gmra.mxu0 %vm467_vm3, %v1148_v39  ;;  %7734 = vrcp.f32 %v1457_v43 }
 0x3cd   :  { %7005 = vmatprep.mubr.msk.f32.mxu0 %vm7954_vm0, %v7953_v1  ;;  %v7725_v55 = vpop.eup %7724 }
 0x3ce   :  { %v1152_v19 = vmul.f32 %v7725_v55, %v8658_v37  ;;  %v7727_v25 = vpop.eup %7726 }
 0x3cf   :  { %v1471_v53 = vpop.permute.xlu1 %1470  ;;  %v1459_v61 = vmul.f32 %v7727_v25, %v8656_v10 }
 0x3d0   :  { %7006 = vmatmul.mubr.msk.f32.gmra.mxu0 %vm467_vm3, %v1150_v47 }
 0x3d1   :  { %7043 = vmatpush3.msra.mxu0 %v1471_v53  ;;  %7008 = vmatprep.mubr.msk.f32.mxu0 %vm7954_vm0, %v7953_v1  ;;  %v7729_v63 = vpop.eup %7728 }
 0x3d2   :  { %7044 = vmatprep.subr.mxu0 %v7953_v1  ;;  %v1461_v37 = vmul.f32 %v7729_v63, %v8666_v51  ;;  %v7731_v23 = vpop.eup %7730 }
 0x3d3   :  { %7045 = vmatpush3.msra.mxu0 %v1469_v52  ;;  %v1463_v6 = vmul.f32 %v7731_v23, %v8664_v2 }
 0x3d4   :  { %7009 = vmatmul.mubr.msk.f32.gmra.mxu0 %vm467_vm3, %v1152_v19  ;;  %7084 = vmatprep.subr.mxu0 %v7953_v1 }
 0x3d5   :  { %7046 = vmatprep.mubr.msk.f32.mxu0 %vm7954_vm0, %v7953_v1  ;;  %v7733_v15 = vpop.eup %7732 }
 0x3d6   :  { %v1465_v10 = vmul.f32 %v7733_v15, %v8672_v59 }
 0x3d8   :  { %7047 = vmatmul.mubr.msk.f32.vlgmr.msra.gmra.mxu0 %vm467_vm3, %v1459_v61 }
 0x3d9   :  { %7049 = vmatprep.mubr.msk.f32.mxu0 %vm7954_vm0, %v7953_v1  ;;  %v7735_v60 = vpop.eup %7734 }
 0x3da   :  { %v1467_v51 = vmul.f32 %v7735_v60, %v8676_v11 }
 0x3dc   :  { %7050 = vmatmul.mubr.msk.f32.gmra.mxu0 %vm467_vm3, %v1461_v37 }
 0x3dd   :  { %7052 = vmatprep.mubr.msk.f32.mxu0 %vm7954_vm0, %v7953_v1 }
 0x3e0   :  { %7053 = vmatmul.mubr.msk.f32.gmra.mxu0 %vm467_vm3, %v1463_v6 }
 0x3e1   :  { %7055 = vmatprep.mubr.msk.f32.mxu0 %vm7954_vm0, %v7953_v1 }
 0x3e4   :  { %7056 = vmatmul.mubr.msk.f32.gmra.mxu0 %vm467_vm3, %v1465_v10 }
 0x3e5   :  { %7058 = vmatprep.mubr.msk.f32.mxu0 %vm7954_vm0, %v7953_v1 }
 0x3e8   :  { %7059 = vmatmul.mubr.msk.f32.gmra.mxu0 %vm467_vm3, %v1467_v51 }
 0x3e9   :  { %7092 = vmatprep.mubr.msk.f32.mxu0 %vm7954_vm0, %v7953_v1 }
 0x42e   :  { %v8790_v2 = vpop.f32.mrf.mxu0 }
 0x430   :  { %v6898_v31 = vpop.f32.mrf.mxu0 }
 0x432   :  { %v8792_v17 = vpop.f32.mrf.mxu0 }
 0x434   :  { %v6901_v32 = vpop.f32.mrf.mxu0 }
 0x436   :  { %v8794_v59 = vpop.f32.mrf.mxu0 }
 0x438   :  { %v6904_v49 = vpop.f32.mrf.mxu0 }
 0x43a   :  { %v8796_v20 = vpop.f32.mrf.mxu0 }
 0x43c   :  { %v6907_v38 = vpop.f32.mrf.mxu0 }
 0x43e   :  { %v8798_v3 = vpop.f32.mrf.mxu0 }
 0x440   :  { %v6910_v11 = vpop.f32.mrf.mxu0 }
 0x442   :  { %v934_v56 = vpop.f32.mrf.mxu0 }
 0x443   :  { %1593 = vrot.lane.b32.xlu1 %v934_v56, %s10447_s2 }
 0x444   :  { %v6948_v48 = vpop.f32.mrf.mxu0 }
 0x446   :  { %v939_v8 = vpop.f32.mrf.mxu0 }
 0x447   :  { %1595 = vrot.lane.b32.xlu0 %v939_v8, %s10447_s2 }
 0x448   :  { %v6951_v58 = vpop.f32.mrf.mxu0 }
 0x44a   :  { %v944_v27 = vpop.f32.mrf.mxu0 }
 0x44b   :  { %1597 = vrot.lane.b32.xlu1 %v944_v27, %s10447_s2 }
 0x44c   :  { %v6954_v26 = vpop.f32.mrf.mxu0 }
 0x44e   :  { %v949_v62 = vpop.f32.mrf.mxu0 }
 0x450   :  { %v6957_v4 = vpop.f32.mrf.mxu0 }
 0x452   :  { %v954_v30 = vpop.f32.mrf.mxu0 }
 0x454   :  { %v6960_v50 = vpop.f32.mrf.mxu0 }
 0x456   :  { %v1249_v40 = vpop.f32.mrf.mxu0 }
 0x457   :  { %1613 = vrot.lane.b32.xlu0 %v1249_v40, %s10445_s26 }
 0x458   :  { %v6998_v13 = vpop.f32.mrf.mxu0 }
 0x487   :  { %v1254_v16 = vpop.f32.mrf.mxu0 }
 0x488   :  { %1615 = vrot.lane.b32.xlu1 %v1254_v16, %s10445_s26 }
 0x489   :  { %v7001_v21 = vpop.f32.mrf.mxu0 }
 0x48c   :  { %v1259_v24 = vpop.f32.mrf.mxu0 }
 0x48d   :  { %1617 = vrot.lane.b32.xlu0 %v1259_v24, %s10445_s26 }
 0x48e   :  { %v7004_v22 = vpop.f32.mrf.mxu0 }
 0x490   :  { %v1264_v5 = vpop.f32.mrf.mxu0 }
 0x492   :  { %v7007_v12 = vpop.f32.mrf.mxu0 }
 0x494   :  { %v1269_v46 = vpop.f32.mrf.mxu0 }
 0x496   :  { %v7010_v39 = vpop.f32.mrf.mxu0 }
 0x498   :  { %v1564_v33 = vpop.f32.mrf.mxu0 }
 0x499   :  { %1633 = vrot.lane.b32.xlu1 %v1564_v33, %s10443_s29 }
 0x49a   :  { %v7048_v36 = vpop.f32.mrf.mxu0 }
 0x49c   :  { %v1569_v43 = vpop.f32.mrf.mxu0 }
 0x49d   :  { %1619 = vrot.lane.b32.xlu1 %v1264_v5, %s10445_s26  ;;  %1635 = vrot.lane.b32.xlu0 %v1569_v43, %s10443_s29 }
 0x49e   :  { %v7051_v47 = vpop.f32.mrf.mxu0 }
 0x4a0   :  { %v1574_v55 = vpop.f32.mrf.mxu0 }
 0x4a1   :  { %1599 = vrot.lane.b32.xlu0 %v949_v62, %s10447_s2  ;;  %1637 = vrot.lane.b32.xlu1 %v1574_v55, %s10443_s29  ;;  %v7926_v55 = vld [vmem:[%s10462_s28 + $0x10] sm:$0xff] }
 0x4a2   :  { %v7054_v53 = vpop.f32.mrf.mxu0 }
 0x4a4   :  { %v1579_v52 = vpop.f32.mrf.mxu0 }
 0x4a5   :  { %1601 = vrot.lane.b32.xlu1 %v954_v30, %s10447_s2  ;;  %1639 = vrot.lane.b32.xlu0 %v1579_v52, %s10443_s29  ;;  %s10483_s2 = smov 48  }
 0x4a6   :  { %v7057_v19 = vpop.f32.mrf.mxu0 }
 0x4a8   :  { %v1584_v25 = vpop.f32.mrf.mxu0 }
 0x4a9   :  { %1621 = vrot.lane.b32.xlu0 %v1269_v46, %s10445_s26  ;;  %1641 = vrot.lane.b32.xlu1 %v1584_v25, %s10443_s29  ;;  %v7925_v46 = vld [vmem:[%s10462_s28 + $0x8] sm:$0xff] }
 0x4aa   :  { %v7060_v61 = vpop.f32.mrf.mxu0 }
 0x4b5   :  { %v1594_v63 = vpop.permute.xlu1 %1593 }
 0x4b6   :  { %v1648_v10 = vsel %vm10452_vm2, %v8790_v2, %v1594_v63  ;;  %v7927_v63 = vld [vmem:[%s10462_s28 + $0x18] sm:$0xff] }
 0x4b9   :  { %v1596_v37 = vpop.permute.xlu0 %1595 }
 0x4ba   :  { %v1649_v49 = vsel %vm10452_vm2, %v8792_v17, %v1596_v37 }
 0x4bd   :  { %v1598_v23 = vpop.permute.xlu1 %1597 }
 0x4be   :  { %v1650_v48 = vsel %vm10452_vm2, %v8794_v59, %v1598_v23 }
 0x4c9   :  { %v1614_v6 = vpop.permute.xlu0 %1613 }
 0x4ca   :  { %v1654_v60 = vsel %vm10451_vm10, %v1648_v10, %v1614_v6 }
 0x4fa   :  { %v1616_v15 = vpop.permute.xlu1 %1615 }
 0x4fb   :  { %v1655_v38 = vsel %vm10451_vm10, %v1649_v49, %v1616_v15 }
 0x4ff   :  { %v1618_v51 = vpop.permute.xlu0 %1617 }
 0x500   :  { %v1656_v8 = vsel %vm10451_vm10, %v1650_v48, %v1618_v51 }
 0x50b   :  { %v1634_v31 = vpop.permute.xlu1 %1633 }
 0x50c   :  { %v1660_v32 = vsel %vm10450_vm11, %v1654_v60, %v1634_v31  ;;  %v7928_v60 = vld [vmem:[%s10462_s28 + $0x20] sm:$0xff] }
 0x50d   :  { %7070 = vmatmul.mubr.msk.f32.vlgmr.msra.gmra.mxu1 %vm225_vm1, %v1660_v32 }
 0x50e   :  { %7072 = vmatprep.mubr.msk.f32.mxu1 %vm7954_vm0, %v7953_v1 }
 0x50f   :  { %v1620_v11 = vpop.permute.xlu1 %1619  ;;  %v1636_v56 = vpop.permute.xlu0 %1635 }
 0x510   :  { %v1661_v2 = vsel %vm10450_vm11, %v1655_v38, %v1636_v56 }
 0x511   :  { %7073 = vmatmul.mubr.msk.f32.gmra.mxu1 %vm225_vm1, %v1661_v2 }
 0x512   :  { %7075 = vmatprep.mubr.msk.f32.mxu1 %vm7954_vm0, %v7953_v1 }
 0x513   :  { %v1600_v17 = vpop.permute.xlu0 %1599  ;;  %v1638_v58 = vpop.permute.xlu1 %1637 }
 0x514   :  { %v1651_v27 = vsel %vm10452_vm2, %v8796_v20, %v1600_v17  ;;  %v1662_v26 = vsel %vm10450_vm11, %v1656_v8, %v1638_v58 }
 0x515   :  { %7076 = vmatmul.mubr.msk.f32.gmra.mxu1 %vm225_vm1, %v1662_v26  ;;  %v1657_v59 = vsel %vm10451_vm10, %v1651_v27, %v1620_v11 }
 0x516   :  { %7078 = vmatprep.mubr.msk.f32.mxu1 %vm7954_vm0, %v7953_v1 }
 0x517   :  { %v1602_v62 = vpop.permute.xlu1 %1601  ;;  %v1640_v4 = vpop.permute.xlu0 %1639 }
 0x518   :  { %v1663_v30 = vsel %vm10450_vm11, %v1657_v59, %v1640_v4  ;;  %v1652_v20 = vsel %vm10452_vm2, %v8798_v3, %v1602_v62  ;;  %v7924_v3 = vld [vmem:[%s10462_s28] sm:$0xff]  ;;  %s10520_s28 = smov 40  }
 0x519   :  { %7079 = vmatmul.mubr.msk.f32.gmra.mxu1 %vm225_vm1, %v1663_v30 }
 0x51a   :  { %7081 = vmatprep.mubr.msk.f32.mxu1 %vm7954_vm0, %v7953_v1 }
 0x51b   :  { %v1622_v50 = vpop.permute.xlu0 %1621  ;;  %v1642_v40 = vpop.permute.xlu1 %1641 }
 0x51c   :  { %v1658_v13 = vsel %vm10451_vm10, %v1652_v20, %v1622_v50 }
 0x51d   :  { %v1664_v57 = vsel %vm10450_vm11, %v1658_v13, %v1642_v40  ;;  %vm2623_vm11 = vcmask 31744  }
 0x51e   :  { %7082 = vmatmul.mubr.msk.f32.gmra.mxu1 %vm225_vm1, %v1664_v57 }
 0x51f   :  { %7123 = vmatprep.mubr.msk.f32.mxu1 %vm7954_vm0, %v7953_v1 }
 0x5cd   :  { %v1757_v34 = vpop.f32.mrf.mxu1 }
 0x5ce   :  { %v1758_v16 = vadd.f32 %v6290_v42, %v1757_v34 }
 0x5cf   :  { %v7071_v21 = vpop.f32.mrf.mxu1 }
 0x5d0   :  { %v1781_v24 = vadd.f32 %v7924_v3, %v1758_v16  ;;  %v1879_v3 = vld [vmem:[%s10406_s9 + $0x18] sm:$0xff] }
 0x5d1   :  { %v1762_v44 = vpop.f32.mrf.mxu1  ;;  %7085 = vmatpush3.msra.mxu0 %v1879_v3 }
 0x5d2   :  { %v1763_v22 = vadd.f32 %v6290_v42, %v1762_v44  ;;  %v1788_v5 = vsel %vm225_vm1, %v1781_v24, 0.0  ;;  %7086 = vmatprep.subr.mxu0 %v7953_v1  ;;  %v1877_v44 = vld [vmem:[%s10406_s9 + $0x8] sm:$0xff] }
 0x5d3   :  { %v7074_v12 = vpop.f32.mrf.mxu1  ;;  %1789 = vadd.xlane.f32.xlu0 %v1788_v5 }
 0x5d4   :  { %v1782_v39 = vadd.f32 %v7925_v46, %v1763_v22  ;;  %v1876_v22 = vld [vmem:[%s10406_s9] sm:$0xff] }
 0x5d5   :  { %v1767_v33 = vpop.f32.mrf.mxu1 }
 0x5d6   :  { %v1768_v36 = vadd.f32 %v6290_v42, %v1767_v33  ;;  %v1791_v43 = vsel %vm225_vm1, %v1782_v39, 0.0 }
 0x5d7   :  { %v7077_v47 = vpop.f32.mrf.mxu1  ;;  %1792 = vadd.xlane.f32.xlu1 %v1791_v43 }
 0x5d8   :  { %v1783_v53 = vadd.f32 %v7926_v55, %v1768_v36 }
 0x5d9   :  { %v1772_v52 = vpop.f32.mrf.mxu1 }
 0x5da   :  { %v1773_v19 = vadd.f32 %v6290_v42, %v1772_v52  ;;  %v1794_v25 = vsel %vm225_vm1, %v1783_v53, 0.0 }
 0x5db   :  { %1795 = vadd.xlane.f32.xlu0 %v1794_v25  ;;  %v7080_v61 = vpop.f32.mrf.mxu1 }
 0x5dc   :  { %v1784_v37 = vadd.f32 %v7927_v63, %v1773_v19  ;;  %v6296_v63 = vld [vmem:[%s10476_s4] ss:$0 sm:$0xff] }
 0x5de   :  { %v1777_v23 = vpop.f32.mrf.mxu1  ;;  %v1797_v6 = vsel %vm225_vm1, %v1784_v37, 0.0 }
 0x5df   :  { %v1778_v15 = vadd.f32 %v6290_v42, %v1777_v23  ;;  %1798 = vadd.xlane.f32.xlu0 %v1797_v6 }
 0x5e0   :  { %v7083_v10 = vpop.f32.mrf.mxu1 }
 0x5e1   :  { %v1785_v51 = vadd.f32 %v7928_v60, %v1778_v15  ;;  %v6297_v15 = vld [vmem:[%s10405_s8] ss:$0 sm:$0xff] }
 0x5e3   :  { %v1800_v31 = vsel %vm225_vm1, %v1785_v51, 0.0 }
 0x5e4   :  { %1801 = vadd.xlane.f32.xlu1 %v1800_v31 }
 0x65c   :  { %v1790_v32 = vpop.xlane.xlu0 %1789 }
 0x65d   :  { %v1804_v49 = vmul.f32 0.03125, %v1790_v32 }
 0x65f   :  { %v1809_v38 = vsub.f32 %v1781_v24, %v1804_v49  ;;  %v1878_v24 = vld [vmem:[%s10406_s9 + $0x10] sm:$0xff] }
 0x660   :  { %v1793_v11 = vpop.xlane.xlu1 %1792  ;;  %7087 = vmatpush3.msra.mxu0 %v1878_v24 }
 0x661   :  { %v1805_v56 = vmul.f32 0.03125, %v1793_v11  ;;  %v1814_v2 = vmul.f32 %v1809_v38, %v1809_v38  ;;  %7088 = vmatprep.subr.mxu0 %v7953_v1 }
 0x662   :  { %7089 = vmatpush3.msra.mxu0 %v1877_v44 }
 0x663   :  { %v8889_v48 = vsub.f32 %v1782_v39, %v1805_v56  ;;  %v1819_v8 = vsel %vm225_vm1, %v1814_v2, 0.0  ;;  %7090 = vmatprep.subr.mxu0 %v7953_v1 }
 0x664   :  { %1820 = vadd.xlane.f32.xlu0 %v1819_v8  ;;  %v1796_v17 = vpop.xlane.xlu0 %1795  ;;  %7091 = vmatpush3.msra.mxu0 %v1876_v22 }
 0x665   :  { %v1806_v58 = vmul.f32 0.03125, %v1796_v17  ;;  %v1815_v27 = vmul.f32 %v8889_v48, %v8889_v48  ;;  %7138 = vmatprep.subr.mxu0 %v7953_v1 }
 0x667   :  { %v8894_v26 = vsub.f32 %v1783_v53, %v1806_v58  ;;  %v1822_v62 = vsel %vm225_vm1, %v1815_v27, 0.0 }
 0x668   :  { %v1799_v59 = vpop.xlane.xlu0 %1798  ;;  %1823 = vadd.xlane.f32.xlu1 %v1822_v62 }
 0x669   :  { %v1807_v4 = vmul.f32 0.03125, %v1799_v59  ;;  %v1816_v30 = vmul.f32 %v8894_v26, %v8894_v26 }
 0x66b   :  { %v8899_v20 = vsub.f32 %v1784_v37, %v1807_v4  ;;  %v1825_v50 = vsel %vm225_vm1, %v1816_v30, 0.0  ;;  %v2134_v4 = vld [vmem:[%s10408_s11 + $0x38] sm:$0xff]  ;;  %v2133_v30 = vld [vmem:[%s10408_s11 + $0x30] sm:$0xff] }
 0x66c   :  { %1826 = vadd.xlane.f32.xlu0 %v1825_v50  ;;  %7108 = vmatpush3.msra.mxu1 %v2134_v4  ;;  %v2131_v50 = vld [vmem:[%s10408_s11 + $0x20] sm:$0xff] }
 0x66d   :  { %v1802_v40 = vpop.xlane.xlu1 %1801  ;;  %v1817_v13 = vmul.f32 %v8899_v20, %v8899_v20  ;;  %7109 = vmatprep.subr.mxu1 %v7953_v1 }
 0x66e   :  { %v1808_v57 = vmul.f32 0.03125, %v1802_v40  ;;  %7110 = vmatpush3.msra.mxu1 %v2133_v30  ;;  %v2130_v40 = vld [vmem:[%s10408_s11 + $0x18] sm:$0xff] }
 0x66f   :  { %v1828_v42 = vsel %vm225_vm1, %v1817_v13, 0.0  ;;  %7111 = vmatprep.subr.mxu1 %v7953_v1  ;;  %v2129_v13 = vld [vmem:[%s10408_s11 + $0x10] sm:$0xff] }
 0x670   :  { %v1813_v34 = vsub.f32 %v1785_v51, %v1808_v57  ;;  %1829 = vadd.xlane.f32.xlu1 %v1828_v42  ;;  %v2128_v57 = vld [vmem:[%s10408_s11 + $0x8] sm:$0xff]  ;;  %v2127_v42 = vld [vmem:[%s10408_s11] sm:$0xff] }
 0x672   :  { %v1818_v16 = vmul.f32 %v1813_v34, %v1813_v34 }
 0x674   :  { %v1831_v21 = vsel %vm225_vm1, %v1818_v16, 0.0 }
 0x675   :  { %1832 = vadd.xlane.f32.xlu0 %v1831_v21 }
 0x6ed   :  { %v1821_v5 = vpop.xlane.xlu0 %1820 }
 0x6ee   :  { %v1834_v12 = vmul.f32 0.03125, %v1821_v5 }
 0x6f0   :  { %v1839_v46 = vadd.f32 1e-05, %v1834_v12 }
 0x6f1   :  { %v1824_v39 = vpop.xlane.xlu1 %1823 }
 0x6f2   :  { %7736 = vrsqrt.f32 %v1839_v46  ;;  %v1835_v33 = vmul.f32 0.03125, %v1824_v39 }
 0x6f4   :  { %v1840_v36 = vadd.f32 1e-05, %v1835_v33 }
 0x6f5   :  { %v1827_v43 = vpop.xlane.xlu0 %1826 }
 0x6f6   :  { %7738 = vrsqrt.f32 %v1840_v36  ;;  %v1836_v47 = vmul.f32 0.03125, %v1827_v43 }
 0x6f8   :  { %v1841_v55 = vadd.f32 1e-05, %v1836_v47 }
 0x6f9   :  { %v1830_v53 = vpop.xlane.xlu1 %1829 }
 0x6fa   :  { %7740 = vrsqrt.f32 %v1841_v55  ;;  %v1837_v52 = vmul.f32 0.03125, %v1830_v53 }
 0x6fc   :  { %v1842_v19 = vadd.f32 1e-05, %v1837_v52 }
 0x6fe   :  { %7742 = vrsqrt.f32 %v1842_v19  ;;  %v1833_v25 = vpop.xlane.xlu0 %1832 }
 0x6ff   :  { %v7737_v61 = vpop.eup %7736  ;;  %v1838_v37 = vmul.f32 0.03125, %v1833_v25 }
 0x700   :  { %v1849_v23 = vmul.f32 %v7737_v61, %v1809_v38 }
 0x701   :  { %v1843_v6 = vadd.f32 1e-05, %v1838_v37 }
 0x702   :  { %v1860_v10 = vmul.f32 %v6296_v63, %v1849_v23 }
 0x703   :  { %v7739_v60 = vpop.eup %7738  ;;  %7744 = vrsqrt.f32 %v1843_v6 }
 0x704   :  { %v8928_v51 = vadd.f32 %v6297_v15, %v1860_v10  ;;  %v1850_v31 = vmul.f32 %v7739_v60, %v8889_v48 }
 0x706   :  { %7093 = vmatmul.mubr.msk.f32.vlgmr.msra.gmra.mxu0 %vm225_vm1, %v8928_v51  ;;  %v1861_v32 = vmul.f32 %v6296_v63, %v1850_v31 }
 0x707   :  { %v7741_v49 = vpop.eup %7740  ;;  %7095 = vmatprep.mubr.msk.f32.mxu0 %vm7954_vm0, %v7953_v1 }
 0x708   :  { %v8935_v38 = vadd.f32 %v6297_v15, %v1861_v32  ;;  %v1851_v11 = vmul.f32 %v7741_v49, %v8894_v26 }
 0x70a   :  { %7096 = vmatmul.mubr.msk.f32.gmra.mxu0 %vm225_vm1, %v8935_v38  ;;  %v1862_v56 = vmul.f32 %v6296_v63, %v1851_v11 }
 0x70b   :  { %v7743_v2 = vpop.eup %7742  ;;  %7098 = vmatprep.mubr.msk.f32.mxu0 %vm7954_vm0, %v7953_v1 }
 0x70c   :  { %v8942_v48 = vadd.f32 %v6297_v15, %v1862_v56  ;;  %v1852_v8 = vmul.f32 %v7743_v2, %v8899_v20  ;;  %v2132_v20 = vld [vmem:[%s10408_s11 + $0x28] sm:$0xff] }
 0x70d   :  { %7112 = vmatpush3.msra.mxu1 %v2132_v20 }
 0x70e   :  { %7099 = vmatmul.mubr.msk.f32.gmra.mxu0 %vm225_vm1, %v8942_v48  ;;  %v1863_v17 = vmul.f32 %v6296_v63, %v1852_v8  ;;  %7113 = vmatprep.subr.mxu1 %v7953_v1 }
 0x70f   :  { %7101 = vmatprep.mubr.msk.f32.mxu0 %vm7954_vm0, %v7953_v1  ;;  %7114 = vmatpush3.msra.mxu1 %v2131_v50 }
 0x710   :  { %v7745_v58 = vpop.eup %7744  ;;  %v8949_v27 = vadd.f32 %v6297_v15, %v1863_v17  ;;  %7115 = vmatprep.subr.mxu1 %v7953_v1 }
 0x711   :  { %v1853_v26 = vmul.f32 %v7745_v58, %v1813_v34  ;;  %7116 = vmatpush3.msra.mxu1 %v2130_v40  ;;  %v6298_v34 = vld [vmem:[%s10407_s10] ss:$0 sm:$0xff] }
 0x712   :  { %7102 = vmatmul.mubr.msk.f32.gmra.mxu0 %vm225_vm1, %v8949_v27  ;;  %7117 = vmatprep.subr.mxu1 %v7953_v1 }
 0x713   :  { %7104 = vmatprep.mubr.msk.f32.mxu0 %vm7954_vm0, %v7953_v1  ;;  %v1864_v62 = vmul.f32 %v6296_v63, %v1853_v26  ;;  %7118 = vmatpush3.msra.mxu1 %v2129_v13 }
 0x714   :  { %7119 = vmatprep.subr.mxu1 %v7953_v1 }
 0x715   :  { %v8955_v59 = vadd.f32 %v6297_v15, %v1864_v62  ;;  %7120 = vmatpush3.msra.mxu1 %v2128_v57 }
 0x716   :  { %7121 = vmatprep.subr.mxu1 %v7953_v1 }
 0x717   :  { %7105 = vmatmul.mubr.msk.f32.gmra.mxu0 %vm225_vm1, %v8955_v59  ;;  %7122 = vmatpush3.msra.mxu1 %v2127_v42 }
 0x718   :  { %7148 = vmatprep.mubr.msk.f32.mxu0 %vm7954_vm0, %v7953_v1  ;;  %7167 = vmatprep.subr.mxu1 %v7953_v1 }
 0x7c6   :  { %v1968_v16 = vpop.f32.mrf.mxu0 }
 0x7c7   :  { %v8996_v21 = vadd.f32 %v6298_v34, %v1968_v16 }
 0x7c8   :  { %v7094_v3 = vpop.f32.mrf.mxu0 }
 0x7c9   :  { %v8999_v24 = vmul.f32 0.70710677, %v8996_v21 }
 0x7ca   :  { %v1973_v44 = vpop.f32.mrf.mxu0 }
 0x7cb   :  { %v1997_v22 = vand.u32 2147483647, %v8999_v24  ;;  %v9002_v5 = vadd.f32 %v6298_v34, %v1973_v44  ;;  %vm2097_vm12 = vcmp.ge.f32.partialorder %v8999_v24, 0.0 }
 0x7cc   :  { %v7097_v12 = vpop.f32.mrf.mxu0 }
 0x7cd   :  { %v2002_v46 = vmul.f32 0.3275911, %v1997_v22  ;;  %v9005_v39 = vmul.f32 0.70710677, %v9002_v5  ;;  %v2067_v23 = vsub.f32 0.0, %v1997_v22 }
 0x7ce   :  { %v1978_v33 = vpop.f32.mrf.mxu0 }
 0x7cf   :  { %v2007_v36 = vadd.f32 1.0, %v2002_v46  ;;  %v1998_v43 = vand.u32 2147483647, %v9005_v39  ;;  %v9008_v47 = vadd.f32 %v6298_v34, %v1978_v33  ;;  %v2072_v49 = vmul.f32 %v2067_v23, %v1997_v22 }
 0x7d0   :  { %v7100_v55 = vpop.f32.mrf.mxu0  ;;  %vm2098_vm14 = vcmp.ge.f32.partialorder %v9005_v39, 0.0 }
 0x7d1   :  { %7746 = vrcp.f32 %v2007_v36  ;;  %v2003_v53 = vmul.f32 0.3275911, %v1998_v43  ;;  %v9011_v52 = vmul.f32 0.70710677, %v9008_v47  ;;  %v2068_v8 = vsub.f32 0.0, %v1998_v43 }
 0x7d2   :  { %v1983_v19 = vpop.f32.mrf.mxu0  ;;  %v2077_v26 = vmul.f32 1.442695, %v2072_v49 }
 0x7d3   :  { %v2008_v25 = vadd.f32 1.0, %v2003_v53  ;;  %v9013_v61 = vadd.f32 %v6298_v34, %v1983_v19  ;;  %v1999_v63 = vand.u32 2147483647, %v9011_v52  ;;  %v2073_v20 = vmul.f32 %v2068_v8, %v1998_v43 }
 0x7d4   :  { %v7103_v37 = vpop.f32.mrf.mxu0  ;;  %vm2099_vm4 = vcmp.ge.f32.partialorder %v9011_v52, 0.0 }
 0x7d5   :  { %7748 = vrcp.f32 %v2008_v25  ;;  %v9017_v6 = vmul.f32 0.70710677, %v9013_v61  ;;  %v2004_v15 = vmul.f32 0.3275911, %v1999_v63  ;;  %v2069_v50 = vsub.f32 0.0, %v1999_v63 }
 0x7d6   :  { %v2079_v16 = vmul.f32 1.442695, %v2073_v20  ;;  %v2115_v52 = vmul.f32 0.5, %v9013_v61 }
 0x7d7   :  { %v2000_v10 = vand.u32 2147483647, %v9017_v6  ;;  %v1988_v60 = vpop.f32.mrf.mxu0  ;;  %v2009_v31 = vadd.f32 1.0, %v2004_v15  ;;  %v2074_v44 = vmul.f32 %v2069_v50, %v1999_v63  ;;  %vm2100_vm6 = vcmp.ge.f32.partialorder %v9017_v6, 0.0 }
 0x7d8   :  { %v9020_v32 = vadd.f32 %v6298_v34, %v1988_v60 }
 0x7d9   :  { %v2005_v11 = vmul.f32 0.3275911, %v2000_v10  ;;  %v7106_v56 = vpop.f32.mrf.mxu0  ;;  %7750 = vrcp.f32 %v2009_v31  ;;  %v2070_v3 = vsub.f32 0.0, %v2000_v10  ;;  %v2081_v43 = vmul.f32 1.442695, %v2074_v44 }
 0x7da   :  { %v9023_v2 = vmul.f32 0.70710677, %v9020_v32 }
 0x7db   :  { %v2010_v17 = vadd.f32 1.0, %v2005_v11  ;;  %v2075_v55 = vmul.f32 %v2070_v3, %v2000_v10 }
 0x7dc   :  { %v2001_v58 = vand.u32 2147483647, %v9023_v2 }
 0x7dd   :  { %7752 = vrcp.f32 %v2010_v17  ;;  %v2083_v11 = vmul.f32 1.442695, %v2075_v55 }
 0x7de   :  { %v7747_v62 = vpop.eup %7746  ;;  %v2006_v4 = vmul.f32 0.3275911, %v2001_v58  ;;  %7754 = vpow2.f32 %v2077_v26  ;;  %v2071_v19 = vsub.f32 0.0, %v2001_v58 }
 0x7df   :  { %v2022_v30 = vmul.f32 1.0614054, %v7747_v62 }
 0x7e0   :  { %v2011_v40 = vadd.f32 1.0, %v2006_v4  ;;  %v2076_v63 = vmul.f32 %v2071_v19, %v2001_v58 }
 0x7e1   :  { %v6304_v13 = vadd.f32 -1.4531521, %v2022_v30 }
 0x7e2   :  { %v7749_v57 = vpop.eup %7748  ;;  %7756 = vrcp.f32 %v2011_v40 }
 0x7e3   :  { %v2032_v42 = vmul.f32 %v7747_v62, %v6304_v13  ;;  %v2023_v34 = vmul.f32 1.0614054, %v7749_v57  ;;  %7758 = vpow2.f32 %v2079_v16 }
 0x7e4   :  { %7760 = vpow2.f32 %v2081_v43 }
 0x7e5   :  { %v2037_v22 = vadd.f32 1.4214138, %v2032_v42  ;;  %v6305_v12 = vadd.f32 -1.4531521, %v2023_v34  ;;  %7762 = vpow2.f32 %v2083_v11  ;;  %v2085_v34 = vmul.f32 1.442695, %v2076_v63 }
 0x7e6   :  { %v7751_v46 = vpop.eup %7750  ;;  %v2112_v11 = vmul.f32 0.5, %v8996_v21 }
 0x7e7   :  { %v2042_v33 = vmul.f32 %v7747_v62, %v2037_v22  ;;  %v2033_v36 = vmul.f32 %v7749_v57, %v6305_v12  ;;  %v2024_v53 = vmul.f32 1.0614054, %v7751_v46  ;;  %7764 = vpow2.f32 %v2085_v34 }
 0x7e9   :  { %v6309_v25 = vadd.f32 -0.28449672, %v2042_v33  ;;  %v2038_v37 = vadd.f32 1.4214138, %v2033_v36  ;;  %v6306_v15 = vadd.f32 -1.4531521, %v2024_v53 }
 0x7ea   :  { %v7753_v23 = vpop.eup %7752 }
 0x7eb   :  { %v2052_v60 = vmul.f32 %v7747_v62, %v6309_v25  ;;  %v2043_v31 = vmul.f32 %v7749_v57, %v2038_v37  ;;  %v2025_v49 = vmul.f32 1.0614054, %v7753_v23  ;;  %v2034_v56 = vmul.f32 %v7751_v46, %v6306_v15  ;;  %v7755_v4 = vpop.eup %7754 }
 0x7ed   :  { %v2057_v8 = vadd.f32 0.2548296, %v2052_v60  ;;  %v6310_v17 = vadd.f32 -0.28449672, %v2043_v31  ;;  %v6307_v26 = vadd.f32 -1.4531521, %v2025_v49 }
 0x7ee   :  { %v2039_v30 = vadd.f32 1.4214138, %v2034_v56 }
 0x7ef   :  { %v7757_v10 = vpop.eup %7756  ;;  %v2062_v20 = vmul.f32 %v7747_v62, %v2057_v8  ;;  %v2053_v50 = vmul.f32 %v7749_v57, %v6310_v17  ;;  %v2035_v40 = vmul.f32 %v7753_v23, %v6307_v26 }
 0x7f0   :  { %v2044_v13 = vmul.f32 %v7751_v46, %v2039_v30  ;;  %v2026_v42 = vmul.f32 1.0614054, %v7757_v10  ;;  %v7759_v55 = vpop.eup %7758 }
 0x7f1   :  { %v2087_v16 = vmul.f32 %v7755_v4, %v2062_v20  ;;  %v2058_v3 = vadd.f32 0.2548296, %v2053_v50  ;;  %v2040_v44 = vadd.f32 1.4214138, %v2035_v40  ;;  %v7761_v8 = vpop.eup %7760 }
 0x7f2   :  { %v6311_v22 = vadd.f32 -0.28449672, %v2044_v13  ;;  %v6308_v12 = vadd.f32 -1.4531521, %v2026_v42  ;;  %v7763_v40 = vpop.eup %7762  ;;  %v2113_v13 = vmul.f32 0.5, %v9002_v5 }
 0x7f3   :  { %v2092_v33 = vsub.f32 1.0, %v2087_v16  ;;  %v2063_v58 = vmul.f32 %v7749_v57, %v2058_v3  ;;  %v2045_v36 = vmul.f32 %v7753_v23, %v2040_v44 }
 0x7f4   :  { %v2054_v53 = vmul.f32 %v7751_v46, %v6311_v22  ;;  %v2036_v43 = vmul.f32 %v7757_v10, %v6308_v12  ;;  %v7765_v5 = vpop.eup %7764  ;;  %v2114_v12 = vmul.f32 0.5, %v9008_v47 }
 0x7f5   :  { %v2102_v19 = vsub.f32 0.0, %v2092_v33  ;;  %v2088_v62 = vmul.f32 %v7759_v55, %v2063_v58  ;;  %v6312_v25 = vadd.f32 -0.28449672, %v2045_v36 }
 0x7f6   :  { %v2059_v37 = vadd.f32 0.2548296, %v2054_v53  ;;  %v2041_v15 = vadd.f32 1.4214138, %v2036_v43 }
 0x7f7   :  { %v2107_v60 = vsel %vm2097_vm12, %v2092_v33, %v2102_v19  ;;  %v2093_v31 = vsub.f32 1.0, %v2088_v62  ;;  %v2055_v49 = vmul.f32 %v7753_v23, %v6312_v25  ;;  %vm2101_vm12 = vcmp.ge.f32.partialorder %v9023_v2, 0.0 }
 0x7f8   :  { %v2117_v56 = vadd.f32 1.0, %v2107_v60  ;;  %v2064_v63 = vmul.f32 %v7751_v46, %v2059_v37  ;;  %v2046_v57 = vmul.f32 %v7757_v10, %v2041_v15  ;;  %v2116_v25 = vmul.f32 0.5, %v9020_v32  ;;  %v6314_v32 = vld [vmem:[%s10409_s12] ss:$0 sm:$0xff] }
 0x7f9   :  { %v2103_v17 = vsub.f32 0.0, %v2093_v31  ;;  %v2060_v26 = vadd.f32 0.2548296, %v2055_v49 }
 0x7fa   :  { %v2122_v4 = vmul.f32 %v2117_v56, %v2112_v11  ;;  %v2089_v30 = vmul.f32 %v7761_v8, %v2064_v63  ;;  %v6313_v20 = vadd.f32 -0.28449672, %v2046_v57 }
 0x7fb   :  { %v2108_v24 = vsel %vm2098_vm14, %v2093_v31, %v2103_v17  ;;  %v2065_v50 = vmul.f32 %v7753_v23, %v2060_v26 }
 0x7fc   :  { %v2118_v42 = vadd.f32 1.0, %v2108_v24  ;;  %v2094_v34 = vsub.f32 1.0, %v2089_v30  ;;  %v2056_v21 = vmul.f32 %v7757_v10, %v6313_v20  ;;  %7124 = vmatmul.mubr.msk.f32.vlgmr.msra.gmra.mxu1 %vm10449_vm13, %v2122_v4 }
 0x7fd   :  { %v2090_v46 = vmul.f32 %v7763_v40, %v2065_v50  ;;  %7126 = vmatprep.mubr.msk.f32.mxu1 %vm7954_vm0, %v7953_v1 }
 0x7fe   :  { %v2123_v16 = vmul.f32 %v2118_v42, %v2113_v13  ;;  %v2104_v3 = vsub.f32 0.0, %v2094_v34  ;;  %v2061_v44 = vadd.f32 0.2548296, %v2056_v21 }
 0x7ff   :  { %v2095_v39 = vsub.f32 1.0, %v2090_v46 }
 0x800   :  { %v2109_v22 = vsel %vm2099_vm4, %v2094_v34, %v2104_v3  ;;  %v2066_v23 = vmul.f32 %v7757_v10, %v2061_v44  ;;  %7127 = vmatmul.mubr.msk.f32.gmra.mxu1 %vm10449_vm13, %v2123_v16  ;;  %vm2627_vm4 = vcmask 1043456  }
 0x801   :  { %v2119_v33 = vadd.f32 1.0, %v2109_v22  ;;  %v2105_v58 = vsub.f32 0.0, %v2095_v39  ;;  %7129 = vmatprep.mubr.msk.f32.mxu1 %vm7954_vm0, %v7953_v1 }
 0x802   :  { %v2091_v36 = vmul.f32 %v7765_v5, %v2066_v23 }
 0x803   :  { %v2124_v55 = vmul.f32 %v2119_v33, %v2114_v12  ;;  %v2110_v53 = vsel %vm2100_vm6, %v2095_v39, %v2105_v58  ;;  %vm2521_vm6 = vcmask 257024  }
 0x804   :  { %v2120_v43 = vadd.f32 1.0, %v2110_v53  ;;  %v2096_v19 = vsub.f32 1.0, %v2091_v36 }
 0x805   :  { %7130 = vmatmul.mubr.msk.f32.gmra.mxu1 %vm10449_vm13, %v2124_v55 }
 0x806   :  { %v2125_v10 = vmul.f32 %v2120_v43, %v2115_v52  ;;  %v2106_v62 = vsub.f32 0.0, %v2096_v19  ;;  %7132 = vmatprep.mubr.msk.f32.mxu1 %vm7954_vm0, %v7953_v1 }
 0x808   :  { %v2111_v47 = vsel %vm2101_vm12, %v2096_v19, %v2106_v62 }
 0x809   :  { %v2121_v6 = vadd.f32 1.0, %v2111_v47  ;;  %7133 = vmatmul.mubr.msk.f32.gmra.mxu1 %vm10449_vm13, %v2125_v10 }
 0x80a   :  { %7135 = vmatprep.mubr.msk.f32.mxu1 %vm7954_vm0, %v7953_v1 }
 0x80b   :  { %v2126_v61 = vmul.f32 %v2121_v6, %v2116_v25 }
 0x80d   :  { %7136 = vmatmul.mubr.msk.f32.gmra.mxu1 %vm10449_vm13, %v2126_v61  ;;  %vm2611_vm13 = vcmask 27648  }
 0x80e   :  { %7169 = vmatprep.mubr.msk.f32.mxu1 %vm7954_vm0, %v7953_v1 }
 0x8bc   :  { %v2224_v37 = vpop.f32.mrf.mxu1 }
 0x8bd   :  { %v2225_v40 = vadd.f32 %v6314_v32, %v2224_v37 }
 0x8be   :  { %v7125_v15 = vpop.f32.mrf.mxu1 }
 0x8c0   :  { %v2229_v60 = vpop.f32.mrf.mxu1 }
 0x8c1   :  { %v2230_v56 = vadd.f32 %v6314_v32, %v2229_v60 }
 0x8c2   :  { %v7128_v31 = vpop.f32.mrf.mxu1 }
 0x8c3   :  { %v2249_v26 = vadd.f32 %v2230_v56, %v8935_v38 }
 0x8c5   :  { %v2234_v2 = vpop.f32.mrf.mxu1  ;;  %v2258_v42 = vsel %vm225_vm1, %v2249_v26, 0.0 }
 0x8c6   :  { %v2235_v4 = vadd.f32 %v6314_v32, %v2234_v2 }
 0x8c7   :  { %v7131_v49 = vpop.f32.mrf.mxu1 }
 0x8c8   :  { %v2250_v13 = vadd.f32 %v2235_v4, %v8942_v48 }
 0x8c9   :  { %v2239_v11 = vpop.f32.mrf.mxu1 }
 0x8ca   :  { %v2240_v63 = vadd.f32 %v6314_v32, %v2239_v11  ;;  %v2261_v38 = vsel %vm225_vm1, %v2250_v13, 0.0 }
 0x8cb   :  { %v7134_v57 = vpop.f32.mrf.mxu1 }
 0x8cc   :  { %v2251_v8 = vadd.f32 %v2240_v63, %v8949_v27  ;;  %v2248_v27 = vadd.f32 %v2225_v40, %v8928_v51 }
 0x8cd   :  { %v2244_v17 = vpop.f32.mrf.mxu1 }
 0x8ce   :  { %v2245_v30 = vadd.f32 %v6314_v32, %v2244_v17  ;;  %v2264_v20 = vsel %vm225_vm1, %v2251_v8, 0.0  ;;  %v2255_v21 = vsel %vm225_vm1, %v2248_v27, 0.0 }
 0x8cf   :  { %2265 = vadd.xlane.f32.xlu0 %v2264_v20  ;;  %v7137_v24 = vpop.f32.mrf.mxu1 }
 0x8d0   :  { %v2252_v50 = vadd.f32 %v2245_v30, %v8955_v59 }
 0x8d2   :  { %v2267_v34 = vsel %vm225_vm1, %v2252_v50, 0.0 }
 0x8d3   :  { %2259 = vadd.xlane.f32.xlu0 %v2258_v42  ;;  %2268 = vadd.xlane.f32.xlu1 %v2267_v34 }
 0x8d7   :  { %2262 = vadd.xlane.f32.xlu1 %v2261_v38  ;;  %v6321_v38 = vld [vmem:[%s10411_s14] ss:$0 sm:$0xff] }
 0x8db   :  { %2256 = vadd.xlane.f32.xlu1 %v2255_v21 }
 0x958   :  { %v2266_v46 = vpop.xlane.xlu0 %2265 }
 0x959   :  { %v2273_v16 = vmul.f32 0.03125, %v2266_v46 }
 0x95b   :  { %v2278_v59 = vsub.f32 %v2251_v8, %v2273_v16 }
 0x95c   :  { %v2260_v3 = vpop.xlane.xlu0 %2259  ;;  %v2269_v44 = vpop.xlane.xlu1 %2268 }
 0x95d   :  { %v2271_v48 = vmul.f32 0.03125, %v2260_v3  ;;  %v2274_v39 = vmul.f32 0.03125, %v2269_v44  ;;  %v2283_v22 = vmul.f32 %v2278_v59, %v2278_v59 }
 0x95f   :  { %v2276_v23 = vsub.f32 %v2249_v26, %v2271_v48  ;;  %v2279_v5 = vsub.f32 %v2252_v50, %v2274_v39  ;;  %v2294_v12 = vsel %vm225_vm1, %v2283_v22, 0.0  ;;  %v6320_v50 = vld [vmem:[%s10410_s13] ss:$0 sm:$0xff] }
 0x960   :  { %2295 = vadd.xlane.f32.xlu1 %v2294_v12  ;;  %v2263_v51 = vpop.xlane.xlu1 %2262 }
 0x961   :  { %v2272_v33 = vmul.f32 0.03125, %v2263_v51  ;;  %v2281_v58 = vmul.f32 %v2276_v23, %v2276_v23  ;;  %v2284_v36 = vmul.f32 %v2279_v5, %v2279_v5 }
 0x963   :  { %v2277_v55 = vsub.f32 %v2250_v13, %v2272_v33  ;;  %v2288_v53 = vsel %vm225_vm1, %v2281_v58, 0.0  ;;  %v2297_v52 = vsel %vm225_vm1, %v2284_v36, 0.0  ;;  %v9101_v33 = vld [vmem:[%s10412_s15 + $0x18] sm:$0xff]  ;;  %v9109_v58 = vld [vmem:[%s10412_s15 + $0x10] sm:$0xff]  ;;  %v9118_v36 = vld [vmem:[%s10412_s15 + $0x8] sm:$0xff] }
 0x964   :  { %2289 = vadd.xlane.f32.xlu1 %v2288_v53  ;;  %2298 = vadd.xlane.f32.xlu0 %v2297_v52  ;;  %v2257_v43 = vpop.xlane.xlu1 %2256 }
 0x965   :  { %v2270_v19 = vmul.f32 0.03125, %v2257_v43  ;;  %v2282_v10 = vmul.f32 %v2277_v55, %v2277_v55  ;;  %v9137_v43 = vld [vmem:[%s10413_s16] ss:$0 sm:$0xff] }
 0x967   :  { %v2275_v62 = vsub.f32 %v2248_v27, %v2270_v19  ;;  %v2291_v47 = vsel %vm225_vm1, %v2282_v10, 0.0 }
 0x968   :  { %2292 = vadd.xlane.f32.xlu0 %v2291_v47 }
 0x969   :  { %v2280_v25 = vmul.f32 %v2275_v62, %v2275_v62 }
 0x96b   :  { %v2285_v6 = vsel %vm225_vm1, %v2280_v25, 0.0 }
 0x96c   :  { %2286 = vadd.xlane.f32.xlu0 %v2285_v6  ;;  %v2603_v6 = vsub.s32 0, %v8380_v14 }
 0x9e9   :  { %v2296_v61 = vpop.xlane.xlu1 %2295 }
 0x9ea   :  { %v2303_v37 = vmul.f32 0.03125, %v2296_v61 }
 0x9ec   :  { %v2308_v15 = vadd.f32 1e-05, %v2303_v37 }
 0x9ed   :  { %v2290_v60 = vpop.xlane.xlu1 %2289  ;;  %v2299_v31 = vpop.xlane.xlu0 %2298 }
 0x9ee   :  { %v2301_v2 = vmul.f32 0.03125, %v2290_v60  ;;  %v2304_v49 = vmul.f32 0.03125, %v2299_v31  ;;  %7766 = vrsqrt.f32 %v2308_v15  ;;  %v9160_v31 = vld [vmem:[%s10415_s18] sm:$0xf] }
 0x9f0   :  { %v2306_v32 = vadd.f32 1e-05, %v2301_v2  ;;  %v2309_v11 = vadd.f32 1e-05, %v2304_v49 }
 0x9f1   :  { %v2293_v56 = vpop.xlane.xlu0 %2292 }
 0x9f2   :  { %7768 = vrsqrt.f32 %v2306_v32  ;;  %v2302_v63 = vmul.f32 0.03125, %v2293_v56 }
 0x9f3   :  { %7770 = vrsqrt.f32 %v2309_v11 }
 0x9f4   :  { %v2307_v57 = vadd.f32 1e-05, %v2302_v63 }
 0x9f5   :  { %v2287_v8 = vpop.xlane.xlu0 %2286 }
 0x9f6   :  { %7772 = vrsqrt.f32 %v2307_v57  ;;  %v2300_v17 = vmul.f32 0.03125, %v2287_v8 }
 0x9f8   :  { %v2305_v26 = vadd.f32 1e-05, %v2300_v17 }
 0x9fa   :  { %7774 = vrsqrt.f32 %v2305_v26 }
 0x9fb   :  { %v7767_v4 = vpop.eup %7766 }
 0x9fc   :  { %v2318_v20 = vmul.f32 %v7767_v4, %v2278_v59  ;;  %v2348_v59 = vmul.u32 5, %v8380_v14 }
 0x9fe   :  { %v2329_v34 = vmul.f32 %v6320_v50, %v2318_v20  ;;  %vm2349_vm14 = vcmp.eq.s32.totalorder %v8370_v7, %v2348_v59 }
 0x9ff   :  { %v7769_v30 = vpop.eup %7768  ;;  %v6322_v51 = vsel %vm2349_vm14, 1.0, %v7953_v1  ;;  %vm2609_vm14 = vcmp.gt.f32.partialorder %v9160_v31, 0.0  ;;  %v2819_v31 = vadd.s32 4, %v8370_v7 }
 0xa00   :  { %v7771_v24 = vpop.eup %7770  ;;  %v2316_v27 = vmul.f32 %v7769_v30, %v2276_v23  ;;  %v9079_v44 = vadd.f32 %v6321_v38, %v2329_v34 }
 0xa01   :  { %v2319_v40 = vmul.f32 %v7771_v24, %v2279_v5  ;;  %v2352_v24 = vmul.u32 5, %v8370_v7 }
 0xa02   :  { %v2327_v48 = vmul.f32 %v6320_v50, %v2316_v27 }
 0xa03   :  { %v7773_v13 = vpop.eup %7772  ;;  %v2330_v42 = vmul.f32 %v6320_v50, %v2319_v40  ;;  %vm2354_vm10 = vcmp.eq.s32.totalorder %v8386_v18, %v2352_v24  ;;  %vm2355_vm2 = vcmp.eq.s32.totalorder %v8396_v28, %v2352_v24 }
 0xa04   :  { %v2317_v21 = vmul.f32 %v7773_v13, %v2277_v55  ;;  %v9090_v5 = vadd.f32 %v6321_v38, %v2327_v48  ;;  %v9127_v55 = vld [vmem:[%s10412_s15] sm:$0xff]  ;;  %v6324_v27 = vsel %vm2354_vm10, 1.0, %v7953_v1  ;;  %vm2357_vm10 = vcmp.eq.s32.totalorder %v8413_v41, %v2352_v24  ;;  %s10522_s15 = smov 16  }
 0xa05   :  { %v9075_v46 = vadd.f32 %v6321_v38, %v2330_v42 }
 0xa06   :  { %v2328_v16 = vmul.f32 %v6320_v50, %v2317_v21 }
 0xa07   :  { %v7775_v3 = vpop.eup %7774  ;;  %7139 = vmatpush3.msra.mxu0 %v9075_v46 }
 0xa08   :  { %7140 = vmatprep.subr.mxu0 %v7953_v1  ;;  %v9082_v39 = vadd.f32 %v6321_v38, %v2328_v16  ;;  %v2315_v22 = vmul.f32 %v7775_v3, %v2275_v62  ;;  %v9145_v62 = vld [vmem:[%s10414_s17] sm:$0x1]  ;;  %v6327_v16 = vsel %vm2357_vm10, 1.0, %v7953_v1 }
 0xa09   :  { %7141 = vmatpush3.msra.mxu0 %v9079_v44 }
 0xa0a   :  { %7142 = vmatprep.subr.mxu0 %v7953_v1  ;;  %v2326_v23 = vmul.f32 %v6320_v50, %v2315_v22 }
 0xa0b   :  { %7143 = vmatpush3.msra.mxu0 %v9082_v39 }
 0xa0c   :  { %7144 = vmatprep.subr.mxu0 %v7953_v1  ;;  %v9093_v12 = vadd.f32 %v6321_v38, %v2326_v23  ;;  %v6325_v38 = vsel %vm2355_vm2, 1.0, %v7953_v1 }
 0xa0d   :  { %7145 = vmatpush3.msra.mxu0 %v9090_v5 }
 0xa0e   :  { %7146 = vmatprep.subr.mxu0 %v7953_v1 }
 0xa0f   :  { %7147 = vmatpush3.msra.mxu0 %v9093_v12 }
 0xa10   :  { %7149 = vmatmul.mubr.msk.f32.vlgmr.msra.gmra.mxu0 %vm467_vm3, %v6322_v51  ;;  %7151 = vmatprep.subr.mxu0 %v7953_v1 }
 0xa11   :  { %7152 = vmatpush3.msra.mxu0 %v9101_v33  ;;  %7159 = vmatprep.mubr.msk.f32.mxu0 %vm7954_vm0, %v7953_v1 }
 0xa12   :  { %7153 = vmatprep.subr.mxu0 %v7953_v1 }
 0xa13   :  { %7154 = vmatpush3.msra.mxu0 %v9109_v58 }
 0xa14   :  { %7155 = vmatprep.subr.mxu0 %v7953_v1 }
 0xa15   :  { %7156 = vmatpush3.msra.mxu0 %v9118_v36 }
 0xa16   :  { %7157 = vmatprep.subr.mxu0 %v7953_v1 }
 0xa17   :  { %7158 = vmatpush3.msra.mxu0 %v9127_v55 }
 0xa18   :  { %7162 = vmatprep.subr.mxu0 %v7953_v1 }
 0xad0   :  { %v2437_v53 = vpop.f32.mrf.mxu0 }
 0xad1   :  { %7160 = vmatmul.mubr.msk.f32.vlgmr.msra.gmra.mxu0 %vm225_vm1, %v2437_v53 }
 0xad2   :  { %v7150_v52 = vpop.f32.mrf.mxu0  ;;  %7164 = vmatprep.mubr.msk.f32.mxu0 %vm7954_vm0, %v7953_v1 }
 0xb91   :  { %v2510_v19 = vpop.f32.mrf.mxu0 }
 0xb92   :  { %v2520_v10 = vmul.f32 %v9137_v43, %v2510_v19  ;;  %7163 = vmatpush3.xpose.msk.msra.mxu0 %vm225_vm1, %v2510_v19  ;;  %7168 = vmatpush3.msk.msra.mxu1 %vm2627_vm4, %v2510_v19 }
 0xb93   :  { %v7161_v47 = vpop.f32.mrf.mxu0  ;;  %7172 = vmatprep.subr.mxu0 %v7953_v1  ;;  %7189 = vmatprep.subr.mxu1 %v7953_v1 }
 0xb94   :  { %v2522_v25 = vsel %vm2521_vm6, %v2520_v10, 0.0  ;;  %v2814_v10 = vadd.s32 4, %v8380_v14 }
 0xb95   :  { %7165 = vmatmul.mubr.msk.f32.vlgmr.msra.gmra.mxu0 %vm225_vm1, %v9145_v62  ;;  %2523 = vadd.xlane.f32.xlu1 %v2522_v25 }
 0xb96   :  { %7174 = vmatprep.mubr.msk.f32.mxu0 %vm7954_vm0, %v7953_v1 }
 0xc1e   :  { %v2524_v15 = vpop.xlane.xlu1 %2523 }
 0xc55   :  { %v2597_v61 = vpop.f32.mrf.mxu0 }
 0xc56   :  { %v2604_v37 = vrot.slane %v2597_v61, %v2603_v6 }
 0xc57   :  { %v7166_v60 = vpop.f32.mrf.mxu0 }
 0xc58   :  { %v2605_v2 = vadd.f32 %v2604_v37, %v2524_v15  ;;  %v2815_v37 = vmul.u32 5, %v2814_v10 }
 0xc5a   :  { %v2607_v49 = vmul.f32 0.2, %v2605_v2  ;;  %vm2606_vm12 = vcmp.gt.f32.partialorder %v2605_v2, 0.0  ;;  %vm2816_vm2 = vcmp.eq.s32.totalorder %v8370_v7, %v2815_v37 }
 0xc5c   :  { %v2608_v32 = vsel %vm2606_vm12, %v2605_v2, %v2607_v49  ;;  %vm2353_vm12 = vcmp.eq.s32.totalorder %v8380_v14, %v2352_v24 }
 0xc5d   :  { %v2610_v11 = vsel %vm2609_vm14, %v2608_v32, -1e+30  ;;  %v6323_v34 = vsel %vm2353_vm12, 1.0, %v7953_v1  ;;  %vm2356_vm12 = vcmp.eq.s32.totalorder %v8399_v29, %v2352_v24 }
 0xc5e   :  { %v2612_v56 = vsel %vm2611_vm13, %v2610_v11, -inf  ;;  %v6326_v21 = vsel %vm2356_vm12, 1.0, %v7953_v1 }
 0xc5f   :  { %2613 = vmax.xlane.f32.xlu0 %v2612_v56 }
 0xce8   :  { %v2614_v63 = vpop.xlane.xlu0 %2613 }
 0xce9   :  { %v2615_v57 = vsub.f32 %v2610_v11, %v2614_v63 }
 0xceb   :  { %v2616_v8 = vmul.f32 1.442695, %v2615_v57 }
 0xced   :  { %7776 = vpow2.f32 %v2616_v8 }
 0xcfa   :  { %v7777_v17 = vpop.eup %7776 }
 0xcfb   :  { %v2618_v26 = vsel %vm2611_vm13, %v7777_v17, 0.0 }
 0xcfc   :  { %2619 = vadd.xlane.f32.xlu1 %v2618_v26 }
 0xd85   :  { %v2620_v4 = vpop.xlane.xlu1 %2619 }
 0xd86   :  { %7778 = vrcp.f32 %v2620_v4 }
 0xd93   :  { %v7779_v30 = vpop.eup %7778 }
 0xd94   :  { %v2622_v20 = vmul.f32 %v7779_v30, %v7777_v17 }
 0xd96   :  { %7170 = vmatmul.mubr.msk.f32.vlgmr.msra.gmra.mxu1 %vm2623_vm11, %v2622_v20 }
 0xd97   :  { %7199 = vmatprep.mubr.msk.f32.mxu1 %vm7954_vm0, %v7953_v1 }
 0xe56   :  { %v2696_v50 = vpop.f32.mrf.mxu1 }
 0xe57   :  { %v2697_v40 = vadd.f32 %v2696_v50, %v2437_v53  ;;  %v2820_v50 = vmul.u32 5, %v2819_v31 }
 0xe58   :  { %v7171_v13 = vpop.f32.mrf.mxu1 }
 0xe59   :  { %v2700_v42 = vsub.f32 %v2697_v40, %v2437_v53  ;;  %vm2825_vm10 = vcmp.eq.s32.totalorder %v8413_v41, %v2820_v50 }
 0xe5b   :  { %7173 = vmatpush3.msk.msra.mxu0 %vm2627_vm4, %v2700_v42 }
 0xe5c   :  { %7175 = vmatmul.mubr.msk.f32.vlgmr.msra.gmra.mxu0 %vm2623_vm11, %v6323_v34  ;;  %7218 = vmatprep.subr.mxu0 %v7953_v1 }
 0xe5d   :  { %7177 = vmatprep.mubr.msk.f32.mxu0 %vm7954_vm0, %v7953_v1 }
 0xe60   :  { %7178 = vmatmul.mubr.msk.f32.gmra.mxu0 %vm2623_vm11, %v6324_v27 }
 0xe61   :  { %7180 = vmatprep.mubr.msk.f32.mxu0 %vm7954_vm0, %v7953_v1 }
 0xe64   :  { %7181 = vmatmul.mubr.msk.f32.gmra.mxu0 %vm2623_vm11, %v6325_v38 }
 0xe65   :  { %7183 = vmatprep.mubr.msk.f32.mxu0 %vm7954_vm0, %v7953_v1 }
 0xe68   :  { %7184 = vmatmul.mubr.msk.f32.gmra.mxu0 %vm2623_vm11, %v6326_v21 }
 0xe69   :  { %7186 = vmatprep.mubr.msk.f32.mxu0 %vm7954_vm0, %v7953_v1 }
 0xe6c   :  { %7187 = vmatmul.mubr.msk.f32.gmra.mxu0 %vm2623_vm11, %v6327_v16 }
 0xe6d   :  { %7220 = vmatprep.mubr.msk.f32.mxu0 %vm7954_vm0, %v7953_v1 }
 0xf1c   :  { %v2785_v3 = vpop.f32.mrf.mxu0 }
 0xf1e   :  { %v7176_v48 = vpop.f32.mrf.mxu0 }
 0xf20   :  { %v2790_v22 = vpop.f32.mrf.mxu0 }
 0xf22   :  { %v7179_v23 = vpop.f32.mrf.mxu0 }
 0xf24   :  { %v2795_v51 = vpop.f32.mrf.mxu0 }
 0xf25   :  { %v9208_v60 = vadd.f32 %v2795_v51, %v9082_v39  ;;  %v6341_v39 = vsel %vm2816_vm2, 1.0, %v7953_v1 }
 0xf26   :  { %v7182_v53 = vpop.f32.mrf.mxu0 }
 0xf28   :  { %v2800_v52 = vpop.f32.mrf.mxu0 }
 0xf29   :  { %v9203_v15 = vadd.f32 %v2800_v52, %v9079_v44  ;;  %v9219_v44 = vadd.f32 %v2785_v3, %v9093_v12 }
 0xf2a   :  { %v7185_v19 = vpop.f32.mrf.mxu0 }
 0xf2c   :  { %v2805_v47 = vpop.f32.mrf.mxu0 }
 0xf2d   :  { %v9200_v25 = vadd.f32 %v2805_v47, %v9075_v46  ;;  %v9214_v46 = vadd.f32 %v2790_v22, %v9090_v5 }
 0xf2e   :  { %v7188_v61 = vpop.f32.mrf.mxu0 }
 0xf2f   :  { %7190 = vmatpush3.msra.mxu1 %v9200_v25 }
 0xf30   :  { %7191 = vmatprep.subr.mxu1 %v7953_v1 }
 0xf31   :  { %7192 = vmatpush3.msra.mxu1 %v9203_v15 }
 0xf32   :  { %7193 = vmatprep.subr.mxu1 %v7953_v1 }
 0xf33   :  { %7194 = vmatpush3.msra.mxu1 %v9208_v60 }
 0xf34   :  { %7195 = vmatprep.subr.mxu1 %v7953_v1 }
 0xf35   :  { %7196 = vmatpush3.msra.mxu1 %v9214_v46 }
 0xf36   :  { %7197 = vmatprep.subr.mxu1 %v7953_v1 }
 0xf37   :  { %7198 = vmatpush3.msra.mxu1 %v9219_v44 }
 0xf38   :  { %7200 = vmatmul.mubr.msk.f32.vlgmr.msra.gmra.mxu1 %vm467_vm3, %v6341_v39  ;;  %7202 = vmatprep.subr.mxu1 %v7953_v1 }
 0xf39   :  { %7203 = vmatpush3.msra.mxu1 %v9101_v33  ;;  %7210 = vmatprep.mubr.msk.f32.mxu1 %vm7954_vm0, %v7953_v1 }
 0xf3a   :  { %7204 = vmatprep.subr.mxu1 %v7953_v1 }
 0xf3b   :  { %7205 = vmatpush3.msra.mxu1 %v9109_v58 }
 0xf3c   :  { %7206 = vmatprep.subr.mxu1 %v7953_v1 }
 0xf3d   :  { %7207 = vmatpush3.msra.mxu1 %v9118_v36 }
 0xf3e   :  { %7208 = vmatprep.subr.mxu1 %v7953_v1 }
 0xf3f   :  { %7209 = vmatpush3.msra.mxu1 %v9127_v55 }
 0xf40   :  { %7213 = vmatprep.subr.mxu1 %v7953_v1 }
 0xff8   :  { %v2905_v5 = vpop.f32.mrf.mxu1 }
 0xff9   :  { %7211 = vmatmul.mubr.msk.f32.vlgmr.msra.gmra.mxu1 %vm225_vm1, %v2905_v5 }
 0xffa   :  { %v7201_v12 = vpop.f32.mrf.mxu1  ;;  %7215 = vmatprep.mubr.msk.f32.mxu1 %vm7954_vm0, %v7953_v1 }
0x10b9   :  { %v2978_v33 = vpop.f32.mrf.mxu1 }
0x10ba   :  { %v2982_v58 = vmul.f32 %v9137_v43, %v2978_v33  ;;  %7214 = vmatpush3.xpose.msk.msra.mxu1 %vm225_vm1, %v2978_v33  ;;  %7219 = vmatpush3.msk.msra.mxu0 %vm2627_vm4, %v2978_v33 }
0x10bb   :  { %v7212_v36 = vpop.f32.mrf.mxu1  ;;  %7223 = vmatprep.subr.mxu1 %v7953_v1  ;;  %7240 = vmatprep.subr.mxu0 %v7953_v1 }
0x10bc   :  { %v2983_v55 = vsel %vm2521_vm6, %v2982_v58, 0.0  ;;  %vm2821_vm6 = vcmp.eq.s32.totalorder %v8380_v14, %v2820_v50 }
0x10bd   :  { %7216 = vmatmul.mubr.msk.f32.vlgmr.msra.gmra.mxu1 %vm225_vm1, %v9145_v62  ;;  %2984 = vadd.xlane.f32.xlu0 %v2983_v55  ;;  %v6342_v27 = vsel %vm2821_vm6, 1.0, %v7953_v1 }
0x10be   :  { %7225 = vmatprep.mubr.msk.f32.mxu1 %vm7954_vm0, %v7953_v1 }
0x1146   :  { %v2985_v49 = vpop.xlane.xlu0 %2984 }
0x117d   :  { %v3055_v2 = vpop.f32.mrf.mxu1 }
0x117e   :  { %v3062_v43 = vrot.slane %v3055_v2, %v2603_v6 }
0x117f   :  { %v7217_v32 = vpop.f32.mrf.mxu1 }
0x1180   :  { %v3063_v11 = vadd.f32 %v3062_v43, %v2985_v49 }
0x1182   :  { %v3065_v56 = vmul.f32 0.2, %v3063_v11  ;;  %vm3064_vm12 = vcmp.gt.f32.partialorder %v3063_v11, 0.0 }
0x1184   :  { %v3066_v63 = vsel %vm3064_vm12, %v3063_v11, %v3065_v56 }
0x1185   :  { %v3067_v57 = vsel %vm2609_vm14, %v3066_v63, -1e+30  ;;  %vm2823_vm14 = vcmp.eq.s32.totalorder %v8396_v28, %v2820_v50  ;;  %v6346_v28 = vsel %vm2825_vm10, 1.0, %v7953_v1 }
0x1186   :  { %v3068_v8 = vsel %vm2611_vm13, %v3067_v57, -inf }
0x1187   :  { %3069 = vmax.xlane.f32.xlu1 %v3068_v8 }
0x1210   :  { %v3070_v62 = vpop.xlane.xlu1 %3069 }
0x1211   :  { %v3071_v17 = vsub.f32 %v3067_v57, %v3070_v62 }
0x1213   :  { %v3072_v26 = vmul.f32 1.442695, %v3071_v17 }
0x1215   :  { %7780 = vpow2.f32 %v3072_v26 }
0x1222   :  { %v7781_v4 = vpop.eup %7780 }
0x1223   :  { %v3074_v30 = vsel %vm2611_vm13, %v7781_v4, 0.0  ;;  %vm2822_vm13 = vcmp.eq.s32.totalorder %v8386_v18, %v2820_v50  ;;  %v6344_v18 = vsel %vm2823_vm14, 1.0, %v7953_v1 }
0x1224   :  { %3075 = vadd.xlane.f32.xlu0 %v3074_v30  ;;  %v6343_v38 = vsel %vm2822_vm13, 1.0, %v7953_v1 }
0x12ad   :  { %v3076_v6 = vpop.xlane.xlu0 %3075 }
0x12ae   :  { %7782 = vrcp.f32 %v3076_v6 }
0x12bb   :  { %v7783_v20 = vpop.eup %7782 }
0x12bc   :  { %v3078_v24 = vmul.f32 %v7783_v20, %v7781_v4 }
0x12be   :  { %7221 = vmatmul.mubr.msk.f32.vlgmr.msra.gmra.mxu0 %vm2623_vm11, %v3078_v24 }
0x12bf   :  { %7248 = vmatprep.mubr.msk.f32.mxu0 %vm7954_vm0, %v7953_v1 }
0x137e   :  { %v3150_v40 = vpop.f32.mrf.mxu0 }
0x137f   :  { %v3151_v13 = vadd.f32 %v3150_v40, %v2905_v5  ;;  %v6363_v40 = vld [vmem:[%s10461_s24 + $0x30] sm:$0xff] }
0x1380   :  { %v7222_v42 = vpop.f32.mrf.mxu0 }
0x1381   :  { %v3154_v34 = vsub.f32 %v3151_v13, %v2905_v5  ;;  %v6362_v13 = vld [vmem:[%s10461_s24 + $0x28] sm:$0xff]  ;;  %v6361_v42 = vld [vmem:[%s10461_s24 + $0x20] sm:$0xff] }
0x1383   :  { %7224 = vmatpush3.msk.msra.mxu1 %vm2627_vm4, %v3154_v34  ;;  %vm2824_vm4 = vcmp.eq.s32.totalorder %v8399_v29, %v2820_v50  ;;  %v6364_v50 = vld [vmem:[%s10461_s24 + $0x38] sm:$0xff] }
0x1384   :  { %7226 = vmatmul.mubr.msk.f32.vlgmr.msra.gmra.mxu1 %vm2623_vm11, %v6342_v27  ;;  %7263 = vmatprep.subr.mxu1 %v7953_v1  ;;  %v6345_v21 = vsel %vm2824_vm4, 1.0, %v7953_v1 }
0x1385   :  { %7228 = vmatprep.mubr.msk.f32.mxu1 %vm7954_vm0, %v7953_v1  ;;  %7241 = vmatpush3.msra.mxu0 %v6364_v50 }
0x1386   :  { %7242 = vmatprep.subr.mxu0 %v7953_v1 }
0x1387   :  { %7243 = vmatpush3.msra.mxu0 %v6363_v40 }
0x1388   :  { %7229 = vmatmul.mubr.msk.f32.gmra.mxu1 %vm2623_vm11, %v6343_v38  ;;  %7244 = vmatprep.subr.mxu0 %v7953_v1 }
0x1389   :  { %7231 = vmatprep.mubr.msk.f32.mxu1 %vm7954_vm0, %v7953_v1  ;;  %7245 = vmatpush3.msra.mxu0 %v6362_v13 }
0x138a   :  { %7246 = vmatprep.subr.mxu0 %v7953_v1 }
0x138b   :  { %7247 = vmatpush3.msra.mxu0 %v6361_v42 }
0x138c   :  { %7232 = vmatmul.mubr.msk.f32.gmra.mxu1 %vm2623_vm11, %v6344_v18  ;;  %7288 = vmatprep.subr.mxu0 %v7953_v1 }
0x138d   :  { %7234 = vmatprep.mubr.msk.f32.mxu1 %vm7954_vm0, %v7953_v1 }
0x1390   :  { %7235 = vmatmul.mubr.msk.f32.gmra.mxu1 %vm2623_vm11, %v6345_v21 }
0x1391   :  { %7237 = vmatprep.mubr.msk.f32.mxu1 %vm7954_vm0, %v7953_v1 }
0x1394   :  { %7238 = vmatmul.mubr.msk.f32.gmra.mxu1 %vm2623_vm11, %v6346_v28  ;;  %vm10484_vm11 = vcmask 64512  }
0x1395   :  { %7273 = vmatprep.mubr.msk.f32.mxu1 %vm7954_vm0, %v7953_v1  ;;  %vm10485_vm2 = vmmov %vm10484_vm11 }
0x1396   :  { %vm10486_vm12 = vmmov %vm10485_vm2 }
0x1397   :  { %vm10487_vm6 = vmmov %vm10485_vm2 }
0x1398   :  { %vm10488_vm13 = vmmov %vm10485_vm2 }
0x1399   :  { %vm10489_vm14 = vmmov %vm10485_vm2 }
0x139a   :  { %vm10490_vm4 = vmmov %vm10485_vm2 }
0x139b   :  { %vm10491_vm10 = vmmov %vm10485_vm2 }
0x1444   :  { %v3239_v29 = vpop.f32.mrf.mxu1 }
0x1445   :  { %v3263_v16 = vadd.f32 %v3239_v29, %v9219_v44 }
0x1446   :  { %v7227_v3 = vpop.f32.mrf.mxu1 }
0x1447   :  { %v3270_v48 = vsel %vm225_vm1, %v3263_v16, 0.0 }
0x1448   :  { %3271 = vadd.xlane.f32.xlu1 %v3270_v48  ;;  %v3244_v41 = vpop.f32.mrf.mxu1 }
0x1449   :  { %v3264_v22 = vadd.f32 %v3244_v41, %v9214_v46 }
0x144a   :  { %v7230_v23 = vpop.f32.mrf.mxu1 }
0x144b   :  { %v3273_v51 = vsel %vm225_vm1, %v3264_v22, 0.0 }
0x144c   :  { %3274 = vadd.xlane.f32.xlu0 %v3273_v51  ;;  %v3249_v53 = vpop.f32.mrf.mxu1 }
0x144d   :  { %v3265_v52 = vadd.f32 %v3249_v53, %v9208_v60 }
0x144e   :  { %v7233_v19 = vpop.f32.mrf.mxu1 }
0x144f   :  { %v3276_v10 = vsel %vm225_vm1, %v3265_v52, 0.0 }
0x1450   :  { %3277 = vadd.xlane.f32.xlu1 %v3276_v10  ;;  %v3254_v47 = vpop.f32.mrf.mxu1 }
0x1451   :  { %v3266_v61 = vadd.f32 %v3254_v47, %v9203_v15  ;;  %v6360_v47 = vld [vmem:[%s10417_s20] ss:$0 sm:$0xff] }
0x1452   :  { %v7236_v37 = vpop.f32.mrf.mxu1 }
0x1453   :  { %v3279_v44 = vsel %vm225_vm1, %v3266_v61, 0.0 }
0x1454   :  { %3280 = vadd.xlane.f32.xlu0 %v3279_v44  ;;  %v3259_v39 = vpop.f32.mrf.mxu1 }
0x1455   :  { %v3267_v46 = vadd.f32 %v3259_v39, %v9200_v25 }
0x1456   :  { %v7239_v5 = vpop.f32.mrf.mxu1 }
0x1457   :  { %v3282_v12 = vsel %vm225_vm1, %v3267_v46, 0.0 }
0x1458   :  { %3283 = vadd.xlane.f32.xlu1 %v3282_v12 }
0x14d1   :  { %v3272_v33 = vpop.xlane.xlu1 %3271 }
0x14d2   :  { %v3285_v60 = vmul.f32 0.03125, %v3272_v33 }
0x14d4   :  { %v3290_v58 = vsub.f32 %v3263_v16, %v3285_v60 }
0x14d5   :  { %v3275_v36 = vpop.xlane.xlu0 %3274 }
0x14d6   :  { %v3286_v55 = vmul.f32 0.03125, %v3275_v36  ;;  %v3295_v2 = vmul.f32 %v3290_v58, %v3290_v58 }
0x14d8   :  { %v9297_v43 = vsub.f32 %v3264_v22, %v3286_v55  ;;  %v3300_v15 = vsel %vm225_vm1, %v3295_v2, 0.0 }
0x14d9   :  { %v3278_v49 = vpop.xlane.xlu1 %3277  ;;  %3301 = vadd.xlane.f32.xlu0 %v3300_v15 }
0x14da   :  { %v3287_v32 = vmul.f32 0.03125, %v3278_v49  ;;  %v3296_v25 = vmul.f32 %v9297_v43, %v9297_v43 }
0x14dc   :  { %v9302_v11 = vsub.f32 %v3265_v52, %v3287_v32  ;;  %v3303_v56 = vsel %vm225_vm1, %v3296_v25, 0.0  ;;  %v6359_v52 = vld [vmem:[%s10416_s19] ss:$0 sm:$0xff] }
0x14dd   :  { %v3281_v63 = vpop.xlane.xlu0 %3280  ;;  %3304 = vadd.xlane.f32.xlu1 %v3303_v56 }
0x14de   :  { %v3288_v57 = vmul.f32 0.03125, %v3281_v63  ;;  %v3297_v8 = vmul.f32 %v9302_v11, %v9302_v11 }
0x14e0   :  { %v9307_v62 = vsub.f32 %v3266_v61, %v3288_v57  ;;  %v3306_v17 = vsel %vm225_vm1, %v3297_v8, 0.0 }
0x14e1   :  { %3307 = vadd.xlane.f32.xlu0 %v3306_v17  ;;  %v3284_v26 = vpop.xlane.xlu1 %3283  ;;  %v6366_v17 = vld [vmem:[%s10463_s6 + $0x1] ss:$0 sm:$0xff]  ;;  %s10477_s6 = smov 80  }
0x14e2   :  { %v3289_v4 = vmul.f32 0.03125, %v3284_v26  ;;  %v3298_v30 = vmul.f32 %v9307_v62, %v9307_v62 }
0x14e4   :  { %v9312_v6 = vsub.f32 %v3267_v46, %v3289_v4  ;;  %v3309_v20 = vsel %vm225_vm1, %v3298_v30, 0.0 }
0x14e5   :  { %3310 = vadd.xlane.f32.xlu1 %v3309_v20 }
0x14e6   :  { %v3299_v24 = vmul.f32 %v9312_v6, %v9312_v6 }
0x14e8   :  { %v3312_v31 = vsel %vm225_vm1, %v3299_v24, 0.0 }
0x14e9   :  { %3313 = vadd.xlane.f32.xlu0 %v3312_v31 }
0x1562   :  { %v3302_v34 = vpop.xlane.xlu0 %3301 }
0x1563   :  { %v3315_v27 = vmul.f32 0.03125, %v3302_v34 }
0x1565   :  { %v3320_v38 = vadd.f32 1e-05, %v3315_v27 }
0x1566   :  { %v3305_v18 = vpop.xlane.xlu1 %3304 }
0x1567   :  { %7784 = vrsqrt.f32 %v3320_v38  ;;  %v3316_v21 = vmul.f32 0.03125, %v3305_v18 }
0x1569   :  { %v3321_v28 = vadd.f32 1e-05, %v3316_v21 }
0x156a   :  { %v3308_v29 = vpop.xlane.xlu0 %3307 }
0x156b   :  { %7786 = vrsqrt.f32 %v3321_v28  ;;  %v3317_v16 = vmul.f32 0.03125, %v3308_v29 }
0x156d   :  { %v3322_v3 = vadd.f32 1e-05, %v3317_v16 }
0x156e   :  { %v3311_v48 = vpop.xlane.xlu1 %3310 }
0x156f   :  { %7788 = vrsqrt.f32 %v3322_v3  ;;  %v3318_v41 = vmul.f32 0.03125, %v3311_v48 }
0x1571   :  { %v3323_v22 = vadd.f32 1e-05, %v3318_v41 }
0x1572   :  { %v3314_v23 = vpop.xlane.xlu0 %3313 }
0x1573   :  { %7790 = vrsqrt.f32 %v3323_v22  ;;  %v3319_v51 = vmul.f32 0.03125, %v3314_v23 }
0x1574   :  { %v7785_v53 = vpop.eup %7784 }
0x1575   :  { %v3324_v19 = vadd.f32 1e-05, %v3319_v51  ;;  %v3330_v10 = vmul.f32 %v7785_v53, %v3290_v58 }
0x1577   :  { %7792 = vrsqrt.f32 %v3324_v19  ;;  %v3341_v61 = vmul.f32 %v6359_v52, %v3330_v10 }
0x1578   :  { %v7787_v37 = vpop.eup %7786 }
0x1579   :  { %v9340_v44 = vadd.f32 %v6360_v47, %v3341_v61  ;;  %v3331_v39 = vmul.f32 %v7787_v37, %v9297_v43 }
0x157b   :  { %7249 = vmatmul.mubr.msk.f32.vlgmr.msra.gmra.mxu0 %vm225_vm1, %v9340_v44  ;;  %v3342_v46 = vmul.f32 %v6359_v52, %v3331_v39 }
0x157c   :  { %v7789_v5 = vpop.eup %7788  ;;  %7251 = vmatprep.mubr.msk.f32.mxu0 %vm7954_vm0, %v7953_v1 }
0x157d   :  { %v9347_v12 = vadd.f32 %v6360_v47, %v3342_v46  ;;  %v3332_v33 = vmul.f32 %v7789_v5, %v9302_v11 }
0x157f   :  { %7252 = vmatmul.mubr.msk.f32.gmra.mxu0 %vm225_vm1, %v9347_v12  ;;  %v3343_v60 = vmul.f32 %v6359_v52, %v3332_v33 }
0x1580   :  { %v7791_v58 = vpop.eup %7790  ;;  %7254 = vmatprep.mubr.msk.f32.mxu0 %vm7954_vm0, %v7953_v1 }
0x1581   :  { %v9354_v36 = vadd.f32 %v6360_v47, %v3343_v60  ;;  %v3333_v55 = vmul.f32 %v7791_v58, %v9307_v62 }
0x1583   :  { %7255 = vmatmul.mubr.msk.f32.gmra.mxu0 %vm225_vm1, %v9354_v36  ;;  %v3344_v2 = vmul.f32 %v6359_v52, %v3333_v55 }
0x1584   :  { %v7793_v43 = vpop.eup %7792  ;;  %7257 = vmatprep.mubr.msk.f32.mxu0 %vm7954_vm0, %v7953_v1 }
0x1585   :  { %v9361_v15 = vadd.f32 %v6360_v47, %v3344_v2  ;;  %v3334_v49 = vmul.f32 %v7793_v43, %v9312_v6 }
0x1587   :  { %7258 = vmatmul.mubr.msk.f32.gmra.mxu0 %vm225_vm1, %v9361_v15  ;;  %v3345_v32 = vmul.f32 %v6359_v52, %v3334_v49 }
0x1588   :  { %7260 = vmatprep.mubr.msk.f32.mxu0 %vm7954_vm0, %v7953_v1 }
0x1589   :  { %v9368_v25 = vadd.f32 %v6360_v47, %v3345_v32 }
0x158b   :  { %7261 = vmatmul.mubr.msk.f32.gmra.mxu0 %vm225_vm1, %v9368_v25 }
0x158c   :  { %7298 = vmatprep.mubr.msk.f32.mxu0 %vm7954_vm0, %v7953_v1 }
0x163b   :  { %v3451_v11 = vpop.f32.mrf.mxu0 }
0x163c   :  { %v9381_v20 = vadd.f32 %v6366_v17, %v3451_v11 }
0x163d   :  { %v7250_v56 = vpop.f32.mrf.mxu0 }
0x163f   :  { %v3456_v63 = vpop.f32.mrf.mxu0 }
0x1640   :  { %v9395_v40 = vadd.f32 %v6366_v17, %v3456_v63 }
0x1641   :  { %v7253_v57 = vpop.f32.mrf.mxu0 }
0x1643   :  { %v3461_v8 = vpop.f32.mrf.mxu0 }
0x1644   :  { %v9389_v50 = vadd.f32 %v6366_v17, %v3461_v8 }
0x1645   :  { %v7256_v62 = vpop.f32.mrf.mxu0 }
0x1647   :  { %v3466_v26 = vpop.f32.mrf.mxu0 }
0x1648   :  { %v9377_v4 = vadd.f32 %v6366_v17, %v3466_v26 }
0x1649   :  { %v7259_v30 = vpop.f32.mrf.mxu0 }
0x164a   :  { %3486 = vrot.lane.b32.xlu0 %v9377_v4, %s7955_s27 }
0x164b   :  { %v3471_v6 = vpop.f32.mrf.mxu0 }
0x164c   :  { %v9383_v24 = vadd.f32 %v6366_v17, %v3471_v6 }
0x164d   :  { %v7262_v31 = vpop.f32.mrf.mxu0 }
0x164e   :  { %3480 = vrot.lane.b32.xlu0 %v9381_v20, %s7955_s27  ;;  %3488 = vrot.lane.b32.xlu1 %v9383_v24, %s7955_s27 }
0x1652   :  { %3801 = vrot.lane.b32.xlu0 %v9377_v4, %s7956_s7  ;;  %3484 = vrot.lane.b32.xlu1 %v9389_v50, %s7955_s27 }
0x1656   :  { %3797 = vrot.lane.b32.xlu0 %v9395_v40, %s7956_s7  ;;  %3482 = vrot.lane.b32.xlu1 %v9395_v40, %s7955_s27  ;;  %s10478_s27 = smov 112  }
0x165a   :  { %3785 = vrot.lane.b32.xlu0 %v9381_v20, %s7958_s3  ;;  %3803 = vrot.lane.b32.xlu1 %v9383_v24, %s7956_s7 }
0x165e   :  { %3787 = vrot.lane.b32.xlu0 %v9395_v40, %s7958_s3  ;;  %3799 = vrot.lane.b32.xlu1 %v9389_v50, %s7956_s7 }
0x1662   :  { %3789 = vrot.lane.b32.xlu0 %v9389_v50, %s7958_s3  ;;  %3795 = vrot.lane.b32.xlu1 %v9381_v20, %s7956_s7  ;;  %s10479_s7 = smov 72  }
0x1666   :  { %3791 = vrot.lane.b32.xlu0 %v9377_v4, %s7958_s3  ;;  %4118 = vrot.lane.b32.xlu1 %v9383_v24, %s10477_s6 }
0x166a   :  { %3793 = vrot.lane.b32.xlu0 %v9383_v24, %s7958_s3  ;;  %4116 = vrot.lane.b32.xlu1 %v9377_v4, %s10477_s6  ;;  %s10480_s3 = smov 104  }
0x166e   :  { %4100 = vrot.lane.b32.xlu0 %v9381_v20, %s10478_s27  ;;  %4114 = vrot.lane.b32.xlu1 %v9389_v50, %s10477_s6 }
0x1672   :  { %4102 = vrot.lane.b32.xlu0 %v9395_v40, %s10478_s27  ;;  %4112 = vrot.lane.b32.xlu1 %v9395_v40, %s10477_s6 }
0x1676   :  { %4104 = vrot.lane.b32.xlu0 %v9389_v50, %s10478_s27  ;;  %4110 = vrot.lane.b32.xlu1 %v9381_v20, %s10477_s6 }
0x167a   :  { %4106 = vrot.lane.b32.xlu0 %v9377_v4, %s10478_s27  ;;  %4433 = vrot.lane.b32.xlu1 %v9383_v24, %s10479_s7 }
0x167e   :  { %4108 = vrot.lane.b32.xlu0 %v9383_v24, %s10478_s27  ;;  %4431 = vrot.lane.b32.xlu1 %v9377_v4, %s10479_s7 }
0x1682   :  { %4415 = vrot.lane.b32.xlu0 %v9381_v20, %s10480_s3  ;;  %4429 = vrot.lane.b32.xlu1 %v9389_v50, %s10479_s7 }
0x1686   :  { %4419 = vrot.lane.b32.xlu0 %v9389_v50, %s10480_s3  ;;  %4427 = vrot.lane.b32.xlu1 %v9395_v40, %s10479_s7 }
0x168a   :  { %4423 = vrot.lane.b32.xlu0 %v9383_v24, %s10480_s3  ;;  %4425 = vrot.lane.b32.xlu1 %v9381_v20, %s10479_s7  ;;  %s10523_s7 = smov 24  }
0x168e   :  { %3671 = vrot.lane.b32.xlu0 %v9377_v4, %s10481_s0  ;;  %4417 = vrot.lane.b32.xlu1 %v9395_v40, %s10480_s3 }
0x1692   :  { %3667 = vrot.lane.b32.xlu0 %v9395_v40, %s10481_s0  ;;  %4421 = vrot.lane.b32.xlu1 %v9377_v4, %s10480_s3 }
0x1696   :  { %3665 = vrot.lane.b32.xlu0 %v9381_v20, %s10481_s0  ;;  %3669 = vrot.lane.b32.xlu1 %v9389_v50, %s10481_s0 }
0x169a   :  { %3986 = vrot.lane.b32.xlu0 %v9377_v4, %s10482_s30  ;;  %3984 = vrot.lane.b32.xlu1 %v9389_v50, %s10482_s30 }
0x169e   :  { %3982 = vrot.lane.b32.xlu0 %v9395_v40, %s10482_s30  ;;  %4299 = vrot.lane.b32.xlu1 %v9389_v50, %s10483_s2 }
0x16a2   :  { %3980 = vrot.lane.b32.xlu0 %v9381_v20, %s10482_s30  ;;  %3673 = vrot.lane.b32.xlu1 %v9383_v24, %s10481_s0 }
0x16a6   :  { %4301 = vrot.lane.b32.xlu0 %v9377_v4, %s10483_s2  ;;  %3988 = vrot.lane.b32.xlu1 %v9383_v24, %s10482_s30 }
0x16aa   :  { %4297 = vrot.lane.b32.xlu0 %v9395_v40, %s10483_s2  ;;  %4303 = vrot.lane.b32.xlu1 %v9383_v24, %s10483_s2 }
0x16bc   :  { %v3487_v13 = vpop.permute.xlu0 %3486 }
0x16c0   :  { %v3481_v42 = vpop.permute.xlu0 %3480  ;;  %v3489_v34 = vpop.permute.xlu1 %3488 }
0x16c1   :  { %7264 = vmatpush3.xpose.msk.msra.mxu1 %vm10484_vm11, %v3489_v34  ;;  %vm10492_vm11 = vmmov %vm10485_vm2 }
0x16c2   :  { %7265 = vmatprep.subr.mxu1 %v7953_v1 }
0x16c4   :  { %v3802_v27 = vpop.permute.xlu0 %3801  ;;  %v3485_v38 = vpop.permute.xlu1 %3484 }
0x16c5   :  { %7266 = vmatpush3.xpose.msk.msra.mxu1 %vm10485_vm2, %v3487_v13 }
0x16c6   :  { %7267 = vmatprep.subr.mxu1 %v7953_v1 }
0x16c8   :  { %v3798_v18 = vpop.permute.xlu0 %3797  ;;  %v3483_v21 = vpop.permute.xlu1 %3482 }
0x16c9   :  { %7268 = vmatpush3.xpose.msk.msra.mxu1 %vm10486_vm12, %v3485_v38  ;;  %vm10493_vm12 = vmmov %vm10485_vm2 }
0x16ca   :  { %7269 = vmatprep.subr.mxu1 %v7953_v1 }
0x16cc   :  { %v3786_v28 = vpop.permute.xlu0 %3785  ;;  %v3804_v29 = vpop.permute.xlu1 %3803 }
0x16cd   :  { %7270 = vmatpush3.xpose.msk.msra.mxu1 %vm10487_vm6, %v3483_v21  ;;  %vm10494_vm6 = vmmov %vm10485_vm2 }
0x16ce   :  { %7271 = vmatprep.subr.mxu1 %v7953_v1 }
0x16d0   :  { %v3788_v16 = vpop.permute.xlu0 %3787  ;;  %v3800_v3 = vpop.permute.xlu1 %3799 }
0x16d1   :  { %7272 = vmatpush3.xpose.msk.msra.mxu1 %vm10488_vm13, %v3481_v42  ;;  %vm10495_vm13 = vmmov %vm10485_vm2 }
0x16d2   :  { %7313 = vmatprep.subr.mxu1 %v7953_v1 }
0x16d4   :  { %v3790_v48 = vpop.permute.xlu0 %3789  ;;  %7274 = vmatmul.mubr.msk.f32.vlgmr.msra.gmra.mxu1 %vm10489_vm14, %v9381_v20  ;;  %v3796_v41 = vpop.permute.xlu1 %3795  ;;  %vm10496_vm14 = vmmov %vm10485_vm2 }
0x16d5   :  { %7314 = vmatpush3.xpose.msk.msra.mxu1 %vm10490_vm4, %v3804_v29  ;;  %7276 = vmatprep.mubr.msk.f32.mxu1 %vm7954_vm0, %v7953_v1  ;;  %vm10497_vm4 = vmmov %vm10485_vm2 }
0x16d6   :  { %7315 = vmatprep.subr.mxu1 %v7953_v1 }
0x16d8   :  { %v3792_v22 = vpop.permute.xlu0 %3791  ;;  %7277 = vmatmul.mubr.msk.f32.gmra.mxu1 %vm10491_vm10, %v9395_v40  ;;  %v4119_v23 = vpop.permute.xlu1 %4118  ;;  %vm10498_vm10 = vmmov %vm10485_vm2 }
0x16d9   :  { %7316 = vmatpush3.xpose.msk.msra.mxu1 %vm10492_vm11, %v3802_v27  ;;  %7279 = vmatprep.mubr.msk.f32.mxu1 %vm7954_vm0, %v7953_v1  ;;  %vm10499_vm11 = vmmov %vm10485_vm2 }
0x16da   :  { %7317 = vmatprep.subr.mxu1 %v7953_v1 }
0x16dc   :  { %v3794_v51 = vpop.permute.xlu0 %3793  ;;  %7280 = vmatmul.mubr.msk.f32.gmra.mxu1 %vm10485_vm2, %v9389_v50  ;;  %v4117_v53 = vpop.permute.xlu1 %4116 }
0x16dd   :  { %7318 = vmatpush3.xpose.msk.msra.mxu1 %vm10493_vm12, %v3800_v3  ;;  %7282 = vmatprep.mubr.msk.f32.mxu1 %vm7954_vm0, %v7953_v1  ;;  %vm10500_vm12 = vmmov %vm10485_vm2 }
0x16de   :  { %7319 = vmatprep.subr.mxu1 %v7953_v1 }
0x16e0   :  { %v4101_v52 = vpop.permute.xlu0 %4100  ;;  %7283 = vmatmul.mubr.msk.f32.gmra.mxu1 %vm10494_vm6, %v9377_v4  ;;  %v4115_v19 = vpop.permute.xlu1 %4114  ;;  %vm10501_vm6 = vmmov %vm10485_vm2 }
0x16e1   :  { %7320 = vmatpush3.xpose.msk.msra.mxu1 %vm10495_vm13, %v3798_v18  ;;  %7285 = vmatprep.mubr.msk.f32.mxu1 %vm7954_vm0, %v7953_v1  ;;  %vm10502_vm13 = vmmov %vm10485_vm2 }
0x16e2   :  { %7321 = vmatprep.subr.mxu1 %v7953_v1 }
0x16e4   :  { %7286 = vmatmul.mubr.msk.f32.gmra.mxu1 %vm10496_vm14, %v9383_v24  ;;  %v4113_v10 = vpop.permute.xlu1 %4112  ;;  %v4103_v47 = vpop.permute.xlu0 %4102  ;;  %vm10503_vm14 = vmmov %vm10485_vm2 }
0x16e5   :  { %7322 = vmatpush3.xpose.msk.msra.mxu1 %vm10497_vm4, %v3796_v41  ;;  %7323 = vmatprep.mubr.msk.f32.mxu1 %vm7954_vm0, %v7953_v1  ;;  %vm10504_vm4 = vmmov %vm10485_vm2 }
0x16e6   :  { %7363 = vmatprep.subr.mxu1 %v7953_v1 }
0x16e8   :  { %7324 = vmatmul.mubr.msk.f32.vlgmr.msra.gmra.mxu1 %vm10498_vm10, %v3786_v28  ;;  %v4111_v61 = vpop.permute.xlu1 %4110  ;;  %v4105_v37 = vpop.permute.xlu0 %4104  ;;  %vm10505_vm10 = vmmov %vm10485_vm2 }
0x16e9   :  { %7364 = vmatpush3.xpose.msk.msra.mxu1 %vm10499_vm11, %v4119_v23  ;;  %7326 = vmatprep.mubr.msk.f32.mxu1 %vm7954_vm0, %v7953_v1  ;;  %vm10506_vm11 = vmmov %vm10485_vm2 }
0x16ea   :  { %7365 = vmatprep.subr.mxu1 %v7953_v1 }
0x16ec   :  { %7327 = vmatmul.mubr.msk.f32.gmra.mxu1 %vm10485_vm2, %v3788_v16  ;;  %v4434_v39 = vpop.permute.xlu1 %4433  ;;  %v4107_v5 = vpop.permute.xlu0 %4106 }
0x16ed   :  { %7366 = vmatpush3.xpose.msk.msra.mxu1 %vm10500_vm12, %v4117_v53  ;;  %7329 = vmatprep.mubr.msk.f32.mxu1 %vm7954_vm0, %v7953_v1  ;;  %vm10507_vm12 = vmmov %vm10485_vm2 }
0x16ee   :  { %7367 = vmatprep.subr.mxu1 %v7953_v1 }
0x16f0   :  { %7330 = vmatmul.mubr.msk.f32.gmra.mxu1 %vm10501_vm6, %v3790_v48  ;;  %v4432_v46 = vpop.permute.xlu1 %4431  ;;  %v4109_v60 = vpop.permute.xlu0 %4108  ;;  %vm10508_vm6 = vmmov %vm10485_vm2 }
0x16f1   :  { %7368 = vmatpush3.xpose.msk.msra.mxu1 %vm10502_vm13, %v4115_v19  ;;  %7332 = vmatprep.mubr.msk.f32.mxu1 %vm7954_vm0, %v7953_v1  ;;  %vm10509_vm13 = vmmov %vm10485_vm2 }
0x16f2   :  { %7369 = vmatprep.subr.mxu1 %v7953_v1 }
0x16f4   :  { %7333 = vmatmul.mubr.msk.f32.gmra.mxu1 %vm10503_vm14, %v3792_v22  ;;  %v4430_v33 = vpop.permute.xlu1 %4429  ;;  %v4416_v2 = vpop.permute.xlu0 %4415  ;;  %vm10510_vm14 = vmmov %vm10485_vm2 }
0x16f5   :  { %7370 = vmatpush3.xpose.msk.msra.mxu1 %vm10504_vm4, %v4113_v10  ;;  %7335 = vmatprep.mubr.msk.f32.mxu1 %vm7954_vm0, %v7953_v1  ;;  %vm10511_vm4 = vmmov %vm10485_vm2 }
0x16f6   :  { %7371 = vmatprep.subr.mxu1 %v7953_v1 }
0x16f8   :  { %7336 = vmatmul.mubr.msk.f32.gmra.mxu1 %vm10505_vm10, %v3794_v51  ;;  %v4428_v58 = vpop.permute.xlu1 %4427  ;;  %v4420_v49 = vpop.permute.xlu0 %4419  ;;  %vm10512_vm10 = vmmov %vm10485_vm2 }
0x16f9   :  { %7372 = vmatpush3.xpose.msk.msra.mxu1 %vm10506_vm11, %v4111_v61  ;;  %7373 = vmatprep.mubr.msk.f32.mxu1 %vm7954_vm0, %v7953_v1  ;;  %vm10513_vm11 = vmmov %vm10485_vm2 }
0x16fa   :  { %7413 = vmatprep.subr.mxu1 %v7953_v1 }
0x16fc   :  { %7374 = vmatmul.mubr.msk.f32.vlgmr.msra.gmra.mxu1 %vm10485_vm2, %v4101_v52  ;;  %v4426_v55 = vpop.permute.xlu1 %4425  ;;  %v4424_v56 = vpop.permute.xlu0 %4423 }
0x16fd   :  { %7414 = vmatpush3.xpose.msk.msra.mxu1 %vm10507_vm12, %v4434_v39  ;;  %7376 = vmatprep.mubr.msk.f32.mxu1 %vm7954_vm0, %v7953_v1  ;;  %vm10514_vm12 = vmmov %vm10485_vm2 }
0x16fe   :  { %7415 = vmatprep.subr.mxu1 %v7953_v1 }
0x1700   :  { %7377 = vmatmul.mubr.msk.f32.gmra.mxu1 %vm10508_vm6, %v4103_v47  ;;  %v4418_v43 = vpop.permute.xlu1 %4417  ;;  %v3672_v57 = vpop.permute.xlu0 %3671  ;;  %vm10515_vm6 = vmmov %vm10485_vm2 }
0x1701   :  { %7416 = vmatpush3.xpose.msk.msra.mxu1 %vm10509_vm13, %v4432_v46  ;;  %7379 = vmatprep.mubr.msk.f32.mxu1 %vm7954_vm0, %v7953_v1  ;;  %vm10516_vm13 = vmmov %vm10485_vm2 }
0x1702   :  { %7417 = vmatprep.subr.mxu1 %v7953_v1 }
0x1704   :  { %7380 = vmatmul.mubr.msk.f32.gmra.mxu1 %vm10510_vm14, %v4105_v37  ;;  %v4422_v32 = vpop.permute.xlu1 %4421  ;;  %v3668_v17 = vpop.permute.xlu0 %3667  ;;  %vm10517_vm14 = vmmov %vm10485_vm2 }
0x1705   :  { %7418 = vmatpush3.xpose.msk.msra.mxu1 %vm10511_vm4, %v4430_v33  ;;  %7382 = vmatprep.mubr.msk.f32.mxu1 %vm7954_vm0, %v7953_v1  ;;  %vm10518_vm4 = vmmov %vm10485_vm2 }
0x1706   :  { %7419 = vmatprep.subr.mxu1 %v7953_v1 }
0x1708   :  { %7383 = vmatmul.mubr.msk.f32.gmra.mxu1 %vm10512_vm10, %v4107_v5  ;;  %v3670_v11 = vpop.permute.xlu1 %3669  ;;  %v3666_v26 = vpop.permute.xlu0 %3665  ;;  %vm10519_vm10 = vmmov %vm10485_vm2 }
0x1709   :  { %7420 = vmatpush3.xpose.msk.msra.mxu1 %vm10513_vm11, %v4428_v58  ;;  %7385 = vmatprep.mubr.msk.f32.mxu1 %vm7954_vm0, %v7953_v1 }
0x170a   :  { %7421 = vmatprep.subr.mxu1 %v7953_v1 }
0x170c   :  { %7386 = vmatmul.mubr.msk.f32.gmra.mxu1 %vm10485_vm2, %v4109_v60  ;;  %v9571_v63 = vpop.permute.xlu1 %3984 }
0x170d   :  { %7422 = vmatpush3.xpose.msk.msra.mxu1 %vm10514_vm12, %v4426_v55  ;;  %7423 = vmatprep.mubr.msk.f32.mxu1 %vm7954_vm0, %v7953_v1 }
0x170e   :  { %7463 = vmatprep.subr.mxu1 %v7953_v1 }
0x1710   :  { %7424 = vmatmul.mubr.msk.f32.vlgmr.msra.gmra.mxu1 %vm10515_vm6, %v4416_v2  ;;  %v9578_v8 = vpop.permute.xlu1 %4299  ;;  %vm10531_vm6 = vmmov %vm10485_vm2 }
0x1711   :  { %7426 = vmatprep.mubr.msk.f32.mxu1 %vm7954_vm0, %v7953_v1 }
0x1714   :  { %7427 = vmatmul.mubr.msk.f32.gmra.mxu1 %vm10516_vm13, %v4418_v43  ;;  %v3674_v62 = vpop.permute.xlu1 %3673 }
0x1715   :  { %7289 = vmatpush3.msra.mxu0 %v3674_v62  ;;  %7429 = vmatprep.mubr.msk.f32.mxu1 %vm7954_vm0, %v7953_v1 }
0x1716   :  { %7290 = vmatprep.subr.mxu0 %v7953_v1 }
0x1717   :  { %7291 = vmatpush3.msra.mxu0 %v3672_v57 }
0x1718   :  { %7292 = vmatprep.subr.mxu0 %v7953_v1  ;;  %7430 = vmatmul.mubr.msk.f32.gmra.mxu1 %vm10517_vm14, %v4420_v49 }
0x1719   :  { %7293 = vmatpush3.msra.mxu0 %v3670_v11  ;;  %7432 = vmatprep.mubr.msk.f32.mxu1 %vm7954_vm0, %v7953_v1 }
0x171a   :  { %7294 = vmatprep.subr.mxu0 %v7953_v1 }
0x171b   :  { %7295 = vmatpush3.msra.mxu0 %v3668_v17 }
0x171c   :  { %7296 = vmatprep.subr.mxu0 %v7953_v1  ;;  %7433 = vmatmul.mubr.msk.f32.gmra.mxu1 %vm10518_vm4, %v4422_v32 }
0x171d   :  { %7297 = vmatpush3.msra.mxu0 %v3666_v26  ;;  %7435 = vmatprep.mubr.msk.f32.mxu1 %vm7954_vm0, %v7953_v1 }
0x171e   :  { %7338 = vmatprep.subr.mxu0 %v7953_v1 }
0x1720   :  { %7436 = vmatmul.mubr.msk.f32.gmra.mxu1 %vm10519_vm10, %v4424_v56  ;;  %vm10535_vm10 = vmmov %vm10485_vm2 }
0x1721   :  { %7471 = vmatprep.mubr.msk.f32.mxu1 %vm7954_vm0, %v7953_v1 }
0x1794   :  { %v3576_v30 = vpop.f32.mrf.mxu1 }
0x1795   :  { %v3600_v6 = vmul.f32 0.35355338, %v3576_v30 }
0x1796   :  { %v7275_v31 = vpop.f32.mrf.mxu1 }
0x1797   :  { %v9601_v13 = vsel %vm8405_vm15, %v3600_v6, -1e+30 }
0x1798   :  { %v3581_v42 = vpop.f32.mrf.mxu1  ;;  %v3610_v34 = vsel %vm467_vm3, %v9601_v13, -inf }
0x1799   :  { %v3601_v27 = vmul.f32 0.35355338, %v3581_v42  ;;  %3611 = vmax.xlane.f32.xlu1 %v3610_v34 }
0x179a   :  { %v7278_v38 = vpop.f32.mrf.mxu1 }
0x179b   :  { %v9607_v18 = vsel %vm8421_vm5, %v3601_v27, -1e+30 }
0x179c   :  { %v3586_v21 = vpop.f32.mrf.mxu1  ;;  %v3613_v28 = vsel %vm467_vm3, %v9607_v18, -inf }
0x179d   :  { %v3602_v29 = vmul.f32 0.35355338, %v3586_v21  ;;  %3614 = vmax.xlane.f32.xlu0 %v3613_v28 }
0x179e   :  { %v7281_v16 = vpop.f32.mrf.mxu1 }
0x179f   :  { %v9613_v3 = vsel %vm8433_vm7, %v3602_v29, -1e+30 }
0x17a0   :  { %v3591_v48 = vpop.f32.mrf.mxu1  ;;  %v3616_v41 = vsel %vm467_vm3, %v9613_v3, -inf }
0x17a1   :  { %v3603_v22 = vmul.f32 0.35355338, %v3591_v48  ;;  %3617 = vmax.xlane.f32.xlu0 %v3616_v41 }
0x17a2   :  { %v7284_v23 = vpop.f32.mrf.mxu1 }
0x17a3   :  { %v9619_v51 = vsel %vm8444_vm8, %v3603_v22, -1e+30 }
0x17a4   :  { %v3596_v53 = vpop.f32.mrf.mxu1  ;;  %v3619_v52 = vsel %vm467_vm3, %v9619_v51, -inf }
0x17a5   :  { %v3604_v19 = vmul.f32 0.35355338, %v3596_v53  ;;  %3620 = vmax.xlane.f32.xlu1 %v3619_v52 }
0x17a6   :  { %v7287_v10 = vpop.f32.mrf.mxu1 }
0x17a7   :  { %v9625_v47 = vsel %vm8454_vm9, %v3604_v19, -1e+30 }
0x17a8   :  { %v3891_v61 = vpop.f32.mrf.mxu1  ;;  %v3622_v37 = vsel %vm467_vm3, %v9625_v47, -inf }
0x17a9   :  { %v3915_v39 = vmul.f32 0.35355338, %v3891_v61  ;;  %3623 = vmax.xlane.f32.xlu0 %v3622_v37 }
0x17aa   :  { %v7325_v46 = vpop.f32.mrf.mxu1 }
0x17ab   :  { %v9631_v5 = vsel %vm8405_vm15, %v3915_v39, -1e+30 }
0x17ac   :  { %v3896_v33 = vpop.f32.mrf.mxu1  ;;  %v3925_v60 = vsel %vm467_vm3, %v9631_v5, -inf }
0x17ad   :  { %v3916_v58 = vmul.f32 0.35355338, %v3896_v33  ;;  %3926 = vmax.xlane.f32.xlu1 %v3925_v60 }
0x17ae   :  { %v7328_v55 = vpop.f32.mrf.mxu1 }
0x17af   :  { %v9637_v2 = vsel %vm8421_vm5, %v3916_v58, -1e+30 }
0x17b0   :  { %v3901_v43 = vpop.f32.mrf.mxu1  ;;  %v3928_v49 = vsel %vm467_vm3, %v9637_v2, -inf }
0x17b1   :  { %v3917_v32 = vmul.f32 0.35355338, %v3901_v43  ;;  %3929 = vmax.xlane.f32.xlu0 %v3928_v49 }
0x17b2   :  { %v7331_v11 = vpop.f32.mrf.mxu1 }
0x17b3   :  { %v9643_v56 = vsel %vm8433_vm7, %v3917_v32, -1e+30 }
0x17b4   :  { %v3906_v57 = vpop.f32.mrf.mxu1  ;;  %v3931_v62 = vsel %vm467_vm3, %v9643_v56, -inf }
0x17b5   :  { %v3918_v17 = vmul.f32 0.35355338, %v3906_v57  ;;  %3932 = vmax.xlane.f32.xlu1 %v3931_v62 }
0x17b6   :  { %v7334_v26 = vpop.f32.mrf.mxu1 }
0x17b7   :  { %v9649_v30 = vsel %vm8444_vm8, %v3918_v17, -1e+30 }
0x17b8   :  { %v3911_v6 = vpop.f32.mrf.mxu1  ;;  %v3934_v31 = vsel %vm467_vm3, %v9649_v30, -inf }
0x17b9   :  { %v3919_v42 = vmul.f32 0.35355338, %v3911_v6  ;;  %3935 = vmax.xlane.f32.xlu0 %v3934_v31 }
0x17ba   :  { %v7337_v34 = vpop.f32.mrf.mxu1 }
0x17bb   :  { %v9655_v27 = vsel %vm8454_vm9, %v3919_v42, -1e+30 }
0x17bc   :  { %v4206_v38 = vpop.f32.mrf.mxu1  ;;  %v3937_v21 = vsel %vm467_vm3, %v9655_v27, -inf }
0x17bd   :  { %v4230_v28 = vmul.f32 0.35355338, %v4206_v38  ;;  %3938 = vmax.xlane.f32.xlu1 %v3937_v21 }
0x17be   :  { %v7375_v29 = vpop.f32.mrf.mxu1 }
0x17bf   :  { %v9661_v16 = vsel %vm8405_vm15, %v4230_v28, -1e+30 }
0x17c0   :  { %v4211_v48 = vpop.f32.mrf.mxu1  ;;  %v4240_v41 = vsel %vm467_vm3, %v9661_v16, -inf }
0x17c1   :  { %4241 = vmax.xlane.f32.xlu0 %v4240_v41  ;;  %v4231_v11 = vmul.f32 0.35355338, %v4211_v48 }
0x17c2   :  { %v7378_v22 = vpop.f32.mrf.mxu1 }
0x17c3   :  { %v9671_v62 = vsel %vm8421_vm5, %v4231_v11, -1e+30 }
0x17c4   :  { %v4216_v23 = vpop.f32.mrf.mxu1  ;;  %v4243_v26 = vsel %vm467_vm3, %v9671_v62, -inf }
0x17c5   :  { %v4232_v57 = vmul.f32 0.35355338, %v4216_v23 }
0x17c6   :  { %v7381_v53 = vpop.f32.mrf.mxu1 }
0x17c7   :  { %v9675_v17 = vsel %vm8433_vm7, %v4232_v57, -1e+30 }
0x17c8   :  { %v4221_v52 = vpop.f32.mrf.mxu1  ;;  %v4246_v38 = vsel %vm467_vm3, %v9675_v17, -inf }
0x17ca   :  { %v7384_v19 = vpop.f32.mrf.mxu1 }
0x17cc   :  { %v4226_v10 = vpop.f32.mrf.mxu1 }
0x17cd   :  { %v4234_v31 = vmul.f32 0.35355338, %v4226_v10 }
0x17ce   :  { %4618 = vrot.lane.b32.xlu1 %v9383_v24, %s10520_s28  ;;  %v7387_v61 = vpop.f32.mrf.mxu1  ;;  %v4233_v24 = vmul.f32 0.35355338, %v4221_v52 }
0x17cf   :  { %v9689_v28 = vsel %vm8454_vm9, %v4234_v31, -1e+30 }
0x17d0   :  { %v4521_v37 = vpop.f32.mrf.mxu1  ;;  %v9681_v6 = vsel %vm8444_vm8, %v4233_v24, -1e+30  ;;  %v4252_v22 = vsel %vm467_vm3, %v9689_v28, -inf }
0x17d1   :  { %v4545_v42 = vmul.f32 0.35355338, %v4521_v37  ;;  %v4249_v21 = vsel %vm467_vm3, %v9681_v6, -inf }
0x17d2   :  { %v7425_v39 = vpop.f32.mrf.mxu1 }
0x17d3   :  { %v9693_v29 = vsel %vm8405_vm15, %v4545_v42, -1e+30  ;;  %v9723_v39 = vpop.permute.xlu0 %3986  ;;  %vm10524_vm15 = vmmov %vm10485_vm2 }
0x17d4   :  { %v4526_v46 = vpop.f32.mrf.mxu1  ;;  %v4555_v23 = vsel %vm467_vm3, %v9693_v29, -inf }
0x17d5   :  { %v4546_v34 = vmul.f32 0.35355338, %v4526_v46 }
0x17d6   :  { %v7428_v33 = vpop.f32.mrf.mxu1 }
0x17d7   :  { %4295 = vrot.lane.b32.xlu0 %v9381_v20, %s10483_s2  ;;  %v9697_v41 = vsel %vm8421_vm5, %v4546_v34, -1e+30  ;;  %v9725_v46 = vpop.permute.xlu0 %3982  ;;  %v9729_v33 = vpop.permute.xlu1 %3988  ;;  %vm10525_vm5 = vcmask 130048  }
0x17d8   :  { %v4531_v60 = vpop.f32.mrf.mxu1  ;;  %v4558_v19 = vsel %vm467_vm3, %v9697_v41, -inf  ;;  %vm10530_vm12 = vmmov %vm10525_vm5 }
0x17d9   :  { %v4547_v48 = vmul.f32 0.35355338, %v4531_v60  ;;  %vm10533_vm14 = vmmov %vm10525_vm5 }
0x17da   :  { %v7431_v58 = vpop.f32.mrf.mxu1 }
0x17db   :  { %v9705_v53 = vsel %vm8433_vm7, %v4547_v48, -1e+30  ;;  %v9727_v0 = vpop.permute.xlu0 %3980  ;;  %v9733_v60 = vpop.permute.xlu1 %4303  ;;  %vm10526_vm7 = vcmask 195584  }
0x17dc   :  { %v4536_v55 = vpop.f32.mrf.mxu1  ;;  %v4561_v45 = vsel %vm467_vm3, %v9705_v53, -inf  ;;  %vm10529_vm11 = vmmov %vm10526_vm7 }
0x17dd   :  { %v4548_v35 = vmul.f32 0.35355338, %v4536_v55  ;;  %vm10532_vm13 = vmmov %vm10526_vm7 }
0x17de   :  { %v7434_v43 = vpop.f32.mrf.mxu1  ;;  %vm10534_vm4 = vmmov %vm10526_vm7 }
0x17df   :  { %v9713_v10 = vsel %vm8444_vm8, %v4548_v35, -1e+30  ;;  %v9731_v9 = vpop.permute.xlu0 %4301  ;;  %vm10527_vm8 = vmmov %vm10485_vm2 }
0x17e0   :  { %v4541_v49 = vpop.f32.mrf.mxu1  ;;  %v4564_v54 = vsel %vm467_vm3, %v9713_v10, -inf }
0x17e1   :  { %v4549_v52 = vmul.f32 0.35355338, %v4541_v49 }
0x17e2   :  { %v7437_v32 = vpop.f32.mrf.mxu1 }
0x17e3   :  { %v9717_v61 = vsel %vm8454_vm9, %v4549_v52, -1e+30  ;;  %v9735_v58 = vpop.permute.xlu0 %4297  ;;  %vm10528_vm9 = vmmov %vm10525_vm5 }
0x17e4   :  { %v4567_v37 = vsel %vm467_vm3, %v9717_v61, -inf }
0x17f2   :  { %4244 = vmax.xlane.f32.xlu1 %v4243_v26 }
0x17f6   :  { %4247 = vmax.xlane.f32.xlu0 %v4246_v38  ;;  %4250 = vmax.xlane.f32.xlu1 %v4249_v21 }
0x17fa   :  { %4253 = vmax.xlane.f32.xlu0 %v4252_v22  ;;  %4556 = vmax.xlane.f32.xlu1 %v4555_v23 }
0x17fe   :  { %4559 = vmax.xlane.f32.xlu0 %v4558_v19  ;;  %4562 = vmax.xlane.f32.xlu1 %v4561_v45 }
0x1802   :  { %4565 = vmax.xlane.f32.xlu0 %v4564_v54  ;;  %4568 = vmax.xlane.f32.xlu1 %v4567_v37 }
0x1822   :  { %v3612_v55 = vpop.xlane.xlu1 %3611 }
0x1823   :  { %v3625_v43 = vsub.f32 %v9601_v13, %v3612_v55 }
0x1825   :  { %v3630_v49 = vmul.f32 1.442695, %v3625_v43 }
0x1826   :  { %v3615_v32 = vpop.xlane.xlu0 %3614 }
0x1827   :  { %7794 = vpow2.f32 %v3630_v49  ;;  %v3626_v11 = vsub.f32 %v9607_v18, %v3615_v32 }
0x1829   :  { %v3632_v57 = vmul.f32 1.442695, %v3626_v11 }
0x182a   :  { %v3618_v24 = vpop.xlane.xlu0 %3617 }
0x182b   :  { %7796 = vpow2.f32 %v3632_v57  ;;  %v3627_v26 = vsub.f32 %v9613_v3, %v3618_v24 }
0x182d   :  { %v3634_v31 = vmul.f32 1.442695, %v3627_v26 }
0x182e   :  { %v3621_v42 = vpop.xlane.xlu1 %3620 }
0x182f   :  { %7798 = vpow2.f32 %v3634_v31  ;;  %v3628_v34 = vsub.f32 %v9619_v51, %v3621_v42 }
0x1831   :  { %v3636_v38 = vmul.f32 1.442695, %v3628_v34 }
0x1832   :  { %v3624_v21 = vpop.xlane.xlu0 %3623 }
0x1833   :  { %7800 = vpow2.f32 %v3636_v38  ;;  %v3629_v13 = vsub.f32 %v9625_v47, %v3624_v21 }
0x1834   :  { %v9742_v48 = vpop.eup %7794 }
0x1835   :  { %v3638_v22 = vmul.f32 1.442695, %v3629_v13  ;;  %v3640_v18 = vsel %vm467_vm3, %v9742_v48, 0.0 }
0x1836   :  { %3641 = vadd.xlane.f32.xlu0 %v3640_v18  ;;  %v3927_v23 = vpop.xlane.xlu1 %3926 }
0x1837   :  { %7802 = vpow2.f32 %v3638_v22  ;;  %v3940_v3 = vsub.f32 %v9631_v5, %v3927_v23 }
0x1838   :  { %v9747_v35 = vpop.eup %7796 }
0x1839   :  { %v3945_v52 = vmul.f32 1.442695, %v3940_v3  ;;  %v3643_v51 = vsel %vm467_vm3, %v9747_v35, 0.0 }
0x183a   :  { %v3930_v19 = vpop.xlane.xlu0 %3929  ;;  %3644 = vadd.xlane.f32.xlu1 %v3643_v51 }
0x183b   :  { %7804 = vpow2.f32 %v3945_v52  ;;  %v3941_v47 = vsub.f32 %v9637_v2, %v3930_v19 }
0x183c   :  { %v9752_v45 = vpop.eup %7798 }
0x183d   :  { %v3947_v54 = vmul.f32 1.442695, %v3941_v47  ;;  %v3646_v37 = vsel %vm467_vm3, %v9752_v45, 0.0 }
0x183e   :  { %3647 = vadd.xlane.f32.xlu0 %v3646_v37  ;;  %v3933_v55 = vpop.xlane.xlu1 %3932 }
0x183f   :  { %7806 = vpow2.f32 %v3947_v54  ;;  %v3942_v5 = vsub.f32 %v9643_v56, %v3933_v55 }
0x1840   :  { %v9757_v43 = vpop.eup %7800 }
0x1841   :  { %v3949_v49 = vmul.f32 1.442695, %v3942_v5  ;;  %v3649_v32 = vsel %vm467_vm3, %v9757_v43, 0.0 }
0x1842   :  { %v3936_v11 = vpop.xlane.xlu0 %3935  ;;  %3650 = vadd.xlane.f32.xlu1 %v3649_v32 }
0x1843   :  { %7808 = vpow2.f32 %v3949_v49  ;;  %v3943_v2 = vsub.f32 %v9649_v30, %v3936_v11 }
0x1844   :  { %v9762_v57 = vpop.eup %7802 }
0x1845   :  { %v3951_v24 = vmul.f32 1.442695, %v3943_v2  ;;  %v3652_v26 = vsel %vm467_vm3, %v9762_v57, 0.0 }
0x1846   :  { %3653 = vadd.xlane.f32.xlu0 %v3652_v26  ;;  %v3939_v31 = vpop.xlane.xlu1 %3938 }
0x1847   :  { %7810 = vpow2.f32 %v3951_v24  ;;  %v3944_v56 = vsub.f32 %v9655_v27, %v3939_v31 }
0x1848   :  { %v9767_v42 = vpop.eup %7804 }
0x1849   :  { %v3953_v34 = vmul.f32 1.442695, %v3944_v56  ;;  %v3955_v38 = vsel %vm467_vm3, %v9767_v42, 0.0 }
0x184a   :  { %v4242_v21 = vpop.xlane.xlu0 %4241  ;;  %3956 = vadd.xlane.f32.xlu0 %v3955_v38  ;;  %v9796_v54 = vpop.permute.xlu1 %4618 }
0x184b   :  { %7812 = vpow2.f32 %v3953_v34  ;;  %v4255_v30 = vsub.f32 %v9661_v16, %v4242_v21 }
0x184c   :  { %v9772_v13 = vpop.eup %7806 }
0x184d   :  { %v4260_v22 = vmul.f32 1.442695, %v4255_v30  ;;  %v3958_v18 = vsel %vm467_vm3, %v9772_v13, 0.0 }
0x184e   :  { %3959 = vadd.xlane.f32.xlu1 %v3958_v18  ;;  %v9798_v37 = vpop.permute.xlu0 %4295 }
0x184f   :  { %7814 = vpow2.f32 %v4260_v22 }
0x1850   :  { %v9776_v27 = vpop.eup %7808 }
0x1851   :  { %v3961_v23 = vsel %vm467_vm3, %v9776_v27, 0.0 }
0x1852   :  { %3962 = vadd.xlane.f32.xlu0 %v3961_v23 }
0x1854   :  { %v9780_v3 = vpop.eup %7810 }
0x1855   :  { %v3964_v52 = vsel %vm467_vm3, %v9780_v3, 0.0 }
0x1856   :  { %3965 = vadd.xlane.f32.xlu1 %v3964_v52 }
0x1858   :  { %v9784_v16 = vpop.eup %7812 }
0x1859   :  { %v3967_v51 = vsel %vm467_vm3, %v9784_v16, 0.0 }
0x185a   :  { %3968 = vadd.xlane.f32.xlu1 %v3967_v51 }
0x185c   :  { %v9788_v19 = vpop.eup %7814 }
0x185d   :  { %v4270_v47 = vsel %vm467_vm3, %v9788_v19, 0.0 }
0x185e   :  { %4271 = vadd.xlane.f32.xlu0 %v4270_v47 }
0x186b   :  { %4614 = vrot.lane.b32.xlu1 %v9389_v50, %s10520_s28 }
0x1874   :  { %4616 = vrot.lane.b32.xlu0 %v9377_v4, %s10520_s28 }
0x187b   :  { %v4245_v55 = vpop.xlane.xlu1 %4244 }
0x187c   :  { %v4256_v5 = vsub.f32 %v9671_v62, %v4245_v55 }
0x187e   :  { %v4262_v49 = vmul.f32 1.442695, %v4256_v5 }
0x187f   :  { %v4248_v32 = vpop.xlane.xlu0 %4247  ;;  %v4251_v11 = vpop.xlane.xlu1 %4250 }
0x1880   :  { %7816 = vpow2.f32 %v4262_v49  ;;  %v4257_v2 = vsub.f32 %v9675_v17, %v4248_v32  ;;  %v4258_v24 = vsub.f32 %v9681_v6, %v4251_v11 }
0x1882   :  { %v4264_v26 = vmul.f32 1.442695, %v4257_v2  ;;  %v4266_v50 = vmul.f32 1.442695, %v4258_v24 }
0x1883   :  { %v4254_v31 = vpop.xlane.xlu0 %4253  ;;  %v4557_v56 = vpop.xlane.xlu1 %4556 }
0x1884   :  { %7818 = vpow2.f32 %v4264_v26  ;;  %v4259_v4 = vsub.f32 %v9689_v28, %v4254_v31  ;;  %v4570_v34 = vsub.f32 %v9693_v29, %v4557_v56 }
0x1885   :  { %7820 = vpow2.f32 %v4266_v50 }
0x1886   :  { %v4268_v38 = vmul.f32 1.442695, %v4259_v4  ;;  %v4575_v62 = vmul.f32 1.442695, %v4570_v34 }
0x1887   :  { %v4560_v21 = vpop.xlane.xlu0 %4559  ;;  %v4563_v30 = vpop.xlane.xlu1 %4562 }
0x1888   :  { %7822 = vpow2.f32 %v4268_v38  ;;  %v4571_v22 = vsub.f32 %v9697_v41, %v4560_v21  ;;  %v4572_v17 = vsub.f32 %v9705_v53, %v4563_v30 }
0x1889   :  { %7824 = vpow2.f32 %v4575_v62 }
0x188a   :  { %v4577_v6 = vmul.f32 1.442695, %v4571_v22  ;;  %v4579_v18 = vmul.f32 1.442695, %v4572_v17 }
0x188b   :  { %v4566_v23 = vpop.xlane.xlu0 %4565  ;;  %v4569_v52 = vpop.xlane.xlu1 %4568 }
0x188c   :  { %7826 = vpow2.f32 %v4577_v6  ;;  %v4573_v28 = vsub.f32 %v9713_v10, %v4566_v23  ;;  %v4574_v29 = vsub.f32 %v9717_v61, %v4569_v52 }
0x188d   :  { %v9809_v51 = vpop.eup %7816  ;;  %7828 = vpow2.f32 %v4579_v18 }
0x188e   :  { %v4581_v47 = vmul.f32 1.442695, %v4573_v28  ;;  %v4273_v55 = vsel %vm467_vm3, %v9809_v51, 0.0  ;;  %v4583_v41 = vmul.f32 1.442695, %v4574_v29 }
0x188f   :  { %4274 = vadd.xlane.f32.xlu1 %v4273_v55 }
0x1890   :  { %7830 = vpow2.f32 %v4581_v47 }
0x1891   :  { %v9813_v53 = vpop.eup %7818  ;;  %7832 = vpow2.f32 %v4583_v41 }
0x1892   :  { %v9815_v5 = vpop.eup %7820  ;;  %v4276_v49 = vsel %vm467_vm3, %v9813_v53, 0.0 }
0x1893   :  { %4277 = vadd.xlane.f32.xlu0 %v4276_v49  ;;  %v4279_v10 = vsel %vm467_vm3, %v9815_v5, 0.0 }
0x1894   :  { %4280 = vadd.xlane.f32.xlu1 %v4279_v10 }
0x1895   :  { %v9821_v61 = vpop.eup %7822 }
0x1896   :  { %v9823_v32 = vpop.eup %7824  ;;  %v4282_v11 = vsel %vm467_vm3, %v9821_v61, 0.0 }
0x1897   :  { %v4585_v2 = vsel %vm467_vm3, %v9823_v32, 0.0 }
0x1898   :  { %4283 = vadd.xlane.f32.xlu1 %v4282_v11  ;;  %4586 = vadd.xlane.f32.xlu0 %v4585_v2 }
0x1899   :  { %v9829_v24 = vpop.eup %7826 }
0x189a   :  { %v9831_v26 = vpop.eup %7828  ;;  %v4588_v50 = vsel %vm467_vm3, %v9829_v24, 0.0 }
0x189b   :  { %v4591_v31 = vsel %vm467_vm3, %v9831_v26, 0.0 }
0x189c   :  { %4589 = vadd.xlane.f32.xlu1 %v4588_v50  ;;  %4592 = vadd.xlane.f32.xlu0 %v4591_v31 }
0x189d   :  { %v9837_v56 = vpop.eup %7830 }
0x189e   :  { %v4594_v4 = vsel %vm467_vm3, %v9837_v56, 0.0  ;;  %v9841_v34 = vpop.eup %7832 }
0x189f   :  { %v4597_v38 = vsel %vm467_vm3, %v9841_v34, 0.0 }
0x18a0   :  { %4595 = vadd.xlane.f32.xlu1 %v4594_v4 }
0x18a4   :  { %4598 = vadd.xlane.f32.xlu1 %v4597_v38 }
0x18b2   :  { %4610 = vrot.lane.b32.xlu0 %v9381_v20, %s10520_s28 }
0x18b5   :  { %4612 = vrot.lane.b32.xlu1 %v9395_v40, %s10520_s28 }
0x18bf   :  { %v3642_v62 = vpop.xlane.xlu0 %3641 }
0x18c0   :  { %7834 = vrcp.f32 %v3642_v62 }
0x18c3   :  { %v3645_v21 = vpop.xlane.xlu1 %3644 }
0x18c4   :  { %7836 = vrcp.f32 %v3645_v21 }
0x18c7   :  { %v3648_v30 = vpop.xlane.xlu0 %3647 }
0x18c8   :  { %7838 = vrcp.f32 %v3648_v30 }
0x18cb   :  { %v3651_v22 = vpop.xlane.xlu1 %3650 }
0x18cc   :  { %7840 = vrcp.f32 %v3651_v22 }
0x18cd   :  { %v7835_v17 = vpop.eup %7834 }
0x18ce   :  { %v3656_v6 = vmul.f32 %v7835_v17, %v9742_v48 }
0x18cf   :  { %v3654_v18 = vpop.xlane.xlu0 %3653 }
0x18d0   :  { %7842 = vrcp.f32 %v3654_v18  ;;  %7299 = vmatmul.mubr.msk.f32.vlgmr.msra.gmra.mxu0 %vm467_vm3, %v3656_v6 }
0x18d1   :  { %v7837_v23 = vpop.eup %7836  ;;  %7339 = vmatpush3.msra.mxu0 %v9729_v33  ;;  %7301 = vmatprep.mubr.msk.f32.mxu0 %vm7954_vm0, %v7953_v1 }
0x18d2   :  { %7340 = vmatprep.subr.mxu0 %v7953_v1  ;;  %v3658_v20 = vmul.f32 %v7837_v23, %v9747_v35 }
0x18d3   :  { %7341 = vmatpush3.msra.mxu0 %v9723_v39  ;;  %v3957_v40 = vpop.xlane.xlu0 %3956 }
0x18d4   :  { %7342 = vmatprep.subr.mxu0 %v7953_v1  ;;  %7844 = vrcp.f32 %v3957_v40  ;;  %7302 = vmatmul.mubr.msk.f32.gmra.mxu0 %vm467_vm3, %v3658_v20 }
0x18d5   :  { %v7839_v48 = vpop.eup %7838  ;;  %7343 = vmatpush3.msra.mxu0 %v9571_v63  ;;  %7304 = vmatprep.mubr.msk.f32.mxu0 %vm7954_vm0, %v7953_v1 }
0x18d6   :  { %7344 = vmatprep.subr.mxu0 %v7953_v1  ;;  %v3660_v33 = vmul.f32 %v7839_v48, %v9752_v45 }
0x18d7   :  { %7345 = vmatpush3.msra.mxu0 %v9725_v46  ;;  %v3960_v35 = vpop.xlane.xlu1 %3959 }
0x18d8   :  { %7346 = vmatprep.subr.mxu0 %v7953_v1  ;;  %7846 = vrcp.f32 %v3960_v35  ;;  %7305 = vmatmul.mubr.msk.f32.gmra.mxu0 %vm467_vm3, %v3660_v33 }
0x18d9   :  { %v7841_v39 = vpop.eup %7840  ;;  %7347 = vmatpush3.msra.mxu0 %v9727_v0  ;;  %7307 = vmatprep.mubr.msk.f32.mxu0 %vm7954_vm0, %v7953_v1 }
0x18da   :  { %v3662_v63 = vmul.f32 %v7841_v39, %v9757_v43  ;;  %7388 = vmatprep.subr.mxu0 %v7953_v1 }
0x18db   :  { %v3963_v52 = vpop.xlane.xlu0 %3962 }
0x18dc   :  { %7848 = vrcp.f32 %v3963_v52  ;;  %7308 = vmatmul.mubr.msk.f32.gmra.mxu0 %vm467_vm3, %v3662_v63 }
0x18dd   :  { %v7843_v46 = vpop.eup %7842  ;;  %7310 = vmatprep.mubr.msk.f32.mxu0 %vm7954_vm0, %v7953_v1 }
0x18de   :  { %v3664_v45 = vmul.f32 %v7843_v46, %v9762_v57 }
0x18df   :  { %v3966_v28 = vpop.xlane.xlu1 %3965 }
0x18e0   :  { %7850 = vrcp.f32 %v3966_v28  ;;  %7311 = vmatmul.mubr.msk.f32.gmra.mxu0 %vm467_vm3, %v3664_v45 }
0x18e1   :  { %v7845_v0 = vpop.eup %7844  ;;  %7348 = vmatprep.mubr.msk.f32.mxu0 %vm7954_vm0, %v7953_v1 }
0x18e2   :  { %v3971_v43 = vmul.f32 %v7845_v0, %v9767_v42 }
0x18e3   :  { %v3969_v29 = vpop.xlane.xlu1 %3968 }
0x18e4   :  { %7852 = vrcp.f32 %v3969_v29  ;;  %7349 = vmatmul.mubr.msk.f32.vlgmr.msra.gmra.mxu0 %vm467_vm3, %v3971_v43 }
0x18e5   :  { %v7847_v47 = vpop.eup %7846  ;;  %7389 = vmatpush3.msra.mxu0 %v9733_v60  ;;  %7351 = vmatprep.mubr.msk.f32.mxu0 %vm7954_vm0, %v7953_v1 }
0x18e6   :  { %7390 = vmatprep.subr.mxu0 %v7953_v1  ;;  %v3973_v57 = vmul.f32 %v7847_v47, %v9772_v13 }
0x18e7   :  { %7391 = vmatpush3.msra.mxu0 %v9731_v9  ;;  %v4272_v55 = vpop.xlane.xlu0 %4271 }
0x18e8   :  { %7854 = vrcp.f32 %v4272_v55  ;;  %7392 = vmatprep.subr.mxu0 %v7953_v1  ;;  %7352 = vmatmul.mubr.msk.f32.gmra.mxu0 %vm467_vm3, %v3973_v57 }
0x18e9   :  { %v7849_v42 = vpop.eup %7848  ;;  %7393 = vmatpush3.msra.mxu0 %v9578_v8  ;;  %7354 = vmatprep.mubr.msk.f32.mxu0 %vm7954_vm0, %v7953_v1 }
0x18ea   :  { %7394 = vmatprep.subr.mxu0 %v7953_v1  ;;  %v3975_v60 = vmul.f32 %v7849_v42, %v9776_v27 }
0x18eb   :  { %7395 = vmatpush3.msra.mxu0 %v9735_v58 }
0x18ec   :  { %7396 = vmatprep.subr.mxu0 %v7953_v1  ;;  %7355 = vmatmul.mubr.msk.f32.gmra.mxu0 %vm467_vm3, %v3975_v60 }
0x18ed   :  { %v7851_v9 = vpop.eup %7850  ;;  %7397 = vmatpush3.msra.mxu0 %v9798_v37  ;;  %7357 = vmatprep.mubr.msk.f32.mxu0 %vm7954_vm0, %v7953_v1 }
0x18ee   :  { %v3977_v8 = vmul.f32 %v7851_v9, %v9780_v3  ;;  %7438 = vmatprep.subr.mxu0 %v7953_v1  ;;  %v4617_v3 = vpop.permute.xlu0 %4616 }
0x18f0   :  { %7358 = vmatmul.mubr.msk.f32.gmra.mxu0 %vm467_vm3, %v3977_v8 }
0x18f1   :  { %v7853_v13 = vpop.eup %7852  ;;  %7360 = vmatprep.mubr.msk.f32.mxu0 %vm7954_vm0, %v7953_v1 }
0x18f2   :  { %v3979_v58 = vmul.f32 %v7853_v13, %v9784_v16  ;;  %v4615_v16 = vpop.permute.xlu1 %4614 }
0x18f4   :  { %7361 = vmatmul.mubr.msk.f32.gmra.mxu0 %vm467_vm3, %v3979_v58 }
0x18f5   :  { %v7855_v27 = vpop.eup %7854  ;;  %7398 = vmatprep.mubr.msk.f32.mxu0 %vm7954_vm0, %v7953_v1 }
0x18f6   :  { %v4286_v37 = vmul.f32 %v7855_v27, %v9788_v19  ;;  %v6435_v27 = vld [vmem:[%s10474_s25 + $0x38] sm:$0xff] }
0x18f7   :  { %7464 = vmatpush3.msra.mxu1 %v6435_v27 }
0x18f8   :  { %7399 = vmatmul.mubr.msk.f32.vlgmr.msra.gmra.mxu0 %vm467_vm3, %v4286_v37  ;;  %v6434_v37 = vld [vmem:[%s10474_s25 + $0x30] sm:$0xff]  ;;  %7465 = vmatprep.subr.mxu1 %v7953_v1 }
0x18f9   :  { %7439 = vmatpush3.msra.mxu0 %v9796_v54  ;;  %7401 = vmatprep.mubr.msk.f32.mxu0 %vm7954_vm0, %v7953_v1 }
0x18fa   :  { %7440 = vmatprep.subr.mxu0 %v7953_v1  ;;  %7466 = vmatpush3.msra.mxu1 %v6434_v37 }
0x18fb   :  { %7441 = vmatpush3.msra.mxu0 %v4617_v3  ;;  %v6433_v3 = vld [vmem:[%s10474_s25 + $0x28] sm:$0xff]  ;;  %7467 = vmatprep.subr.mxu1 %v7953_v1 }
0x18fc   :  { %7442 = vmatprep.subr.mxu0 %v7953_v1  ;;  %7468 = vmatpush3.msra.mxu1 %v6433_v3 }
0x18fd   :  { %7443 = vmatpush3.msra.mxu0 %v4615_v16  ;;  %7469 = vmatprep.subr.mxu1 %v7953_v1 }
0x18fe   :  { %7444 = vmatprep.subr.mxu0 %v7953_v1 }
0x1918   :  { %v4275_v41 = vpop.xlane.xlu1 %4274 }
0x1919   :  { %7856 = vrcp.f32 %v4275_v41 }
0x191c   :  { %v4278_v19 = vpop.xlane.xlu0 %4277 }
0x191d   :  { %7858 = vrcp.f32 %v4278_v19  ;;  %v4281_v49 = vpop.xlane.xlu1 %4280 }
0x191e   :  { %7860 = vrcp.f32 %v4281_v49  ;;  %v6432_v49 = vld [vmem:[%s10474_s25 + $0x20] sm:$0xff] }
0x191f   :  { %7470 = vmatpush3.msra.mxu1 %v6432_v49 }
0x1920   :  { %7509 = vmatprep.subr.mxu1 %v7953_v1 }
0x1921   :  { %v4284_v54 = vpop.xlane.xlu1 %4283  ;;  %v4587_v10 = vpop.xlane.xlu0 %4586 }
0x1922   :  { %7862 = vrcp.f32 %v4284_v54 }
0x1923   :  { %7864 = vrcp.f32 %v4587_v10 }
0x1925   :  { %v4590_v11 = vpop.xlane.xlu1 %4589  ;;  %v4593_v21 = vpop.xlane.xlu0 %4592 }
0x1926   :  { %v7857_v2 = vpop.eup %7856  ;;  %7866 = vrcp.f32 %v4590_v11 }
0x1927   :  { %v4288_v50 = vmul.f32 %v7857_v2, %v9809_v51  ;;  %7868 = vrcp.f32 %v4593_v21 }
0x1929   :  { %v4596_v31 = vpop.xlane.xlu1 %4595  ;;  %7402 = vmatmul.mubr.msk.f32.gmra.mxu0 %vm467_vm3, %v4288_v50 }
0x192a   :  { %v7859_v4 = vpop.eup %7858  ;;  %7404 = vmatprep.mubr.msk.f32.mxu0 %vm7954_vm0, %v7953_v1  ;;  %7870 = vrcp.f32 %v4596_v31 }
0x192b   :  { %v4290_v38 = vmul.f32 %v7859_v4, %v9813_v53  ;;  %v7861_v62 = vpop.eup %7860  ;;  %v4611_v53 = vpop.permute.xlu0 %4610 }
0x192c   :  { %v4292_v51 = vmul.f32 %v7861_v62, %v9815_v5 }
0x192d   :  { %v4599_v30 = vpop.xlane.xlu1 %4598  ;;  %7405 = vmatmul.mubr.msk.f32.gmra.mxu0 %vm467_vm3, %v4290_v38 }
0x192e   :  { %7407 = vmatprep.mubr.msk.f32.mxu0 %vm7954_vm0, %v7953_v1  ;;  %7872 = vrcp.f32 %v4599_v30 }
0x192f   :  { %v7863_v22 = vpop.eup %7862 }
0x1930   :  { %v4294_v6 = vmul.f32 %v7863_v22, %v9821_v61  ;;  %v7865_v18 = vpop.eup %7864 }
0x1931   :  { %v4613_v17 = vpop.permute.xlu1 %4612  ;;  %7408 = vmatmul.mubr.msk.f32.gmra.mxu0 %vm467_vm3, %v4292_v51  ;;  %v4601_v5 = vmul.f32 %v7865_v18, %v9823_v32 }
0x1932   :  { %7445 = vmatpush3.msra.mxu0 %v4613_v17  ;;  %7410 = vmatprep.mubr.msk.f32.mxu0 %vm7954_vm0, %v7953_v1 }
0x1933   :  { %7446 = vmatprep.subr.mxu0 %v7953_v1  ;;  %v7867_v23 = vpop.eup %7866 }
0x1934   :  { %7447 = vmatpush3.msra.mxu0 %v4611_v53  ;;  %v4603_v61 = vmul.f32 %v7867_v23, %v9829_v24  ;;  %v7869_v20 = vpop.eup %7868 }
0x1935   :  { %7411 = vmatmul.mubr.msk.f32.gmra.mxu0 %vm467_vm3, %v4294_v6  ;;  %7486 = vmatprep.subr.mxu0 %v7953_v1  ;;  %v4605_v40 = vmul.f32 %v7869_v20, %v9831_v26 }
0x1936   :  { %7448 = vmatprep.mubr.msk.f32.mxu0 %vm7954_vm0, %v7953_v1 }
0x1937   :  { %v7871_v48 = vpop.eup %7870 }
0x1938   :  { %v4607_v32 = vmul.f32 %v7871_v48, %v9837_v56 }
0x1939   :  { %7449 = vmatmul.mubr.msk.f32.vlgmr.msra.gmra.mxu0 %vm467_vm3, %v4601_v5 }
0x193a   :  { %7451 = vmatprep.mubr.msk.f32.mxu0 %vm7954_vm0, %v7953_v1 }
0x193b   :  { %v7873_v33 = vpop.eup %7872 }
0x193c   :  { %v4609_v24 = vmul.f32 %v7873_v33, %v9841_v34 }
0x193d   :  { %7452 = vmatmul.mubr.msk.f32.gmra.mxu0 %vm467_vm3, %v4603_v61 }
0x193e   :  { %7454 = vmatprep.mubr.msk.f32.mxu0 %vm7954_vm0, %v7953_v1 }
0x1941   :  { %7455 = vmatmul.mubr.msk.f32.gmra.mxu0 %vm467_vm3, %v4605_v40 }
0x1942   :  { %7457 = vmatprep.mubr.msk.f32.mxu0 %vm7954_vm0, %v7953_v1 }
0x1945   :  { %7458 = vmatmul.mubr.msk.f32.gmra.mxu0 %vm467_vm3, %v4607_v32 }
0x1946   :  { %7460 = vmatprep.mubr.msk.f32.mxu0 %vm7954_vm0, %v7953_v1 }
0x1949   :  { %7461 = vmatmul.mubr.msk.f32.gmra.mxu0 %vm467_vm3, %v4609_v24 }
0x194a   :  { %7494 = vmatprep.mubr.msk.f32.mxu0 %vm7954_vm0, %v7953_v1 }
0x1990   :  { %v9955_v26 = vpop.f32.mrf.mxu0 }
0x1992   :  { %v7300_v35 = vpop.f32.mrf.mxu0 }
0x1994   :  { %v9957_v39 = vpop.f32.mrf.mxu0 }
0x1996   :  { %v7303_v63 = vpop.f32.mrf.mxu0 }
0x1998   :  { %v9959_v56 = vpop.f32.mrf.mxu0 }
0x199a   :  { %v7306_v52 = vpop.f32.mrf.mxu0 }
0x199c   :  { %v9961_v46 = vpop.f32.mrf.mxu0 }
0x199e   :  { %v7309_v45 = vpop.f32.mrf.mxu0 }
0x19a0   :  { %v9963_v28 = vpop.f32.mrf.mxu0 }
0x19a2   :  { %v7312_v34 = vpop.f32.mrf.mxu0 }
0x19a4   :  { %v4076_v0 = vpop.f32.mrf.mxu0 }
0x19a5   :  { %4735 = vrot.lane.b32.xlu1 %v4076_v0, %s10521_s5 }
0x19a6   :  { %v7350_v43 = vpop.f32.mrf.mxu0 }
0x19a8   :  { %v4081_v29 = vpop.f32.mrf.mxu0 }
0x19a9   :  { %4737 = vrot.lane.b32.xlu0 %v4081_v29, %s10521_s5 }
0x19aa   :  { %v7353_v47 = vpop.f32.mrf.mxu0 }
0x19ac   :  { %v4086_v57 = vpop.f32.mrf.mxu0 }
0x19ad   :  { %4739 = vrot.lane.b32.xlu1 %v4086_v57, %s10521_s5 }
0x19ae   :  { %v7356_v55 = vpop.f32.mrf.mxu0 }
0x19b0   :  { %v4091_v42 = vpop.f32.mrf.mxu0 }
0x19b2   :  { %v7359_v60 = vpop.f32.mrf.mxu0 }
0x19b4   :  { %v4096_v9 = vpop.f32.mrf.mxu0 }
0x19b6   :  { %v7362_v8 = vpop.f32.mrf.mxu0 }
0x19b8   :  { %v4391_v13 = vpop.f32.mrf.mxu0 }
0x19b9   :  { %4755 = vrot.lane.b32.xlu0 %v4391_v13, %s10522_s15  ;;  %v6437_v13 = vld [vmem:[%s10475_s1 + $0x1] ss:$0 sm:$0xff]  ;;  %s10544_s1 = sld [smem:[#allocation7_spill]] }
0x19ba   :  { %v7400_v58 = vpop.f32.mrf.mxu0 }
0x19e9   :  { %v4396_v16 = vpop.f32.mrf.mxu0 }
0x19ea   :  { %4757 = vrot.lane.b32.xlu1 %v4396_v16, %s10522_s15 }
0x19eb   :  { %v7403_v41 = vpop.f32.mrf.mxu0 }
0x19ed   :  { %v4401_v19 = vpop.f32.mrf.mxu0 }
0x19ee   :  { %4759 = vrot.lane.b32.xlu0 %v4401_v19, %s10522_s15 }
0x19ef   :  { %v7406_v54 = vpop.f32.mrf.mxu0 }
0x19f1   :  { %v4406_v10 = vpop.f32.mrf.mxu0 }
0x19f3   :  { %v7409_v11 = vpop.f32.mrf.mxu0 }
0x19f5   :  { %v4411_v2 = vpop.f32.mrf.mxu0 }
0x19f7   :  { %v7412_v50 = vpop.f32.mrf.mxu0 }
0x19f9   :  { %v4706_v31 = vpop.f32.mrf.mxu0 }
0x19fa   :  { %4775 = vrot.lane.b32.xlu1 %v4706_v31, %s10523_s7 }
0x19fb   :  { %v7450_v4 = vpop.f32.mrf.mxu0 }
0x19fd   :  { %v4711_v38 = vpop.f32.mrf.mxu0 }
0x19fe   :  { %4761 = vrot.lane.b32.xlu1 %v4406_v10, %s10522_s15  ;;  %4777 = vrot.lane.b32.xlu0 %v4711_v38, %s10523_s7 }
0x19ff   :  { %v7453_v62 = vpop.f32.mrf.mxu0 }
0x1a01   :  { %v4716_v21 = vpop.f32.mrf.mxu0 }
0x1a02   :  { %4741 = vrot.lane.b32.xlu0 %v4091_v42, %s10521_s5  ;;  %4779 = vrot.lane.b32.xlu1 %v4716_v21, %s10523_s7 }
0x1a03   :  { %v7456_v30 = vpop.f32.mrf.mxu0 }
0x1a05   :  { %v4721_v51 = vpop.f32.mrf.mxu0 }
0x1a06   :  { %4743 = vrot.lane.b32.xlu1 %v4096_v9, %s10521_s5  ;;  %4781 = vrot.lane.b32.xlu0 %v4721_v51, %s10523_s7 }
0x1a07   :  { %v7459_v22 = vpop.f32.mrf.mxu0 }
0x1a09   :  { %v4726_v17 = vpop.f32.mrf.mxu0 }
0x1a0a   :  { %4763 = vrot.lane.b32.xlu0 %v4411_v2, %s10522_s15  ;;  %4783 = vrot.lane.b32.xlu1 %v4726_v17, %s10523_s7  ;;  %s10543_s7 = sld [smem:[#allocation6_spill]] }
0x1a0b   :  { %v7462_v53 = vpop.f32.mrf.mxu0 }
0x1a17   :  { %v4736_v6 = vpop.permute.xlu1 %4735 }
0x1a18   :  { %v4790_v20 = vsel %vm10524_vm15, %v9955_v26, %v4736_v6  ;;  %vm10536_vm15 = vmmov %vm10525_vm5 }
0x1a1b   :  { %v4738_v18 = vpop.permute.xlu0 %4737 }
0x1a1c   :  { %v4791_v24 = vsel %vm10527_vm8, %v9957_v39, %v4738_v18 }
0x1a1f   :  { %v4740_v5 = vpop.permute.xlu1 %4739 }
0x1a20   :  { %v4792_v45 = vsel %vm10485_vm2, %v9959_v56, %v4740_v5 }
0x1a2b   :  { %v4756_v23 = vpop.permute.xlu0 %4755 }
0x1a2c   :  { %v4795_v40 = vsel %vm10525_vm5, %v4790_v20, %v4756_v23  ;;  %vm10537_vm5 = vmmov %vm10534_vm4 }
0x1a5c   :  { %v4758_v61 = vpop.permute.xlu1 %4757 }
0x1a5d   :  { %v4796_v35 = vsel %vm10528_vm9, %v4791_v24, %v4758_v61  ;;  %vm10538_vm9 = vcmask 523264  }
0x1a5e   :  { %vm10539_vm2 = vmmov %vm10538_vm9 }
0x1a60   :  { %v4760_v48 = vpop.permute.xlu0 %4759 }
0x1a61   :  { %v4797_v34 = vsel %vm10530_vm12, %v4792_v45, %v4760_v48 }
0x1a6c   :  { %v4776_v32 = vpop.permute.xlu1 %4775 }
0x1a6d   :  { %v4800_v33 = vsel %vm10526_vm7, %v4795_v40, %v4776_v32 }
0x1a6e   :  { %7472 = vmatmul.mubr.msk.f32.vlgmr.msra.gmra.mxu1 %vm225_vm1, %v4800_v33 }
0x1a6f   :  { %7474 = vmatprep.mubr.msk.f32.mxu1 %vm7954_vm0, %v7953_v1 }
0x1a70   :  { %v4762_v63 = vpop.permute.xlu1 %4761  ;;  %v4778_v52 = vpop.permute.xlu0 %4777 }
0x1a71   :  { %v4801_v26 = vsel %vm10529_vm11, %v4796_v35, %v4778_v52 }
0x1a72   :  { %7475 = vmatmul.mubr.msk.f32.gmra.mxu1 %vm225_vm1, %v4801_v26 }
0x1a73   :  { %7477 = vmatprep.mubr.msk.f32.mxu1 %vm7954_vm0, %v7953_v1 }
0x1a74   :  { %v4742_v39 = vpop.permute.xlu0 %4741  ;;  %v4780_v0 = vpop.permute.xlu1 %4779 }
0x1a75   :  { %v4793_v43 = vsel %vm10531_vm6, %v9961_v46, %v4742_v39  ;;  %v4802_v29 = vsel %vm10532_vm13, %v4797_v34, %v4780_v0  ;;  %vm10540_vm6 = vmmov %vm10539_vm2 }
0x1a76   :  { %7478 = vmatmul.mubr.msk.f32.gmra.mxu1 %vm225_vm1, %v4802_v29  ;;  %v4798_v56 = vsel %vm10533_vm14, %v4793_v43, %v4762_v63  ;;  %vm10541_vm14 = vmmov %vm10539_vm2 }
0x1a77   :  { %7480 = vmatprep.mubr.msk.f32.mxu1 %vm7954_vm0, %v7953_v1 }
0x1a78   :  { %v4744_v47 = vpop.permute.xlu1 %4743  ;;  %v4782_v57 = vpop.permute.xlu0 %4781 }
0x1a79   :  { %v4803_v55 = vsel %vm10534_vm4, %v4798_v56, %v4782_v57  ;;  %v4794_v46 = vsel %vm10535_vm10, %v9963_v28, %v4744_v47  ;;  %v6450_v47 = vld [vmem:[%s10406_s9 + $0x38] sm:$0xff]  ;;  %v6449_v56 = vld [vmem:[%s10406_s9 + $0x30] sm:$0xff]  ;;  %v6448_v57 = vld [vmem:[%s10406_s9 + $0x28] sm:$0xff] }
0x1a7a   :  { %7481 = vmatmul.mubr.msk.f32.gmra.mxu1 %vm225_vm1, %v4803_v55  ;;  %7487 = vmatpush3.msra.mxu0 %v6450_v47  ;;  %v6447_v55 = vld [vmem:[%s10406_s9 + $0x20] sm:$0xff]  ;;  %vm10542_vm4 = vmmov %vm10539_vm2 }
0x1a7b   :  { %7483 = vmatprep.mubr.msk.f32.mxu1 %vm7954_vm0, %v7953_v1  ;;  %7488 = vmatprep.subr.mxu0 %v7953_v1 }
0x1a7c   :  { %v4764_v42 = vpop.permute.xlu0 %4763  ;;  %v4784_v60 = vpop.permute.xlu1 %4783  ;;  %7489 = vmatpush3.msra.mxu0 %v6449_v56 }
0x1a7d   :  { %v4799_v9 = vsel %vm10536_vm15, %v4794_v46, %v4764_v42  ;;  %7490 = vmatprep.subr.mxu0 %v7953_v1 }
0x1a7e   :  { %v4804_v8 = vsel %vm10537_vm5, %v4799_v9, %v4784_v60  ;;  %7491 = vmatpush3.msra.mxu0 %v6448_v57 }
0x1a7f   :  { %7484 = vmatmul.mubr.msk.f32.gmra.mxu1 %vm225_vm1, %v4804_v8  ;;  %7492 = vmatprep.subr.mxu0 %v7953_v1 }
0x1a80   :  { %7525 = vmatprep.mubr.msk.f32.mxu1 %vm7954_vm0, %v7953_v1  ;;  %7493 = vmatpush3.msra.mxu0 %v6447_v55 }
0x1a81   :  { %7540 = vmatprep.subr.mxu0 %v7953_v1 }
0x1b2e   :  { %v4899_v58 = vpop.f32.mrf.mxu1 }
0x1b2f   :  { %v4900_v27 = vadd.f32 %v6437_v13, %v4899_v58 }
0x1b30   :  { %v7473_v37 = vpop.f32.mrf.mxu1 }
0x1b31   :  { %v4923_v28 = vadd.f32 %v4900_v27, %v9340_v44 }
0x1b32   :  { %v4904_v3 = vpop.f32.mrf.mxu1 }
0x1b33   :  { %v4905_v16 = vadd.f32 %v6437_v13, %v4904_v3  ;;  %v4932_v41 = vsel %vm225_vm1, %v4923_v28, 0.0 }
0x1b34   :  { %v7476_v19 = vpop.f32.mrf.mxu1  ;;  %4933 = vadd.xlane.f32.xlu0 %v4932_v41 }
0x1b35   :  { %v4924_v49 = vadd.f32 %v4905_v16, %v9347_v12 }
0x1b36   :  { %v4909_v54 = vpop.f32.mrf.mxu1 }
0x1b37   :  { %v4910_v10 = vadd.f32 %v6437_v13, %v4909_v54  ;;  %v4935_v11 = vsel %vm225_vm1, %v4924_v49, 0.0 }
0x1b38   :  { %v7479_v2 = vpop.f32.mrf.mxu1  ;;  %4936 = vadd.xlane.f32.xlu1 %v4935_v11  ;;  %v6446_v11 = vld [vmem:[%s10405_s8 + $0x1] ss:$0 sm:$0xff] }
0x1b39   :  { %v4925_v50 = vadd.f32 %v4910_v10, %v9354_v36 }
0x1b3a   :  { %v4914_v31 = vpop.f32.mrf.mxu1 }
0x1b3b   :  { %v4915_v4 = vadd.f32 %v6437_v13, %v4914_v31  ;;  %v4938_v44 = vsel %vm225_vm1, %v4925_v50, 0.0 }
0x1b3c   :  { %4939 = vadd.xlane.f32.xlu0 %v4938_v44  ;;  %v7482_v38 = vpop.f32.mrf.mxu1 }
0x1b3d   :  { %v4926_v62 = vadd.f32 %v4915_v4, %v9361_v15 }
0x1b3f   :  { %v4919_v21 = vpop.f32.mrf.mxu1  ;;  %v4941_v30 = vsel %vm225_vm1, %v4926_v62, 0.0 }
0x1b40   :  { %v4920_v12 = vadd.f32 %v6437_v13, %v4919_v21  ;;  %4942 = vadd.xlane.f32.xlu0 %v4941_v30 }
0x1b41   :  { %v7485_v51 = vpop.f32.mrf.mxu1 }
0x1b42   :  { %v4927_v22 = vadd.f32 %v4920_v12, %v9368_v25 }
0x1b44   :  { %v4944_v17 = vsel %vm225_vm1, %v4927_v22, 0.0 }
0x1b45   :  { %4945 = vadd.xlane.f32.xlu1 %v4944_v17 }
0x1bbd   :  { %v4934_v36 = vpop.xlane.xlu0 %4933 }
0x1bbe   :  { %v4947_v53 = vmul.f32 0.03125, %v4934_v36 }
0x1bc0   :  { %v4952_v6 = vsub.f32 %v4923_v28, %v4947_v53 }
0x1bc1   :  { %v4937_v18 = vpop.xlane.xlu1 %4936 }
0x1bc2   :  { %v4948_v5 = vmul.f32 0.03125, %v4937_v18  ;;  %v4957_v23 = vmul.f32 %v4952_v6, %v4952_v6 }
0x1bc4   :  { %v10044_v61 = vsub.f32 %v4924_v49, %v4948_v5  ;;  %v4962_v15 = vsel %vm225_vm1, %v4957_v23, 0.0  ;;  %v6445_v49 = vld [vmem:[%s10476_s4 + $0x1] ss:$0 sm:$0xff] }
0x1bc5   :  { %4963 = vadd.xlane.f32.xlu0 %v4962_v15  ;;  %v4940_v20 = vpop.xlane.xlu0 %4939  ;;  %v6474_v15 = vld [vmem:[%s10408_s11 + $0x70] sm:$0xff] }
0x1bc6   :  { %v4949_v40 = vmul.f32 0.03125, %v4940_v20  ;;  %v4958_v48 = vmul.f32 %v10044_v61, %v10044_v61  ;;  %v6473_v20 = vld [vmem:[%s10408_s11 + $0x68] sm:$0xff] }
0x1bc8   :  { %v4954_v25 = vsub.f32 %v4925_v50, %v4949_v40  ;;  %v4965_v32 = vsel %vm225_vm1, %v4958_v48, 0.0  ;;  %v6472_v40 = vld [vmem:[%s10408_s11 + $0x60] sm:$0xff]  ;;  %v6471_v48 = vld [vmem:[%s10408_s11 + $0x58] sm:$0xff] }
0x1bc9   :  { %v4943_v33 = vpop.xlane.xlu0 %4942  ;;  %4966 = vadd.xlane.f32.xlu1 %v4965_v32  ;;  %v6469_v32 = vld [vmem:[%s10408_s11 + $0x48] sm:$0xff] }
0x1bca   :  { %v4950_v24 = vmul.f32 0.03125, %v4943_v33  ;;  %v4959_v35 = vmul.f32 %v4954_v25, %v4954_v25  ;;  %v6468_v33 = vld [vmem:[%s10408_s11 + $0x40] sm:$0xff] }
0x1bcc   :  { %v4955_v63 = vsub.f32 %v4926_v62, %v4950_v24  ;;  %v4968_v52 = vsel %vm225_vm1, %v4959_v35, 0.0  ;;  %v6452_v24 = vld [vmem:[%s10407_s10 + $0x1] ss:$0 sm:$0xff] }
0x1bcd   :  { %4969 = vadd.xlane.f32.xlu0 %v4968_v52 }
0x1bce   :  { %v4946_v26 = vpop.xlane.xlu1 %4945  ;;  %v4960_v45 = vmul.f32 %v4955_v63, %v4955_v63 }
0x1bcf   :  { %v4951_v34 = vmul.f32 0.03125, %v4946_v26 }
0x1bd0   :  { %v4971_v39 = vsel %vm225_vm1, %v4960_v45, 0.0 }
0x1bd1   :  { %v4956_v0 = vsub.f32 %v4927_v22, %v4951_v34  ;;  %4972 = vadd.xlane.f32.xlu1 %v4971_v39 }
0x1bd3   :  { %v4961_v43 = vmul.f32 %v4956_v0, %v4956_v0 }
0x1bd5   :  { %v4974_v29 = vsel %vm225_vm1, %v4961_v43, 0.0 }
0x1bd6   :  { %4975 = vadd.xlane.f32.xlu0 %v4974_v29 }
0x1c4e   :  { %v4964_v46 = vpop.xlane.xlu0 %4963 }
0x1c4f   :  { %v4977_v42 = vmul.f32 0.03125, %v4964_v46 }
0x1c51   :  { %v4982_v60 = vadd.f32 1e-05, %v4977_v42 }
0x1c52   :  { %v4967_v9 = vpop.xlane.xlu1 %4966 }
0x1c53   :  { %7874 = vrsqrt.f32 %v4982_v60  ;;  %v4978_v8 = vmul.f32 0.03125, %v4967_v9 }
0x1c55   :  { %v4983_v13 = vadd.f32 1e-05, %v4978_v8 }
0x1c56   :  { %v4970_v58 = vpop.xlane.xlu0 %4969 }
0x1c57   :  { %7876 = vrsqrt.f32 %v4983_v13  ;;  %v4979_v27 = vmul.f32 0.03125, %v4970_v58 }
0x1c59   :  { %v4984_v37 = vadd.f32 1e-05, %v4979_v27 }
0x1c5a   :  { %v4973_v28 = vpop.xlane.xlu1 %4972 }
0x1c5b   :  { %7878 = vrsqrt.f32 %v4984_v37  ;;  %v4980_v3 = vmul.f32 0.03125, %v4973_v28 }
0x1c5d   :  { %v4985_v16 = vadd.f32 1e-05, %v4980_v3 }
0x1c5f   :  { %7880 = vrsqrt.f32 %v4985_v16  ;;  %v4976_v41 = vpop.xlane.xlu0 %4975 }
0x1c60   :  { %v7875_v19 = vpop.eup %7874  ;;  %v4981_v54 = vmul.f32 0.03125, %v4976_v41 }
0x1c61   :  { %v4992_v10 = vmul.f32 %v7875_v19, %v4952_v6 }
0x1c62   :  { %v4986_v2 = vadd.f32 1e-05, %v4981_v54 }
0x1c63   :  { %v5003_v50 = vmul.f32 %v6445_v49, %v4992_v10 }
0x1c64   :  { %v7877_v31 = vpop.eup %7876  ;;  %7882 = vrsqrt.f32 %v4986_v2 }
0x1c65   :  { %v10075_v4 = vadd.f32 %v6446_v11, %v5003_v50  ;;  %v4993_v44 = vmul.f32 %v7877_v31, %v10044_v61  ;;  %v6475_v61 = vld [vmem:[%s10408_s11 + $0x78] sm:$0xff] }
0x1c66   :  { %7510 = vmatpush3.msra.mxu1 %v6475_v61 }
0x1c67   :  { %7495 = vmatmul.mubr.msk.f32.vlgmr.msra.gmra.mxu0 %vm225_vm1, %v10075_v4  ;;  %v5004_v38 = vmul.f32 %v6445_v49, %v4993_v44  ;;  %7511 = vmatprep.subr.mxu1 %v7953_v1 }
0x1c68   :  { %v7879_v62 = vpop.eup %7878  ;;  %7497 = vmatprep.mubr.msk.f32.mxu0 %vm7954_vm0, %v7953_v1  ;;  %7512 = vmatpush3.msra.mxu1 %v6474_v15 }
0x1c69   :  { %v4994_v21 = vmul.f32 %v7879_v62, %v4954_v25  ;;  %v10082_v30 = vadd.f32 %v6446_v11, %v5004_v38  ;;  %7513 = vmatprep.subr.mxu1 %v7953_v1  ;;  %v6470_v25 = vld [vmem:[%s10408_s11 + $0x50] sm:$0xff] }
0x1c6a   :  { %7514 = vmatpush3.msra.mxu1 %v6473_v20 }
0x1c6b   :  { %7498 = vmatmul.mubr.msk.f32.gmra.mxu0 %vm225_vm1, %v10082_v30  ;;  %v5005_v12 = vmul.f32 %v6445_v49, %v4994_v21  ;;  %7515 = vmatprep.subr.mxu1 %v7953_v1 }
0x1c6c   :  { %v7881_v51 = vpop.eup %7880  ;;  %7500 = vmatprep.mubr.msk.f32.mxu0 %vm7954_vm0, %v7953_v1  ;;  %7516 = vmatpush3.msra.mxu1 %v6472_v40 }
0x1c6d   :  { %v4995_v22 = vmul.f32 %v7881_v51, %v4955_v63  ;;  %v10088_v17 = vadd.f32 %v6446_v11, %v5005_v12  ;;  %7517 = vmatprep.subr.mxu1 %v7953_v1 }
0x1c6e   :  { %7518 = vmatpush3.msra.mxu1 %v6471_v48 }
0x1c6f   :  { %7501 = vmatmul.mubr.msk.f32.gmra.mxu0 %vm225_vm1, %v10088_v17  ;;  %v5006_v36 = vmul.f32 %v6445_v49, %v4995_v22  ;;  %7519 = vmatprep.subr.mxu1 %v7953_v1 }
0x1c70   :  { %7503 = vmatprep.mubr.msk.f32.mxu0 %vm7954_vm0, %v7953_v1  ;;  %7520 = vmatpush3.msra.mxu1 %v6470_v25 }
0x1c71   :  { %v7883_v53 = vpop.eup %7882  ;;  %v10094_v6 = vadd.f32 %v6446_v11, %v5006_v36  ;;  %7521 = vmatprep.subr.mxu1 %v7953_v1 }
0x1c72   :  { %v4996_v18 = vmul.f32 %v7883_v53, %v4956_v0  ;;  %7522 = vmatpush3.msra.mxu1 %v6469_v32 }
0x1c73   :  { %7504 = vmatmul.mubr.msk.f32.gmra.mxu0 %vm225_vm1, %v10094_v6  ;;  %7523 = vmatprep.subr.mxu1 %v7953_v1 }
0x1c74   :  { %7506 = vmatprep.mubr.msk.f32.mxu0 %vm7954_vm0, %v7953_v1  ;;  %v5007_v5 = vmul.f32 %v6445_v49, %v4996_v18  ;;  %7524 = vmatpush3.msra.mxu1 %v6468_v33 }
0x1c75   :  { %7564 = vmatprep.subr.mxu1 %v7953_v1 }
0x1c76   :  { %v10100_v23 = vadd.f32 %v6446_v11, %v5007_v5 }
0x1c78   :  { %7507 = vmatmul.mubr.msk.f32.gmra.mxu0 %vm225_vm1, %v10100_v23 }
0x1c79   :  { %7550 = vmatprep.mubr.msk.f32.mxu0 %vm7954_vm0, %v7953_v1 }
0x1d27   :  { %v5113_v35 = vpop.f32.mrf.mxu0 }
0x1d28   :  { %v10141_v63 = vadd.f32 %v6452_v24, %v5113_v35 }
0x1d29   :  { %v7496_v52 = vpop.f32.mrf.mxu0 }
0x1d2a   :  { %v10144_v26 = vmul.f32 0.70710677, %v10141_v63 }
0x1d2b   :  { %v5118_v45 = vpop.f32.mrf.mxu0 }
0x1d2c   :  { %v5142_v34 = vand.u32 2147483647, %v10144_v26  ;;  %v10147_v39 = vadd.f32 %v6452_v24, %v5118_v45  ;;  %vm5242_vm7 = vcmp.ge.f32.partialorder %v10144_v26, 0.0 }
0x1d2d   :  { %v7499_v0 = vpop.f32.mrf.mxu0 }
0x1d2e   :  { %v5147_v43 = vmul.f32 0.3275911, %v5142_v34  ;;  %v10150_v29 = vmul.f32 0.70710677, %v10147_v39  ;;  %v5212_v37 = vsub.f32 0.0, %v5142_v34 }
0x1d2f   :  { %v5123_v47 = vpop.f32.mrf.mxu0 }
0x1d30   :  { %v5152_v56 = vadd.f32 1.0, %v5147_v43  ;;  %v5143_v57 = vand.u32 2147483647, %v10150_v29  ;;  %v10153_v55 = vadd.f32 %v6452_v24, %v5123_v47  ;;  %v5217_v54 = vmul.f32 %v5212_v37, %v5142_v34 }
0x1d31   :  { %v7502_v46 = vpop.f32.mrf.mxu0  ;;  %vm5243_vm8 = vcmp.ge.f32.partialorder %v10150_v29, 0.0 }
0x1d32   :  { %7884 = vrcp.f32 %v5152_v56  ;;  %v5148_v42 = vmul.f32 0.3275911, %v5143_v57  ;;  %v10156_v60 = vmul.f32 0.70710677, %v10153_v55  ;;  %v5213_v50 = vsub.f32 0.0, %v5143_v57 }
0x1d33   :  { %v5128_v9 = vpop.f32.mrf.mxu0  ;;  %v5222_v38 = vmul.f32 1.442695, %v5217_v54 }
0x1d34   :  { %v5153_v8 = vadd.f32 1.0, %v5148_v42  ;;  %v10158_v13 = vadd.f32 %v6452_v24, %v5128_v9  ;;  %v5144_v58 = vand.u32 2147483647, %v10156_v60  ;;  %v5218_v51 = vmul.f32 %v5213_v50, %v5143_v57 }
0x1d35   :  { %v7505_v27 = vpop.f32.mrf.mxu0  ;;  %vm5244_vm11 = vcmp.ge.f32.partialorder %v10156_v60, 0.0 }
0x1d36   :  { %7886 = vrcp.f32 %v5153_v8  ;;  %v10162_v28 = vmul.f32 0.70710677, %v10158_v13  ;;  %v5149_v3 = vmul.f32 0.3275911, %v5144_v58  ;;  %v5214_v22 = vsub.f32 0.0, %v5144_v58 }
0x1d37   :  { %v5224_v15 = vmul.f32 1.442695, %v5218_v51  ;;  %v5260_v60 = vmul.f32 0.5, %v10158_v13 }
0x1d38   :  { %v5145_v16 = vand.u32 2147483647, %v10162_v28  ;;  %v5133_v41 = vpop.f32.mrf.mxu0  ;;  %v5154_v19 = vadd.f32 1.0, %v5149_v3  ;;  %v5219_v40 = vmul.f32 %v5214_v22, %v5144_v58  ;;  %vm5245_vm12 = vcmp.ge.f32.partialorder %v10162_v28, 0.0 }
0x1d39   :  { %v10165_v49 = vadd.f32 %v6452_v24, %v5133_v41 }
0x1d3a   :  { %v5150_v10 = vmul.f32 0.3275911, %v5145_v16  ;;  %v7508_v11 = vpop.f32.mrf.mxu0  ;;  %7888 = vrcp.f32 %v5154_v19  ;;  %v5215_v20 = vsub.f32 0.0, %v5145_v16  ;;  %v5226_v45 = vmul.f32 1.442695, %v5219_v40 }
0x1d3b   :  { %v10168_v2 = vmul.f32 0.70710677, %v10165_v49 }
0x1d3c   :  { %v5155_v31 = vadd.f32 1.0, %v5150_v10  ;;  %v5220_v35 = vmul.f32 %v5215_v20, %v5145_v16 }
0x1d3d   :  { %v5146_v44 = vand.u32 2147483647, %v10168_v2  ;;  %vm5246_vm13 = vcmp.ge.f32.partialorder %v10168_v2, 0.0 }
0x1d3e   :  { %7890 = vrcp.f32 %v5155_v31  ;;  %v5228_v9 = vmul.f32 1.442695, %v5220_v35 }
0x1d3f   :  { %v7885_v62 = vpop.eup %7884  ;;  %v5151_v21 = vmul.f32 0.3275911, %v5146_v44  ;;  %7892 = vpow2.f32 %v5222_v38  ;;  %v5216_v34 = vsub.f32 0.0, %v5146_v44 }
0x1d40   :  { %v5167_v12 = vmul.f32 1.0614054, %v7885_v62 }
0x1d41   :  { %v5156_v36 = vadd.f32 1.0, %v5151_v21  ;;  %v5221_v58 = vmul.f32 %v5216_v34, %v5146_v44 }
0x1d42   :  { %v6458_v53 = vadd.f32 -1.4531521, %v5167_v12 }
0x1d43   :  { %v7887_v18 = vpop.eup %7886  ;;  %7894 = vrcp.f32 %v5156_v36  ;;  %v5230_v38 = vmul.f32 1.442695, %v5221_v58 }
0x1d44   :  { %v5177_v5 = vmul.f32 %v7885_v62, %v6458_v53  ;;  %v5168_v61 = vmul.f32 1.0614054, %v7887_v18  ;;  %7896 = vpow2.f32 %v5224_v15 }
0x1d45   :  { %7898 = vpow2.f32 %v5226_v45  ;;  %v5257_v45 = vmul.f32 0.5, %v10141_v63 }
0x1d46   :  { %v5182_v48 = vadd.f32 1.4214138, %v5177_v5  ;;  %v6459_v25 = vadd.f32 -1.4531521, %v5168_v61  ;;  %7900 = vpow2.f32 %v5228_v9 }
0x1d47   :  { %v7889_v32 = vpop.eup %7888  ;;  %7902 = vpow2.f32 %v5230_v38 }
0x1d48   :  { %v5187_v33 = vmul.f32 %v7885_v62, %v5182_v48  ;;  %v5178_v24 = vmul.f32 %v7887_v18, %v6459_v25  ;;  %v5169_v52 = vmul.f32 1.0614054, %v7889_v32 }
0x1d4a   :  { %v6463_v0 = vadd.f32 -0.28449672, %v5187_v33  ;;  %v5183_v43 = vadd.f32 1.4214138, %v5178_v24  ;;  %v6460_v56 = vadd.f32 -1.4531521, %v5169_v52 }
0x1d4b   :  { %v7891_v47 = vpop.eup %7890 }
0x1d4c   :  { %v5197_v57 = vmul.f32 %v7885_v62, %v6463_v0  ;;  %v5188_v46 = vmul.f32 %v7887_v18, %v5183_v43  ;;  %v5170_v42 = vmul.f32 1.0614054, %v7891_v47  ;;  %v5179_v8 = vmul.f32 %v7889_v32, %v6460_v56  ;;  %v7893_v41 = vpop.eup %7892 }
0x1d4e   :  { %v5202_v27 = vadd.f32 0.2548296, %v5197_v57  ;;  %v6464_v37 = vadd.f32 -0.28449672, %v5188_v46  ;;  %v6461_v3 = vadd.f32 -1.4531521, %v5170_v42 }
0x1d4f   :  { %v5184_v19 = vadd.f32 1.4214138, %v5179_v8 }
0x1d50   :  { %v7895_v16 = vpop.eup %7894  ;;  %v5207_v54 = vmul.f32 %v7885_v62, %v5202_v27  ;;  %v5198_v10 = vmul.f32 %v7887_v18, %v6464_v37  ;;  %v5180_v11 = vmul.f32 %v7891_v47, %v6461_v3  ;;  %v5258_v27 = vmul.f32 0.5, %v10147_v39 }
0x1d51   :  { %v5189_v50 = vmul.f32 %v7889_v32, %v5184_v19  ;;  %v5171_v31 = vmul.f32 1.0614054, %v7895_v16  ;;  %v7897_v61 = vpop.eup %7896 }
0x1d52   :  { %v5232_v21 = vmul.f32 %v7893_v41, %v5207_v54  ;;  %v5203_v12 = vadd.f32 0.2548296, %v5198_v10  ;;  %v5185_v51 = vadd.f32 1.4214138, %v5180_v11  ;;  %v7899_v43 = vpop.eup %7898  ;;  %v5259_v11 = vmul.f32 0.5, %v10153_v55 }
0x1d53   :  { %v6465_v22 = vadd.f32 -0.28449672, %v5189_v50  ;;  %v6462_v36 = vadd.f32 -1.4531521, %v5171_v31  ;;  %v7901_v58 = vpop.eup %7900 }
0x1d54   :  { %v5237_v53 = vsub.f32 1.0, %v5232_v21  ;;  %v5208_v44 = vmul.f32 %v7887_v18, %v5203_v12  ;;  %v5190_v5 = vmul.f32 %v7891_v47, %v5185_v51  ;;  %v7903_v39 = vpop.eup %7902 }
0x1d55   :  { %v5199_v15 = vmul.f32 %v7889_v32, %v6465_v22  ;;  %v5181_v20 = vmul.f32 %v7895_v16, %v6462_v36 }
0x1d56   :  { %v5247_v40 = vsub.f32 0.0, %v5237_v53  ;;  %v5233_v62 = vmul.f32 %v7897_v61, %v5208_v44  ;;  %v6466_v48 = vadd.f32 -0.28449672, %v5190_v5 }
0x1d57   :  { %v5204_v25 = vadd.f32 0.2548296, %v5199_v15  ;;  %v5186_v33 = vadd.f32 1.4214138, %v5181_v20 }
0x1d58   :  { %v5252_v24 = vsel %vm5242_vm7, %v5237_v53, %v5247_v40  ;;  %v5238_v35 = vsub.f32 1.0, %v5233_v62  ;;  %v5200_v52 = vmul.f32 %v7891_v47, %v6466_v48  ;;  %v5261_v53 = vmul.f32 0.5, %v10165_v49  ;;  %v6477_v49 = vld [vmem:[%s10409_s12 + $0x1] ss:$0 sm:$0xff] }
0x1d59   :  { %v5262_v34 = vadd.f32 1.0, %v5252_v24  ;;  %v5209_v0 = vmul.f32 %v7889_v32, %v5204_v25  ;;  %v5191_v18 = vmul.f32 %v7895_v16, %v5186_v33 }
0x1d5a   :  { %v5248_v56 = vsub.f32 0.0, %v5238_v35  ;;  %v5205_v57 = vadd.f32 0.2548296, %v5200_v52 }
0x1d5b   :  { %v5267_v46 = vmul.f32 %v5262_v34, %v5257_v45  ;;  %v5234_v42 = vmul.f32 %v7899_v43, %v5209_v0  ;;  %v6467_v9 = vadd.f32 -0.28449672, %v5191_v18 }
0x1d5c   :  { %v5253_v8 = vsel %vm5243_vm8, %v5238_v35, %v5248_v56  ;;  %v5210_v26 = vmul.f32 %v7891_v47, %v5205_v57 }
0x1d5d   :  { %v5263_v37 = vadd.f32 1.0, %v5253_v8  ;;  %v5239_v3 = vsub.f32 1.0, %v5234_v42  ;;  %v5201_v41 = vmul.f32 %v7895_v16, %v6467_v9  ;;  %7526 = vmatmul.mubr.msk.f32.vlgmr.msra.gmra.mxu1 %vm10538_vm9, %v5267_v46 }
0x1d5e   :  { %v5235_v63 = vmul.f32 %v7901_v58, %v5210_v26  ;;  %7528 = vmatprep.mubr.msk.f32.mxu1 %vm7954_vm0, %v7953_v1 }
0x1d5f   :  { %v5268_v32 = vmul.f32 %v5263_v37, %v5258_v27  ;;  %v5249_v19 = vsub.f32 0.0, %v5239_v3  ;;  %v5206_v54 = vadd.f32 0.2548296, %v5201_v41 }
0x1d60   :  { %v5240_v29 = vsub.f32 1.0, %v5235_v63 }
0x1d61   :  { %v5254_v10 = vsel %vm5244_vm11, %v5239_v3, %v5249_v19  ;;  %v5211_v47 = vmul.f32 %v7895_v16, %v5206_v54  ;;  %7529 = vmatmul.mubr.msk.f32.gmra.mxu1 %vm10539_vm2, %v5268_v32 }
0x1d62   :  { %v5264_v50 = vadd.f32 1.0, %v5254_v10  ;;  %v5250_v31 = vsub.f32 0.0, %v5240_v29  ;;  %7531 = vmatprep.mubr.msk.f32.mxu1 %vm7954_vm0, %v7953_v1 }
0x1d63   :  { %v5236_v38 = vmul.f32 %v7903_v39, %v5211_v47 }
0x1d64   :  { %v5269_v21 = vmul.f32 %v5264_v50, %v5259_v11  ;;  %v5255_v12 = vsel %vm5245_vm12, %v5240_v29, %v5250_v31 }
0x1d65   :  { %v5265_v51 = vadd.f32 1.0, %v5255_v12  ;;  %v5241_v22 = vsub.f32 1.0, %v5236_v38 }
0x1d66   :  { %7532 = vmatmul.mubr.msk.f32.gmra.mxu1 %vm10540_vm6, %v5269_v21 }
0x1d67   :  { %v5270_v16 = vmul.f32 %v5265_v51, %v5260_v60  ;;  %v5251_v36 = vsub.f32 0.0, %v5241_v22  ;;  %7534 = vmatprep.mubr.msk.f32.mxu1 %vm7954_vm0, %v7953_v1 }
0x1d69   :  { %v5256_v55 = vsel %vm5246_vm13, %v5241_v22, %v5251_v36 }
0x1d6a   :  { %v5266_v28 = vadd.f32 1.0, %v5256_v55  ;;  %7535 = vmatmul.mubr.msk.f32.gmra.mxu1 %vm10541_vm14, %v5270_v16 }
0x1d6b   :  { %7537 = vmatprep.mubr.msk.f32.mxu1 %vm7954_vm0, %v7953_v1 }
0x1d6c   :  { %v5271_v13 = vmul.f32 %v5266_v28, %v5261_v53 }
0x1d6e   :  { %7538 = vmatmul.mubr.msk.f32.gmra.mxu1 %vm10542_vm4, %v5271_v13 }
0x1d6f   :  { %7574 = vmatprep.mubr.msk.f32.mxu1 %vm7954_vm0, %v7953_v1 }
0x1e1d   :  { %v5370_v44 = vpop.f32.mrf.mxu1 }
0x1e1e   :  { %v5371_v43 = vadd.f32 %v6477_v49, %v5370_v44 }
0x1e1f   :  { %v7527_v5 = vpop.f32.mrf.mxu1 }
0x1e21   :  { %v5375_v61 = vpop.f32.mrf.mxu1 }
0x1e22   :  { %v5376_v62 = vadd.f32 %v6477_v49, %v5375_v61 }
0x1e23   :  { %v7530_v15 = vpop.f32.mrf.mxu1 }
0x1e24   :  { %v5395_v35 = vadd.f32 %v5376_v62, %v10082_v30 }
0x1e26   :  { %v5380_v2 = vpop.f32.mrf.mxu1  ;;  %v5406_v57 = vsel %vm225_vm1, %v5395_v35, 0.0 }
0x1e27   :  { %v5381_v52 = vadd.f32 %v6477_v49, %v5380_v2 }
0x1e28   :  { %v7533_v20 = vpop.f32.mrf.mxu1 }
0x1e29   :  { %v5396_v56 = vadd.f32 %v5381_v52, %v10088_v17 }
0x1e2a   :  { %v5385_v40 = vpop.f32.mrf.mxu1 }
0x1e2b   :  { %v5386_v48 = vadd.f32 %v6477_v49, %v5385_v40  ;;  %v5409_v30 = vsel %vm225_vm1, %v5396_v56, 0.0  ;;  %v6485_v40 = vld [vmem:[%s10410_s13 + $0x1] ss:$0 sm:$0xff] }
0x1e2c   :  { %v7536_v25 = vpop.f32.mrf.mxu1 }
0x1e2d   :  { %v5397_v33 = vadd.f32 %v5386_v48, %v10094_v6  ;;  %v5394_v6 = vadd.f32 %v5371_v43, %v10075_v4  ;;  %v6486_v48 = vld [vmem:[%s10411_s14 + $0x1] ss:$0 sm:$0xff] }
0x1e2e   :  { %v5390_v24 = vpop.f32.mrf.mxu1 }
0x1e2f   :  { %v5391_v45 = vadd.f32 %v6477_v49, %v5390_v24  ;;  %v5412_v34 = vsel %vm225_vm1, %v5397_v33, 0.0  ;;  %v5403_v42 = vsel %vm225_vm1, %v5394_v6, 0.0 }
0x1e30   :  { %5413 = vadd.xlane.f32.xlu0 %v5412_v34  ;;  %v7539_v0 = vpop.f32.mrf.mxu1 }
0x1e31   :  { %v5398_v18 = vadd.f32 %v5391_v45, %v10100_v23 }
0x1e33   :  { %v5415_v46 = vsel %vm225_vm1, %v5398_v18, 0.0 }
0x1e34   :  { %5407 = vadd.xlane.f32.xlu0 %v5406_v57  ;;  %5416 = vadd.xlane.f32.xlu1 %v5415_v46 }
0x1e38   :  { %5410 = vadd.xlane.f32.xlu1 %v5409_v30 }
0x1e3c   :  { %5404 = vadd.xlane.f32.xlu1 %v5403_v42 }
0x1eb9   :  { %v5414_v9 = vpop.xlane.xlu0 %5413 }
0x1eba   :  { %v5421_v8 = vmul.f32 0.03125, %v5414_v9 }
0x1ebc   :  { %v5426_v23 = vsub.f32 %v5397_v33, %v5421_v8 }
0x1ebd   :  { %v5408_v26 = vpop.xlane.xlu0 %5407  ;;  %v5417_v58 = vpop.xlane.xlu1 %5416 }
0x1ebe   :  { %v5419_v17 = vmul.f32 0.03125, %v5408_v26  ;;  %v5422_v27 = vmul.f32 0.03125, %v5417_v58  ;;  %v5431_v37 = vmul.f32 %v5426_v23, %v5426_v23 }
0x1ec0   :  { %v5424_v3 = vsub.f32 %v5395_v35, %v5419_v17  ;;  %v5427_v41 = vsub.f32 %v5398_v18, %v5422_v27  ;;  %v5442_v63 = vsel %vm225_vm1, %v5431_v37, 0.0 }
0x1ec1   :  { %5443 = vadd.xlane.f32.xlu1 %v5442_v63  ;;  %v5411_v4 = vpop.xlane.xlu1 %5410 }
0x1ec2   :  { %v5420_v32 = vmul.f32 0.03125, %v5411_v4  ;;  %v5429_v19 = vmul.f32 %v5424_v3, %v5424_v3  ;;  %v5432_v54 = vmul.f32 %v5427_v41, %v5427_v41 }
0x1ec4   :  { %v5425_v29 = vsub.f32 %v5396_v56, %v5420_v32  ;;  %v5436_v10 = vsel %vm225_vm1, %v5429_v19, 0.0  ;;  %v5445_v47 = vsel %vm225_vm1, %v5432_v54, 0.0 }
0x1ec5   :  { %5437 = vadd.xlane.f32.xlu1 %v5436_v10  ;;  %5446 = vadd.xlane.f32.xlu0 %v5445_v47  ;;  %v5405_v39 = vpop.xlane.xlu1 %5404 }
0x1ec6   :  { %v5418_v11 = vmul.f32 0.03125, %v5405_v39  ;;  %v5430_v50 = vmul.f32 %v5425_v29, %v5425_v29 }
0x1ec8   :  { %v5423_v31 = vsub.f32 %v5394_v6, %v5418_v11  ;;  %v5439_v38 = vsel %vm225_vm1, %v5430_v50, 0.0 }
0x1ec9   :  { %5440 = vadd.xlane.f32.xlu0 %v5439_v38 }
0x1eca   :  { %v5428_v21 = vmul.f32 %v5423_v31, %v5423_v31 }
0x1ecc   :  { %v5433_v12 = vsel %vm225_vm1, %v5428_v21, 0.0 }
0x1ecd   :  { %5434 = vadd.xlane.f32.xlu0 %v5433_v12 }
0x1f4a   :  { %v5444_v60 = vpop.xlane.xlu1 %5443 }
0x1f4b   :  { %v5451_v51 = vmul.f32 0.03125, %v5444_v60 }
0x1f4d   :  { %v5456_v22 = vadd.f32 1e-05, %v5451_v51 }
0x1f4e   :  { %v5438_v16 = vpop.xlane.xlu1 %5437  ;;  %v5447_v36 = vpop.xlane.xlu0 %5446 }
0x1f4f   :  { %7904 = vrsqrt.f32 %v5456_v22  ;;  %v5449_v55 = vmul.f32 0.03125, %v5438_v16  ;;  %v5452_v53 = vmul.f32 0.03125, %v5447_v36 }
0x1f51   :  { %v5454_v28 = vadd.f32 1e-05, %v5449_v55  ;;  %v5457_v13 = vadd.f32 1e-05, %v5452_v53 }
0x1f52   :  { %v5441_v44 = vpop.xlane.xlu0 %5440 }
0x1f53   :  { %7906 = vrsqrt.f32 %v5454_v28  ;;  %v5450_v5 = vmul.f32 0.03125, %v5441_v44 }
0x1f54   :  { %7908 = vrsqrt.f32 %v5457_v13 }
0x1f55   :  { %v5455_v61 = vadd.f32 1e-05, %v5450_v5 }
0x1f56   :  { %v5435_v15 = vpop.xlane.xlu0 %5434 }
0x1f57   :  { %7910 = vrsqrt.f32 %v5455_v61  ;;  %v5448_v2 = vmul.f32 0.03125, %v5435_v15 }
0x1f59   :  { %v5453_v20 = vadd.f32 1e-05, %v5448_v2 }
0x1f5b   :  { %7912 = vrsqrt.f32 %v5453_v20 }
0x1f5c   :  { %v7905_v49 = vpop.eup %7904 }
0x1f5d   :  { %v5466_v62 = vmul.f32 %v7905_v49, %v5426_v23 }
0x1f5f   :  { %v5477_v25 = vmul.f32 %v6485_v40, %v5466_v62 }
0x1f60   :  { %v7907_v33 = vpop.eup %7906 }
0x1f61   :  { %v7909_v24 = vpop.eup %7908  ;;  %v5488_v35 = vadd.f32 %v6486_v48, %v5477_v25  ;;  %v5464_v52 = vmul.f32 %v7907_v33, %v5424_v3 }
0x1f62   :  { %v5467_v45 = vmul.f32 %v7909_v24, %v5427_v41 }
0x1f63   :  { %v5499_v34 = vsel %vm225_vm1, %v5488_v35, 0.0  ;;  %v5475_v0 = vmul.f32 %v6485_v40, %v5464_v52 }
0x1f64   :  { %v7911_v18 = vpop.eup %7910  ;;  %5500 = vadd.xlane.f32.xlu0 %v5499_v34  ;;  %v5478_v43 = vmul.f32 %v6485_v40, %v5467_v45 }
0x1f65   :  { %v5486_v56 = vadd.f32 %v6486_v48, %v5475_v0  ;;  %v5465_v57 = vmul.f32 %v7911_v18, %v5425_v29  ;;  %v10232_v18 = vadd.s32 1, %v2348_v59 }
0x1f66   :  { %v5489_v46 = vadd.f32 %v6486_v48, %v5478_v43  ;;  %v7929_v43 = vld [vmem:[%s10416_s19] ss:$0 sm:$0xff] }
0x1f67   :  { %v5493_v6 = vsel %vm225_vm1, %v5486_v56, 0.0  ;;  %v5476_v30 = vmul.f32 %v6485_v40, %v5465_v57  ;;  %vm5567_vm10 = vcmp.eq.s32.totalorder %v8370_v7, %v10232_v18 }
0x1f68   :  { %v7913_v42 = vpop.eup %7912  ;;  %5494 = vadd.xlane.f32.xlu0 %v5493_v6  ;;  %v5502_v9 = vsel %vm225_vm1, %v5489_v46, 0.0 }
0x1f69   :  { %5503 = vadd.xlane.f32.xlu1 %v5502_v9  ;;  %v5487_v8 = vadd.f32 %v6486_v48, %v5476_v30  ;;  %v5463_v23 = vmul.f32 %v7913_v42, %v5423_v31  ;;  %v7930_v30 = vld [vmem:[%s10417_s20] ss:$0 sm:$0xff] }
0x1f6b   :  { %v5496_v26 = vsel %vm225_vm1, %v5487_v8, 0.0  ;;  %v5474_v58 = vmul.f32 %v6485_v40, %v5463_v23  ;;  %v5727_v23 = vadd.s32 1, %v10232_v18 }
0x1f6d   :  { %5497 = vadd.xlane.f32.xlu1 %v5496_v26  ;;  %v5485_v17 = vadd.f32 %v6486_v48, %v5474_v58  ;;  %vm5728_vm15 = vcmp.eq.s32.totalorder %v8370_v7, %v5727_v23 }
0x1f6f   :  { %v5490_v27 = vsel %vm225_vm1, %v5485_v17, 0.0 }
0x1f71   :  { %5491 = vadd.xlane.f32.xlu1 %v5490_v27 }
0x1fed   :  { %v5501_v37 = vpop.xlane.xlu0 %5500 }
0x1fee   :  { %v5508_v3 = vmul.f32 0.03125, %v5501_v37 }
0x1ff0   :  { %v5513_v41 = vsub.f32 %v5488_v35, %v5508_v3 }
0x1ff1   :  { %v5495_v63 = vpop.xlane.xlu0 %5494 }
0x1ff2   :  { %v5506_v4 = vmul.f32 0.03125, %v5495_v63  ;;  %v5504_v32 = vpop.xlane.xlu1 %5503  ;;  %v5518_v19 = vmul.f32 %v5513_v41, %v5513_v41  ;;  %v6491_v63 = vsel %vm5728_vm15, 1.0, %v7953_v1 }
0x1ff3   :  { %v5509_v54 = vmul.f32 0.03125, %v5504_v32  ;;  %v5883_v32 = vadd.s32 2, %v10232_v18 }
0x1ff4   :  { %v5511_v29 = vsub.f32 %v5486_v56, %v5506_v4  ;;  %v5529_v10 = vsel %vm225_vm1, %v5518_v19, 0.0  ;;  %v5646_v4 = vld [vmem:[%s10418_s21 + $0x18] sm:$0xff]  ;;  %v5645_v19 = vld [vmem:[%s10418_s21 + $0x10] sm:$0xff] }
0x1ff5   :  { %v5514_v47 = vsub.f32 %v5489_v46, %v5509_v54  ;;  %5530 = vadd.xlane.f32.xlu1 %v5529_v10  ;;  %v5644_v54 = vld [vmem:[%s10418_s21 + $0x8] sm:$0xff]  ;;  %vm5884_vm5 = vcmp.eq.s32.totalorder %v8370_v7, %v5883_v32 }
0x1ff6   :  { %v5498_v39 = vpop.xlane.xlu1 %5497  ;;  %v5516_v11 = vmul.f32 %v5511_v29, %v5511_v29  ;;  %v6498_v10 = vsel %vm5884_vm5, 1.0, %v7953_v1 }
0x1ff7   :  { %v5507_v50 = vmul.f32 0.03125, %v5498_v39  ;;  %v5519_v31 = vmul.f32 %v5514_v47, %v5514_v47 }
0x1ff8   :  { %v5523_v38 = vsel %vm225_vm1, %v5516_v11, 0.0  ;;  %v6495_v11 = vld [vmem:[%s10418_s21 + $0x30] sm:$0xff] }
0x1ff9   :  { %v5512_v21 = vsub.f32 %v5487_v8, %v5507_v50  ;;  %5524 = vadd.xlane.f32.xlu1 %v5523_v38  ;;  %v5532_v12 = vsel %vm225_vm1, %v5519_v31, 0.0  ;;  %v6494_v38 = vld [vmem:[%s10418_s21 + $0x28] sm:$0xff] }
0x1ffa   :  { %5533 = vadd.xlane.f32.xlu0 %v5532_v12  ;;  %v5492_v60 = vpop.xlane.xlu1 %5491  ;;  %v6493_v12 = vld [vmem:[%s10418_s21 + $0x20] sm:$0xff] }
0x1ffb   :  { %v5505_v51 = vmul.f32 0.03125, %v5492_v60  ;;  %v5517_v22 = vmul.f32 %v5512_v21, %v5512_v21  ;;  %v6503_v60 = vld [vmem:[%s10418_s21 + $0x58] sm:$0xff] }
0x1ffd   :  { %v5510_v16 = vsub.f32 %v5485_v17, %v5505_v51  ;;  %v5526_v36 = vsel %vm225_vm1, %v5517_v22, 0.0  ;;  %v6502_v51 = vld [vmem:[%s10418_s21 + $0x50] sm:$0xff]  ;;  %v6501_v22 = vld [vmem:[%s10418_s21 + $0x48] sm:$0xff] }
0x1ffe   :  { %5527 = vadd.xlane.f32.xlu0 %v5526_v36  ;;  %v6500_v36 = vld [vmem:[%s10418_s21 + $0x40] sm:$0xff] }
0x1fff   :  { %v5515_v55 = vmul.f32 %v5510_v16, %v5510_v16 }
0x2001   :  { %v5520_v53 = vsel %vm225_vm1, %v5515_v55, 0.0 }
0x2002   :  { %5521 = vadd.xlane.f32.xlu0 %v5520_v53  ;;  %v6039_v53 = vadd.s32 3, %v10232_v18 }
0x2004   :  { %vm6040_vm7 = vcmp.eq.s32.totalorder %v8370_v7, %v6039_v53  ;;  %v6509_v7 = vld [vmem:[%s10418_s21 + $0x70] sm:$0xff] }
0x207e   :  { %v5531_v28 = vpop.xlane.xlu1 %5530 }
0x207f   :  { %v5538_v13 = vmul.f32 0.03125, %v5531_v28  ;;  %v6505_v28 = vsel %vm6040_vm7, 1.0, %v7953_v1 }
0x2081   :  { %v5543_v44 = vadd.f32 1e-05, %v5538_v13  ;;  %v6510_v13 = vld [vmem:[%s10418_s21 + $0x78] sm:$0xff] }
0x2082   :  { %v5525_v5 = vpop.xlane.xlu1 %5524 }
0x2083   :  { %v5536_v61 = vmul.f32 0.03125, %v5525_v5  ;;  %v5534_v15 = vpop.xlane.xlu0 %5533  ;;  %7914 = vrsqrt.f32 %v5543_v44  ;;  %v6508_v44 = vld [vmem:[%s10418_s21 + $0x68] sm:$0xff]  ;;  %v6507_v5 = vld [vmem:[%s10418_s21 + $0x60] sm:$0xff] }
0x2084   :  { %v5539_v2 = vmul.f32 0.03125, %v5534_v15  ;;  %v6202_v15 = vld [vmem:[%s10544_s1] sm:$0xff] }
0x2085   :  { %v5541_v20 = vadd.f32 1e-05, %v5536_v61  ;;  %v6195_v61 = vld [vmem:[%s10543_s7] sm:$0xff]  ;;  %6205 = vperm.xlu0 %7655, %v6202_v15  }
0x2086   :  { %v5544_v49 = vadd.f32 1e-05, %v5539_v2  ;;  %6198 = vperm.xlu1 %7654, %v6195_v61  }
0x2087   :  { %7916 = vrsqrt.f32 %v5541_v20  ;;  %v5528_v40 = vpop.xlane.xlu0 %5527 }
0x2088   :  { %7918 = vrsqrt.f32 %v5544_v49  ;;  %v5537_v62 = vmul.f32 0.03125, %v5528_v40 }
0x208a   :  { %v5542_v48 = vadd.f32 1e-05, %v5537_v62 }
0x208b   :  { %v5522_v25 = vpop.xlane.xlu0 %5521 }
0x208c   :  { %7920 = vrsqrt.f32 %v5542_v48  ;;  %v5535_v33 = vmul.f32 0.03125, %v5522_v25 }
0x208e   :  { %v5540_v24 = vadd.f32 1e-05, %v5535_v33 }
0x2090   :  { %7922 = vrsqrt.f32 %v5540_v24  ;;  %v7915_v35 = vpop.eup %7914 }
0x2091   :  { %v5553_v45 = vmul.f32 %v7915_v35, %v5513_v41  ;;  %v6487_v41 = vsel %vm5567_vm10, 1.0, %v7953_v1 }
0x2093   :  { %v5558_v57 = vmul.f32 %v7929_v43, %v5553_v45 }
0x2094   :  { %v7917_v52 = vpop.eup %7916 }
0x2095   :  { %v7919_v34 = vpop.eup %7918  ;;  %v5551_v46 = vmul.f32 %v7917_v52, %v5511_v29  ;;  %v10244_v14 = vadd.f32 %v7930_v30, %v5558_v57  ;;  %v5643_v29 = vld [vmem:[%s10418_s21] sm:$0xff] }
0x2096   :  { %v5554_v0 = vmul.f32 %v7919_v34, %v5514_v47  ;;  %v6496_v47 = vld [vmem:[%s10418_s21 + $0x38] sm:$0xff]  ;;  %s7970_s21 = smov [#allocation2]  }
0x2097   :  { %v5556_v8 = vmul.f32 %v7929_v43, %v5551_v46  ;;  %s6216_s2 = sshll.u32 %s7970_s21, 4  ;;  %s6217_s2 = int_to_ptr.vmem [resolvable:$true] %s6216_s2 }
0x2098   :  { %v5559_v56 = vmul.f32 %v7929_v43, %v5554_v0  ;;  %p7936_p1 = scmp.lt.s32.totalorder %s6217_s2, %s6217_s2 }
0x2099   :  { %v7921_v6 = vpop.eup %7920  ;;  %v10259_v27 = vadd.f32 %v7930_v30, %v5556_v8 }
0x209a   :  { %v10240_v42 = vadd.f32 %v7930_v30, %v5559_v56  ;;  %v5552_v9 = vmul.f32 %v7921_v6, %v5512_v21 }
0x209c   :  { %7541 = vmatpush3.msra.mxu0 %v10240_v42  ;;  %7565 = vmatpush3.msra.mxu1 %v10240_v42  ;;  %v5557_v59 = vmul.f32 %v7929_v43, %v5552_v9 }
0x209d   :  { %v7923_v26 = vpop.eup %7922  ;;  %7542 = vmatprep.subr.mxu0 %v7953_v1  ;;  %7566 = vmatprep.subr.mxu1 %v7953_v1 }
0x209e   :  { %7543 = vmatpush3.msra.mxu0 %v10244_v14  ;;  %7567 = vmatpush3.msra.mxu1 %v10244_v14  ;;  %v10251_v58 = vadd.f32 %v7930_v30, %v5557_v59  ;;  %v5550_v17 = vmul.f32 %v7923_v26, %v5510_v16 }
0x209f   :  { %7544 = vmatprep.subr.mxu0 %v7953_v1  ;;  %7568 = vmatprep.subr.mxu1 %v7953_v1 }
0x20a0   :  { %7545 = vmatpush3.msra.mxu0 %v10251_v58  ;;  %7569 = vmatpush3.msra.mxu1 %v10251_v58  ;;  %v5555_v37 = vmul.f32 %v7929_v43, %v5550_v17 }
0x20a1   :  { %7546 = vmatprep.subr.mxu0 %v7953_v1  ;;  %7570 = vmatprep.subr.mxu1 %v7953_v1 }
0x20a2   :  { %7547 = vmatpush3.msra.mxu0 %v10259_v27  ;;  %7571 = vmatpush3.msra.mxu1 %v10259_v27  ;;  %v10266_v3 = vadd.f32 %v7930_v30, %v5555_v37 }
0x20a3   :  { %7548 = vmatprep.subr.mxu0 %v7953_v1  ;;  %7572 = vmatprep.subr.mxu1 %v7953_v1 }
0x20a4   :  { %7549 = vmatpush3.msra.mxu0 %v10266_v3  ;;  %7573 = vmatpush3.msra.mxu1 %v10266_v3 }
0x20a5   :  { %7551 = vmatmul.mubr.msk.f32.vlgmr.msra.gmra.mxu0 %vm467_vm3, %v6487_v41  ;;  %7588 = vmatprep.subr.mxu1 %v7953_v1 }
0x20a6   :  { %7575 = vmatmul.mubr.msk.f32.vlgmr.msra.gmra.mxu1 %vm467_vm3, %v6491_v63  ;;  %7553 = vmatprep.subr.mxu0 %v7953_v1 }
0x20a7   :  { %7589 = vmatpush3.msra.mxu1 %v10240_v42  ;;  %7598 = vmatprep.mubr.msk.f32.mxu1 %vm7954_vm0, %v7953_v1 }
0x20a8   :  { %7590 = vmatprep.subr.mxu1 %v7953_v1  ;;  %7554 = vmatpush3.msra.mxu0 %v5646_v4 }
0x20a9   :  { %7591 = vmatpush3.msra.mxu1 %v10244_v14  ;;  %7555 = vmatprep.subr.mxu0 %v7953_v1 }
0x20aa   :  { %7592 = vmatprep.subr.mxu1 %v7953_v1  ;;  %7556 = vmatpush3.msra.mxu0 %v5645_v19 }
0x20ab   :  { %7593 = vmatpush3.msra.mxu1 %v10251_v58  ;;  %7557 = vmatprep.subr.mxu0 %v7953_v1 }
0x20ac   :  { %7594 = vmatprep.subr.mxu1 %v7953_v1  ;;  %7558 = vmatpush3.msra.mxu0 %v5644_v54 }
0x20ad   :  { %7595 = vmatpush3.msra.mxu1 %v10259_v27  ;;  %7559 = vmatprep.subr.mxu0 %v7953_v1 }
0x20ae   :  { %7596 = vmatprep.subr.mxu1 %v7953_v1  ;;  %7560 = vmatpush3.msra.mxu0 %v5643_v29 }
0x20af   :  { %7597 = vmatpush3.msra.mxu1 %v10266_v3  ;;  %7561 = vmatprep.mubr.msk.f32.mxu0 %vm7954_vm0, %v7953_v1 }
0x20b0   :  { %7599 = vmatmul.mubr.msk.f32.vlgmr.msra.gmra.mxu1 %vm467_vm3, %v6498_v10  ;;  %7577 = vmatprep.subr.mxu0 %v7953_v1 }
0x20b1   :  { %7625 = vmatprep.subr.mxu1 %v7953_v1  ;;  %7633 = vmatprep.mubr.msk.f32.mxu1 %vm7954_vm0, %v7953_v1 }
0x20b2   :  { %7626 = vmatpush3.msra.mxu1 %v6510_v13 }
0x20b3   :  { %7627 = vmatprep.subr.mxu1 %v7953_v1 }
0x20b4   :  { %7628 = vmatpush3.msra.mxu1 %v6509_v7 }
0x20b5   :  { %7629 = vmatprep.subr.mxu1 %v7953_v1 }
0x20b6   :  { %7630 = vmatpush3.msra.mxu1 %v6508_v44 }
0x20b7   :  { %7631 = vmatprep.subr.mxu1 %v7953_v1 }
0x20b8   :  { %7632 = vmatpush3.msra.mxu1 %v6507_v5 }
0x2100   :  { %v6206_v18 = vpop.permute.xlu0 %6205 }
0x2101   :  { %v6199_v34 = vpop.permute.xlu1 %6198 }
0x2165   :  { %v5639_v39 = vpop.f32.mrf.mxu0 }
0x2166   :  { %7562 = vmatmul.mubr.msk.f32.vlgmr.msra.gmra.mxu0 %vm225_vm1, %v5639_v39  ;;  %v5800_v50 = vpop.f32.mrf.mxu1 }
0x2167   :  { %7578 = vmatpush3.msra.mxu0 %v6496_v47  ;;  %7585 = vmatprep.mubr.msk.f32.mxu0 %vm7954_vm0, %v7953_v1  ;;  %v7552_v31 = vpop.f32.mrf.mxu0 }
0x2168   :  { %7579 = vmatprep.subr.mxu0 %v7953_v1  ;;  %v7576_v21 = vpop.f32.mrf.mxu1 }
0x2169   :  { %7580 = vmatpush3.msra.mxu0 %v6495_v11 }
0x216a   :  { %7581 = vmatprep.subr.mxu0 %v7953_v1 }
0x216b   :  { %7582 = vmatpush3.msra.mxu0 %v6494_v38 }
0x216c   :  { %7583 = vmatprep.subr.mxu0 %v7953_v1 }
0x216d   :  { %7584 = vmatpush3.msra.mxu0 %v6493_v12 }
0x216e   :  { %7601 = vmatprep.subr.mxu0 %v7953_v1  ;;  %7586 = vmatmul.mubr.msk.f32.vlgmr.msra.gmra.mxu0 %vm225_vm1, %v5800_v50 }
0x216f   :  { %7602 = vmatpush3.msra.mxu0 %v6503_v60  ;;  %7609 = vmatprep.mubr.msk.f32.mxu0 %vm7954_vm0, %v7953_v1 }
0x2170   :  { %7603 = vmatprep.subr.mxu0 %v7953_v1  ;;  %v5956_v16 = vpop.f32.mrf.mxu1 }
0x2171   :  { %7604 = vmatpush3.msra.mxu0 %v6502_v51 }
0x2172   :  { %7605 = vmatprep.subr.mxu0 %v7953_v1  ;;  %v7600_v55 = vpop.f32.mrf.mxu1 }
0x2173   :  { %7606 = vmatpush3.msra.mxu0 %v6501_v22 }
0x2174   :  { %7607 = vmatprep.subr.mxu0 %v7953_v1 }
0x2175   :  { %7608 = vmatpush3.msra.mxu0 %v6500_v36 }
0x2176   :  { %7610 = vmatmul.mubr.msk.f32.vlgmr.msra.gmra.mxu0 %vm225_vm1, %v5956_v16  ;;  %7612 = vmatprep.subr.mxu0 %v7953_v1 }
0x2177   :  { %7613 = vmatpush3.msra.mxu0 %v10240_v42  ;;  %7622 = vmatprep.mubr.msk.f32.mxu0 %vm7954_vm0, %v7953_v1  ;;  %vm10545_vm0 = vcmask 64512  }
0x2178   :  { %7614 = vmatprep.subr.mxu0 %v7953_v1 }
0x2179   :  { %7615 = vmatpush3.msra.mxu0 %v10244_v14 }
0x217a   :  { %7616 = vmatprep.subr.mxu0 %v7953_v1 }
0x217b   :  { %7617 = vmatpush3.msra.mxu0 %v10251_v58 }
0x217c   :  { %7618 = vmatprep.subr.mxu0 %v7953_v1 }
0x217d   :  { %7619 = vmatpush3.msra.mxu0 %v10259_v27 }
0x217e   :  { %7620 = vmatprep.subr.mxu0 %v7953_v1  ;;  %v6490_v1 = vld [vmem:[%s10419_s22] ss:$0 sm:$0xff]  ;;  %s7931_s22 = scalar_lea.vmem %s6217_s2, 128 }
0x217f   :  { %7621 = vmatpush3.msra.mxu0 %v10266_v3  ;;  %p7932_p0 = scmp.ne.s32.totalorder %s6217_s2, %s7931_s22  ;;  %p7937_p2 = scmp.lt.s32.totalorder %s7931_s22, %s7931_s22 }
0x2180   :  { %7623 = vmatmul.mubr.msk.f32.vlgmr.msra.gmra.mxu0 %vm467_vm3, %v6505_v28 }
0x2181   :  { %p7938_p3 = por %p7937_p2, %p7936_p1 }
0x2183   :  { %p7939_p4 = pnand %p7938_p3, %p7932_p0 }
0x2226   :  { %v5716_v2 = vpop.f32.mrf.mxu0 }
0x2227   :  { %v5726_v49 = vadd.f32 %v6490_v1, %v5716_v2 }
0x2228   :  { %v7563_v20 = vpop.f32.mrf.mxu0 }
0x222e   :  { %v5878_v40 = vpop.f32.mrf.mxu0 }
0x222f   :  { %v5882_v62 = vadd.f32 %v5878_v40, %v5726_v49 }
0x2230   :  { %v7587_v48 = vpop.f32.mrf.mxu0 }
0x2236   :  { %v6034_v25 = vpop.f32.mrf.mxu0 }
0x2237   :  { %v6038_v33 = vadd.f32 %v6034_v25, %v5882_v62 }
0x2238   :  { %v7611_v24 = vpop.f32.mrf.mxu0 }
0x2240   :  { %v6112_v35 = vpop.f32.mrf.mxu0 }
0x2241   :  { %7634 = vmatmul.mubr.msk.f32.vlgmr.msra.gmra.mxu1 %vm225_vm1, %v6112_v35 }
0x2242   :  { %v7624_v52 = vpop.f32.mrf.mxu0 }
0x2301   :  { %v6190_v45 = vpop.f32.mrf.mxu1 }
0x2302   :  { %v6194_v0 = vadd.f32 %v6190_v45, %v6038_v33 }
0x2303   :  { %v7635_v43 = vpop.f32.mrf.mxu1 }
0x2304   :  { %v6201_v56 = vmul.f32 %v6199_v34, %v6194_v0 }
0x2306   :  { %v6208_v57 = vadd.f32 %v6206_v18, %v6201_v56 }
0x2308   :  { %6209 = vst.msk [vmem:[#allocation2] sm:$0xff] %vm10545_vm0, %v6208_v57 }
0x2309   :  { %7942 = shalt.err (!%p7939_p4)
}
0x230a   :  { %6219 = dma.vmem_to_hbm [thread:$0]  %s6217_s2, 128, %s10420_s23, [#allocation3]  }
0x230b   :  { %7951 = dma.done.wait [#allocation3], 128  }
0x230c   :  { %7952 = vsyncadd [#allocation3], 4294967168 }
0x230d   :  { %6223 = vsyncpa [#allocation3], 1 }

</bundles_post_ra>
